<compile_context>
chip_gen: v7x
topology: tpu7x:2x2x1
jax: 0.10.0
libtpu: 0.0.40
codegen_flags: <defaults>
</compile_context>

<pallas_src>
import functools

import jax
import jax.numpy as jnp
from jax import lax
from jax.experimental import pallas as pl
from jax.experimental.pallas import tpu as pltpu


def _round_up(x, m):
    return (x + m - 1) // m * m


# ---------------------------------------------------------------------------
# Fused ResnetBlock kernel
# ---------------------------------------------------------------------------

def _resblock_body(xp_ref, w1_ref, w2_ref, cb1_ref, g1_ref, be1_ref,
                   cb2_ref, g2_ref, be2_ref, M_ref, MT_ref, mask_ref,
                   scale_ref, shift_ref, wr_ref, br_ref, out_ref, h1pad_ref,
                   *, H, W, n_per_group, gn_eps):
    """One image per grid step.

    xp_ref   : (1, (H+3)*(W+2), Cin_p) bf16  zero-padded image, width-flattened
    w1/w2    : (9, Cin_p, C_p)/(9, C_p, C_p) bf16  tap-major, weight-standardized
    mask_ref : (H*(W+2), 1) f32   1 at valid rows, 0 at the 2 junk cols per row
    out_ref  : (1, H*(W+2), C_p) bf16  padded-width layout (wrapper slices)
    h1pad_ref: ((H+3)*(W+2), C_p) bf16 VMEM scratch: h1 staged with zero halo
    """
    Wp2 = W + 2
    HWp = H * Wp2
    NF = h1pad_ref.shape[0]
    base = Wp2 + 1                     # flat offset of output pixel (0, 0)
    mask = mask_ref[...]               # (HWp, 1) f32

    def conv3x3(load, w_ref):
        # Implicit GEMM: 9 shifted row windows x (Cin_p, C_p) bf16 matmuls,
        # accumulated in f32.  Junk rows are handled downstream.
        acc = jnp.dot(load(0), w_ref[0], preferred_element_type=jnp.float32)
        for tap in range(1, 9):
            dy, dx = divmod(tap, 3)
            acc = acc + jnp.dot(load(dy * Wp2 + dx), w_ref[tap],
                                preferred_element_type=jnp.float32)
        return acc

    def gn_mean_inv(y):
        # Masked single-pass stats; per-channel sums -> per-group via one-hot
        # matmuls (padded channels have zero rows in M -> never contaminate).
        ym = y * mask
        s1 = jnp.sum(ym, axis=0, keepdims=True)                   # (1, C_p)
        s2 = jnp.sum(ym * ym, axis=0, keepdims=True)
        gs1 = jnp.dot(s1, M_ref[...], preferred_element_type=jnp.float32)
        gs2 = jnp.dot(s2, M_ref[...], preferred_element_type=jnp.float32)
        mean_g = gs1 / n_per_group
        var_g = jnp.maximum(gs2 / n_per_group - mean_g * mean_g, 0.0)
        inv_g = lax.rsqrt(var_g + gn_eps)
        mean_c = jnp.dot(mean_g, MT_ref[...], preferred_element_type=jnp.float32)
        inv_c = jnp.dot(inv_g, MT_ref[...], preferred_element_type=jnp.float32)
        return mean_c, inv_c

    # ---- block1: conv3x3 + bias + GN + (scale+1, shift) + SiLU -------------
    y1 = conv3x3(lambda off: xp_ref[0, pl.ds(off, HWp), :], w1_ref) + cb1_ref[...]
    mean1, inv1 = gn_mean_inv(y1)
    sp1 = scale_ref[0] + 1.0                                      # (1, C_p)
    ig1 = inv1 * g1_ref[...]
    a1 = ig1 * sp1
    b1 = (be1_ref[...] - mean1 * ig1) * sp1 + shift_ref[0]
    h1 = y1 * a1 + b1                                             # fused affine
    h1 = h1 * jax.nn.sigmoid(h1)                                  # SiLU

    # Stage h1 in VMEM with a clean zero halo for block2's conv:
    #  - junk rows (which land on halo columns) are zeroed by the mask,
    #  - top/bottom halo rows are explicitly zeroed every step (scratch may
    #    hold stale data from a previous grid step / core).
    c_h = h1pad_ref.shape[1]
    h1pad_ref[pl.ds(base, HWp), :] = (h1 * mask).astype(h1pad_ref.dtype)
    h1pad_ref[pl.ds(0, base), :] = jnp.zeros((base, c_h), h1pad_ref.dtype)
    tail = NF - base - HWp
    h1pad_ref[pl.ds(base + HWp, tail), :] = jnp.zeros((tail, c_h),
                                                      h1pad_ref.dtype)

    # ---- block2: conv3x3 + bias + GN + SiLU ---------------------------------
    y2 = conv3x3(lambda off: h1pad_ref[pl.ds(off, HWp), :], w2_ref) + cb2_ref[...]
    mean2, inv2 = gn_mean_inv(y2)
    a2 = inv2 * g2_ref[...]
    b2 = be2_ref[...] - mean2 * a2
    h2 = y2 * a2 + b2
    h2 = h2 * jax.nn.sigmoid(h2)

    # ---- residual (identity or fused 1x1 conv) ------------------------------
    xres = xp_ref[0, pl.ds(base, HWp), :]                         # same layout
    if wr_ref is None:
        res = xres.astype(jnp.float32)
    else:
        res = jnp.dot(xres, wr_ref[...],
                      preferred_element_type=jnp.float32) + br_ref[...]
    out_ref[0] = (h2 + res).astype(out_ref.dtype)


def _resblock_kernel_proj(xp, w1, w2, cb1, g1, be1, cb2, g2, be2, M, MT, mask,
                          scale, shift, wr, br, out_ref, h1pad,
                          *, H, W, n_per_group, gn_eps):
    _resblock_body(xp, w1, w2, cb1, g1, be1, cb2, g2, be2, M, MT, mask,
                   scale, shift, wr, br, out_ref, h1pad,
                   H=H, W=W, n_per_group=n_per_group, gn_eps=gn_eps)


def _resblock_kernel_id(xp, w1, w2, cb1, g1, be1, cb2, g2, be2, M, MT, mask,
                        scale, shift, out_ref, h1pad,
                        *, H, W, n_per_group, gn_eps):
    _resblock_body(xp, w1, w2, cb1, g1, be1, cb2, g2, be2, M, MT, mask,
                   scale, shift, None, None, out_ref, h1pad,
                   H=H, W=W, n_per_group=n_per_group, gn_eps=gn_eps)


# ---------------------------------------------------------------------------
# pallas_call wrapper
# ---------------------------------------------------------------------------

def _full(shape):
    n = len(shape)
    return pl.BlockSpec(shape, lambda *_: (0,) * n)


def _compiler_params(step_bytes):
    kwargs = dict(dimension_semantics=("parallel",))
    try:
        cap = pltpu.get_tpu_info().vmem_capacity_bytes
    except Exception:
        cap = 128 * 1024 * 1024
    default_scoped = 32 * 1024 * 1024
    if step_bytes > default_scoped:
        # Chip-aware cap: never request more than ~85% of physical VMEM
        # (v7x has only 64 MiB / core).  Beyond that, re-tile (see TODO).
        kwargs["vmem_limit_bytes"] = int(min(step_bytes, 0.85 * cap))
    return pltpu.CompilerParams(**kwargs)


def _resnet_block_call(xp_flat, w1, w2, cb1, g1, be1, cb2, g2, be2, M, MT,
                       mask, scale, shift, wr, br, *, H, W, group_size):
    B, NF, cin_p = xp_flat.shape
    c_p = w1.shape[2]
    G = M.shape[1]
    Wp2 = W + 2
    HWp = H * Wp2
    identity = wr is None
    kern = _resblock_kernel_id if identity else _resblock_kernel_proj
    kernel = functools.partial(kern, H=H, W=W,
                               n_per_group=float(H * W * group_size),
                               gn_eps=1e-5)

    in_specs = [
        pl.BlockSpec((1, NF, cin_p), lambda i: (i, 0, 0)),       # padded image
        _full((9, cin_p, c_p)), _full((9, c_p, c_p)),            # conv weights
        _full((1, c_p)), _full((1, c_p)), _full((1, c_p)),       # b1, g1, be1
        _full((1, c_p)), _full((1, c_p)), _full((1, c_p)),       # b2, g2, be2
        _full((c_p, G)), _full((G, c_p)),                        # group one-hots
        _full((HWp, 1)),                                         # valid-row mask
        pl.BlockSpec((1, 1, c_p), lambda i: (i, 0, 0)),          # scale (per B)
        pl.BlockSpec((1, 1, c_p), lambda i: (i, 0, 0)),          # shift (per B)
    ]
    args = [xp_flat, w1, w2, cb1, g1, be1, cb2, g2, be2, M, MT, mask,
            scale, shift]
    if not identity:
        in_specs += [_full((cin_p, c_p)), _full((1, c_p))]
        args += [wr, br]

    # Honest per-step VMEM estimate: double-buffered blocks + scratch + f32
    # temporaries (conv accumulator / GN slabs).
    bf, f4 = 2, 4
    consts = ((9 * cin_p * c_p + 9 * c_p * c_p) * bf
              + (c_p * G + G * c_p) * f4 + 8 * c_p * f4 + HWp * 128 * f4)
    if not identity:
        consts += cin_p * c_p * bf + c_p * f4
    per_step = NF * cin_p * bf + HWp * c_p * bf + 2 * c_p * f4
    step_bytes = 2 * (consts + per_step) + NF * c_p * bf + 5 * HWp * c_p * f4

    return pl.pallas_call(
        kernel,
        out_shape=jax.ShapeDtypeStruct((B, HWp, c_p), jnp.bfloat16),
        grid=(B,),
        in_specs=in_specs,
        out_specs=pl.BlockSpec((1, HWp, c_p), lambda i: (i, 0, 0)),
        scratch_shapes=[pltpu.VMEM((NF, c_p), jnp.bfloat16)],
        compiler_params=_compiler_params(step_bytes),
    )(*args)


# ---------------------------------------------------------------------------
# JAX glue: weight standardization, padding, parameter packing
# ---------------------------------------------------------------------------

def _weight_standardize(w, eps):
    m = jnp.mean(w, axis=(1, 2, 3), keepdims=True)
    v = jnp.var(w, axis=(1, 2, 3), keepdims=True)            # unbiased=False
    return (w - m) / jnp.sqrt(v + eps)


def _prep_conv3x3(w_oihw, cin_p, cout_p, ws_eps):
    # (O, I, 3, 3): standardize in f32, pad, tap-major (9, Cin_p, Cout_p) bf16.
    w = _weight_standardize(w_oihw.astype(jnp.float32), ws_eps)
    w = jnp.transpose(w, (2, 3, 1, 0))                        # (ky, kx, I, O)
    w = jnp.pad(w, ((0, 0), (0, 0),
                    (0, cin_p - w.shape[2]), (0, cout_p - w.shape[3])))
    return w.reshape(9, cin_p, cout_p).astype(jnp.bfloat16)


def _pad_row(v, c_p):
    v = v.astype(jnp.float32)
    return jnp.pad(v, (0, c_p - v.shape[0]))[None, :]


def resnet_block_forward(params, x_nchw, time_emb, *, groups):
    x = jnp.transpose(x_nchw, (0, 2, 3, 1)).astype(jnp.float32)       # NHWC
    B, H, W, Cin = x.shape
    C = params["w1"].shape[0]
    cg = C // groups
    cin_p = _round_up(Cin, 128)
    c_p = _round_up(C, 128)
    Wp2 = W + 2
    NF = (H + 3) * Wp2                 # +1 top halo row, +2 bottom (slack for taps)
    HWp = H * Wp2
    ws_eps = 1e-5                      # x.dtype == float32

    w1 = _prep_conv3x3(params["w1"], cin_p, c_p, ws_eps)
    w2 = _prep_conv3x3(params["w2"], c_p, c_p, ws_eps)

    # One-hot (C_p, G) group-assignment matrix (padded channels -> no group).
    ch = jnp.arange(c_p)
    M = (((ch[:, None] // cg) == jnp.arange(groups)[None, :])
         & (ch[:, None] < C)).astype(jnp.float32)
    MT = M.T

    # Valid-row mask in the padded-width layout (cols W, W+1 of each row = junk).
    mask = ((jnp.arange(HWp) % Wp2) < W).astype(jnp.float32)[:, None]

    # Time-embedding MLP hoisted out of the kernel: SiLU(t) @ W.T + b.
    t = time_emb.astype(jnp.float32)
    t = t * jax.nn.sigmoid(t)
    te2 = jnp.dot(t, params["mlp_w"].astype(jnp.float32).T,
                  precision="highest") + params["mlp_b"].astype(jnp.float32)
    scale = jnp.pad(te2[:, :C], ((0, 0), (0, c_p - C)))[:, None, :]
    shift = jnp.pad(te2[:, C:], ((0, 0), (0, c_p - C)))[:, None, :]

    # Zero-padded (spatial + channel) image, width-flattened, bf16.
    xp = jnp.pad(x, ((0, 0), (1, 2), (1, 1), (0, cin_p - Cin)))
    xp_flat = xp.reshape(B, NF, cin_p).astype(jnp.bfloat16)

    if Cin == C and params.get("wr") is None:                 # Identity residual
        wr_p, br_p = None, None
    else:
        wr = params["wr"][:, :, 0, 0].astype(jnp.float32).T   # (Cin, C)
        wr_p = jnp.pad(wr, ((0, cin_p - Cin), (0, c_p - C))).astype(jnp.bfloat16)
        br_p = _pad_row(params["br"], c_p)

    out = _resnet_block_call(
        xp_flat, w1, w2,
        _pad_row(params["b1"], c_p), _pad_row(params["g1"], c_p),
        _pad_row(params["be1"], c_p),
        _pad_row(params["b2"], c_p), _pad_row(params["g2"], c_p),
        _pad_row(params["be2"], c_p),
        M, MT, mask, scale, shift, wr_p, br_p,
        H=H, W=W, group_size=cg)

    out = out.reshape(B, H, Wp2, c_p)[:, :, :W, :C].astype(jnp.float32)
    return jnp.transpose(out, (0, 3, 1, 2))                   # back to NCHW


# ---------------------------------------------------------------------------
# Pure-JAX reference (mirrors the PyTorch module, NCHW, f32)
# ---------------------------------------------------------------------------

def resnet_block_reference(params, x, time_emb, *, groups):
    def silu(v):
        return v * jax.nn.sigmoid(v)

    def conv(v, w, b, pad):
        y = lax.conv_general_dilated(
            v, w, window_strides=(1, 1), padding=[(pad, pad), (pad, pad)],
            dimension_numbers=("NCHW", "OIHW", "NCHW"), precision="highest")
        return y + b[None, :, None, None]

    def group_norm(v, gamma, beta, eps=1e-5):
        B, C, H, W = v.shape
        vr = v.reshape(B, groups, C // groups, H, W)
        m = vr.mean(axis=(2, 3, 4), keepdims=True)
        var = vr.var(axis=(2, 3, 4), keepdims=True)
        vn = ((vr - m) / jnp.sqrt(var + eps)).reshape(B, C, H, W)
        return vn * gamma[None, :, None, None] + beta[None, :, None, None]

    C = params["w1"].shape[0]
    te = jnp.dot(silu(time_emb), params["mlp_w"].T,
                 precision="highest") + params["mlp_b"]
    scale = te[:, :C][:, :, None, None]
    shift = te[:, C:][:, :, None, None]

    h = conv(x, _weight_standardize(params["w1"], 1e-5), params["b1"], 1)
    h = group_norm(h, params["g1"], params["be1"])
    h = h * (scale + 1.0) + shift
    h = silu(h)

    h = conv(h, _weight_standardize(params["w2"], 1e-5), params["b2"], 1)
    h = group_norm(h, params["g2"], params["be2"])
    h = silu(h)

    if params.get("wr") is None:
        res = x
    else:
        res = conv(x, params["wr"], params["br"], 0)
    return h + res


# ---------------------------------------------------------------------------

if __name__ == "__main__":
    def make_params(key, dim, dim_out, t_dim, with_res):
        ks = jax.random.split(key, 12)
        p = {
            "w1": 0.3 * jax.random.normal(ks[0], (dim_out, dim, 3, 3), jnp.float32),
            "b1": 0.1 * jax.random.normal(ks[1], (dim_out,), jnp.float32),
            "g1": 1.0 + 0.1 * jax.random.normal(ks[2], (dim_out,), jnp.float32),
            "be1": 0.1 * jax.random.normal(ks[3], (dim_out,), jnp.float32),
            "w2": 0.3 * jax.random.normal(ks[4], (dim_out, dim_out, 3, 3), jnp.float32),
            "b2": 0.1 * jax.random.normal(ks[5], (dim_out,), jnp.float32),
            "g2": 1.0 + 0.1 * jax.random.normal(ks[6], (dim_out,), jnp.float32),
            "be2": 0.1 * jax.random.normal(ks[7], (dim_out,), jnp.float32),
            "mlp_w": 0.2 * jax.random.normal(ks[8], (2 * dim_out, t_dim), jnp.float32),
            "mlp_b": 0.1 * jax.random.normal(ks[9], (2 * dim_out,), jnp.float32),
        }
        if with_res:
            p["wr"] = 0.3 * jax.random.normal(ks[10], (dim_out, dim, 1, 1), jnp.float32)
            p["br"] = 0.1 * jax.random.normal(ks[11], (dim_out,), jnp.float32)
        return p

    groups, t_dim, B, H, W = 8, 32, 2, 16, 16
    key = jax.random.PRNGKey(0)
    k0, k1, k2, k3, k4, k5 = jax.random.split(key, 6)
    fwd = jax.jit(functools.partial(resnet_block_forward, groups=groups))

    # Case 1: dim != dim_out -> fused 1x1 residual conv.
    dim, dim_out = 4, 8
    x = jax.random.normal(k0, (B, dim, H, W), jnp.float32)
    temb = jax.random.normal(k1, (B, t_dim), jnp.float32)
    p = make_params(k2, dim, dim_out, t_dim, with_res=True)
    out = jax.block_until_ready(fwd(p, x, temb))
    ref = resnet_block_reference(p, x, temb, groups=groups)
    assert out.shape == (B, dim_out, H, W), out.shape
    err = float(jnp.max(jnp.abs(out - ref)))
    tol = 0.05 + 0.03 * float(jnp.max(jnp.abs(ref)))
    if err > tol:
        raise AssertionError(f"proj-residual mismatch: max abs err {err} > {tol}")

    # Case 2: dim == dim_out -> identity residual.
    x2 = jax.random.normal(k3, (B, dim_out, H, W), jnp.float32)
    temb2 = jax.random.normal(k4, (B, t_dim), jnp.float32)
    p2 = make_params(k5, dim_out, dim_out, t_dim, with_res=False)
    out2 = jax.block_until_ready(fwd(p2, x2, temb2))
    ref2 = resnet_block_reference(p2, x2, temb2, groups=groups)
    assert out2.shape == (B, dim_out, H, W), out2.shape
    err2 = float(jnp.max(jnp.abs(out2 - ref2)))
    tol2 = 0.05 + 0.03 * float(jnp.max(jnp.abs(ref2)))
    if err2 > tol2:
        raise AssertionError(f"identity-residual mismatch: max abs err {err2} > {tol2}")

    print("KERNEL_OK")
</pallas_src>

<mosaic_0001>
module attributes {stable_mosaic.version = 11 : i64} {
  func.func @_resblock_kernel_proj(%arg0: i32, %arg1: memref<1x342x128xbf16, #tpu.memory_space<vmem>>, %arg2: memref<9x128x128xbf16, #tpu.memory_space<vmem>>, %arg3: memref<9x128x128xbf16, #tpu.memory_space<vmem>>, %arg4: memref<1x128xf32, #tpu.memory_space<vmem>>, %arg5: memref<1x128xf32, #tpu.memory_space<vmem>>, %arg6: memref<1x128xf32, #tpu.memory_space<vmem>>, %arg7: memref<1x128xf32, #tpu.memory_space<vmem>>, %arg8: memref<1x128xf32, #tpu.memory_space<vmem>>, %arg9: memref<1x128xf32, #tpu.memory_space<vmem>>, %arg10: memref<128x8xf32, #tpu.memory_space<vmem>>, %arg11: memref<8x128xf32, #tpu.memory_space<vmem>>, %arg12: memref<288x1xf32, #tpu.memory_space<vmem>>, %arg13: memref<1x1x128xf32, #tpu.memory_space<vmem>>, %arg14: memref<1x1x128xf32, #tpu.memory_space<vmem>>, %arg15: memref<128x128xbf16, #tpu.memory_space<vmem>>, %arg16: memref<1x128xf32, #tpu.memory_space<vmem>>, %arg17: memref<1x288x128xbf16, #tpu.memory_space<vmem>>, %arg18: memref<342x128xbf16, #tpu.memory_space<vmem>>) attributes {dimension_semantics = [#tpu.dimension_semantics<parallel>], iteration_bounds = array<i64: 2>, scalar_prefetch = 0 : i64, scratch_operands = 1 : i64, tpu.core_type = #tpu.core_type<tc>, window_params = [{transform_indices = @transform_0, window_bounds = array<i64: 1, 342, 128>}, {pipeline_mode = #tpu.pipeline_mode<synchronous>, transform_indices = @transform_1, window_bounds = array<i64: 9, 128, 128>}, {pipeline_mode = #tpu.pipeline_mode<synchronous>, transform_indices = @transform_2, window_bounds = array<i64: 9, 128, 128>}, {pipeline_mode = #tpu.pipeline_mode<synchronous>, transform_indices = @transform_3, window_bounds = array<i64: 1, 128>}, {pipeline_mode = #tpu.pipeline_mode<synchronous>, transform_indices = @transform_4, window_bounds = array<i64: 1, 128>}, {pipeline_mode = #tpu.pipeline_mode<synchronous>, transform_indices = @transform_5, window_bounds = array<i64: 1, 128>}, {pipeline_mode = #tpu.pipeline_mode<synchronous>, transform_indices = @transform_6, window_bounds = array<i64: 1, 128>}, {pipeline_mode = #tpu.pipeline_mode<synchronous>, transform_indices = @transform_7, window_bounds = array<i64: 1, 128>}, {pipeline_mode = #tpu.pipeline_mode<synchronous>, transform_indices = @transform_8, window_bounds = array<i64: 1, 128>}, {pipeline_mode = #tpu.pipeline_mode<synchronous>, transform_indices = @transform_9, window_bounds = array<i64: 128, 8>}, {pipeline_mode = #tpu.pipeline_mode<synchronous>, transform_indices = @transform_10, window_bounds = array<i64: 8, 128>}, {pipeline_mode = #tpu.pipeline_mode<synchronous>, transform_indices = @transform_11, window_bounds = array<i64: 288, 1>}, {transform_indices = @transform_12, window_bounds = array<i64: 1, 1, 128>}, {transform_indices = @transform_13, window_bounds = array<i64: 1, 1, 128>}, {pipeline_mode = #tpu.pipeline_mode<synchronous>, transform_indices = @transform_14, window_bounds = array<i64: 128, 128>}, {pipeline_mode = #tpu.pipeline_mode<synchronous>, transform_indices = @transform_15, window_bounds = array<i64: 1, 128>}, {transform_indices = @transform_16, window_bounds = array<i64: 1, 288, 128>}]} {
    %c0 = arith.constant 0 : index
    %c0_0 = arith.constant 0 : index
    %0 = vector.load %arg12[%c0, %c0_0] : memref<288x1xf32, #tpu.memory_space<vmem>>, vector<288x1xf32>
    %c0_1 = arith.constant 0 : index
    %c0_2 = arith.constant 0 : index
    %c0_3 = arith.constant 0 : index
    %1 = vector.load %arg1[%c0_1, %c0_2, %c0_3] : memref<1x342x128xbf16, #tpu.memory_space<vmem>>, vector<1x288x128xbf16>
    %2 = vector.shape_cast %1 : vector<1x288x128xbf16> to vector<288x128xbf16>
    %c0_4 = arith.constant 0 : index
    %c0_5 = arith.constant 0 : index
    %c0_6 = arith.constant 0 : index
    %3 = vector.load %arg2[%c0_4, %c0_5, %c0_6] : memref<9x128x128xbf16, #tpu.memory_space<vmem>>, vector<1x128x128xbf16>
    %4 = vector.shape_cast %3 : vector<1x128x128xbf16> to vector<128x128xbf16>
    %cst = arith.constant dense<0.000000e+00> : vector<288x128xf32>
    %5 = tpu.matmul %2, %4, %cst {dimension_numbers = #tpu.dot_dimension_numbers<[1], [0], [0], [1], [0, 0, 1, 1], [], []>} : vector<288x128xbf16>, vector<128x128xbf16>, vector<288x128xf32> -> vector<288x128xf32>
    %c0_7 = arith.constant 0 : index
    %c1 = arith.constant 1 : index
    %c0_8 = arith.constant 0 : index
    %6 = vector.load %arg1[%c0_7, %c1, %c0_8] : memref<1x342x128xbf16, #tpu.memory_space<vmem>>, vector<1x288x128xbf16>
    %7 = vector.shape_cast %6 : vector<1x288x128xbf16> to vector<288x128xbf16>
    %c1_9 = arith.constant 1 : index
    %c0_10 = arith.constant 0 : index
    %c0_11 = arith.constant 0 : index
    %8 = vector.load %arg2[%c1_9, %c0_10, %c0_11] : memref<9x128x128xbf16, #tpu.memory_space<vmem>>, vector<1x128x128xbf16>
    %9 = vector.shape_cast %8 : vector<1x128x128xbf16> to vector<128x128xbf16>
    %cst_12 = arith.constant dense<0.000000e+00> : vector<288x128xf32>
    %10 = tpu.matmul %7, %9, %cst_12 {dimension_numbers = #tpu.dot_dimension_numbers<[1], [0], [0], [1], [0, 0, 1, 1], [], []>} : vector<288x128xbf16>, vector<128x128xbf16>, vector<288x128xf32> -> vector<288x128xf32>
    %11 = arith.addf %5, %10 : vector<288x128xf32>
    %c0_13 = arith.constant 0 : index
    %c2 = arith.constant 2 : index
    %c0_14 = arith.constant 0 : index
    %12 = vector.load %arg1[%c0_13, %c2, %c0_14] : memref<1x342x128xbf16, #tpu.memory_space<vmem>>, vector<1x288x128xbf16>
    %13 = vector.shape_cast %12 : vector<1x288x128xbf16> to vector<288x128xbf16>
    %c2_15 = arith.constant 2 : index
    %c0_16 = arith.constant 0 : index
    %c0_17 = arith.constant 0 : index
    %14 = vector.load %arg2[%c2_15, %c0_16, %c0_17] : memref<9x128x128xbf16, #tpu.memory_space<vmem>>, vector<1x128x128xbf16>
    %15 = vector.shape_cast %14 : vector<1x128x128xbf16> to vector<128x128xbf16>
    %cst_18 = arith.constant dense<0.000000e+00> : vector<288x128xf32>
    %16 = tpu.matmul %13, %15, %cst_18 {dimension_numbers = #tpu.dot_dimension_numbers<[1], [0], [0], [1], [0, 0, 1, 1], [], []>} : vector<288x128xbf16>, vector<128x128xbf16>, vector<288x128xf32> -> vector<288x128xf32>
    %17 = arith.addf %11, %16 : vector<288x128xf32>
    %c0_19 = arith.constant 0 : index
    %c18 = arith.constant 18 : index
    %c0_20 = arith.constant 0 : index
    %18 = vector.load %arg1[%c0_19, %c18, %c0_20] : memref<1x342x128xbf16, #tpu.memory_space<vmem>>, vector<1x288x128xbf16>
    %19 = vector.shape_cast %18 : vector<1x288x128xbf16> to vector<288x128xbf16>
    %c3 = arith.constant 3 : index
    %c0_21 = arith.constant 0 : index
    %c0_22 = arith.constant 0 : index
    %20 = vector.load %arg2[%c3, %c0_21, %c0_22] : memref<9x128x128xbf16, #tpu.memory_space<vmem>>, vector<1x128x128xbf16>
    %21 = vector.shape_cast %20 : vector<1x128x128xbf16> to vector<128x128xbf16>
    %cst_23 = arith.constant dense<0.000000e+00> : vector<288x128xf32>
    %22 = tpu.matmul %19, %21, %cst_23 {dimension_numbers = #tpu.dot_dimension_numbers<[1], [0], [0], [1], [0, 0, 1, 1], [], []>} : vector<288x128xbf16>, vector<128x128xbf16>, vector<288x128xf32> -> vector<288x128xf32>
    %23 = arith.addf %17, %22 : vector<288x128xf32>
    %c0_24 = arith.constant 0 : index
    %c19 = arith.constant 19 : index
    %c0_25 = arith.constant 0 : index
    %24 = vector.load %arg1[%c0_24, %c19, %c0_25] : memref<1x342x128xbf16, #tpu.memory_space<vmem>>, vector<1x288x128xbf16>
    %25 = vector.shape_cast %24 : vector<1x288x128xbf16> to vector<288x128xbf16>
    %c4 = arith.constant 4 : index
    %c0_26 = arith.constant 0 : index
    %c0_27 = arith.constant 0 : index
    %26 = vector.load %arg2[%c4, %c0_26, %c0_27] : memref<9x128x128xbf16, #tpu.memory_space<vmem>>, vector<1x128x128xbf16>
    %27 = vector.shape_cast %26 : vector<1x128x128xbf16> to vector<128x128xbf16>
    %cst_28 = arith.constant dense<0.000000e+00> : vector<288x128xf32>
    %28 = tpu.matmul %25, %27, %cst_28 {dimension_numbers = #tpu.dot_dimension_numbers<[1], [0], [0], [1], [0, 0, 1, 1], [], []>} : vector<288x128xbf16>, vector<128x128xbf16>, vector<288x128xf32> -> vector<288x128xf32>
    %29 = arith.addf %23, %28 : vector<288x128xf32>
    %c0_29 = arith.constant 0 : index
    %c20 = arith.constant 20 : index
    %c0_30 = arith.constant 0 : index
    %30 = vector.load %arg1[%c0_29, %c20, %c0_30] : memref<1x342x128xbf16, #tpu.memory_space<vmem>>, vector<1x288x128xbf16>
    %31 = vector.shape_cast %30 : vector<1x288x128xbf16> to vector<288x128xbf16>
    %c5 = arith.constant 5 : index
    %c0_31 = arith.constant 0 : index
    %c0_32 = arith.constant 0 : index
    %32 = vector.load %arg2[%c5, %c0_31, %c0_32] : memref<9x128x128xbf16, #tpu.memory_space<vmem>>, vector<1x128x128xbf16>
    %33 = vector.shape_cast %32 : vector<1x128x128xbf16> to vector<128x128xbf16>
    %cst_33 = arith.constant dense<0.000000e+00> : vector<288x128xf32>
    %34 = tpu.matmul %31, %33, %cst_33 {dimension_numbers = #tpu.dot_dimension_numbers<[1], [0], [0], [1], [0, 0, 1, 1], [], []>} : vector<288x128xbf16>, vector<128x128xbf16>, vector<288x128xf32> -> vector<288x128xf32>
    %35 = arith.addf %29, %34 : vector<288x128xf32>
    %c0_34 = arith.constant 0 : index
    %c36 = arith.constant 36 : index
    %c0_35 = arith.constant 0 : index
    %36 = vector.load %arg1[%c0_34, %c36, %c0_35] : memref<1x342x128xbf16, #tpu.memory_space<vmem>>, vector<1x288x128xbf16>
    %37 = vector.shape_cast %36 : vector<1x288x128xbf16> to vector<288x128xbf16>
    %c6 = arith.constant 6 : index
    %c0_36 = arith.constant 0 : index
    %c0_37 = arith.constant 0 : index
    %38 = vector.load %arg2[%c6, %c0_36, %c0_37] : memref<9x128x128xbf16, #tpu.memory_space<vmem>>, vector<1x128x128xbf16>
    %39 = vector.shape_cast %38 : vector<1x128x128xbf16> to vector<128x128xbf16>
    %cst_38 = arith.constant dense<0.000000e+00> : vector<288x128xf32>
    %40 = tpu.matmul %37, %39, %cst_38 {dimension_numbers = #tpu.dot_dimension_numbers<[1], [0], [0], [1], [0, 0, 1, 1], [], []>} : vector<288x128xbf16>, vector<128x128xbf16>, vector<288x128xf32> -> vector<288x128xf32>
    %41 = arith.addf %35, %40 : vector<288x128xf32>
    %c0_39 = arith.constant 0 : index
    %c37 = arith.constant 37 : index
    %c0_40 = arith.constant 0 : index
    %42 = vector.load %arg1[%c0_39, %c37, %c0_40] : memref<1x342x128xbf16, #tpu.memory_space<vmem>>, vector<1x288x128xbf16>
    %43 = vector.shape_cast %42 : vector<1x288x128xbf16> to vector<288x128xbf16>
    %c7 = arith.constant 7 : index
    %c0_41 = arith.constant 0 : index
    %c0_42 = arith.constant 0 : index
    %44 = vector.load %arg2[%c7, %c0_41, %c0_42] : memref<9x128x128xbf16, #tpu.memory_space<vmem>>, vector<1x128x128xbf16>
    %45 = vector.shape_cast %44 : vector<1x128x128xbf16> to vector<128x128xbf16>
    %cst_43 = arith.constant dense<0.000000e+00> : vector<288x128xf32>
    %46 = tpu.matmul %43, %45, %cst_43 {dimension_numbers = #tpu.dot_dimension_numbers<[1], [0], [0], [1], [0, 0, 1, 1], [], []>} : vector<288x128xbf16>, vector<128x128xbf16>, vector<288x128xf32> -> vector<288x128xf32>
    %47 = arith.addf %41, %46 : vector<288x128xf32>
    %c0_44 = arith.constant 0 : index
    %c38 = arith.constant 38 : index
    %c0_45 = arith.constant 0 : index
    %48 = vector.load %arg1[%c0_44, %c38, %c0_45] : memref<1x342x128xbf16, #tpu.memory_space<vmem>>, vector<1x288x128xbf16>
    %49 = vector.shape_cast %48 : vector<1x288x128xbf16> to vector<288x128xbf16>
    %c8 = arith.constant 8 : index
    %c0_46 = arith.constant 0 : index
    %c0_47 = arith.constant 0 : index
    %50 = vector.load %arg2[%c8, %c0_46, %c0_47] : memref<9x128x128xbf16, #tpu.memory_space<vmem>>, vector<1x128x128xbf16>
    %51 = vector.shape_cast %50 : vector<1x128x128xbf16> to vector<128x128xbf16>
    %cst_48 = arith.constant dense<0.000000e+00> : vector<288x128xf32>
    %52 = tpu.matmul %49, %51, %cst_48 {dimension_numbers = #tpu.dot_dimension_numbers<[1], [0], [0], [1], [0, 0, 1, 1], [], []>} : vector<288x128xbf16>, vector<128x128xbf16>, vector<288x128xf32> -> vector<288x128xf32>
    %53 = arith.addf %47, %52 : vector<288x128xf32>
    %c0_49 = arith.constant 0 : index
    %c0_50 = arith.constant 0 : index
    %54 = vector.load %arg4[%c0_49, %c0_50] : memref<1x128xf32, #tpu.memory_space<vmem>>, vector<1x128xf32>
    %55 = vector.broadcast %54 : vector<1x128xf32> to vector<288x128xf32>
    %56 = arith.addf %53, %55 : vector<288x128xf32>
    %57 = vector.broadcast %0 : vector<288x1xf32> to vector<288x128xf32>
    %58 = arith.mulf %56, %57 : vector<288x128xf32>
    %cst_51 = arith.constant dense<0.000000e+00> : vector<128xf32>
    %59 = vector.multi_reduction <add>, %58, %cst_51 [0] : vector<288x128xf32> to vector<128xf32>
    %60 = vector.shape_cast %59 : vector<128xf32> to vector<1x128xf32>
    %61 = arith.mulf %58, %58 : vector<288x128xf32>
    %cst_52 = arith.constant dense<0.000000e+00> : vector<128xf32>
    %62 = vector.multi_reduction <add>, %61, %cst_52 [0] : vector<288x128xf32> to vector<128xf32>
    %63 = vector.shape_cast %62 : vector<128xf32> to vector<1x128xf32>
    %c0_53 = arith.constant 0 : index
    %c0_54 = arith.constant 0 : index
    %64 = vector.load %arg10[%c0_53, %c0_54] : memref<128x8xf32, #tpu.memory_space<vmem>>, vector<128x8xf32>
    %cst_55 = arith.constant dense<0.000000e+00> : vector<1x8xf32>
    %65 = tpu.matmul %60, %64, %cst_55 {dimension_numbers = #tpu.dot_dimension_numbers<[1], [0], [0], [1], [0, 0, 1, 1], [], []>} : vector<1x128xf32>, vector<128x8xf32>, vector<1x8xf32> -> vector<1x8xf32>
    %c0_56 = arith.constant 0 : index
    %c0_57 = arith.constant 0 : index
    %66 = vector.load %arg10[%c0_56, %c0_57] : memref<128x8xf32, #tpu.memory_space<vmem>>, vector<128x8xf32>
    %cst_58 = arith.constant dense<0.000000e+00> : vector<1x8xf32>
    %67 = tpu.matmul %63, %66, %cst_58 {dimension_numbers = #tpu.dot_dimension_numbers<[1], [0], [0], [1], [0, 0, 1, 1], [], []>} : vector<1x128xf32>, vector<128x8xf32>, vector<1x8xf32> -> vector<1x8xf32>
    %cst_59 = arith.constant 2.560000e+02 : f32
    %68 = vector.broadcast %cst_59 : f32 to vector<1x8xf32>
    %69 = arith.divf %65, %68 : vector<1x8xf32>
    %cst_60 = arith.constant 2.560000e+02 : f32
    %70 = vector.broadcast %cst_60 : f32 to vector<1x8xf32>
    %71 = arith.divf %67, %70 : vector<1x8xf32>
    %72 = arith.mulf %69, %69 : vector<1x8xf32>
    %73 = arith.subf %71, %72 : vector<1x8xf32>
    %cst_61 = arith.constant 0.000000e+00 : f32
    %74 = vector.broadcast %cst_61 : f32 to vector<1x8xf32>
    %75 = arith.maximumf %73, %74 : vector<1x8xf32>
    %cst_62 = arith.constant 9.99999974E-6 : f32
    %76 = vector.broadcast %cst_62 : f32 to vector<1x8xf32>
    %77 = arith.addf %75, %76 : vector<1x8xf32>
    %78 = math.rsqrt %77 : vector<1x8xf32>
    %c0_63 = arith.constant 0 : index
    %c0_64 = arith.constant 0 : index
    %79 = vector.load %arg11[%c0_63, %c0_64] : memref<8x128xf32, #tpu.memory_space<vmem>>, vector<8x128xf32>
    %cst_65 = arith.constant dense<0.000000e+00> : vector<1x128xf32>
    %80 = tpu.matmul %69, %79, %cst_65 {dimension_numbers = #tpu.dot_dimension_numbers<[1], [0], [0], [1], [0, 0, 1, 1], [], []>} : vector<1x8xf32>, vector<8x128xf32>, vector<1x128xf32> -> vector<1x128xf32>
    %c0_66 = arith.constant 0 : index
    %c0_67 = arith.constant 0 : index
    %81 = vector.load %arg11[%c0_66, %c0_67] : memref<8x128xf32, #tpu.memory_space<vmem>>, vector<8x128xf32>
    %cst_68 = arith.constant dense<0.000000e+00> : vector<1x128xf32>
    %82 = tpu.matmul %78, %81, %cst_68 {dimension_numbers = #tpu.dot_dimension_numbers<[1], [0], [0], [1], [0, 0, 1, 1], [], []>} : vector<1x8xf32>, vector<8x128xf32>, vector<1x128xf32> -> vector<1x128xf32>
    %c0_69 = arith.constant 0 : index
    %c0_70 = arith.constant 0 : index
    %c0_71 = arith.constant 0 : index
    %83 = vector.load %arg13[%c0_69, %c0_70, %c0_71] : memref<1x1x128xf32, #tpu.memory_space<vmem>>, vector<1x1x128xf32>
    %84 = vector.shape_cast %83 : vector<1x1x128xf32> to vector<1x128xf32>
    %cst_72 = arith.constant 1.000000e+00 : f32
    %85 = vector.broadcast %cst_72 : f32 to vector<1x128xf32>
    %86 = arith.addf %84, %85 : vector<1x128xf32>
    %c0_73 = arith.constant 0 : index
    %c0_74 = arith.constant 0 : index
    %87 = vector.load %arg5[%c0_73, %c0_74] : memref<1x128xf32, #tpu.memory_space<vmem>>, vector<1x128xf32>
    %88 = arith.mulf %82, %87 : vector<1x128xf32>
    %89 = arith.mulf %88, %86 : vector<1x128xf32>
    %c0_75 = arith.constant 0 : index
    %c0_76 = arith.constant 0 : index
    %90 = vector.load %arg6[%c0_75, %c0_76] : memref<1x128xf32, #tpu.memory_space<vmem>>, vector<1x128xf32>
    %91 = arith.mulf %80, %88 : vector<1x128xf32>
    %92 = arith.subf %90, %91 : vector<1x128xf32>
    %93 = arith.mulf %92, %86 : vector<1x128xf32>
    %c0_77 = arith.constant 0 : index
    %c0_78 = arith.constant 0 : index
    %c0_79 = arith.constant 0 : index
    %94 = vector.load %arg14[%c0_77, %c0_78, %c0_79] : memref<1x1x128xf32, #tpu.memory_space<vmem>>, vector<1x1x128xf32>
    %95 = vector.shape_cast %94 : vector<1x1x128xf32> to vector<1x128xf32>
    %96 = arith.addf %93, %95 : vector<1x128xf32>
    %97 = vector.broadcast %89 : vector<1x128xf32> to vector<288x128xf32>
    %98 = arith.mulf %56, %97 : vector<288x128xf32>
    %99 = vector.broadcast %96 : vector<1x128xf32> to vector<288x128xf32>
    %100 = arith.addf %98, %99 : vector<288x128xf32>
    %101 = arith.negf %100 : vector<288x128xf32>
    %102 = math.exp %101 : vector<288x128xf32>
    %cst_80 = arith.constant 1.000000e+00 : f32
    %103 = vector.broadcast %cst_80 : f32 to vector<288x128xf32>
    %104 = arith.addf %103, %102 : vector<288x128xf32>
    %105 = arith.divf %103, %104 : vector<288x128xf32>
    %106 = arith.mulf %100, %105 : vector<288x128xf32>
    %107 = vector.broadcast %0 : vector<288x1xf32> to vector<288x128xf32>
    %108 = arith.mulf %106, %107 : vector<288x128xf32>
    %109 = arith.truncf %108 : vector<288x128xf32> to vector<288x128xbf16>
    %c19_81 = arith.constant 19 : index
    %c0_82 = arith.constant 0 : index
    %110 = vector.load %arg18[%c19_81, %c0_82] : memref<342x128xbf16, #tpu.memory_space<vmem>>, vector<288x128xbf16>
    tpu.vector_store %arg18[%c19_81, %c0_82], %109 {strides = array<i32>} : memref<342x128xbf16, #tpu.memory_space<vmem>>, vector<288x128xbf16>,
    %cst_83 = arith.constant 0.000000e+00 : bf16
    %111 = vector.broadcast %cst_83 : bf16 to vector<19x128xbf16>
    %c0_84 = arith.constant 0 : index
    %c0_85 = arith.constant 0 : index
    %112 = vector.load %arg18[%c0_84, %c0_85] : memref<342x128xbf16, #tpu.memory_space<vmem>>, vector<19x128xbf16>
    tpu.vector_store %arg18[%c0_84, %c0_85], %111 {strides = array<i32>} : memref<342x128xbf16, #tpu.memory_space<vmem>>, vector<19x128xbf16>,
    %cst_86 = arith.constant 0.000000e+00 : bf16
    %113 = vector.broadcast %cst_86 : bf16 to vector<35x128xbf16>
    %c307 = arith.constant 307 : index
    %c0_87 = arith.constant 0 : index
    %114 = vector.load %arg18[%c307, %c0_87] : memref<342x128xbf16, #tpu.memory_space<vmem>>, vector<35x128xbf16>
    tpu.vector_store %arg18[%c307, %c0_87], %113 {strides = array<i32>} : memref<342x128xbf16, #tpu.memory_space<vmem>>, vector<35x128xbf16>,
    %c0_88 = arith.constant 0 : index
    %c0_89 = arith.constant 0 : index
    %115 = vector.load %arg18[%c0_88, %c0_89] : memref<342x128xbf16, #tpu.memory_space<vmem>>, vector<288x128xbf16>
    %c0_90 = arith.constant 0 : index
    %c0_91 = arith.constant 0 : index
    %c0_92 = arith.constant 0 : index
    %116 = vector.load %arg3[%c0_90, %c0_91, %c0_92] : memref<9x128x128xbf16, #tpu.memory_space<vmem>>, vector<1x128x128xbf16>
    %117 = vector.shape_cast %116 : vector<1x128x128xbf16> to vector<128x128xbf16>
    %cst_93 = arith.constant dense<0.000000e+00> : vector<288x128xf32>
    %118 = tpu.matmul %115, %117, %cst_93 {dimension_numbers = #tpu.dot_dimension_numbers<[1], [0], [0], [1], [0, 0, 1, 1], [], []>} : vector<288x128xbf16>, vector<128x128xbf16>, vector<288x128xf32> -> vector<288x128xf32>
    %c1_94 = arith.constant 1 : index
    %c0_95 = arith.constant 0 : index
    %119 = vector.load %arg18[%c1_94, %c0_95] : memref<342x128xbf16, #tpu.memory_space<vmem>>, vector<288x128xbf16>
    %c1_96 = arith.constant 1 : index
    %c0_97 = arith.constant 0 : index
    %c0_98 = arith.constant 0 : index
    %120 = vector.load %arg3[%c1_96, %c0_97, %c0_98] : memref<9x128x128xbf16, #tpu.memory_space<vmem>>, vector<1x128x128xbf16>
    %121 = vector.shape_cast %120 : vector<1x128x128xbf16> to vector<128x128xbf16>
    %cst_99 = arith.constant dense<0.000000e+00> : vector<288x128xf32>
    %122 = tpu.matmul %119, %121, %cst_99 {dimension_numbers = #tpu.dot_dimension_numbers<[1], [0], [0], [1], [0, 0, 1, 1], [], []>} : vector<288x128xbf16>, vector<128x128xbf16>, vector<288x128xf32> -> vector<288x128xf32>
    %123 = arith.addf %118, %122 : vector<288x128xf32>
    %c2_100 = arith.constant 2 : index
    %c0_101 = arith.constant 0 : index
    %124 = vector.load %arg18[%c2_100, %c0_101] : memref<342x128xbf16, #tpu.memory_space<vmem>>, vector<288x128xbf16>
    %c2_102 = arith.constant 2 : index
    %c0_103 = arith.constant 0 : index
    %c0_104 = arith.constant 0 : index
    %125 = vector.load %arg3[%c2_102, %c0_103, %c0_104] : memref<9x128x128xbf16, #tpu.memory_space<vmem>>, vector<1x128x128xbf16>
    %126 = vector.shape_cast %125 : vector<1x128x128xbf16> to vector<128x128xbf16>
    %cst_105 = arith.constant dense<0.000000e+00> : vector<288x128xf32>
    %127 = tpu.matmul %124, %126, %cst_105 {dimension_numbers = #tpu.dot_dimension_numbers<[1], [0], [0], [1], [0, 0, 1, 1], [], []>} : vector<288x128xbf16>, vector<128x128xbf16>, vector<288x128xf32> -> vector<288x128xf32>
    %128 = arith.addf %123, %127 : vector<288x128xf32>
    %c18_106 = arith.constant 18 : index
    %c0_107 = arith.constant 0 : index
    %129 = vector.load %arg18[%c18_106, %c0_107] : memref<342x128xbf16, #tpu.memory_space<vmem>>, vector<288x128xbf16>
    %c3_108 = arith.constant 3 : index
    %c0_109 = arith.constant 0 : index
    %c0_110 = arith.constant 0 : index
    %130 = vector.load %arg3[%c3_108, %c0_109, %c0_110] : memref<9x128x128xbf16, #tpu.memory_space<vmem>>, vector<1x128x128xbf16>
    %131 = vector.shape_cast %130 : vector<1x128x128xbf16> to vector<128x128xbf16>
    %cst_111 = arith.constant dense<0.000000e+00> : vector<288x128xf32>
    %132 = tpu.matmul %129, %131, %cst_111 {dimension_numbers = #tpu.dot_dimension_numbers<[1], [0], [0], [1], [0, 0, 1, 1], [], []>} : vector<288x128xbf16>, vector<128x128xbf16>, vector<288x128xf32> -> vector<288x128xf32>
    %133 = arith.addf %128, %132 : vector<288x128xf32>
    %c19_112 = arith.constant 19 : index
    %c0_113 = arith.constant 0 : index
    %134 = vector.load %arg18[%c19_112, %c0_113] : memref<342x128xbf16, #tpu.memory_space<vmem>>, vector<288x128xbf16>
    %c4_114 = arith.constant 4 : index
    %c0_115 = arith.constant 0 : index
    %c0_116 = arith.constant 0 : index
    %135 = vector.load %arg3[%c4_114, %c0_115, %c0_116] : memref<9x128x128xbf16, #tpu.memory_space<vmem>>, vector<1x128x128xbf16>
    %136 = vector.shape_cast %135 : vector<1x128x128xbf16> to vector<128x128xbf16>
    %cst_117 = arith.constant dense<0.000000e+00> : vector<288x128xf32>
    %137 = tpu.matmul %134, %136, %cst_117 {dimension_numbers = #tpu.dot_dimension_numbers<[1], [0], [0], [1], [0, 0, 1, 1], [], []>} : vector<288x128xbf16>, vector<128x128xbf16>, vector<288x128xf32> -> vector<288x128xf32>
    %138 = arith.addf %133, %137 : vector<288x128xf32>
    %c20_118 = arith.constant 20 : index
    %c0_119 = arith.constant 0 : index
    %139 = vector.load %arg18[%c20_118, %c0_119] : memref<342x128xbf16, #tpu.memory_space<vmem>>, vector<288x128xbf16>
    %c5_120 = arith.constant 5 : index
    %c0_121 = arith.constant 0 : index
    %c0_122 = arith.constant 0 : index
    %140 = vector.load %arg3[%c5_120, %c0_121, %c0_122] : memref<9x128x128xbf16, #tpu.memory_space<vmem>>, vector<1x128x128xbf16>
    %141 = vector.shape_cast %140 : vector<1x128x128xbf16> to vector<128x128xbf16>
    %cst_123 = arith.constant dense<0.000000e+00> : vector<288x128xf32>
    %142 = tpu.matmul %139, %141, %cst_123 {dimension_numbers = #tpu.dot_dimension_numbers<[1], [0], [0], [1], [0, 0, 1, 1], [], []>} : vector<288x128xbf16>, vector<128x128xbf16>, vector<288x128xf32> -> vector<288x128xf32>
    %143 = arith.addf %138, %142 : vector<288x128xf32>
    %c36_124 = arith.constant 36 : index
    %c0_125 = arith.constant 0 : index
    %144 = vector.load %arg18[%c36_124, %c0_125] : memref<342x128xbf16, #tpu.memory_space<vmem>>, vector<288x128xbf16>
    %c6_126 = arith.constant 6 : index
    %c0_127 = arith.constant 0 : index
    %c0_128 = arith.constant 0 : index
    %145 = vector.load %arg3[%c6_126, %c0_127, %c0_128] : memref<9x128x128xbf16, #tpu.memory_space<vmem>>, vector<1x128x128xbf16>
    %146 = vector.shape_cast %145 : vector<1x128x128xbf16> to vector<128x128xbf16>
    %cst_129 = arith.constant dense<0.000000e+00> : vector<288x128xf32>
    %147 = tpu.matmul %144, %146, %cst_129 {dimension_numbers = #tpu.dot_dimension_numbers<[1], [0], [0], [1], [0, 0, 1, 1], [], []>} : vector<288x128xbf16>, vector<128x128xbf16>, vector<288x128xf32> -> vector<288x128xf32>
    %148 = arith.addf %143, %147 : vector<288x128xf32>
    %c37_130 = arith.constant 37 : index
    %c0_131 = arith.constant 0 : index
    %149 = vector.load %arg18[%c37_130, %c0_131] : memref<342x128xbf16, #tpu.memory_space<vmem>>, vector<288x128xbf16>
    %c7_132 = arith.constant 7 : index
    %c0_133 = arith.constant 0 : index
    %c0_134 = arith.constant 0 : index
    %150 = vector.load %arg3[%c7_132, %c0_133, %c0_134] : memref<9x128x128xbf16, #tpu.memory_space<vmem>>, vector<1x128x128xbf16>
    %151 = vector.shape_cast %150 : vector<1x128x128xbf16> to vector<128x128xbf16>
    %cst_135 = arith.constant dense<0.000000e+00> : vector<288x128xf32>
    %152 = tpu.matmul %149, %151, %cst_135 {dimension_numbers = #tpu.dot_dimension_numbers<[1], [0], [0], [1], [0, 0, 1, 1], [], []>} : vector<288x128xbf16>, vector<128x128xbf16>, vector<288x128xf32> -> vector<288x128xf32>
    %153 = arith.addf %148, %152 : vector<288x128xf32>
    %c38_136 = arith.constant 38 : index
    %c0_137 = arith.constant 0 : index
    %154 = vector.load %arg18[%c38_136, %c0_137] : memref<342x128xbf16, #tpu.memory_space<vmem>>, vector<288x128xbf16>
    %c8_138 = arith.constant 8 : index
    %c0_139 = arith.constant 0 : index
    %c0_140 = arith.constant 0 : index
    %155 = vector.load %arg3[%c8_138, %c0_139, %c0_140] : memref<9x128x128xbf16, #tpu.memory_space<vmem>>, vector<1x128x128xbf16>
    %156 = vector.shape_cast %155 : vector<1x128x128xbf16> to vector<128x128xbf16>
    %cst_141 = arith.constant dense<0.000000e+00> : vector<288x128xf32>
    %157 = tpu.matmul %154, %156, %cst_141 {dimension_numbers = #tpu.dot_dimension_numbers<[1], [0], [0], [1], [0, 0, 1, 1], [], []>} : vector<288x128xbf16>, vector<128x128xbf16>, vector<288x128xf32> -> vector<288x128xf32>
    %158 = arith.addf %153, %157 : vector<288x128xf32>
    %c0_142 = arith.constant 0 : index
    %c0_143 = arith.constant 0 : index
    %159 = vector.load %arg7[%c0_142, %c0_143] : memref<1x128xf32, #tpu.memory_space<vmem>>, vector<1x128xf32>
    %160 = vector.broadcast %159 : vector<1x128xf32> to vector<288x128xf32>
    %161 = arith.addf %158, %160 : vector<288x128xf32>
    %162 = vector.broadcast %0 : vector<288x1xf32> to vector<288x128xf32>
    %163 = arith.mulf %161, %162 : vector<288x128xf32>
    %cst_144 = arith.constant dense<0.000000e+00> : vector<128xf32>
    %164 = vector.multi_reduction <add>, %163, %cst_144 [0] : vector<288x128xf32> to vector<128xf32>
    %165 = vector.shape_cast %164 : vector<128xf32> to vector<1x128xf32>
    %166 = arith.mulf %163, %163 : vector<288x128xf32>
    %cst_145 = arith.constant dense<0.000000e+00> : vector<128xf32>
    %167 = vector.multi_reduction <add>, %166, %cst_145 [0] : vector<288x128xf32> to vector<128xf32>
    %168 = vector.shape_cast %167 : vector<128xf32> to vector<1x128xf32>
    %c0_146 = arith.constant 0 : index
    %c0_147 = arith.constant 0 : index
    %169 = vector.load %arg10[%c0_146, %c0_147] : memref<128x8xf32, #tpu.memory_space<vmem>>, vector<128x8xf32>
    %cst_148 = arith.constant dense<0.000000e+00> : vector<1x8xf32>
    %170 = tpu.matmul %165, %169, %cst_148 {dimension_numbers = #tpu.dot_dimension_numbers<[1], [0], [0], [1], [0, 0, 1, 1], [], []>} : vector<1x128xf32>, vector<128x8xf32>, vector<1x8xf32> -> vector<1x8xf32>
    %c0_149 = arith.constant 0 : index
    %c0_150 = arith.constant 0 : index
    %171 = vector.load %arg10[%c0_149, %c0_150] : memref<128x8xf32, #tpu.memory_space<vmem>>, vector<128x8xf32>
    %cst_151 = arith.constant dense<0.000000e+00> : vector<1x8xf32>
    %172 = tpu.matmul %168, %171, %cst_151 {dimension_numbers = #tpu.dot_dimension_numbers<[1], [0], [0], [1], [0, 0, 1, 1], [], []>} : vector<1x128xf32>, vector<128x8xf32>, vector<1x8xf32> -> vector<1x8xf32>
    %cst_152 = arith.constant 2.560000e+02 : f32
    %173 = vector.broadcast %cst_152 : f32 to vector<1x8xf32>
    %174 = arith.divf %170, %173 : vector<1x8xf32>
    %cst_153 = arith.constant 2.560000e+02 : f32
    %175 = vector.broadcast %cst_153 : f32 to vector<1x8xf32>
    %176 = arith.divf %172, %175 : vector<1x8xf32>
    %177 = arith.mulf %174, %174 : vector<1x8xf32>
    %178 = arith.subf %176, %177 : vector<1x8xf32>
    %cst_154 = arith.constant 0.000000e+00 : f32
    %179 = vector.broadcast %cst_154 : f32 to vector<1x8xf32>
    %180 = arith.maximumf %178, %179 : vector<1x8xf32>
    %cst_155 = arith.constant 9.99999974E-6 : f32
    %181 = vector.broadcast %cst_155 : f32 to vector<1x8xf32>
    %182 = arith.addf %180, %181 : vector<1x8xf32>
    %183 = math.rsqrt %182 : vector<1x8xf32>
    %c0_156 = arith.constant 0 : index
    %c0_157 = arith.constant 0 : index
    %184 = vector.load %arg11[%c0_156, %c0_157] : memref<8x128xf32, #tpu.memory_space<vmem>>, vector<8x128xf32>
    %cst_158 = arith.constant dense<0.000000e+00> : vector<1x128xf32>
    %185 = tpu.matmul %174, %184, %cst_158 {dimension_numbers = #tpu.dot_dimension_numbers<[1], [0], [0], [1], [0, 0, 1, 1], [], []>} : vector<1x8xf32>, vector<8x128xf32>, vector<1x128xf32> -> vector<1x128xf32>
    %c0_159 = arith.constant 0 : index
    %c0_160 = arith.constant 0 : index
    %186 = vector.load %arg11[%c0_159, %c0_160] : memref<8x128xf32, #tpu.memory_space<vmem>>, vector<8x128xf32>
    %cst_161 = arith.constant dense<0.000000e+00> : vector<1x128xf32>
    %187 = tpu.matmul %183, %186, %cst_161 {dimension_numbers = #tpu.dot_dimension_numbers<[1], [0], [0], [1], [0, 0, 1, 1], [], []>} : vector<1x8xf32>, vector<8x128xf32>, vector<1x128xf32> -> vector<1x128xf32>
    %c0_162 = arith.constant 0 : index
    %c0_163 = arith.constant 0 : index
    %188 = vector.load %arg8[%c0_162, %c0_163] : memref<1x128xf32, #tpu.memory_space<vmem>>, vector<1x128xf32>
    %189 = arith.mulf %187, %188 : vector<1x128xf32>
    %c0_164 = arith.constant 0 : index
    %c0_165 = arith.constant 0 : index
    %190 = vector.load %arg9[%c0_164, %c0_165] : memref<1x128xf32, #tpu.memory_space<vmem>>, vector<1x128xf32>
    %191 = arith.mulf %185, %189 : vector<1x128xf32>
    %192 = arith.subf %190, %191 : vector<1x128xf32>
    %193 = vector.broadcast %189 : vector<1x128xf32> to vector<288x128xf32>
    %194 = arith.mulf %161, %193 : vector<288x128xf32>
    %195 = vector.broadcast %192 : vector<1x128xf32> to vector<288x128xf32>
    %196 = arith.addf %194, %195 : vector<288x128xf32>
    %197 = arith.negf %196 : vector<288x128xf32>
    %198 = math.exp %197 : vector<288x128xf32>
    %cst_166 = arith.constant 1.000000e+00 : f32
    %199 = vector.broadcast %cst_166 : f32 to vector<288x128xf32>
    %200 = arith.addf %199, %198 : vector<288x128xf32>
    %201 = arith.divf %199, %200 : vector<288x128xf32>
    %202 = arith.mulf %196, %201 : vector<288x128xf32>
    %c0_167 = arith.constant 0 : index
    %c19_168 = arith.constant 19 : index
    %c0_169 = arith.constant 0 : index
    %203 = vector.load %arg1[%c0_167, %c19_168, %c0_169] : memref<1x342x128xbf16, #tpu.memory_space<vmem>>, vector<1x288x128xbf16>
    %204 = vector.shape_cast %203 : vector<1x288x128xbf16> to vector<288x128xbf16>
    %c0_170 = arith.constant 0 : index
    %c0_171 = arith.constant 0 : index
    %205 = vector.load %arg15[%c0_170, %c0_171] : memref<128x128xbf16, #tpu.memory_space<vmem>>, vector<128x128xbf16>
    %cst_172 = arith.constant dense<0.000000e+00> : vector<288x128xf32>
    %206 = tpu.matmul %204, %205, %cst_172 {dimension_numbers = #tpu.dot_dimension_numbers<[1], [0], [0], [1], [0, 0, 1, 1], [], []>} : vector<288x128xbf16>, vector<128x128xbf16>, vector<288x128xf32> -> vector<288x128xf32>
    %c0_173 = arith.constant 0 : index
    %c0_174 = arith.constant 0 : index
    %207 = vector.load %arg16[%c0_173, %c0_174] : memref<1x128xf32, #tpu.memory_space<vmem>>, vector<1x128xf32>
    %208 = vector.broadcast %207 : vector<1x128xf32> to vector<288x128xf32>
    %209 = arith.addf %206, %208 : vector<288x128xf32>
    %210 = arith.addf %202, %209 : vector<288x128xf32>
    %211 = arith.truncf %210 : vector<288x128xf32> to vector<288x128xbf16>
    %c0_175 = arith.constant 0 : index
    %c0_176 = arith.constant 0 : index
    %c0_177 = arith.constant 0 : index
    %212 = vector.load %arg17[%c0_175, %c0_176, %c0_177] : memref<1x288x128xbf16, #tpu.memory_space<vmem>>, vector<1x288x128xbf16>
    %213 = vector.shape_cast %212 : vector<1x288x128xbf16> to vector<288x128xbf16>
    %214 = vector.shape_cast %211 : vector<288x128xbf16> to vector<1x288x128xbf16>
    tpu.vector_store %arg17[%c0_175, %c0_176, %c0_177], %214 {strides = array<i32>} : memref<1x288x128xbf16, #tpu.memory_space<vmem>>, vector<1x288x128xbf16>,
    return
  }
  func.func @transform_0(%arg0: i32) -> (i32, i32, i32) {
    %c0_i32 = arith.constant 0 : i32
    %c0_i32_0 = arith.constant 0 : i32
    %c0_i32_1 = arith.constant 0 : i32
    return %arg0, %c0_i32, %c0_i32_0 : i32, i32, i32
  }
  func.func @transform_1(%arg0: i32) -> (i32, i32, i32) {
    %c0_i32 = arith.constant 0 : i32
    %c0_i32_0 = arith.constant 0 : i32
    %c0_i32_1 = arith.constant 0 : i32
    %c0_i32_2 = arith.constant 0 : i32
    return %c0_i32, %c0_i32_0, %c0_i32_1 : i32, i32, i32
  }
  func.func @transform_2(%arg0: i32) -> (i32, i32, i32) {
    %c0_i32 = arith.constant 0 : i32
    %c0_i32_0 = arith.constant 0 : i32
    %c0_i32_1 = arith.constant 0 : i32
    %c0_i32_2 = arith.constant 0 : i32
    return %c0_i32, %c0_i32_0, %c0_i32_1 : i32, i32, i32
  }
  func.func @transform_3(%arg0: i32) -> (i32, i32) {
    %c0_i32 = arith.constant 0 : i32
    %c0_i32_0 = arith.constant 0 : i32
    %c0_i32_1 = arith.constant 0 : i32
    return %c0_i32, %c0_i32_0 : i32, i32
  }
  func.func @transform_4(%arg0: i32) -> (i32, i32) {
    %c0_i32 = arith.constant 0 : i32
    %c0_i32_0 = arith.constant 0 : i32
    %c0_i32_1 = arith.constant 0 : i32
    return %c0_i32, %c0_i32_0 : i32, i32
  }
  func.func @transform_5(%arg0: i32) -> (i32, i32) {
    %c0_i32 = arith.constant 0 : i32
    %c0_i32_0 = arith.constant 0 : i32
    %c0_i32_1 = arith.constant 0 : i32
    return %c0_i32, %c0_i32_0 : i32, i32
  }
  func.func @transform_6(%arg0: i32) -> (i32, i32) {
    %c0_i32 = arith.constant 0 : i32
    %c0_i32_0 = arith.constant 0 : i32
    %c0_i32_1 = arith.constant 0 : i32
    return %c0_i32, %c0_i32_0 : i32, i32
  }
  func.func @transform_7(%arg0: i32) -> (i32, i32) {
    %c0_i32 = arith.constant 0 : i32
    %c0_i32_0 = arith.constant 0 : i32
    %c0_i32_1 = arith.constant 0 : i32
    return %c0_i32, %c0_i32_0 : i32, i32
  }
  func.func @transform_8(%arg0: i32) -> (i32, i32) {
    %c0_i32 = arith.constant 0 : i32
    %c0_i32_0 = arith.constant 0 : i32
    %c0_i32_1 = arith.constant 0 : i32
    return %c0_i32, %c0_i32_0 : i32, i32
  }
  func.func @transform_9(%arg0: i32) -> (i32, i32) {
    %c0_i32 = arith.constant 0 : i32
    %c0_i32_0 = arith.constant 0 : i32
    %c0_i32_1 = arith.constant 0 : i32
    return %c0_i32, %c0_i32_0 : i32, i32
  }
  func.func @transform_10(%arg0: i32) -> (i32, i32) {
    %c0_i32 = arith.constant 0 : i32
    %c0_i32_0 = arith.constant 0 : i32
    %c0_i32_1 = arith.constant 0 : i32
    return %c0_i32, %c0_i32_0 : i32, i32
  }
  func.func @transform_11(%arg0: i32) -> (i32, i32) {
    %c0_i32 = arith.constant 0 : i32
    %c0_i32_0 = arith.constant 0 : i32
    %c0_i32_1 = arith.constant 0 : i32
    return %c0_i32, %c0_i32_0 : i32, i32
  }
  func.func @transform_12(%arg0: i32) -> (i32, i32, i32) {
    %c0_i32 = arith.constant 0 : i32
    %c0_i32_0 = arith.constant 0 : i32
    %c0_i32_1 = arith.constant 0 : i32
    return %arg0, %c0_i32, %c0_i32_0 : i32, i32, i32
  }
  func.func @transform_13(%arg0: i32) -> (i32, i32, i32) {
    %c0_i32 = arith.constant 0 : i32
    %c0_i32_0 = arith.constant 0 : i32
    %c0_i32_1 = arith.constant 0 : i32
    return %arg0, %c0_i32, %c0_i32_0 : i32, i32, i32
  }
  func.func @transform_14(%arg0: i32) -> (i32, i32) {
    %c0_i32 = arith.constant 0 : i32
    %c0_i32_0 = arith.constant 0 : i32
    %c0_i32_1 = arith.constant 0 : i32
    return %c0_i32, %c0_i32_0 : i32, i32
  }
  func.func @transform_15(%arg0: i32) -> (i32, i32) {
    %c0_i32 = arith.constant 0 : i32
    %c0_i32_0 = arith.constant 0 : i32
    %c0_i32_1 = arith.constant 0 : i32
    return %c0_i32, %c0_i32_0 : i32, i32
  }
  func.func @transform_16(%arg0: i32) -> (i32, i32, i32) {
    %c0_i32 = arith.constant 0 : i32
    %c0_i32_0 = arith.constant 0 : i32
    %c0_i32_1 = arith.constant 0 : i32
    return %arg0, %c0_i32, %c0_i32_0 : i32, i32, i32
  }
}

</mosaic_0001>

<bundles_post_ra>
// kernel: resnet_block_forward.1
= control target key start
LH: loop header
LB: loop body
LE: loop exit
PB: predicated region body
PF: predicated region fallthrough
CT: control target
= control target key end

     0   :  { %s15303_s21 = smov 0   ;;  %s18878_s0 = inlined_call_operand.vmem [shape: bf16[2,342,128], index: 0, kind: input, shape index: {}]   ;;  %s18879_s1 = inlined_call_operand.vmem [shape: bf16[9,128,128], index: 1, kind: input, shape index: {}]   ;;  %s18880_s2 = inlined_call_operand.vmem [shape: bf16[9,128,128], index: 2, kind: input, shape index: {}]   ;;  %s18881_s3 = inlined_call_operand.vmem [shape: f32[1,128], index: 3, kind: input, shape index: {}]   ;;  %s18882_s4 = inlined_call_operand.vmem [shape: f32[1,128], index: 4, kind: input, shape index: {}]   ;;  %s18883_s5 = inlined_call_operand.vmem [shape: f32[1,128], index: 5, kind: input, shape index: {}]   ;;  %s18884_s6 = inlined_call_operand.vmem [shape: f32[1,128], index: 6, kind: input, shape index: {}]   ;;  %s18885_s7 = inlined_call_operand.vmem [shape: f32[1,128], index: 7, kind: input, shape index: {}]   ;;  %s18886_s8 = inlined_call_operand.vmem [shape: f32[1,128], index: 8, kind: input, shape index: {}]   ;;  %s18887_s9 = inlined_call_operand.vmem [shape: f32[128,8], index: 9, kind: input, shape index: {}]   ;;  %s18888_s10 = inlined_call_operand.vmem [shape: f32[8,128], index: 10, kind: input, shape index: {}]   ;;  %s18889_s11 = inlined_call_operand.vmem [shape: f32[288,1], index: 11, kind: input, shape index: {}]   ;;  %s18890_s12 = inlined_call_operand.vmem [shape: f32[2,1,128], index: 12, kind: input, shape index: {}]   ;;  %s18891_s13 = inlined_call_operand.vmem [shape: f32[2,1,128], index: 13, kind: input, shape index: {}]   ;;  %s18892_s14 = inlined_call_operand.vmem [shape: bf16[128,128], index: 14, kind: input, shape index: {}]   ;;  %s18893_s15 = inlined_call_operand.vmem [shape: f32[1,128], index: 15, kind: input, shape index: {}]   ;;  %s18894_s16 = inlined_call_operand.vmem [shape: bf16[2,288,128], index: 16, kind: output, shape index: {}]  }
   0x1   :  { %19005 = sst [smem:[#allocation105_spill]] %s18878_s0 }
   0x2 LB: > { %s11277_s22 = sadd.s32 4294967295, %s15212_s21   ;;  %p11281_p0 = scmp.ge.s32.totalorder %s15212_s21, 1  ;;  %s15212_s21 = sphi %s15303_s21, %s26_s21  }
   0x3   : > { %p478_p1 = scmp.lt.s32.totalorder %s15212_s21, 3 }
   0x5   : > { %p479_p2 = pnand %p11281_p0, %p478_p1 }
   0x7   : > { %482 = sbr.rel (%p479_p2) target bundleno = 3017 (0xbc9), region = 84 }
   0xe   : > { %v14589_v0 = vld [vmem:[%s18879_s1 + $0x40] sm:$0xff]   ;;  %p534_p3 = scmp.lt.s32.totalorder %s11277_s22, 1  ;;  %v14590_v1 = vld [vmem:[%s18879_s1 + $0x48] sm:$0xff]   ;;  %v14591_v2 = vld [vmem:[%s18879_s1 + $0x50] sm:$0xff]   ;;  %s19006_s17 = sld [smem:[#allocation105_spill]]  ;;  %vm1406_vm1 = vcmask 1046528  }
   0xf   : > { %12737 = vmatprep.subr.bf16.mxu0 %v14589_v0  ;;  %13981 = vmatprep.subr.bf16.mxu1 %v14589_v0  ;;  %v14592_v3 = vld [vmem:[%s18879_s1 + $0x58] sm:$0xff]   ;;  %v14593_v11 = vld [vmem:[%s18879_s1 + $0x60] sm:$0xff]   ;;  %vm750_vm0 = vsmask.f32 7424  ;;  %v14594_v14 = vld [vmem:[%s18879_s1 + $0x68] sm:$0xff]   ;;  %vm2678_vm3 = vcmask 1045504  }
  0x10   : > { %s19309_s22 = smov (!%p534_p3, %s11277_s22), 1  ;;  %12738 = vmatpush3.bf16.msra.mxu0 %v14589_v0  ;;  %13989 = vmatpush3.bf16.msra.mxu1 %v14589_v0  ;;  %v14595_v19 = vld [vmem:[%s18879_s1 + $0x70] sm:$0xff]   ;;  %v14596_v24 = vld [vmem:[%s18879_s1 + $0x78] sm:$0xff]   ;;  %v14600_v27 = vld [vmem:[%s18879_s1] sm:$0xff]   ;;  %vm2207_vm2 = vsmask.f32 6400 }
  0x11   : > { %12739 = vmatprep.subr.bf16.mxu0 %v14590_v1  ;;  %s14573_s29 = smul.u32 172, %s19309_s22  ;;  %13982 = vmatprep.subr.bf16.mxu1 %v14590_v1  ;;  %v14601_v35 = vld [vmem:[%s18879_s1 + $0x8] sm:$0xff]   ;;  %v14604_v51 = vld [vmem:[%s18879_s1 + $0x10] sm:$0xff]   ;;  %v14605_v59 = vld [vmem:[%s18879_s1 + $0x18] sm:$0xff]   ;;  %vm3479_vm4 = vsmask.f32 5376  ;;  %s544_s24 = scalar_lea.vmem %s18891_s13, %s19309_s22 }
  0x12   : > { %vm3950_vm5 = vcmask 1044480   ;;  %vm15216_vm6 = vmmov 0   ;;  %vm4809_vm7 = vcmask 64512   ;;  %vm5445_vm8 = vsmask.f32 1280 }
  0x13   : > { %vm5446_vm9 = vsmask.f32 5392  ;;  %vm5844_vm11 = vcmask 1043457   ;;  %vm5845_vm12 = vsmask.f32 7942  ;;  %vm5885_vm14 = vcmask 1041408  }
  0x14   : > { %s15326_s18 = scalar_lea.vmem %s19006_s17, %s14573_s29  ;;  %12740 = vmatpush3.bf16.msra.mxu0 %v14590_v1  ;;  %13990 = vmatpush3.bf16.msra.mxu1 %v14590_v1  ;;  %s541_s29 = scalar_lea.vmem %s18890_s12, %s19309_s22  ;;  %vm17087_vm10 = vmor %vm5445_vm8, %vm5446_vm9 }
  0x15   : > { %12741 = vmatprep.subr.bf16.mxu0 %v14591_v2  ;;  %v587_v4 = vld [vmem:[%s15326_s18] sm:$0xf]  ;;  %v15333_v5 = vld [vmem:[%s15326_s18 + $0x4] sm:$0xf]  ;;  %13983 = vmatprep.subr.bf16.mxu1 %v14591_v2  ;;  %v15339_v7 = vld [vmem:[%s15326_s18 + $0x8] sm:$0xff]  }
  0x16   : > { %v15336_v6 = vcombine.low %v587_v4, %v15333_v5  ;;  %v759_v10 = vshll.u32 %v15339_v7, 16  ;;  %v15352_v17 = vld [vmem:[%s15326_s18 + $0x10] sm:$0xff]   ;;  %v15355_v18 = vld [vmem:[%s15326_s18 + $0x18] sm:$0xff]   ;;  %v763_v20 = vshrl.u32 %v15339_v7, 16  ;;  %v15364_v23 = vld [vmem:[%s15326_s18 + $0x20] sm:$0xff]   ;;  %v1408_v34 = vrot.slane %v15339_v7, 1 }
  0x17   : > { %v767_v21 = vshll.u32 %v15352_v17, 16  ;;  %v775_v22 = vshll.u32 %v15355_v18, 16  ;;  %v771_v25 = vshrl.u32 %v15352_v17, 16  ;;  %v779_v28 = vshrl.u32 %v15355_v18, 16  ;;  %v15376_v33 = vld [vmem:[%s15326_s18 + $0x28] sm:$0xff]   ;;  %v15386_v39 = vld [vmem:[%s15326_s18 + $0x30] sm:$0xff]   ;;  %vm17227_vm13 = vmand %vm5844_vm11, %vm5845_vm12 }
  0x18   : > { %12742 = vmatpush3.bf16.msra.mxu0 %v14591_v2  ;;  %v752_v8 = vshrl.u32 %v15336_v6, 16  ;;  %v754_v9 = vshll.u32 %v15336_v6, 16  ;;  %13991 = vmatpush3.bf16.msra.mxu1 %v14591_v2  ;;  %v761_v13 = vrot.slane %v759_v10, 1  ;;  %v783_v31 = vshll.u32 %v15364_v23, 16  ;;  %v15410_v55 = vld [vmem:[%s15326_s18 + $0x38] sm:$0xff]   ;;  %v15427_v2 = vld [vmem:[%s15326_s18 + $0x40] sm:$0xff]   ;;  %vm5886_vm15 = vmand %vm5885_vm14, %vm5445_vm8 }
  0x19   : > { %12743 = vmatprep.subr.bf16.mxu0 %v14592_v3  ;;  %13984 = vmatprep.subr.bf16.mxu1 %v14592_v3  ;;  %v769_v26 = vrot.slane %v767_v21, 1  ;;  %v777_v30 = vrot.slane %v775_v22, 1  ;;  %v787_v36 = vshrl.u32 %v15364_v23, 16  ;;  %v1410_v37 = vrot.slane %v15352_v17, 1  ;;  %v14608_v4 = vld [vmem:[%s18879_s1 + $0x20] sm:$0xff]   ;;  %v14612_v21 = vld [vmem:[%s18879_s1 + $0x30] sm:$0xff]  }
  0x1a   : > { %v756_v12 = vrot.slane %v754_v9, 1  ;;  %v765_v29 = vor.u32 %v763_v20, %v761_v13  ;;  %v1412_v40 = vrot.slane %v15355_v18, 1  ;;  %v791_v42 = vshll.u32 %v15376_v33, 16  ;;  %v14613_v22 = vld [vmem:[%s18879_s1 + $0x38] sm:$0xff]  }
  0x1b   : > { %v773_v32 = vor.u32 %v771_v25, %v769_v26  ;;  %v15392_v43 = vsel %vm1406_vm1, %v1408_v34, %v1410_v37  ;;  %v1414_v44 = vrot.slane %v15364_v23, 1  ;;  %v1416_v46 = vrot.slane %v15376_v33, 1  ;;  %v14614_v25 = vld [vmem:[%s18879_s1 + $0x80] sm:$0xff]  }
  0x1c   : > { %12744 = vmatpush3.bf16.msra.mxu0 %v14592_v3  ;;  %v757_v15 = vor.u32 %v756_v12, %v752_v8  ;;  %13992 = vmatpush3.bf16.msra.mxu1 %v14592_v3  ;;  %v770_v38 = vsel %vm750_vm0, %v765_v29, %v769_v26  ;;  %v15396_v45 = vsel %vm1406_vm1, %v1410_v37, %v1412_v40  ;;  %v785_v47 = vrot.slane %v783_v31, 1  ;;  %v1385_v3 = vld [vmem:[%s15326_s18] sm:$0xe]  ;;  %v14615_v26 = vld [vmem:[%s18879_s1 + $0x88] sm:$0xff]   ;;  %v15496_v31 = vld [vmem:[%s15326_s18 + $0x58] sm:$0xff]  }
  0x1d   : > { %12745 = vmatprep.subr.bf16.mxu0 %v14593_v11  ;;  %13985 = vmatprep.subr.bf16.mxu1 %v14593_v11  ;;  %v778_v41 = vsel %vm750_vm0, %v773_v32, %v777_v30  ;;  %v15400_v48 = vsel %vm1406_vm1, %v1412_v40, %v1414_v44  ;;  %v1418_v49 = vrot.slane %v15386_v39, 1  ;;  %v781_v50 = vor.u32 %v779_v28, %v777_v30  ;;  %v15488_v28 = vld [vmem:[%s15326_s18 + $0x48] sm:$0xff]   ;;  %v14632_v29 = vld [vmem:[%s18879_s1 + $0xc0] sm:$0xff]   ;;  %v14620_v30 = vld [vmem:[%s15326_s18 + $0x50] sm:$0xff]  }
  0x1e   : > { %v762_v16 = vsel %vm750_vm0, %v757_v15, %v761_v13  ;;  %v15407_v52 = vsel %vm1406_vm1, %v1414_v44, %v1416_v46  ;;  %v789_v53 = vor.u32 %v787_v36, %v785_v47  ;;  %v793_v54 = vrot.slane %v791_v42, 1  ;;  %v14609_v15 = vld [vmem:[%s18879_s1 + $0x28] sm:$0xff]   ;;  %v15499_v32 = vld [vmem:[%s15326_s18 + $0x60] sm:$0xff]   ;;  %v14634_v40 = vld [vmem:[%s18879_s1 + $0xd0] sm:$0xff]  }
  0x1f   : > { %12753 = vmatprep.mubr.bf16.mxu0 %v762_v16  ;;  %v15415_v56 = vsel %vm1406_vm1, %v1416_v46, %v1418_v49  ;;  %v799_v57 = vshll.u32 %v15386_v39, 16  ;;  %v786_v58 = vsel %vm750_vm0, %v781_v50, %v785_v47  ;;  %v795_v60 = vshrl.u32 %v15376_v33, 16  ;;  %v15515_v36 = vld [vmem:[%s15326_s18 + $0x80] sm:$0xff]   ;;  %v15520_v37 = vld [vmem:[%s15326_s18 + $0x88] sm:$0xff]  }
  0x20   : > { %12746 = vmatpush3.bf16.msra.mxu0 %v14593_v11  ;;  %13993 = vmatpush3.bf16.msra.mxu1 %v14593_v11  ;;  %v794_v61 = vsel %vm750_vm0, %v789_v53, %v793_v54  ;;  %v803_v62 = vshrl.u32 %v15386_v39, 16  ;;  %v807_v63 = vshll.u32 %v15410_v55, 16  ;;  %v11351_v10 = vcombine.low %v1385_v3, %v15333_v5  ;;  %v14637_v44 = vld [vmem:[%s18879_s1 + $0xe8] sm:$0xff]   ;;  %v14644_v53 = vld [vmem:[%s18879_s1 + $0x100] sm:$0xff]  }
  0x21   : > { %12747 = vmatprep.subr.bf16.mxu0 %v14594_v14  ;;  %13986 = vmatprep.subr.bf16.mxu1 %v14594_v14  ;;  %v801_v0 = vrot.slane %v799_v57, 1  ;;  %v797_v1 = vor.u32 %v795_v60, %v793_v54  ;;  %v811_v13 = vshrl.u32 %v15410_v55, 16  ;;  %v1420_v42 = vrot.slane %v15410_v55, 1  ;;  %v14640_v3 = vld [vmem:[%s15326_s18 + $0x90] ss:$0 sps:$4 sm:$0x11]  }
  0x22   : > { %v809_v9 = vrot.slane %v807_v63, 1  ;;  %v1407_v11 = vrot.slane %v11351_v10, 1  ;;  %v1422_v46 = vrot.slane %v15427_v2, 1  ;;  %v1424_v47 = vrot.slane %v15488_v28, 1 }
  0x23   : > { %v805_v8 = vor.u32 %v803_v62, %v801_v0  ;;  %v802_v12 = vsel %vm750_vm0, %v797_v1, %v801_v0  ;;  %v1438_v0 = vrot.slane %v15515_v36, 1  ;;  %v1440_v1 = vrot.slane %v15520_v37, 1 }
  0x24   : > { %12748 = vmatpush3.bf16.msra.mxu0 %v14594_v14  ;;  %13994 = vmatpush3.bf16.msra.mxu1 %v14594_v14  ;;  %v815_v14 = vshll.u32 %v15427_v2, 16  ;;  %v813_v5 = vor.u32 %v811_v13, %v809_v9  ;;  %v1425_v50 = vsel %vm1406_vm1, %v1422_v46, %v1424_v47 }
  0x25   : > { %12749 = vmatprep.subr.bf16.mxu0 %v14595_v19  ;;  %13987 = vmatprep.subr.bf16.mxu1 %v14595_v19  ;;  %v810_v16 = vsel %vm750_vm0, %v805_v8, %v809_v9  ;;  %v15580_v8 = vld [vmem:[%s15326_s18 + $0x10] sm:$0xff]   ;;  %v1441_v10 = vsel %vm1406_vm1, %v1438_v0, %v1440_v1 }
  0x26   : > { %v15444_v20 = vrot.slane %v815_v14, 1  ;;  %v1871_v14 = vrot.slane %v15580_v8, 1 }
  0x28   : > { %12750 = vmatpush3.bf16.msra.mxu0 %v14595_v19  ;;  %13995 = vmatpush3.bf16.msra.mxu1 %v14595_v19  ;;  %v15442_v19 = vsel %vm1406_vm1, %v1407_v11, %v1408_v34  ;;  %v15507_v34 = vld [vmem:[%s15326_s18 + $0x70] sm:$0xff]  }
  0x29   : > { %12751 = vmatprep.subr.bf16.mxu0 %v14596_v24  ;;  %13988 = vmatprep.subr.bf16.mxu1 %v14596_v24  ;;  %v1434_v60 = vrot.slane %v15507_v34, 1 }
  0x2c   : > { %12752 = vmatpush3.bf16.msra.mxu0 %v14596_v24  ;;  %13996 = vmatpush3.bf16.msra.mxu1 %v14596_v24  ;;  %v818_v24 = vsel %vm750_vm0, %v813_v5, %v15444_v20  ;;  %v15595_v5 = vld [vmem:[%s15326_s18 + $0x20] sm:$0xff]  }
  0x2d   : > { %12789 = vmatprep.subr.bf16.mxu0 %v14600_v27 }
  0x2f   : > { %12754 = vmatmul.mubr.bf16.vlgmr.msra.gmra.mrb[0].mxu0 %v770_v38  ;;  %v14633_v38 = vld [vmem:[%s18879_s1 + $0xc8] sm:$0xff]  }
  0x30   : > { %12790 = vmatpush3.bf16.msra.mxu0 %v14600_v27  ;;  %12757 = vmatprep.mubr.bf16.mxu0 %v778_v41  ;;  %v14617_v27 = vld [vmem:[%s18879_s1 + $0x98] sm:$0xff]  }
  0x31   : > { %12791 = vmatprep.subr.bf16.mxu0 %v14601_v35  ;;  %v14635_v41 = vld [vmem:[%s18879_s1 + $0xd8] sm:$0xff]  }
  0x34   : > { %12792 = vmatpush3.bf16.msra.mxu0 %v14601_v35  ;;  %v15512_v35 = vld [vmem:[%s15326_s18 + $0x78] sm:$0xff]  }
  0x35   : > { %12793 = vmatprep.subr.bf16.mxu0 %v14604_v51 }
  0x37   : > { %12758 = vmatmul.mubr.bf16.gmra.mrb[4].mxu0 %v786_v58 }
  0x38   : > { %12794 = vmatpush3.bf16.msra.mxu0 %v14604_v51  ;;  %12761 = vmatprep.mubr.bf16.mxu0 %v794_v61  ;;  %v1426_v51 = vrot.slane %v14620_v30, 1  ;;  %v1436_v61 = vrot.slane %v15512_v35, 1 }
  0x39   : > { %12795 = vmatprep.subr.bf16.mxu0 %v14605_v59 }
  0x3a   : > { %v1427_v54 = vsel %vm1406_vm1, %v1424_v47, %v1426_v51  ;;  %v1437_v63 = vsel %vm1406_vm1, %v1434_v60, %v1436_v61  ;;  %v1439_v9 = vsel %vm1406_vm1, %v1436_v61, %v1438_v0  ;;  %v15653_v47 = vld [vmem:[%s15326_s18 + $0x60] sm:$0xff]   ;;  %v15688_v0 = vld [vmem:[%s15326_s18 + $0x88] sm:$0xff]  }
  0x3c   : > { %12796 = vmatpush3.bf16.msra.mxu0 %v14605_v59 }
  0x3d   : > { %12797 = vmatprep.subr.bf16.mxu0 %v14608_v4 }
  0x3f   : > { %12762 = vmatmul.mubr.bf16.gmra.mrb[8].mxu0 %v802_v12  ;;  %v1442_v12 = vrot.slane %v14640_v3, 1  ;;  %v1901_v3 = vrot.slane %v15688_v0, 1 }
  0x40   : > { %12798 = vmatpush3.bf16.msra.mxu0 %v14608_v4  ;;  %12765 = vmatprep.mubr.bf16.mxu0 %v810_v16  ;;  %v15577_v4 = vld [vmem:[%s15326_s18 + $0xc] sm:$0xf]  ;;  %v15591_v16 = vld [vmem:[%s15326_s18 + $0x18] sm:$0xff]  }
  0x41   : > { %12799 = vmatprep.subr.bf16.mxu0 %v14609_v15 }
  0x44   : > { %12800 = vmatpush3.bf16.msra.mxu0 %v14609_v15  ;;  %v1443_v15 = vsel %vm1406_vm1, %v1440_v1, %v1442_v12  ;;  %v15691_v1 = vld [vmem:[%s15326_s18 + $0x90] sm:$0xff]  }
  0x45   : > { %12801 = vmatprep.subr.bf16.mxu0 %v14612_v21 }
  0x47   : > { %12766 = vmatmul.mubr.bf16.gmra.mrb[12].mxu0 %v818_v24 }
  0x48   : > { %12802 = vmatpush3.bf16.msra.mxu0 %v14612_v21  ;;  %12805 = vmatprep.mubr.bf16.mxu0 %v15336_v6  ;;  %v14616_v6 = vld [vmem:[%s18879_s1 + $0x90] sm:$0xff]   ;;  %v1873_v21 = vrot.slane %v15591_v16, 1 }
  0x49   : > { %12803 = vmatprep.subr.bf16.mxu0 %v14613_v22 }
  0x4a   : > { %v1874_v24 = vsel %vm1406_vm1, %v1871_v14, %v1873_v21 }
  0x4c   : > { %12804 = vmatpush3.bf16.msra.mxu0 %v14613_v22  ;;  %v1875_v22 = vrot.slane %v15595_v5, 1 }
  0x4d   : > { %12841 = vmatprep.subr.bf16.mxu0 %v14614_v25 }
  0x4f   : > { %12806 = vmatmul.mubr.bf16.vlgmr.msra.gmra.mrb[0].mxu0 %v15339_v7  ;;  %v14619_v7 = vld [vmem:[%s18879_s1 + $0xa0] sm:$0xff]  }
  0x50   : > { %12842 = vmatpush3.bf16.msra.mxu0 %v14614_v25  ;;  %12809 = vmatprep.mubr.bf16.mxu0 %v15352_v17  ;;  %v14622_v17 = vld [vmem:[%s18879_s1 + $0xa8] sm:$0xff]  }
  0x51   : > { %12843 = vmatprep.subr.bf16.mxu0 %v14615_v26  ;;  %v15601_v25 = vld [vmem:[%s15326_s18 + $0x28] sm:$0xff]  }
  0x54   : > { %12844 = vmatpush3.bf16.msra.mxu0 %v14615_v26  ;;  %v1876_v26 = vsel %vm1406_vm1, %v1873_v21, %v1875_v22  ;;  %v14667_v21 = vld [vmem:[%s15326_s18 + $0x98] ss:$0 sps:$4 sm:$0x11]  }
  0x55   : > { %12845 = vmatprep.subr.bf16.mxu0 %v14616_v6 }
  0x57   : > { %12810 = vmatmul.mubr.bf16.gmra.mrb[4].mxu0 %v15355_v18  ;;  %v14625_v18 = vld [vmem:[%s18879_s1 + $0xb0] sm:$0xff]  }
  0x58   : > { %12813 = vmatprep.mubr.bf16.mxu0 %v15364_v23  ;;  %12846 = vmatpush3.bf16.msra.mxu0 %v14616_v6  ;;  %v14629_v23 = vld [vmem:[%s18879_s1 + $0xb8] sm:$0xff]   ;;  %v14647_v6 = vld [vmem:[%s18879_s1 + $0x108] sm:$0xff]  }
  0x59   : > { %12847 = vmatprep.subr.bf16.mxu0 %v14617_v27 }
  0x5c   : > { %12848 = vmatpush3.bf16.msra.mxu0 %v14617_v27  ;;  %v15608_v27 = vld [vmem:[%s15326_s18 + $0x30] sm:$0xff]  }
  0x5d   : > { %12849 = vmatprep.subr.bf16.mxu0 %v14619_v7 }
  0x5f   : > { %12814 = vmatmul.mubr.bf16.gmra.mrb[8].mxu0 %v15376_v33  ;;  %v15504_v33 = vld [vmem:[%s15326_s18 + $0x68] sm:$0xff]  }
  0x60   : > { %12817 = vmatprep.mubr.bf16.mxu0 %v15386_v39  ;;  %12850 = vmatpush3.bf16.msra.mxu0 %v14619_v7  ;;  %v14639_v39 = vld [vmem:[%s18879_s1 + $0xf8] sm:$0xff]   ;;  %v1432_v57 = vrot.slane %v15504_v33, 1  ;;  %v1877_v7 = vrot.slane %v15601_v25, 1 }
  0x61   : > { %12851 = vmatprep.subr.bf16.mxu0 %v14622_v17 }
  0x62   : > { %v1435_v62 = vsel %vm1406_vm1, %v1432_v57, %v1434_v60  ;;  %v15682_v60 = vld [vmem:[%s15326_s18 + $0x80] sm:$0xff]  }
  0x64   : > { %12852 = vmatpush3.bf16.msra.mxu0 %v14622_v17  ;;  %v1879_v17 = vrot.slane %v15608_v27, 1 }
  0x65   : > { %12853 = vmatprep.subr.bf16.mxu0 %v14625_v18 }
  0x67   : > { %12818 = vmatmul.mubr.bf16.gmra.mrb[12].mxu0 %v15410_v55 }
  0x68   : > { %12821 = vmatprep.mubr.bf16.mxu0 %v15427_v2  ;;  %12854 = vmatpush3.bf16.msra.mxu0 %v14625_v18  ;;  %v1723_v2 = vld [vmem:[%s15326_s18 + $0x8] sm:$0xe]  ;;  %v14650_v18 = vld [vmem:[%s18879_s1 + $0x110] sm:$0xff]  }
  0x69   : > { %12855 = vmatprep.subr.bf16.mxu0 %v14629_v23  ;;  %v15585_v11 = vcombine.low %v1723_v2, %v15577_v4 }
  0x6b   : > { %v1870_v13 = vrot.slane %v15585_v11, 1  ;;  %v2212_v12 = vshll.u32 %v15585_v11, 16 }
  0x6c   : > { %12856 = vmatpush3.bf16.msra.mxu0 %v14629_v23  ;;  %v1878_v23 = vsel %vm1406_vm1, %v1875_v22, %v1877_v7 }
  0x6d   : > { %12893 = vmatprep.subr.bf16.mxu0 %v14632_v29 }
  0x6f   : > { %12822 = vmatmul.mubr.bf16.gmra.mrb[16].mxu0 %v15488_v28  ;;  %v15617_v28 = vld [vmem:[%s15326_s18 + $0x38] sm:$0xff]  }
  0x70   : > { %12825 = vmatprep.mubr.bf16.mxu0 %v14620_v30  ;;  %v15621_v30 = vld [vmem:[%s15326_s18 + $0x40] sm:$0xff]  }
  0x77   : > { %12826 = vmatmul.mubr.bf16.gmra.mrb[20].mxu0 %v15496_v31 }
  0x78   : > { %12829 = vmatprep.mubr.bf16.mxu0 %v15499_v32 }
  0x7f   : > { %12830 = vmatmul.mubr.bf16.gmra.mrb[24].mxu0 %v15504_v33  ;;  %v1883_v33 = vrot.slane %v15621_v30, 1 }
  0x80   : > { %12833 = vmatprep.mubr.bf16.mxu0 %v15507_v34  ;;  %v14656_v34 = vld [vmem:[%s18879_s1 + $0x120] sm:$0xff]  }
  0x87   : > { %12834 = vmatmul.mubr.bf16.gmra.mrb[28].mxu0 %v15512_v35 }
  0x88   : > { %12837 = vmatprep.mubr.bf16.mxu0 %v15515_v36  ;;  %v15633_v36 = vld [vmem:[%s15326_s18 + $0x48] sm:$0xff]  }
  0x8f   : > { %12838 = vmatmul.mubr.bf16.gmra.mrb[32].mxu0 %v15520_v37 }
  0x90   : > { %12857 = vmatprep.mubr.bf16.mxu0 %v15442_v19  ;;  %v1872_v19 = vsel %vm1406_vm1, %v1870_v13, %v1871_v14  ;;  %v2217_v13 = vshrl.u32 %v15580_v8, 16  ;;  %v2220_v14 = vshll.u32 %v15580_v8, 16 }
  0x97   : > { %12858 = vmatmul.mubr.bf16.vlgmr.msra.gmra.mrb[0].mxu0 %v15392_v43  ;;  %v14636_v43 = vld [vmem:[%s18879_s1 + $0xe0] sm:$0xff]  }
  0x98   : > { %12894 = vmatpush3.bf16.msra.mxu0 %v14632_v29  ;;  %12861 = vmatprep.mubr.bf16.mxu0 %v15396_v45  ;;  %v1421_v45 = vsel %vm1406_vm1, %v1418_v49, %v1420_v42  ;;  %v1423_v49 = vsel %vm1406_vm1, %v1420_v42, %v1422_v46  ;;  %v1880_v29 = vsel %vm1406_vm1, %v1877_v7, %v1879_v17  ;;  %v1905_v7 = vrot.slane %v14667_v21, 1 }
  0x99   : > { %12895 = vmatprep.subr.bf16.mxu0 %v14633_v38 }
  0x9c   : > { %12896 = vmatpush3.bf16.msra.mxu0 %v14633_v38  ;;  %v15637_v38 = vld [vmem:[%s15326_s18 + $0x50] sm:$0xff]  }
  0x9d   : > { %12897 = vmatprep.subr.bf16.mxu0 %v14634_v40  ;;  %v1887_v42 = vrot.slane %v15637_v38, 1 }
  0x9f   : > { %12862 = vmatmul.mubr.bf16.gmra.mrb[4].mxu0 %v15400_v48  ;;  %v14638_v48 = vld [vmem:[%s18879_s1 + $0xf0] sm:$0xff]  }
  0xa0   : > { %12865 = vmatprep.mubr.bf16.mxu0 %v15407_v52  ;;  %12898 = vmatpush3.bf16.msra.mxu0 %v14634_v40  ;;  %v1428_v52 = vrot.slane %v15496_v31, 1  ;;  %v14653_v31 = vld [vmem:[%s18879_s1 + $0x118] sm:$0xff]   ;;  %v14659_v40 = vld [vmem:[%s18879_s1 + $0x128] sm:$0xff]  }
  0xa1   : > { %12899 = vmatprep.subr.bf16.mxu0 %v14635_v41 }
  0xa2   : > { %v1429_v55 = vsel %vm1406_vm1, %v1426_v51, %v1428_v52 }
  0xa4   : > { %12900 = vmatpush3.bf16.msra.mxu0 %v14635_v41  ;;  %v1885_v41 = vrot.slane %v15633_v36, 1 }
  0xa5   : > { %12901 = vmatprep.subr.bf16.mxu0 %v14636_v43 }
  0xa6   : > { %v1888_v46 = vsel %vm1406_vm1, %v1885_v41, %v1887_v42 }
  0xa7   : > { %12866 = vmatmul.mubr.bf16.gmra.mrb[8].mxu0 %v15415_v56  ;;  %v1430_v56 = vrot.slane %v15499_v32, 1  ;;  %v1881_v32 = vrot.slane %v15617_v28, 1 }
  0xa8   : > { %12869 = vmatprep.mubr.bf16.mxu0 %v1421_v45  ;;  %12902 = vmatpush3.bf16.msra.mxu0 %v14636_v43  ;;  %v14662_v43 = vld [vmem:[%s18879_s1 + $0x130] sm:$0xff]   ;;  %v15649_v45 = vld [vmem:[%s15326_s18 + $0x58] sm:$0xff]  }
  0xa9   : > { %12903 = vmatprep.subr.bf16.mxu0 %v14637_v44  ;;  %v1431_v58 = vsel %vm1406_vm1, %v1428_v52, %v1430_v56  ;;  %v1433_v59 = vsel %vm1406_vm1, %v1430_v56, %v1432_v57  ;;  %v1882_v35 = vsel %vm1406_vm1, %v1879_v17, %v1881_v32  ;;  %v1884_v37 = vsel %vm1406_vm1, %v1881_v32, %v1883_v33  ;;  %v15667_v52 = vld [vmem:[%s15326_s18 + $0x68] sm:$0xff]  }
  0xaa   : > { %v2226_v17 = vshrl.u32 %v15591_v16, 16 }
  0xac   : > { %12904 = vmatpush3.bf16.msra.mxu0 %v14637_v44  ;;  %v1886_v44 = vsel %vm1406_vm1, %v1883_v33, %v1885_v41  ;;  %v2228_v33 = vrot.slane %v2226_v17, 1  ;;  %v14672_v17 = vld [vmem:[%s18879_s1 + $0x160] sm:$0xff]  }
  0xad   : > { %12905 = vmatprep.subr.bf16.mxu0 %v14638_v48 }
  0xaf   : > { %12870 = vmatmul.mubr.bf16.gmra.mrb[12].mxu0 %v1423_v49  ;;  %v1891_v49 = vrot.slane %v15653_v47, 1 }
  0xb0   : > { %12873 = vmatprep.mubr.bf16.mxu0 %v1425_v50  ;;  %12906 = vmatpush3.bf16.msra.mxu0 %v14638_v48  ;;  %v14666_v48 = vld [vmem:[%s18879_s1 + $0x138] sm:$0xff]   ;;  %v15663_v50 = vld [vmem:[%s18879_s1 + $0x140] sm:$0xff]  }
  0xb1   : > { %12907 = vmatprep.subr.bf16.mxu0 %v14639_v39 }
  0xb4   : > { %12908 = vmatpush3.bf16.msra.mxu0 %v14639_v39  ;;  %v1889_v39 = vrot.slane %v15649_v45, 1 }
  0xb5   : > { %12945 = vmatprep.subr.bf16.mxu0 %v14644_v53 }
  0xb6   : > { %v1890_v51 = vsel %vm1406_vm1, %v1887_v42, %v1889_v39  ;;  %v2244_v42 = vshrl.u32 %v15601_v25, 16 }
  0xb7   : > { %12874 = vmatmul.mubr.bf16.gmra.mrb[16].mxu0 %v1427_v54  ;;  %v15671_v54 = vld [vmem:[%s15326_s18 + $0x70] sm:$0xff]  }
  0xb8   : > { %12877 = vmatprep.mubr.bf16.mxu0 %v1429_v55  ;;  %v1893_v55 = vrot.slane %v15667_v52, 1  ;;  %v1895_v56 = vrot.slane %v15671_v54, 1 }
  0xba   : > { %v1894_v57 = vsel %vm1406_vm1, %v1891_v49, %v1893_v55 }
  0xbf   : > { %12878 = vmatmul.mubr.bf16.gmra.mrb[20].mxu0 %v1431_v58  ;;  %v15678_v58 = vld [vmem:[%s15326_s18 + $0x78] sm:$0xff]  }
  0xc0   : > { %12881 = vmatprep.mubr.bf16.mxu0 %v1433_v59  ;;  %v1896_v59 = vsel %vm1406_vm1, %v1893_v55, %v1895_v56  ;;  %v1897_v61 = vrot.slane %v15678_v58, 1  ;;  %v14669_v55 = vld [vmem:[%s18879_s1 + $0x148] sm:$0xff]  }
  0xc7   : > { %12882 = vmatmul.mubr.bf16.gmra.mrb[24].mxu0 %v1435_v62  ;;  %v1899_v62 = vrot.slane %v15682_v60, 1 }
  0xc8   : > { %12885 = vmatprep.mubr.bf16.mxu0 %v1437_v63  ;;  %v1898_v63 = vsel %vm1406_vm1, %v1895_v56, %v1897_v61 }
  0xc9   : > { %v1900_v2 = vsel %vm1406_vm1, %v1897_v61, %v1899_v62  ;;  %v2262_v61 = vshrl.u32 %v15617_v28, 16 }
  0xcf   : > { %12886 = vmatmul.mubr.bf16.gmra.mrb[28].mxu0 %v1439_v9  ;;  %v1903_v9 = vrot.slane %v15691_v1, 1 }
  0xd0   : > { %12889 = vmatprep.mubr.bf16.mxu0 %v1441_v10  ;;  %v2209_v10 = vshrl.u32 %v15585_v11, 16  ;;  %v2229_v11 = vshll.u32 %v15591_v16, 16 }
  0xd1   : > { %v1906_v32 = vsel %vm1406_vm1, %v1903_v9, %v1905_v7  ;;  %v2292_v7 = vshll.u32 %v15637_v38, 16 }
  0xd2   : > { %v2211_v22 = vrot.slane %v2209_v10, 1 }
  0xd7   : > { %12890 = vmatmul.mubr.bf16.gmra.mrb[32].mxu0 %v1443_v15  ;;  %v1902_v15 = vsel %vm1406_vm1, %v1899_v62, %v1901_v3  ;;  %v2265_v62 = vshll.u32 %v15617_v28, 16 }
  0xd8   : > { %12909 = vmatprep.mubr.bf16.mxu0 %v1872_v19  ;;  %v1904_v19 = vsel %vm1406_vm1, %v1901_v3, %v1903_v9  ;;  %v2271_v3 = vshrl.u32 %v15621_v30, 16  ;;  %v2274_v9 = vshll.u32 %v15621_v30, 16 }
  0xdf   : > { %12910 = vmatmul.mubr.bf16.vlgmr.msra.gmra.mrb[0].mxu0 %v1874_v24  ;;  %v2214_v24 = vrot.slane %v2212_v12, 2  ;;  %v2267_v12 = vrot.slane %v2265_v62, 2  ;;  %v2328_v62 = vshll.u32 %v15671_v54, 16 }
  0xe0   : > { %12946 = vmatpush3.bf16.msra.mxu0 %v14644_v53  ;;  %12913 = vmatprep.mubr.bf16.mxu0 %v1876_v26  ;;  %v1892_v53 = vsel %vm1406_vm1, %v1889_v39, %v1891_v49  ;;  %v2219_v26 = vrot.slane %v2217_v13, 1  ;;  %v2246_v49 = vrot.slane %v2244_v42, 1  ;;  %v2310_v42 = vshll.u32 %v15653_v47, 16 }
  0xe1   : > { %12947 = vmatprep.subr.bf16.mxu0 %v14647_v6 }
  0xe4   : > { %12948 = vmatpush3.bf16.msra.mxu0 %v14647_v6  ;;  %v2222_v6 = vrot.slane %v2220_v14, 2  ;;  %v2273_v14 = vrot.slane %v2271_v3, 1 }
  0xe5   : > { %12949 = vmatprep.subr.bf16.mxu0 %v14650_v18 }
  0xe7   : > { %12914 = vmatmul.mubr.bf16.gmra.mrb[4].mxu0 %v1878_v23  ;;  %v2223_v23 = vor.u32 %v2222_v6, %v2219_v26  ;;  %v2289_v6 = vshrl.u32 %v15637_v38, 16 }
  0xe8   : > { %12917 = vmatprep.mubr.bf16.mxu0 %v1880_v29  ;;  %12950 = vmatpush3.bf16.msra.mxu0 %v14650_v18  ;;  %v2215_v18 = vor.u32 %v2214_v24, %v2211_v22  ;;  %v2235_v29 = vshrl.u32 %v15595_v5, 16  ;;  %v2280_v22 = vshrl.u32 %v15633_v36, 16  ;;  %v2283_v24 = vshll.u32 %v15633_v36, 16 }
  0xe9   : > { %12951 = vmatprep.subr.bf16.mxu0 %v14653_v31 }
  0xec   : > { %12952 = vmatpush3.bf16.msra.mxu0 %v14653_v31  ;;  %v2238_v31 = vshll.u32 %v15595_v5, 16 }
  0xed   : > { %12953 = vmatprep.subr.bf16.mxu0 %v14656_v34 }
  0xef   : > { %12918 = vmatmul.mubr.bf16.gmra.mrb[8].mxu0 %v1882_v35  ;;  %v2224_v35 = vsel %vm2207_vm2, %v2215_v18, %v2223_v23  ;;  %v2282_v18 = vrot.slane %v2280_v22, 1  ;;  %v2346_v22 = vshll.u32 %v15682_v60, 16 }
  0xf0   : > { %12921 = vmatprep.mubr.bf16.mxu0 %v1884_v37  ;;  %12954 = vmatpush3.bf16.msra.mxu0 %v14656_v34  ;;  %v2231_v34 = vrot.slane %v2229_v11, 2  ;;  %v2237_v37 = vrot.slane %v2235_v29, 1 }
  0xf1   : > { %12955 = vmatprep.subr.bf16.mxu0 %v14659_v40 }
  0xf2   : > { %v2232_v41 = vor.u32 %v2231_v34, %v2228_v33  ;;  %v14673_v33 = vld [vmem:[%s18879_s1 + $0x168] sm:$0xff]  }
  0xf4   : > { %12956 = vmatpush3.bf16.msra.mxu0 %v14659_v40  ;;  %v2240_v40 = vrot.slane %v2238_v31, 2  ;;  %v2233_v39 = vsel %vm2207_vm2, %v2223_v23, %v2232_v41  ;;  %v2285_v23 = vrot.slane %v2283_v24, 2  ;;  %v2291_v31 = vrot.slane %v2289_v6, 1 }
  0xf5   : > { %12957 = vmatprep.subr.bf16.mxu0 %v14662_v43 }
  0xf6   : > { %v2286_v34 = vor.u32 %v2285_v23, %v2282_v18  ;;  %v2352_v23 = vshrl.u32 %v15688_v0, 16 }
  0xf7   : > { %12922 = vmatmul.mubr.bf16.gmra.mrb[12].mxu0 %v1886_v44  ;;  %v2241_v44 = vor.u32 %v2240_v40, %v2237_v37  ;;  %v2301_v37 = vshll.u32 %v15649_v45, 16 }
  0xf8   : > { %12925 = vmatprep.mubr.bf16.mxu0 %v1888_v46  ;;  %12958 = vmatpush3.bf16.msra.mxu0 %v14662_v43  ;;  %v2247_v43 = vshll.u32 %v15601_v25, 16  ;;  %v2253_v46 = vshrl.u32 %v15608_v27, 16 }
  0xf9   : > { %12959 = vmatprep.subr.bf16.mxu0 %v14666_v48 }
  0xfa   : > { %v2255_v56 = vrot.slane %v2253_v46, 1 }
  0xfc   : > { %12960 = vmatpush3.bf16.msra.mxu0 %v14666_v48  ;;  %v2256_v48 = vshll.u32 %v15608_v27, 16 }
  0xfd   : > { %12997 = vmatprep.subr.bf16.mxu0 %v15663_v50 }
  0xff   : > { %12926 = vmatmul.mubr.bf16.gmra.mrb[16].mxu0 %v1890_v51  ;;  %v2249_v51 = vrot.slane %v2247_v43, 2  ;;  %v14674_v43 = vld [vmem:[%s18879_s1 + $0x170] sm:$0xff]  }
 0x100   : > { %12929 = vmatprep.mubr.bf16.mxu0 %v1892_v53  ;;  %v2242_v53 = vsel %vm2207_vm2, %v2232_v41, %v2241_v44  ;;  %v2307_v41 = vshrl.u32 %v15653_v47, 16 }
 0x107   : > { %12930 = vmatmul.mubr.bf16.gmra.mrb[20].mxu0 %v1894_v57  ;;  %v2258_v57 = vrot.slane %v2256_v48, 2  ;;  %v2303_v48 = vrot.slane %v2301_v37, 2 }
 0x108   : > { %12933 = vmatprep.mubr.bf16.mxu0 %v1896_v59  ;;  %v2250_v59 = vor.u32 %v2249_v51, %v2246_v49  ;;  %v2309_v49 = vrot.slane %v2307_v41, 1  ;;  %v2312_v51 = vrot.slane %v2310_v42, 2 }
 0x10a   : > { %v2251_v10 = vsel %vm2207_vm2, %v2241_v44, %v2250_v59 }
 0x10f   : > { %12934 = vmatmul.mubr.bf16.gmra.mrb[24].mxu0 %v1898_v63  ;;  %v2259_v63 = vor.u32 %v2258_v57, %v2255_v56  ;;  %v2316_v56 = vshrl.u32 %v15667_v52, 16  ;;  %v2319_v57 = vshll.u32 %v15667_v52, 16 }
 0x110   : > { %12937 = vmatprep.mubr.bf16.mxu0 %v1900_v2  ;;  %v14670_v2 = vld [vmem:[%s18879_s1 + $0x150] sm:$0xff]  }
 0x111   : > { %v2260_v13 = vsel %vm2207_vm2, %v2250_v59, %v2259_v63  ;;  %v2313_v59 = vor.u32 %v2312_v51, %v2309_v49  ;;  %v2318_v3 = vrot.slane %v2316_v56, 1  ;;  %v2657_v49 = vld [vmem:[%s15326_s18 + $0x8] sm:$0xc] }
 0x117   : > { %12938 = vmatmul.mubr.bf16.gmra.mrb[28].mxu0 %v1902_v15  ;;  %v2276_v15 = vrot.slane %v2274_v9, 2  ;;  %v2321_v9 = vrot.slane %v2319_v57, 2  ;;  %v11444_v57 = vcombine.low %v2657_v49, %v15577_v4 }
 0x118   : > { %12941 = vmatprep.mubr.bf16.mxu0 %v1904_v19  ;;  %v14671_v19 = vld [vmem:[%s18879_s1 + $0x158] sm:$0xff]  }
 0x119   : > { %v2277_v26 = vor.u32 %v2276_v15, %v2273_v14  ;;  %v2334_v14 = vshrl.u32 %v15678_v58, 16  ;;  %v2337_v15 = vshll.u32 %v15678_v58, 16 }
 0x11b   : > { %v2287_v44 = vsel %vm2207_vm2, %v2277_v26, %v2286_v34  ;;  %v2339_v6 = vrot.slane %v2337_v15, 2  ;;  %v14682_v15 = vld [vmem:[%s18879_s1 + $0x1a0] sm:$0xff]  }
 0x11f   : > { %12942 = vmatmul.mubr.bf16.gmra.mrb[32].mxu0 %v1906_v32  ;;  %v2294_v32 = vrot.slane %v2292_v7, 2 }
 0x120   : > { %12961 = vmatprep.mubr.bf16.mxu0 %v2224_v35  ;;  %v2298_v35 = vshrl.u32 %v15649_v45, 16 }
 0x121   : > { %v2295_v40 = vor.u32 %v2294_v32, %v2291_v31  ;;  %v2361_v32 = vshrl.u32 %v15691_v1, 16 }
 0x122   : > { %v2300_v46 = vrot.slane %v2298_v35, 1  ;;  %v2354_v35 = vrot.slane %v2352_v23, 1  ;;  %v2704_v23 = vrot.slane %v15671_v54, 2 }
 0x123   : > { %v2363_v42 = vrot.slane %v2361_v32, 1  ;;  %v2708_v32 = vrot.slane %v15682_v60, 2 }
 0x127   : > { %12962 = vmatmul.mubr.bf16.vlgmr.msra.gmra.mrb[0].mxu0 %v2233_v39  ;;  %v2296_v39 = vsel %vm2207_vm2, %v2286_v34, %v2295_v40 }
 0x128   : > { %12998 = vmatpush3.bf16.msra.mxu0 %v15663_v50  ;;  %12965 = vmatprep.mubr.bf16.mxu0 %v2242_v53  ;;  %v2264_v50 = vrot.slane %v2262_v61, 1  ;;  %v14675_v53 = vld [vmem:[%s18879_s1 + $0x178] sm:$0xff]   ;;  %v2325_v61 = vshrl.u32 %v15671_v54, 16  ;;  %v2712_v54 = vrot.slane %v15691_v1, 2 }
 0x129   : > { %12999 = vmatprep.subr.bf16.mxu0 %v14669_v55 }
 0x12a   : > { %v2268_v21 = vor.u32 %v2267_v12, %v2264_v50  ;;  %v2327_v50 = vrot.slane %v2325_v61, 1  ;;  %v2330_v12 = vrot.slane %v2328_v62, 2  ;;  %v2679_v61 = vrot.slane %v11444_v57, 2  ;;  %v15880_v57 = vld [vmem:[%s15326_s18 + $0x38] sm:$0xff]  }
 0x12b   : > { %v2680_v62 = vrot.slane %v15580_v8, 2  ;;  %v2686_v8 = vrot.slane %v15601_v25, 2  ;;  %v2690_v25 = vrot.slane %v15617_v28, 2  ;;  %v2694_v28 = vrot.slane %v15633_v36, 2 }
 0x12c   : > { %13000 = vmatpush3.bf16.msra.mxu0 %v14669_v55  ;;  %v2269_v11 = vsel %vm2207_vm2, %v2259_v63, %v2268_v21  ;;  %v2278_v29 = vsel %vm2207_vm2, %v2268_v21, %v2277_v26  ;;  %v2304_v55 = vor.u32 %v2303_v48, %v2300_v46  ;;  %v15762_v63 = vld [vmem:[%s18879_s1 + $0x180] sm:$0xff]   ;;  %v2343_v21 = vshrl.u32 %v15682_v60, 16 }
 0x12d   : > { %13001 = vmatprep.subr.bf16.mxu0 %v14670_v2  ;;  %v2336_v26 = vrot.slane %v2334_v14, 1  ;;  %v2698_v36 = vrot.slane %v15649_v45, 2  ;;  %v2702_v45 = vrot.slane %v15667_v52, 2  ;;  %v2710_v52 = vrot.slane %v15688_v0, 2 }
 0x12f   : > { %12966 = vmatmul.mubr.bf16.gmra.mrb[4].mxu0 %v2251_v10  ;;  %v2314_v10 = vsel %vm2207_vm2, %v2304_v55, %v2313_v59  ;;  %v2340_v18 = vor.u32 %v2339_v6, %v2336_v26 }
 0x130   : > { %12969 = vmatprep.mubr.bf16.mxu0 %v2260_v13  ;;  %13002 = vmatpush3.bf16.msra.mxu0 %v14670_v2  ;;  %v2305_v2 = vsel %vm2207_vm2, %v2295_v40, %v2304_v55  ;;  %v2322_v13 = vor.u32 %v2321_v9, %v2318_v3  ;;  %v15779_v40 = vld [vmem:[%s15326_s18 + $0x98] ss:$0 sps:$4 sm:$0x33]   ;;  %v2681_v3 = vsel %vm2678_vm3, %v2679_v61, %v2680_v62  ;;  %v2682_v9 = vrot.slane %v15591_v16, 2  ;;  %v14680_v16 = vld [vmem:[%s18879_s1 + $0x190] sm:$0xff]  }
 0x131   : > { %13003 = vmatprep.subr.bf16.mxu0 %v14671_v19  ;;  %v2370_v46 = vshrl.u32 %v15779_v40, 16  ;;  %v2373_v48 = vshll.u32 %v15779_v40, 16  ;;  %v3151_v61 = vrot.slane %v15880_v57, 2 }
 0x132   : > { %v2323_v24 = vsel %vm2207_vm2, %v2313_v59, %v2322_v13 }
 0x133   : > { %v2375_v55 = vrot.slane %v2373_v48, 2 }
 0x134   : > { %13004 = vmatpush3.bf16.msra.mxu0 %v14671_v19  ;;  %v2331_v19 = vor.u32 %v2330_v12, %v2327_v50  ;;  %v2683_v50 = vsel %vm2678_vm3, %v2680_v62, %v2682_v9  ;;  %v14679_v12 = vld [vmem:[%s18879_s1 + $0x188] sm:$0xff]   ;;  %v14695_v62 = vld [vmem:[%s18879_s1 + $0x1d0] sm:$0xff]  }
 0x135   : > { %13005 = vmatprep.subr.bf16.mxu0 %v14672_v17 }
 0x136   : > { %v2332_v7 = vsel %vm2207_vm2, %v2322_v13, %v2331_v19  ;;  %v2341_v34 = vsel %vm2207_vm2, %v2331_v19, %v2340_v18  ;;  %v2688_v13 = vrot.slane %v15608_v27, 2  ;;  %v2692_v27 = vrot.slane %v15621_v30, 2 }
 0x137   : > { %12970 = vmatmul.mubr.bf16.gmra.mrb[8].mxu0 %v2269_v11  ;;  %v2348_v11 = vrot.slane %v2346_v22, 2  ;;  %v14683_v22 = vld [vmem:[%s18879_s1 + $0x1a8] sm:$0xff]   ;;  %v2696_v30 = vrot.slane %v15637_v38, 2  ;;  %v2700_v38 = vrot.slane %v15653_v47, 2 }
 0x138   : > { %12973 = vmatprep.mubr.bf16.mxu0 %v2278_v29  ;;  %13006 = vmatpush3.bf16.msra.mxu0 %v14672_v17  ;;  %v2345_v17 = vrot.slane %v2343_v21, 1  ;;  %v2355_v29 = vshll.u32 %v15688_v0, 16  ;;  %v2689_v14 = vsel %vm2678_vm3, %v2686_v8, %v2688_v13  ;;  %v2691_v19 = vsel %vm2678_vm3, %v2688_v13, %v2690_v25 }
 0x139   : > { %13007 = vmatprep.subr.bf16.mxu0 %v14673_v33  ;;  %v2693_v21 = vsel %vm2678_vm3, %v2690_v25, %v2692_v27  ;;  %v2695_v26 = vsel %vm2678_vm3, %v2692_v27, %v2694_v28  ;;  %v2697_v6 = vsel %vm2678_vm3, %v2694_v28, %v2696_v30  ;;  %v2703_v47 = vsel %vm2678_vm3, %v2700_v38, %v2702_v45  ;;  %v15925_v28 = vld [vmem:[%s15326_s18 + $0x68] sm:$0xff]  }
 0x13a   : > { %v2349_v31 = vor.u32 %v2348_v11, %v2345_v17  ;;  %v2357_v37 = vrot.slane %v2355_v29, 2  ;;  %v14689_v17 = vld [vmem:[%s18879_s1 + $0x1c0] sm:$0xff]   ;;  %v2699_v11 = vsel %vm2678_vm3, %v2696_v30, %v2698_v36  ;;  %v2705_v29 = vsel %vm2678_vm3, %v2702_v45, %v2704_v23  ;;  %v14711_v30 = vld [vmem:[%s18879_s1 + $0x1f8] sm:$0xff]  }
 0x13b   : > { %v2714_v0 = vrot.slane %v15779_v40, 2  ;;  %v15214_v45 = vmov 0  }
 0x13c   : > { %13008 = vmatpush3.bf16.msra.mxu0 %v14673_v33  ;;  %v2364_v33 = vshll.u32 %v15691_v1, 16  ;;  %v2350_v41 = vsel %vm2207_vm2, %v2340_v18, %v2349_v31  ;;  %v2701_v18 = vsel %vm2678_vm3, %v2698_v36, %v2700_v38  ;;  %v15939_v36 = vld [vmem:[%s15326_s18 + $0x70] sm:$0xff]   ;;  %14587 = vset.pattern.permute.xlu0 %v15214_v45  ;;  %5890 = vst [vmem:[#allocation2] sm:$0xf] %v15214_v45  ;;  %5891 = vst [vmem:[#allocation2 + $0x4] sm:$0xf] %v15214_v45 }
 0x13d   : > { %13009 = vmatprep.subr.bf16.mxu0 %v14674_v43  ;;  %5898 = vst [vmem:[#allocation2 + $0x9c] sm:$0xf] %v15214_v45  ;;  %5899 = vst [vmem:[#allocation2 + $0xa0] sm:$0xf] %v15214_v45  ;;  %14588 = vset.pattern.permute.xlu1 %v15214_v45 }
 0x13f   : > { %12974 = vmatmul.mubr.bf16.gmra.mrb[12].mxu0 %v2287_v44  ;;  %v2358_v44 = vor.u32 %v2357_v37, %v2354_v35  ;;  %v2995_v35 = vld [vmem:[%s15326_s18 + $0x10] sm:$0xc]  ;;  %v15848_v37 = vld [vmem:[%s15326_s18 + $0x14] sm:$0xf] }
 0x140   : > { %12977 = vmatprep.mubr.bf16.mxu0 %v2296_v39  ;;  %13010 = vmatpush3.bf16.msra.mxu0 %v14674_v43  ;;  %v2366_v43 = vrot.slane %v2364_v33, 2  ;;  %v15853_v60 = vcombine.low %v2995_v35, %v15848_v37  ;;  %v15177_v35 = vld [vmem:[%s15326_s18 + $0x40] sm:$0xff]  }
 0x141   : > { %13011 = vmatprep.subr.bf16.mxu0 %v14675_v53  ;;  %v2359_v51 = vsel %vm2207_vm2, %v2349_v31, %v2358_v44  ;;  %v2706_v31 = vrot.slane %v15678_v58, 2  ;;  %v2713_v58 = vsel %vm2678_vm3, %v2710_v52, %v2712_v54 }
 0x142   : > { %v2367_v39 = vor.u32 %v2366_v43, %v2363_v42  ;;  %v15856_v42 = vld [vmem:[%s15326_s18 + $0x18] sm:$0xff]   ;;  %v3142_v1 = vrot.slane %v15853_v60, 2 }
 0x143   : > { %v2707_v33 = vsel %vm2678_vm3, %v2704_v23, %v2706_v31  ;;  %v3143_v43 = vrot.slane %v15856_v42, 2  ;;  %v553_v23 = vld [vmem:[%s18889_s11 + $0x10] sm:$0xff] }
 0x144   : > { %13012 = vmatpush3.bf16.msra.mxu0 %v14675_v53  ;;  %v2372_v53 = vrot.slane %v2370_v46, 1  ;;  %v2368_v56 = vsel %vm2207_vm2, %v2358_v44, %v2367_v39  ;;  %v2715_v44 = vsel %vm2678_vm3, %v2712_v54, %v2714_v0  ;;  %v15863_v46 = vld [vmem:[%s15326_s18 + $0x20] sm:$0xff]   ;;  %4322 = vperm.xlu1 %14588, %v553_v23   ;;  %v560_v23 = vld [vmem:[%s18889_s11 + $0x48] sm:$0xff] }
 0x145   : > { %13049 = vmatprep.subr.bf16.mxu0 %v15762_v63  ;;  %v3144_v48 = vsel %vm2678_vm3, %v3142_v1, %v3143_v43  ;;  %v3145_v49 = vrot.slane %v15863_v46, 2  ;;  %v555_v0 = vld [vmem:[%s18889_s11 + $0x20] sm:$0xff] }
 0x146   : > { %v2376_v59 = vor.u32 %v2375_v55, %v2372_v53  ;;  %v15873_v53 = vld [vmem:[%s15326_s18 + $0x30] sm:$0xff]  }
 0x147   : > { %12978 = vmatmul.mubr.bf16.gmra.mrb[16].mxu0 %v2305_v2  ;;  %v3146_v40 = vsel %vm2678_vm3, %v3143_v43, %v3145_v49 }
 0x148   : > { %12981 = vmatprep.mubr.bf16.mxu0 %v2314_v10  ;;  %v2377_v2 = vsel %vm2207_vm2, %v2367_v39, %v2376_v59  ;;  %v2684_v10 = vrot.slane %v15595_v5, 2  ;;  %v15867_v39 = vld [vmem:[%s15326_s18 + $0x28] sm:$0xff]   ;;  %v3149_v59 = vrot.slane %v15873_v53, 2 }
 0x14a   : > { %v2685_v4 = vsel %vm2678_vm3, %v2682_v9, %v2684_v10  ;;  %v2687_v5 = vsel %vm2678_vm3, %v2684_v10, %v2686_v8  ;;  %v3152_v9 = vsel %vm2678_vm3, %v3149_v59, %v3151_v61  ;;  %v15893_v10 = vld [vmem:[%s15326_s18 + $0x48] sm:$0xff]   ;;  %v14701_v8 = vld [vmem:[%s18879_s1 + $0x1e0] sm:$0xff]  }
 0x14f   : > { %12982 = vmatmul.mubr.bf16.gmra.mrb[20].mxu0 %v2323_v24  ;;  %v14684_v24 = vld [vmem:[%s18879_s1 + $0x1b0] sm:$0xff]  }
 0x150   : > { %12985 = vmatprep.mubr.bf16.mxu0 %v2332_v7  ;;  %v14685_v7 = vld [vmem:[%s18879_s1 + $0x1b8] sm:$0xff]  }
 0x157   : > { %12986 = vmatmul.mubr.bf16.gmra.mrb[24].mxu0 %v2341_v34  ;;  %v2709_v34 = vsel %vm2678_vm3, %v2706_v31, %v2708_v32 }
 0x158   : > { %12989 = vmatprep.mubr.bf16.mxu0 %v2350_v41  ;;  %v2711_v41 = vsel %vm2678_vm3, %v2708_v32, %v2710_v52  ;;  %v15959_v32 = vld [vmem:[%s15326_s18 + $0x80] sm:$0xff]   ;;  %v15176_v52 = vld [vmem:[%s15326_s18 + $0x48] sm:$0xff]  }
 0x159   : > { %v823_v54 = vshll.u32 %v15176_v52, 16  ;;  %v827_v43 = vshrl.u32 %v15176_v52, 16 }
 0x15b   : > { %v825_v1 = vrot.slane %v823_v54, 1 }
 0x15f   : > { %12990 = vmatmul.mubr.bf16.gmra.mrb[28].mxu0 %v2359_v51  ;;  %v3147_v51 = vrot.slane %v15867_v39, 2 }
 0x160   : > { %12993 = vmatprep.mubr.bf16.mxu0 %v2368_v56  ;;  %v14692_v56 = vld [vmem:[%s18879_s1 + $0x1c8] sm:$0xff]  }
 0x161   : > { %v3148_v55 = vsel %vm2678_vm3, %v3145_v49, %v3147_v51  ;;  %v3169_v49 = vrot.slane %v15959_v32, 2 }
 0x167   : > { %12994 = vmatmul.mubr.bf16.gmra.mrb[32].mxu0 %v2377_v2  ;;  %v3150_v2 = vsel %vm2678_vm3, %v3147_v51, %v3149_v59  ;;  %v556_v59 = vld [vmem:[%s18889_s11 + $0x28] sm:$0xff] }
 0x168   : > { %13013 = vmatprep.mubr.bf16.mxu0 %v2681_v3  ;;  %v15889_v3 = vld [vmem:[%s15326_s18 + $0x40] sm:$0xff]  }
 0x16f   : > { %13014 = vmatmul.mubr.bf16.vlgmr.msra.gmra.mrb[0].mxu0 %v2683_v50  ;;  %v14698_v50 = vld [vmem:[%s18879_s1 + $0x1d8] sm:$0xff]  }
 0x170   : > { %13050 = vmatpush3.bf16.msra.mxu0 %v15762_v63  ;;  %13017 = vmatprep.mubr.bf16.mxu0 %v2685_v4  ;;  %v14681_v63 = vld [vmem:[%s18879_s1 + $0x198] sm:$0xff]   ;;  %v3153_v4 = vrot.slane %v15889_v3, 2 }
 0x171   : > { %13051 = vmatprep.subr.bf16.mxu0 %v14679_v12 }
 0x172   : > { %v3154_v13 = vsel %vm2678_vm3, %v3151_v61, %v3153_v4  ;;  %v15981_v61 = vld [vmem:[%s15326_s18 + $0x90] sm:$0xff]  }
 0x174   : > { %13052 = vmatpush3.bf16.msra.mxu0 %v14679_v12  ;;  %v3155_v12 = vrot.slane %v15893_v10, 2 }
 0x175   : > { %13053 = vmatprep.subr.bf16.mxu0 %v14680_v16 }
 0x177   : > { %13018 = vmatmul.mubr.bf16.gmra.mrb[4].mxu0 %v2687_v5  ;;  %v3156_v5 = vsel %vm2678_vm3, %v3153_v4, %v3155_v12  ;;  %v15991_v4 = vld [vmem:[%s15326_s18 + $0x98] sm:$0xff]  }
 0x178   : > { %13021 = vmatprep.mubr.bf16.mxu0 %v2689_v14  ;;  %13054 = vmatpush3.bf16.msra.mxu0 %v14680_v16  ;;  %v15905_v16 = vld [vmem:[%s15326_s18 + $0x50] sm:$0xff]   ;;  %v15909_v14 = vld [vmem:[%s15326_s18 + $0x58] sm:$0xff]  }
 0x179   : > { %13055 = vmatprep.subr.bf16.mxu0 %v14681_v63  ;;  %v3157_v25 = vrot.slane %v15905_v16, 2  ;;  %v3159_v27 = vrot.slane %v15909_v14, 2 }
 0x17c   : > { %13056 = vmatpush3.bf16.msra.mxu0 %v14681_v63  ;;  %v14704_v63 = vld [vmem:[%s18879_s1 + $0x1e8] sm:$0xff]  }
 0x17d   : > { %13057 = vmatprep.subr.bf16.mxu0 %v14682_v15 }
 0x17f   : > { %13022 = vmatmul.mubr.bf16.gmra.mrb[8].mxu0 %v2691_v19  ;;  %v3158_v19 = vsel %vm2678_vm3, %v3155_v12, %v3157_v25  ;;  %v15179_v12 = vld [vmem:[%s15326_s18 + $0x58] sm:$0xff]  }
 0x180   : > { %13025 = vmatprep.mubr.bf16.mxu0 %v2693_v21  ;;  %13058 = vmatpush3.bf16.msra.mxu0 %v14682_v15  ;;  %v14707_v15 = vld [vmem:[%s18879_s1 + $0x1f0] sm:$0xff]   ;;  %v15921_v21 = vld [vmem:[%s15326_s18 + $0x60] sm:$0xff]  }
 0x181   : > { %13059 = vmatprep.subr.bf16.mxu0 %v14683_v22 }
 0x184   : > { %13060 = vmatpush3.bf16.msra.mxu0 %v14683_v22  ;;  %v3160_v22 = vsel %vm2678_vm3, %v3157_v25, %v3159_v27  ;;  %v558_v25 = vld [vmem:[%s18889_s11 + $0x38] sm:$0xff] }
 0x185   : > { %13061 = vmatprep.subr.bf16.mxu0 %v14684_v24 }
 0x187   : > { %13026 = vmatmul.mubr.bf16.gmra.mrb[12].mxu0 %v2695_v26  ;;  %v3163_v26 = vrot.slane %v15925_v28, 2 }
 0x188   : > { %13029 = vmatprep.mubr.bf16.mxu0 %v2697_v6  ;;  %13062 = vmatpush3.bf16.msra.mxu0 %v14684_v24  ;;  %v3161_v24 = vrot.slane %v15921_v21, 2  ;;  %v15935_v6 = vld [vmem:[%s18879_s1 + $0x200] sm:$0xff]  }
 0x189   : > { %13063 = vmatprep.subr.bf16.mxu0 %v14685_v7 }
 0x18a   : > { %v3164_v38 = vsel %vm2678_vm3, %v3161_v24, %v3163_v26 }
 0x18c   : > { %13064 = vmatpush3.bf16.msra.mxu0 %v14685_v7  ;;  %v3162_v7 = vsel %vm2678_vm3, %v3159_v27, %v3161_v24  ;;  %v559_v27 = vld [vmem:[%s18889_s11 + $0x40] sm:$0xff]  ;;  %v3484_v24 = vshll.u32 %v15853_v60, 16 }
 0x18d   : > { %13101 = vmatprep.subr.bf16.mxu0 %v14689_v17 }
 0x18e   : > { %v3486_v54 = vrot.slane %v3484_v24, 3 }
 0x18f   : > { %13030 = vmatmul.mubr.bf16.gmra.mrb[16].mxu0 %v2699_v11  ;;  %v551_v11 = vld [vmem:[%s18889_s11] sm:$0xff] }
 0x190   : > { %13033 = vmatprep.mubr.bf16.mxu0 %v2701_v18  ;;  %v3165_v18 = vrot.slane %v15939_v36, 2  ;;  %4312 = vperm.xlu0 %14587, %v551_v11   ;;  %v3175_v11 = vrot.slane %v15991_v4, 2 }
 0x192   : > { %v3166_v31 = vsel %vm2678_vm3, %v3163_v26, %v3165_v18  ;;  %v3489_v26 = vshrl.u32 %v15856_v42, 16 }
 0x197   : > { %13034 = vmatmul.mubr.bf16.gmra.mrb[20].mxu0 %v2703_v47 }
 0x198   : > { %13037 = vmatprep.mubr.bf16.mxu0 %v2705_v29  ;;  %v552_v29 = vld [vmem:[%s18889_s11 + $0x8] sm:$0xff] }
 0x199   : > { %4317 = vperm.xlu0 %14587, %v552_v29  }
 0x19d   : > { %4332 = vperm.xlu0 %14587, %v555_v0   ;;  %v15181_v0 = vld [vmem:[%s15326_s18 + $0x68] sm:$0xff]  }
 0x19f   : > { %13038 = vmatmul.mubr.bf16.gmra.mrb[24].mxu0 %v2707_v33  ;;  %v15962_v33 = vld [vmem:[%s15326_s18 + $0x88] sm:$0xff]  }
 0x1a0   : > { %13041 = vmatprep.mubr.bf16.mxu0 %v2709_v34  ;;  %v3171_v51 = vrot.slane %v15962_v33, 2 }
 0x1a7   : > { %13042 = vmatmul.mubr.bf16.gmra.mrb[28].mxu0 %v2711_v41  ;;  %v819_v41 = vshrl.u32 %v15177_v35, 16  ;;  %v3491_v35 = vrot.slane %v3489_v26, 2 }
 0x1a8   : > { %13045 = vmatprep.mubr.bf16.mxu0 %v2713_v58  ;;  %v554_v58 = vld [vmem:[%s18889_s11 + $0x18] sm:$0xff] }
 0x1a9   : > { %4327 = vperm.xlu1 %14588, %v554_v58  }
 0x1ad   : > { %4337 = vperm.xlu1 %14588, %v556_v59  }
 0x1af   : > { %13046 = vmatmul.mubr.bf16.gmra.mrb[32].mxu0 %v2715_v44  ;;  %v15178_v44 = vld [vmem:[%s15326_s18 + $0x50] sm:$0xff]  }
 0x1b0   : > { %13065 = vmatprep.mubr.bf16.mxu0 %v3144_v48  ;;  %v831_v48 = vshll.u32 %v15178_v44, 16 }
 0x1b1   : > { %4347 = vperm.xlu1 %14588, %v558_v25   ;;  %v565_v25 = vld [vmem:[%s18889_s11 + $0x70] sm:$0xff] }
 0x1b5   : > { %4357 = vperm.xlu1 %14588, %v560_v23   ;;  %v3519_v23 = vshll.u32 %v15873_v53, 16 }
 0x1b7   : > { %13066 = vmatmul.mubr.bf16.vlgmr.msra.gmra.mrb[0].mxu0 %v3146_v40  ;;  %v821_v40 = vor.u32 %v819_v41, %v15444_v20 }
 0x1b8   : > { %13102 = vmatpush3.bf16.msra.mxu0 %v14689_v17  ;;  %13069 = vmatprep.mubr.bf16.mxu0 %v3148_v55  ;;  %v15943_v17 = vld [vmem:[%s15326_s18 + $0x78] sm:$0xff]   ;;  %v829_v55 = vor.u32 %v827_v43, %v825_v1 }
 0x1b9   : > { %13103 = vmatprep.subr.bf16.mxu0 %v14692_v56  ;;  %v3167_v47 = vrot.slane %v15943_v17, 2 }
 0x1bb   : > { %v3168_v34 = vsel %vm2678_vm3, %v3165_v18, %v3167_v47  ;;  %v3170_v20 = vsel %vm2678_vm3, %v3167_v47, %v3169_v49  ;;  %v14712_v47 = vld [vmem:[%s15326_s18 + $0xa0] ss:$0 sps:$4 sm:$0x33]  }
 0x1bc   : > { %13104 = vmatpush3.bf16.msra.mxu0 %v14692_v56  ;;  %v833_v56 = vrot.slane %v831_v48, 1  ;;  %v3177_v43 = vrot.slane %v14712_v47, 2  ;;  %v3498_v48 = vshrl.u32 %v15863_v46, 16  ;;  %v567_v47 = vld [vmem:[%s18889_s11 + $0x80] sm:$0xff] }
 0x1bd   : > { %13105 = vmatprep.subr.bf16.mxu0 %v14695_v62 }
 0x1bf   : > { %13070 = vmatmul.mubr.bf16.gmra.mrb[4].mxu0 %v3150_v2  ;;  %v557_v2 = vld [vmem:[%s18889_s11 + $0x30] sm:$0xff] }
 0x1c0   : > { %13073 = vmatprep.mubr.bf16.mxu0 %v3152_v9  ;;  %13106 = vmatpush3.bf16.msra.mxu0 %v14695_v62  ;;  %v826_v62 = vsel %vm750_vm0, %v821_v40, %v825_v1  ;;  %v834_v9 = vsel %vm750_vm0, %v829_v55, %v833_v56  ;;  %v855_v1 = vshll.u32 %v15181_v0, 16  ;;  %v859_v55 = vshrl.u32 %v15181_v0, 16 }
 0x1c1   : > { %13107 = vmatprep.subr.bf16.mxu0 %v14698_v50  ;;  %12769 = vmatprep.mubr.bf16.mxu1 %v826_v62 }
 0x1c2   : > { %12770 = vmatmul.mubr.bf16.vlgmr.msra.gmra.mrb[0].mxu1 %v834_v9  ;;  %4342 = vperm.xlu0 %14587, %v557_v2   ;;  %v857_v40 = vrot.slane %v855_v1, 1  ;;  %v3501_v9 = vshll.u32 %v15863_v46, 16 }
 0x1c4   : > { %13108 = vmatpush3.bf16.msra.mxu0 %v14698_v50  ;;  %v3172_v50 = vsel %vm2678_vm3, %v3169_v49, %v3171_v51  ;;  %v562_v49 = vld [vmem:[%s18889_s11 + $0x58] sm:$0xff] }
 0x1c5   : > { %13109 = vmatprep.subr.bf16.mxu0 %v14701_v8  ;;  %4367 = vperm.xlu1 %14588, %v562_v49  }
 0x1c6   : > { %4352 = vperm.xlu0 %14587, %v559_v27  }
 0x1c7   : > { %13074 = vmatmul.mubr.bf16.gmra.mrb[8].mxu0 %v3154_v13  ;;  %v3173_v13 = vrot.slane %v15981_v61, 2 }
 0x1c8   : > { %13077 = vmatprep.mubr.bf16.mxu0 %v3156_v5  ;;  %13110 = vmatpush3.bf16.msra.mxu0 %v14701_v8  ;;  %v839_v8 = vshll.u32 %v15179_v12, 16  ;;  %v835_v5 = vshrl.u32 %v15178_v44, 16 }
 0x1c9   : > { %13111 = vmatprep.subr.bf16.mxu0 %v14704_v63  ;;  %v3176_v58 = vsel %vm2678_vm3, %v3173_v13, %v3175_v11 }
 0x1cc   : > { %13112 = vmatpush3.bf16.msra.mxu0 %v14704_v63  ;;  %v3481_v63 = vshrl.u32 %v15853_v60, 16  ;;  %v561_v60 = vld [vmem:[%s18889_s11 + $0x50] sm:$0xff] }
 0x1cd   : > { %13113 = vmatprep.subr.bf16.mxu0 %v14707_v15  ;;  %4362 = vperm.xlu0 %14587, %v561_v60  }
 0x1ce   : > { %v3483_v52 = vrot.slane %v3481_v63, 2 }
 0x1cf   : > { %13078 = vmatmul.mubr.bf16.gmra.mrb[12].mxu0 %v3158_v19  ;;  %v843_v19 = vshrl.u32 %v15179_v12, 16  ;;  %v3510_v12 = vshll.u32 %v15867_v39, 16 }
 0x1d0   : > { %13081 = vmatprep.mubr.bf16.mxu0 %v3160_v22  ;;  %13114 = vmatpush3.bf16.msra.mxu0 %v14707_v15  ;;  %v841_v15 = vrot.slane %v839_v8, 1  ;;  %v15180_v22 = vld [vmem:[%s15326_s18 + $0x60] sm:$0xff]   ;;  %v3487_v62 = vor.u32 %v3486_v54, %v3483_v52  ;;  %v861_v8 = vor.u32 %v859_v55, %v857_v40  ;;  %v3525_v54 = vshrl.u32 %v15880_v57, 16 }
 0x1d1   : > { %13115 = vmatprep.subr.bf16.mxu0 %v14711_v30  ;;  %v851_v44 = vshrl.u32 %v15180_v22, 16  ;;  %v3512_v26 = vrot.slane %v3510_v12, 3 }
 0x1d2   : > { %v845_v18 = vor.u32 %v843_v19, %v841_v15  ;;  %v3500_v19 = vrot.slane %v3498_v48, 2  ;;  %v569_v48 = vld [vmem:[%s18889_s11 + $0x90] sm:$0xff] }
 0x1d4   : > { %13116 = vmatpush3.bf16.msra.mxu0 %v14711_v30  ;;  %v847_v30 = vshll.u32 %v15180_v22, 16  ;;  %v3503_v22 = vrot.slane %v3501_v9, 3  ;;  %v14714_v9 = vld [vmem:[%s18879_s1 + $0x208] sm:$0xff]  }
 0x1d5   : > { %13153 = vmatprep.subr.bf16.mxu0 %v15935_v6 }
 0x1d6   : > { %v849_v45 = vrot.slane %v847_v30, 1  ;;  %v3504_v52 = vor.u32 %v3503_v22, %v3500_v19  ;;  %v3534_v19 = vshrl.u32 %v15889_v3, 16  ;;  %v3537_v22 = vshll.u32 %v15889_v3, 16 }
 0x1d7   : > { %13082 = vmatmul.mubr.bf16.gmra.mrb[16].mxu0 %v3162_v7  ;;  %v3492_v7 = vshll.u32 %v15856_v42, 16 }
 0x1d8   : > { %13085 = vmatprep.mubr.bf16.mxu0 %v3164_v38  ;;  %v837_v38 = vor.u32 %v835_v5, %v833_v56  ;;  %v15182_v56 = vld [vmem:[%s15326_s18 + $0x70] sm:$0xff]   ;;  %v564_v5 = vld [vmem:[%s18889_s11 + $0x68] sm:$0xff] }
 0x1d9   : > { %v3494_v41 = vrot.slane %v3492_v7, 3  ;;  %v863_v59 = vshll.u32 %v15182_v56, 16  ;;  %4377 = vperm.xlu1 %14588, %v564_v5   ;;  %v15183_v7 = vld [vmem:[%s15326_s18 + $0x78] sm:$0xff]  }
 0x1da   : > { %v842_v29 = vsel %vm750_vm0, %v837_v38, %v841_v15  ;;  %v3178_v15 = vsel %vm2678_vm3, %v3175_v11, %v3177_v43  ;;  %v871_v38 = vshll.u32 %v15183_v7, 16  ;;  %v566_v11 = vld [vmem:[%s18889_s11 + $0x78] sm:$0xff]  ;;  %v875_v60 = vshrl.u32 %v15183_v7, 16  ;;  %v568_v43 = vld [vmem:[%s18889_s11 + $0x88] sm:$0xff] }
 0x1db   : > { %12773 = vmatprep.mubr.bf16.mxu1 %v842_v29  ;;  %v3495_v2 = vor.u32 %v3494_v41, %v3491_v35  ;;  %v3528_v35 = vshll.u32 %v15880_v57, 16  ;;  %v3546_v7 = vshll.u32 %v15893_v10, 16 }
 0x1dc   : > { %v873_v29 = vrot.slane %v871_v38, 1 }
 0x1dd   : > { %v3496_v30 = vsel %vm3479_vm4, %v3487_v62, %v3495_v2  ;;  %4387 = vperm.xlu1 %14588, %v566_v11   ;;  %v3505_v55 = vsel %vm3479_vm4, %v3495_v2, %v3504_v52  ;;  %v570_v2 = vld [vmem:[%s18889_s11 + $0x98] sm:$0xff]  ;;  %v573_v11 = vld [vmem:[%s18889_s11 + $0xb0] sm:$0xff] }
 0x1de   : > { %v877_v0 = vor.u32 %v875_v60, %v873_v29  ;;  %v3539_v60 = vrot.slane %v3537_v22, 3  ;;  %v581_v22 = vld [vmem:[%s18889_s11 + $0xf0] sm:$0xff] }
 0x1df   : > { %13086 = vmatmul.mubr.bf16.gmra.mrb[20].mxu0 %v3166_v31  ;;  %v3174_v31 = vsel %vm2678_vm3, %v3171_v51, %v3173_v13  ;;  %v563_v51 = vld [vmem:[%s18889_s11 + $0x60] sm:$0xff]  ;;  %v865_v13 = vrot.slane %v863_v59, 1  ;;  %v3530_v59 = vrot.slane %v3528_v35, 3  ;;  %v574_v35 = vld [vmem:[%s18889_s11 + $0xb8] sm:$0xff] }
 0x1e0   : > { %13089 = vmatprep.mubr.bf16.mxu0 %v3168_v34  ;;  %v850_v34 = vsel %vm750_vm0, %v845_v18, %v849_v45  ;;  %4372 = vperm.xlu0 %14587, %v563_v51   ;;  %v3516_v18 = vshrl.u32 %v15873_v53, 16  ;;  %v3521_v51 = vrot.slane %v3519_v23, 3 }
 0x1e1   : > { %12774 = vmatmul.mubr.bf16.gmra.mrb[4].mxu1 %v850_v34  ;;  %v866_v27 = vsel %vm750_vm0, %v861_v8, %v865_v13  ;;  %4397 = vperm.xlu1 %14588, %v568_v43  }
 0x1e2   : > { %v3518_v49 = vrot.slane %v3516_v18, 2 }
 0x1e4   : > { %4382 = vperm.xlu0 %14587, %v565_v25   ;;  %v3522_v8 = vor.u32 %v3521_v51, %v3518_v49  ;;  %v15186_v25 = vld [vmem:[%s15326_s18 + $0x90] ss:$0 sps:$4 sm:$0x11]   ;;  %v14717_v49 = vld [vmem:[%s18879_s1 + $0x220] sm:$0xff]   ;;  %v576_v51 = vld [vmem:[%s18889_s11 + $0xc8] sm:$0xff] }
 0x1e5   : > { %4407 = vperm.xlu1 %14588, %v570_v2  }
 0x1e7   : > { %13090 = vmatmul.mubr.bf16.gmra.mrb[24].mxu0 %v3170_v20  ;;  %v853_v20 = vor.u32 %v851_v44, %v849_v45  ;;  %v867_v45 = vshrl.u32 %v15182_v56, 16  ;;  %v3527_v56 = vrot.slane %v3525_v54, 2  ;;  %v14716_v54 = vld [vmem:[%s18879_s1 + $0x218] sm:$0xff]  }
 0x1e8   : > { %13093 = vmatprep.mubr.bf16.mxu0 %v3172_v50  ;;  %v3507_v50 = vshrl.u32 %v15867_v39, 16  ;;  %4392 = vperm.xlu0 %14587, %v567_v47  }
 0x1e9   : > { %v858_v63 = vsel %vm750_vm0, %v853_v20, %v857_v40  ;;  %v869_v41 = vor.u32 %v867_v45, %v865_v13  ;;  %v15185_v20 = vld [vmem:[%s15326_s18 + $0x88] sm:$0xff]   ;;  %v571_v13 = vld [vmem:[%s18889_s11 + $0xa0] sm:$0xff] }
 0x1ea   : > { %12777 = vmatprep.mubr.bf16.mxu1 %v858_v63  ;;  %v3509_v24 = vrot.slane %v3507_v50, 2  ;;  %v887_v50 = vshll.u32 %v15185_v20, 16  ;;  %v891_v63 = vshrl.u32 %v15185_v20, 16  ;;  %v572_v45 = vld [vmem:[%s18889_s11 + $0xa8] sm:$0xff] }
 0x1eb   : > { %12778 = vmatmul.mubr.bf16.gmra.mrb[8].mxu1 %v866_v27  ;;  %v874_v44 = vsel %vm750_vm0, %v869_v41, %v873_v29  ;;  %v895_v27 = vshll.u32 %v15186_v25, 16  ;;  %v3536_v29 = vrot.slane %v3534_v19, 2  ;;  %4417 = vperm.xlu1 %14588, %v572_v45   ;;  %v575_v41 = vld [vmem:[%s18889_s11 + $0xc0] sm:$0xff]  ;;  %v3579_v25 = vshrl.u32 %v15925_v28, 16  ;;  %v580_v19 = vld [vmem:[%s18889_s11 + $0xe8] sm:$0xff]  ;;  %v582_v45 = vld [vmem:[%s18889_s11 + $0xf8] sm:$0xff] }
 0x1ec   : > { %12781 = vmatprep.mubr.bf16.mxu1 %v874_v44  ;;  %4402 = vperm.xlu0 %14587, %v569_v48   ;;  %v889_v5 = vrot.slane %v887_v50, 1  ;;  %v3561_v44 = vshrl.u32 %v15909_v14, 16  ;;  %v3564_v48 = vshll.u32 %v15909_v14, 16  ;;  %v14718_v50 = vld [vmem:[%s18879_s1 + $0x228] sm:$0xff]  }
 0x1ed   : > { %v897_v18 = vrot.slane %v895_v27, 1  ;;  %v3582_v27 = vshll.u32 %v15925_v28, 16 }
 0x1ee   : > { %v893_v38 = vor.u32 %v891_v63, %v889_v5  ;;  %v3566_v20 = vrot.slane %v3564_v48, 3 }
 0x1ef   : > { %13094 = vmatmul.mubr.bf16.gmra.mrb[28].mxu0 %v3174_v31  ;;  %v15184_v31 = vld [vmem:[%s15326_s18 + $0x80] sm:$0xff]   ;;  %4427 = vperm.xlu1 %14588, %v574_v35  }
 0x1f0   : > { %13097 = vmatprep.mubr.bf16.mxu0 %v3176_v58  ;;  %v879_v34 = vshll.u32 %v15184_v31, 16  ;;  %v3513_v58 = vor.u32 %v3512_v26, %v3509_v24  ;;  %v883_v12 = vshrl.u32 %v15184_v31, 16  ;;  %v14715_v24 = vld [vmem:[%s18879_s1 + $0x210] sm:$0xff]   ;;  %v3543_v26 = vshrl.u32 %v15893_v10, 16  ;;  %4412 = vperm.xlu0 %14587, %v571_v13  }
 0x1f1   : > { %v898_v23 = vsel %vm750_vm0, %v893_v38, %v897_v18  ;;  %v3570_v13 = vshrl.u32 %v15921_v21, 16  ;;  %v3581_v38 = vrot.slane %v3579_v25, 2  ;;  %v3584_v18 = vrot.slane %v3582_v27, 3 }
 0x1f2   : > { %v881_v1 = vrot.slane %v879_v34, 1  ;;  %v3514_v62 = vsel %vm3479_vm4, %v3504_v52, %v3513_v58  ;;  %v3523_v47 = vsel %vm3479_vm4, %v3513_v58, %v3522_v8  ;;  %v3545_v34 = vrot.slane %v3543_v26, 2 }
 0x1f3   : > { %v3548_v52 = vrot.slane %v3546_v7, 3  ;;  %v3540_v58 = vor.u32 %v3539_v60, %v3536_v29  ;;  %4437 = vperm.xlu1 %14588, %v576_v51   ;;  %v3591_v29 = vshll.u32 %v15939_v36, 16  ;;  %v3585_v60 = vor.u32 %v3584_v18, %v3581_v38 }
 0x1f4   : > { %v882_v40 = vsel %vm750_vm0, %v877_v0, %v881_v1  ;;  %4422 = vperm.xlu0 %14587, %v573_v11   ;;  %v3552_v0 = vshrl.u32 %v15905_v16, 16  ;;  %v3609_v51 = vshll.u32 %v15959_v32, 16  ;;  %v3636_v25 = vshll.u32 %v15991_v4, 16 }
 0x1f5   : > { %12782 = vmatmul.mubr.bf16.gmra.mrb[12].mxu1 %v882_v40  ;;  %v3549_v43 = vor.u32 %v3548_v52, %v3545_v34  ;;  %v577_v40 = vld [vmem:[%s18889_s11 + $0xd0] sm:$0xff]  ;;  %v3600_v34 = vshll.u32 %v15943_v17, 16  ;;  %v584_v52 = vld [vmem:[%s18889_s11 + $0x108] sm:$0xff] }
 0x1f7   : > { %13098 = vmatmul.mubr.bf16.gmra.mrb[32].mxu0 %v3178_v15  ;;  %v3531_v15 = vor.u32 %v3530_v59, %v3527_v56  ;;  %v3554_v56 = vrot.slane %v3552_v0, 2 }
 0x1f8   : > { %13117 = vmatprep.mubr.bf16.mxu0 %v3496_v30  ;;  %v885_v30 = vor.u32 %v883_v12, %v881_v1  ;;  %v3555_v1 = vshll.u32 %v15905_v16, 16  ;;  %4432 = vperm.xlu0 %14587, %v575_v41   ;;  %v578_v12 = vld [vmem:[%s18889_s11 + $0xd8] sm:$0xff] }
 0x1f9   : > { %v3532_v31 = vsel %vm3479_vm4, %v3522_v8, %v3531_v15  ;;  %v579_v8 = vld [vmem:[%s18889_s11 + $0xe0] sm:$0xff]  ;;  %4447 = vperm.xlu1 %14588, %v578_v12  }
 0x1fa   : > { %v3557_v59 = vrot.slane %v3555_v1, 3 }
 0x1fc   : > { %4442 = vperm.xlu0 %14587, %v577_v40   ;;  %v3558_v2 = vor.u32 %v3557_v59, %v3554_v56  ;;  %v3618_v56 = vshll.u32 %v15962_v33, 16 }
 0x1fd   : > { %4457 = vperm.xlu1 %14588, %v580_v19  }
 0x1fe   : > { %v3620_v12 = vrot.slane %v3618_v56, 3 }
 0x1ff   : > { %13118 = vmatmul.mubr.bf16.vlgmr.msra.gmra.mrb[0].mxu0 %v3505_v55  ;;  %v3541_v55 = vsel %vm3479_vm4, %v3531_v15, %v3540_v58  ;;  %v14719_v15 = vld [vmem:[%s18879_s1 + $0x230] sm:$0xff]  }
 0x200   : > { %13154 = vmatpush3.bf16.msra.mxu0 %v15935_v6  ;;  %13121 = vmatprep.mubr.bf16.mxu0 %v3514_v62  ;;  %v890_v6 = vsel %vm750_vm0, %v885_v30, %v889_v5  ;;  %v3550_v62 = vsel %vm3479_vm4, %v3540_v58, %v3549_v43  ;;  %v3573_v5 = vshll.u32 %v15921_v21, 16  ;;  %v3559_v30 = vsel %vm3479_vm4, %v3549_v43, %v3558_v2 }
 0x201   : > { %13155 = vmatprep.subr.bf16.mxu0 %v14714_v9  ;;  %12785 = vmatprep.mubr.bf16.mxu1 %v890_v6  ;;  %v14720_v6 = vld [vmem:[%s18879_s1 + $0x238] sm:$0xff]   ;;  %v3593_v58 = vrot.slane %v3591_v29, 3  ;;  %v3602_v43 = vrot.slane %v3600_v34, 3 }
 0x202   : > { %12786 = vmatmul.mubr.bf16.gmra.mrb[16].mxu1 %v898_v23  ;;  %4452 = vperm.xlu0 %14587, %v579_v8   ;;  %v3575_v26 = vrot.slane %v3573_v5, 3  ;;  %v583_v23 = vld [vmem:[%s18889_s11 + $0x100] sm:$0xff] }
 0x203   : > { %4467 = vperm.xlu1 %14588, %v582_v45   ;;  %v3929_v45 = vld [vmem:[%s15326_s18 + $0x10] sm:$0x8] }
 0x204   : > { %13156 = vmatpush3.bf16.msra.mxu0 %v14714_v9  ;;  %v3563_v9 = vrot.slane %v3561_v44, 2  ;;  %v586_v44 = vld [vmem:[%s18889_s11 + $0x118] sm:$0xff] }
 0x205   : > { %13157 = vmatprep.subr.bf16.mxu0 %v14715_v24 }
 0x206   : > { %v3567_v63 = vor.u32 %v3566_v20, %v3563_v9  ;;  %4462 = vperm.xlu0 %14587, %v581_v22   ;;  %v3611_v9 = vrot.slane %v3609_v51, 3  ;;  %v16175_v22 = vld [vmem:[%s15326_s18 + $0xa0] ss:$0 sps:$4 sm:$0x77]  }
 0x207   : > { %13122 = vmatmul.mubr.bf16.gmra.mrb[4].mxu0 %v3523_v47  ;;  %v3588_v47 = vshrl.u32 %v15939_v36, 16  ;;  %4477 = vperm.xlu1 %14588, %v584_v52   ;;  %v3642_v38 = vshrl.u32 %v16175_v22, 16  ;;  %v3645_v18 = vshll.u32 %v16175_v22, 16  ;;  %v3952_v52 = vrot.slane %v15856_v42, 3 }
 0x208   : > { %13125 = vmatprep.mubr.bf16.mxu0 %v3532_v31  ;;  %13158 = vmatpush3.bf16.msra.mxu0 %v14715_v24  ;;  %v3572_v24 = vrot.slane %v3570_v13, 2  ;;  %v3568_v7 = vsel %vm3479_vm4, %v3558_v2, %v3567_v63  ;;  %v3597_v31 = vshrl.u32 %v15943_v17, 16  ;;  %v3624_v2 = vshrl.u32 %v15981_v61, 16 }
 0x209   : > { %13159 = vmatprep.subr.bf16.mxu0 %v14716_v54  ;;  %v3590_v41 = vrot.slane %v3588_v47, 2  ;;  %v3627_v13 = vshll.u32 %v15981_v61, 16  ;;  %v3647_v47 = vrot.slane %v3645_v18, 3  ;;  %v3960_v42 = vrot.slane %v15880_v57, 3  ;;  %v4645_v18 = vld [vmem:[%s18887_s9 + $0x8] sm:$0xff] }
 0x20a   : > { %v3576_v11 = vor.u32 %v3575_v26, %v3572_v24  ;;  %4472 = vperm.xlu0 %14587, %v583_v23   ;;  %v3599_v1 = vrot.slane %v3597_v31, 2  ;;  %v3638_v26 = vrot.slane %v3636_v25, 3  ;;  %v3968_v57 = vrot.slane %v15909_v14, 3 }
 0x20b   : > { %v3594_v48 = vor.u32 %v3593_v58, %v3590_v41  ;;  %4487 = vperm.xlu1 %14588, %v586_v44   ;;  %v3629_v19 = vrot.slane %v3627_v13, 3  ;;  %v3954_v41 = vrot.slane %v15863_v46, 3  ;;  %v3956_v58 = vrot.slane %v15867_v39, 3 }
 0x20c   : > { %13160 = vmatpush3.bf16.msra.mxu0 %v14716_v54  ;;  %v585_v54 = vld [vmem:[%s18889_s11 + $0x110] sm:$0xff]  ;;  %v3577_v35 = vsel %vm3479_vm4, %v3567_v63, %v3576_v11  ;;  %v3586_v0 = vsel %vm3479_vm4, %v3576_v11, %v3585_v60  ;;  %v3603_v40 = vor.u32 %v3602_v43, %v3599_v1  ;;  %v3633_v63 = vshrl.u32 %v15991_v4, 16 }
 0x20d   : > { %13161 = vmatprep.subr.bf16.mxu0 %v14717_v49  ;;  %v3595_v59 = vsel %vm3479_vm4, %v3585_v60, %v3594_v48  ;;  %v3644_v11 = vrot.slane %v3642_v38, 2  ;;  %v11537_v60 = vcombine.low %v3929_v45, %v15848_v37  ;;  %v3957_v37 = vsel %vm3950_vm5, %v3954_v41, %v3956_v58  ;;  %v4644_v38 = vld [vmem:[%s18887_s9] sm:$0xff] }
 0x20e   : > { %4482 = vperm.xlu0 %14587, %v585_v54   ;;  %v3604_v20 = vsel %vm3479_vm4, %v3594_v48, %v3603_v40  ;;  %v3635_v24 = vrot.slane %v3633_v63, 2  ;;  %v3958_v1 = vrot.slane %v15873_v53, 3  ;;  %v3962_v46 = vrot.slane %v15889_v3, 3 }
 0x20f   : > { %13126 = vmatmul.mubr.bf16.gmra.mrb[8].mxu0 %v3541_v55  ;;  %v3615_v55 = vshrl.u32 %v15962_v33, 16  ;;  %v3648_v31 = vor.u32 %v3647_v47, %v3644_v11  ;;  %v3951_v34 = vrot.slane %v11537_v60, 3  ;;  %v3964_v39 = vrot.slane %v15893_v10, 3  ;;  %v4647_v11 = vld [vmem:[%s18887_s9 + $0x18] sm:$0xff] }
 0x210   : > { %13129 = vmatprep.mubr.bf16.mxu0 %v3550_v62  ;;  %13162 = vmatpush3.bf16.msra.mxu0 %v14717_v49  ;;  %v3606_v49 = vshrl.u32 %v15959_v32, 16  ;;  %v3959_v43 = vsel %vm3950_vm5, %v3956_v58, %v3958_v1  ;;  %v3961_v44 = vsel %vm3950_vm5, %v3958_v1, %v3960_v42  ;;  %v3963_v48 = vsel %vm3950_vm5, %v3960_v42, %v3962_v46  ;;  %v4651_v58 = vld [vmem:[%s18887_s9 + $0x38] sm:$0xff]  ;;  %v4653_v1 = vld [vmem:[%s18887_s9 + $0x48] sm:$0xff] }
 0x211   : > { %13163 = vmatprep.subr.bf16.mxu0 %v14718_v50  ;;  %v3966_v53 = vrot.slane %v15905_v16, 3  ;;  %v3970_v3 = vrot.slane %v15921_v21, 3  ;;  %v3972_v10 = vrot.slane %v15925_v28, 3  ;;  %v3974_v16 = vrot.slane %v15939_v36, 3 }
 0x212   : > { %v3608_v62 = vrot.slane %v3606_v49, 2  ;;  %v3965_v49 = vsel %vm3950_vm5, %v3962_v46, %v3964_v39  ;;  %v3976_v14 = vrot.slane %v15943_v17, 3  ;;  %v3978_v21 = vrot.slane %v15959_v32, 3 }
 0x213   : > { %v3967_v51 = vsel %vm3950_vm5, %v3964_v39, %v3966_v53  ;;  %v3973_v56 = vsel %vm3950_vm5, %v3970_v3, %v3972_v10  ;;  %v3980_v28 = vrot.slane %v15962_v33, 3  ;;  %v3982_v36 = vrot.slane %v15981_v61, 3  ;;  %v4656_v39 = vld [vmem:[%s18887_s9 + $0x60] sm:$0xff] }
 0x214   : > { %13164 = vmatpush3.bf16.msra.mxu0 %v14718_v50  ;;  %v3617_v50 = vrot.slane %v3615_v55, 2  ;;  %v3612_v8 = vor.u32 %v3611_v9, %v3608_v62  ;;  %v3971_v55 = vsel %vm3950_vm5, %v3968_v57, %v3970_v3  ;;  %v3977_v62 = vsel %vm3950_vm5, %v3974_v16, %v3976_v14  ;;  %v16347_v3 = vpop.permute.xlu0 %4312 }
 0x215   : > { %13165 = vmatprep.subr.bf16.mxu0 %v14719_v15  ;;  %v3979_v9 = vsel %vm3950_vm5, %v3976_v14, %v3978_v21  ;;  %v3984_v17 = vrot.slane %v15991_v4, 3  ;;  %v3986_v32 = vrot.slane %v16175_v22, 3  ;;  %v18895_v45 = vmov 0.0|0.0   ;;  %19007 = vst [vmem:[#allocation3_spill] sm:$0xff] %v16347_v3 }
 0x216   : > { %v3621_v5 = vor.u32 %v3620_v12, %v3617_v50  ;;  %v3613_v27 = vsel %vm3479_vm4, %v3603_v40, %v3612_v8  ;;  %v3969_v40 = vsel %vm3950_vm5, %v3966_v53, %v3968_v57  ;;  %v3983_v50 = vsel %vm3950_vm5, %v3980_v28, %v3982_v36  ;;  %13885 = vmatprep.subr.bf16.mxu1 %v18895_v45  ;;  %v4658_v53 = vld [vmem:[%s18887_s9 + $0x70] sm:$0xff]  ;;  %v4659_v57 = vld [vmem:[%s18887_s9 + $0x78] sm:$0xff] }
 0x217   : > { %13130 = vmatmul.mubr.bf16.gmra.mrb[12].mxu0 %v3559_v30  ;;  %v3985_v12 = vsel %vm3950_vm5, %v3982_v36, %v3984_v17  ;;  %v3987_v33 = vsel %vm3950_vm5, %v3984_v17, %v3986_v32 }
 0x218   : > { %13133 = vmatprep.mubr.bf16.mxu0 %v3568_v7  ;;  %13166 = vmatpush3.bf16.msra.mxu0 %v14719_v15  ;;  %v3626_v15 = vrot.slane %v3624_v2, 2  ;;  %v3622_v30 = vsel %vm3479_vm4, %v3612_v8, %v3621_v5 }
 0x219   : > { %13167 = vmatprep.subr.bf16.mxu0 %v14720_v6 }
 0x21a   : > { %v3630_v7 = vor.u32 %v3629_v19, %v3626_v15 }
 0x21c   : > { %13168 = vmatpush3.bf16.msra.mxu0 %v14720_v6  ;;  %v3639_v6 = vor.u32 %v3638_v26, %v3635_v24  ;;  %v3631_v23 = vsel %vm3479_vm4, %v3621_v5, %v3630_v7 }
 0x21d   : > { %13933 = vmatprep.subr.bf16.mxu0 %v18895_v45 }
 0x21e   : > { %v3640_v29 = vsel %vm3479_vm4, %v3630_v7, %v3639_v6  ;;  %v3649_v54 = vsel %vm3479_vm4, %v3639_v6, %v3648_v31  ;;  %v16259_v6 = vpack.c.bf16 %v4645_v18, %v4644_v38 }
 0x21f   : > { %13134 = vmatmul.mubr.bf16.gmra.mrb[16].mxu0 %v3577_v35  ;;  %v3953_v35 = vsel %vm3950_vm5, %v3951_v34, %v3952_v52 }
 0x220   : > { %13137 = vmatprep.mubr.bf16.mxu0 %v3586_v0  ;;  %v3955_v0 = vsel %vm3950_vm5, %v3952_v52, %v3954_v41  ;;  %13887 = vmatpush3.bf16.msra.mxu1 %v16259_v6  ;;  %v4648_v52 = vld [vmem:[%s18887_s9 + $0x20] sm:$0xff]  ;;  %v4650_v41 = vld [vmem:[%s18887_s9 + $0x30] sm:$0xff] }
 0x221   : > { %13888 = vmatprep.subr.bf16.mxu1 %v18895_v45 }
 0x227   : > { %13138 = vmatmul.mubr.bf16.gmra.mrb[20].mxu0 %v3595_v59  ;;  %v3975_v59 = vsel %vm3950_vm5, %v3972_v10, %v3974_v16  ;;  %v16349_v10 = vpop.permute.xlu1 %4322 }
 0x228   : > { %13141 = vmatprep.mubr.bf16.mxu0 %v3604_v20  ;;  %v3981_v20 = vsel %vm3950_vm5, %v3978_v21, %v3980_v28  ;;  %19008 = vst [vmem:[#allocation4_spill] sm:$0xff] %v16349_v10 }
 0x22f   : > { %13142 = vmatmul.mubr.bf16.gmra.mrb[24].mxu0 %v3613_v27 }
 0x230   : > { %13145 = vmatprep.mubr.bf16.mxu0 %v3622_v30 }
 0x237   : > { %13146 = vmatmul.mubr.bf16.gmra.mrb[28].mxu0 %v3631_v23  ;;  %v4646_v23 = vld [vmem:[%s18887_s9 + $0x10] sm:$0xff] }
 0x238   : > { %13149 = vmatprep.mubr.bf16.mxu0 %v3640_v29  ;;  %v16273_v29 = vpack.c.bf16 %v4647_v11, %v4646_v23 }
 0x23a   : > { %13890 = vmatpush3.bf16.msra.mxu1 %v16273_v29 }
 0x23b   : > { %13891 = vmatprep.subr.bf16.mxu1 %v18895_v45 }
 0x23f   : > { %13150 = vmatmul.mubr.bf16.gmra.mrb[32].mxu0 %v3649_v54  ;;  %v4649_v54 = vld [vmem:[%s18887_s9 + $0x28] sm:$0xff] }
 0x240   : > { %13169 = vmatprep.mubr.bf16.mxu0 %v3953_v35  ;;  %v16289_v35 = vpack.c.bf16 %v4649_v54, %v4648_v52 }
 0x242   : > { %13893 = vmatpush3.bf16.msra.mxu1 %v16289_v35 }
 0x243   : > { %13894 = vmatprep.subr.bf16.mxu1 %v18895_v45 }
 0x247   : > { %13170 = vmatmul.mubr.bf16.vlgmr.msra.gmra.mrb[0].mxu0 %v3955_v0  ;;  %v16299_v0 = vpack.c.bf16 %v4651_v58, %v4650_v41 }
 0x248   : > { %13173 = vmatprep.mubr.bf16.mxu0 %v3957_v37  ;;  %v4652_v37 = vld [vmem:[%s18887_s9 + $0x40] sm:$0xff] }
 0x249   : > { %13896 = vmatpush3.bf16.msra.mxu1 %v16299_v0  ;;  %v16309_v42 = vpack.c.bf16 %v4653_v1, %v4652_v37 }
 0x24a   : > { %13897 = vmatprep.subr.bf16.mxu1 %v18895_v45 }
 0x24d   : > { %13899 = vmatpush3.bf16.msra.mxu1 %v16309_v42 }
 0x24e   : > { %13900 = vmatprep.subr.bf16.mxu1 %v18895_v45 }
 0x24f   : > { %13174 = vmatmul.mubr.bf16.gmra.mrb[4].mxu0 %v3959_v43  ;;  %v4654_v43 = vld [vmem:[%s18887_s9 + $0x50] sm:$0xff] }
 0x250   : > { %13177 = vmatprep.mubr.bf16.mxu0 %v3961_v44  ;;  %v4655_v44 = vld [vmem:[%s18887_s9 + $0x58] sm:$0xff] }
 0x251   : > { %v16319_v46 = vpack.c.bf16 %v4655_v44, %v4654_v43 }
 0x253   : > { %13902 = vmatpush3.bf16.msra.mxu1 %v16319_v46 }
 0x254   : > { %13903 = vmatprep.subr.bf16.mxu1 %v18895_v45 }
 0x257   : > { %13178 = vmatmul.mubr.bf16.gmra.mrb[8].mxu0 %v3963_v48  ;;  %v4657_v48 = vld [vmem:[%s18887_s9 + $0x68] sm:$0xff] }
 0x258   : > { %13181 = vmatprep.mubr.bf16.mxu0 %v3965_v49  ;;  %v16329_v49 = vpack.c.bf16 %v4657_v48, %v4656_v39 }
 0x25a   : > { %13905 = vmatpush3.bf16.msra.mxu1 %v16329_v49 }
 0x25b   : > { %13906 = vmatprep.subr.bf16.mxu1 %v18895_v45 }
 0x25f   : > { %13182 = vmatmul.mubr.bf16.gmra.mrb[12].mxu0 %v3967_v51  ;;  %v16339_v51 = vpack.c.bf16 %v4659_v57, %v4658_v53 }
 0x260   : > { %13185 = vmatprep.mubr.bf16.mxu0 %v3969_v40  ;;  %v18897_v40 = vmov 0.0  }
 0x261   : > { %13237 = vmatprep.mubr.msk.f32.mxu1 %vm15216_vm6, %v18897_v40  ;;  %13908 = vmatpush3.bf16.msra.mxu1 %v16339_v51 }
 0x262   : > { %13909 = vmatprep.subr.bf16.mxu1 %v18895_v45 }
 0x267   : > { %13186 = vmatmul.mubr.bf16.gmra.mrb[16].mxu0 %v3971_v55  ;;  %v16351_v55 = vpop.permute.xlu0 %4317 }
 0x268   : > { %13189 = vmatprep.mubr.bf16.mxu0 %v3973_v56  ;;  %19009 = vst [vmem:[#allocation5_spill] sm:$0xff] %v16351_v55  ;;  %v16353_v56 = vpop.permute.xlu1 %4327 }
 0x269   : > { %19010 = vst [vmem:[#allocation6_spill] sm:$0xff] %v16353_v56 }
 0x26b   : > { %v16355_v16 = vpop.permute.xlu0 %4332 }
 0x26c   : > { %19011 = vst [vmem:[#allocation7_spill] sm:$0xff] %v16355_v16  ;;  %v16357_v14 = vpop.permute.xlu1 %4337 }
 0x26d   : > { %19012 = vst [vmem:[#allocation8_spill] sm:$0xff] %v16357_v14 }
 0x26f   : > { %13190 = vmatmul.mubr.bf16.gmra.mrb[20].mxu0 %v3975_v59  ;;  %v16359_v59 = vpop.permute.xlu0 %4342 }
 0x270   : > { %13193 = vmatprep.mubr.bf16.mxu0 %v3977_v62  ;;  %19013 = vst [vmem:[#allocation9_spill] sm:$0xff] %v16359_v59  ;;  %v16361_v62 = vpop.permute.xlu1 %4347 }
 0x271   : > { %19014 = vst [vmem:[#allocation10_spill] sm:$0xff] %v16361_v62 }
 0x273   : > { %v16363_v21 = vpop.permute.xlu0 %4352 }
 0x274   : > { %19015 = vst [vmem:[#allocation11_spill] sm:$0xff] %v16363_v21  ;;  %v16365_v28 = vpop.permute.xlu1 %4357 }
 0x275   : > { %19016 = vst [vmem:[#allocation12_spill] sm:$0xff] %v16365_v28 }
 0x277   : > { %13194 = vmatmul.mubr.bf16.gmra.mrb[24].mxu0 %v3979_v9  ;;  %v16370_v9 = vld [vmem:[%s18881_s3] ss:$0 sm:$0xff]  ;;  %v16372_v36 = vpop.permute.xlu0 %4362 }
 0x278   : > { %13197 = vmatprep.mubr.bf16.mxu0 %v3981_v20  ;;  %19017 = vst [vmem:[#allocation13_spill] sm:$0xff] %v16372_v36 }
 0x27b   : > { %v16394_v41 = vpop.permute.xlu0 %4372 }
 0x27c   : > { %19019 = vst [vmem:[#allocation15_spill] sm:$0xff] %v16394_v41 }
 0x27f   : > { %13198 = vmatmul.mubr.bf16.gmra.mrb[28].mxu0 %v3983_v50 }
 0x280   : > { %13201 = vmatprep.mubr.bf16.mxu0 %v3985_v12 }
 0x287   : > { %13202 = vmatmul.mubr.bf16.gmra.mrb[32].mxu0 %v3987_v33  ;;  %v16380_v33 = vpop.permute.xlu1 %4367 }
 0x288   : > { %13785 = vmatprep.mubr.msk.f32.mxu0 %vm15216_vm6, %v18897_v40  ;;  %19018 = vst [vmem:[#allocation14_spill] sm:$0xff] %v16380_v33 }
 0x28b   : > { %v16398_v39 = vpop.permute.xlu1 %4377 }
 0x28c   : > { %19020 = vst [vmem:[#allocation16_spill] sm:$0xff] %v16398_v39 }
 0x295   : > { %v16221_v8 = vpop.f32.mrb[0].mxu1 }
 0x296   : > { %v16223_v2 = vpop.f32.mrb[1].mxu1 }
 0x297   : > { %v16225_v13 = vpop.f32.mrb[2].mxu1 }
 0x298   : > { %v16227_v61 = vpop.f32.mrb[3].mxu1 }
 0x2b4   : > { %v16229_v4 = vpop.f32.mrb[4].mxu1 }
 0x2b5   : > { %v16231_v5 = vpop.f32.mrb[5].mxu1 }
 0x2b6   : > { %v16233_v63 = vpop.f32.mrb[6].mxu1 }
 0x2b7   : > { %v16235_v25 = vpop.f32.mrb[7].mxu1 }
 0x2be   : > { %v16237_v27 = vpop.f32.mrb[8].mxu1 }
 0x2bf   : > { %v16239_v15 = vpop.f32.mrb[9].mxu1 }
 0x2c0   : > { %v16241_v19 = vpop.f32.mrb[10].mxu1 }
 0x2c1   : > { %v16243_v22 = vpop.f32.mrb[11].mxu1 }
 0x2c8   : > { %v16245_v30 = vpop.f32.mrb[12].mxu1 }
 0x2c9   : > { %v16247_v24 = vpop.f32.mrb[13].mxu1 }
 0x2ca   : > { %v16249_v26 = vpop.f32.mrb[14].mxu1 }
 0x2cb   : > { %v16251_v7 = vpop.f32.mrb[15].mxu1 }
 0x2d5   : > { %v16271_v47 = vpop.f32.mrb[16].mxu1 }
 0x2d6   : > { %v16275_v60 = vpop.f32.mrb[17].mxu1 }
 0x2d7   : > { %v16277_v31 = vpop.f32.mrb[18].mxu1 }
 0x2d8   : > { %v16280_v34 = vpop.f32.mrb[19].mxu1 }
 0x31a   : > { %v13171_v20 = vpop.f32.mrb[0].mxu0 }
 0x31b   : > { %v4088_v17 = vpop.f32.mrb[1].mxu0  ;;  %v16375_v50 = vadd.f32 %v13171_v20, %v16370_v9 }
 0x31c   : > { %v16378_v12 = vadd.f32 %v16370_v9, %v4088_v17  ;;  %v13172_v32 = vpop.f32.mrb[2].mxu0 }
 0x31d   : > { %v16383_v38 = vadd.f32 %v13172_v32, %v16370_v9  ;;  %v4091_v18 = vpop.f32.mrb[3].mxu0  ;;  %v4492_v52 = vmul.f32 %v16349_v10, %v16375_v50 }
 0x31e   : > { %v4490_v23 = vmul.f32 %v16347_v3, %v16378_v12  ;;  %v16388_v11 = vadd.f32 %v16370_v9, %v4091_v18 }
 0x31f   : > { %v4493_v58 = vmul.f32 %v16353_v56, %v16383_v38  ;;  %v4569_v57 = vmul.f32 %v4492_v52, %v4492_v52 }
 0x320   : > { %v4491_v54 = vmul.f32 %v16351_v55, %v16388_v11  ;;  %v4567_v37 = vmul.f32 %v4490_v23, %v4490_v23  ;;  %v16414_v55 = vpop.permute.xlu0 %4382 }
 0x321   : > { %v4570_v45 = vmul.f32 %v4493_v58, %v4493_v58  ;;  %19023 = vst [vmem:[#allocation19_spill] sm:$0xff] %v16414_v55 }
 0x322   : > { %v4526_v1 = vadd.f32 %v4491_v54, %v4490_v23  ;;  %v4568_v43 = vmul.f32 %v4491_v54, %v4491_v54  ;;  %v13175_v44 = vpop.f32.mrb[4].mxu0 }
 0x323   : > { %v16401_v48 = vadd.f32 %v13175_v44, %v16370_v9  ;;  %v4104_v53 = vpop.f32.mrb[5].mxu0 }
 0x324   : > { %v4527_v20 = vadd.f32 %v4526_v1, %v4492_v52  ;;  %v4603_v17 = vadd.f32 %v4568_v43, %v4567_v37  ;;  %v16404_v32 = vadd.f32 %v16370_v9, %v4104_v53  ;;  %v13176_v18 = vpop.f32.mrb[6].mxu0 }
 0x325   : > { %19021 = vst [vmem:[#allocation17_spill] sm:$0xff] %v16401_v48  ;;  %v16407_v40 = vadd.f32 %v13176_v18, %v16370_v9  ;;  %v4107_v23 = vpop.f32.mrb[7].mxu0  ;;  %v4496_v52 = vmul.f32 %v16359_v59, %v16401_v48  ;;  %v16420_v18 = vpop.permute.xlu1 %4387 }
 0x326   : > { %v4604_v54 = vadd.f32 %v4603_v17, %v4569_v57  ;;  %v4494_v56 = vmul.f32 %v16355_v16, %v16404_v32  ;;  %v4528_v10 = vadd.f32 %v4527_v20, %v4493_v58  ;;  %v16412_v44 = vadd.f32 %v16370_v9, %v4107_v23  ;;  %19024 = vst [vmem:[#allocation20_spill] sm:$0xff] %v16420_v18 }
 0x327   : > { %19022 = vst [vmem:[#allocation18_spill] sm:$0xff] %v16407_v40  ;;  %v4497_v57 = vmul.f32 %v16361_v62, %v16407_v40  ;;  %v4573_v59 = vmul.f32 %v4496_v52, %v4496_v52 }
 0x328   : > { %v4529_v37 = vadd.f32 %v4528_v10, %v4494_v56  ;;  %v4571_v1 = vmul.f32 %v4494_v56, %v4494_v56  ;;  %v4605_v43 = vadd.f32 %v4604_v54, %v4570_v45  ;;  %v4495_v53 = vmul.f32 %v16357_v14, %v16412_v44  ;;  %v16430_v14 = vpop.permute.xlu0 %4392 }
 0x329   : > { %19026 = vst [vmem:[#allocation22_spill] sm:$0xff] %v16430_v14  ;;  %v4574_v48 = vmul.f32 %v4497_v57, %v4497_v57 }
 0x32a   : > { %v4606_v58 = vadd.f32 %v4605_v43, %v4571_v1  ;;  %v4530_v20 = vadd.f32 %v4529_v37, %v4495_v53  ;;  %v4572_v17 = vmul.f32 %v4495_v53, %v4495_v53  ;;  %v13179_v23 = vpop.f32.mrb[8].mxu0 }
 0x32b   : > { %v16425_v16 = vadd.f32 %v13179_v23, %v16370_v9  ;;  %v4120_v3 = vpop.f32.mrb[9].mxu0 }
 0x32c   : > { %v4531_v10 = vadd.f32 %v4530_v20, %v4496_v52  ;;  %v4607_v56 = vadd.f32 %v4606_v58, %v4572_v17  ;;  %v16428_v45 = vadd.f32 %v16370_v9, %v4120_v3  ;;  %v13180_v54 = vpop.f32.mrb[10].mxu0  ;;  %v16440_v52 = vpop.permute.xlu1 %4397 }
 0x32d   : > { %v16433_v62 = vadd.f32 %v13180_v54, %v16370_v9  ;;  %v4123_v37 = vpop.f32.mrb[11].mxu0  ;;  %19028 = vst [vmem:[#allocation24_spill] sm:$0xff] %v16440_v52  ;;  %v4500_v3 = vmul.f32 %v16372_v36, %v16425_v16 }
 0x32e   : > { %19025 = vst [vmem:[#allocation21_spill] sm:$0xff] %v16428_v45  ;;  %v4608_v1 = vadd.f32 %v4607_v56, %v4573_v59  ;;  %v4498_v43 = vmul.f32 %v16363_v21, %v16428_v45  ;;  %v4532_v53 = vadd.f32 %v4531_v10, %v4497_v57  ;;  %v16438_v23 = vadd.f32 %v16370_v9, %v4123_v37  ;;  %v16448_v37 = vpop.permute.xlu0 %4402 }
 0x32f   : > { %19027 = vst [vmem:[#allocation23_spill] sm:$0xff] %v16433_v62  ;;  %v4501_v59 = vmul.f32 %v16380_v33, %v16433_v62  ;;  %19029 = vst [vmem:[#allocation25_spill] sm:$0xff] %v16448_v37  ;;  %v4577_v36 = vmul.f32 %v4500_v3, %v4500_v3 }
 0x330   : > { %v4533_v58 = vadd.f32 %v4532_v53, %v4498_v43  ;;  %v4575_v20 = vmul.f32 %v4498_v43, %v4498_v43  ;;  %v4609_v17 = vadd.f32 %v4608_v1, %v4574_v48  ;;  %v4499_v54 = vmul.f32 %v16365_v28, %v16438_v23  ;;  %v16456_v28 = vpop.permute.xlu1 %4407 }
 0x331   : > { %19032 = vst [vmem:[#allocation28_spill] sm:$0xff] %v16456_v28  ;;  %v4578_v33 = vmul.f32 %v4501_v59, %v4501_v59 }
 0x332   : > { %v4610_v56 = vadd.f32 %v4609_v17, %v4575_v20  ;;  %v4534_v21 = vadd.f32 %v4533_v58, %v4499_v54  ;;  %v4576_v57 = vmul.f32 %v4499_v54, %v4499_v54  ;;  %v13183_v10 = vpop.f32.mrb[12].mxu0 }
 0x333   : > { %v16451_v45 = vadd.f32 %v13183_v10, %v16370_v9  ;;  %v4136_v40 = vpop.f32.mrb[13].mxu0 }
 0x334   : > { %v4535_v53 = vadd.f32 %v4534_v21, %v4500_v3  ;;  %v4611_v43 = vadd.f32 %v4610_v56, %v4576_v57  ;;  %v16454_v48 = vadd.f32 %v16370_v9, %v4136_v40  ;;  %v13184_v1 = vpop.f32.mrb[14].mxu0 }
 0x335   : > { %19030 = vst [vmem:[#allocation26_spill] sm:$0xff] %v16451_v45  ;;  %v4139_v20 = vpop.f32.mrb[15].mxu0  ;;  %v4504_v21 = vmul.f32 %v16414_v55, %v16451_v45  ;;  %v16466_v3 = vadd.f32 %v13184_v1, %v16370_v9 }
 0x336   : > { %19031 = vst [vmem:[#allocation27_spill] sm:$0xff] %v16454_v48  ;;  %v4612_v58 = vadd.f32 %v4611_v43, %v4577_v36  ;;  %v4502_v17 = vmul.f32 %v16394_v41, %v16454_v48  ;;  %v4536_v54 = vadd.f32 %v4535_v53, %v4501_v59  ;;  %v16461_v10 = vadd.f32 %v16370_v9, %v4139_v20  ;;  %v16470_v36 = vpop.permute.xlu0 %4412  ;;  %v16472_v20 = vpop.permute.xlu1 %4417 }
 0x337   : > { %19033 = vst [vmem:[#allocation29_spill] sm:$0xff] %v16470_v36  ;;  %19034 = vst [vmem:[#allocation30_spill] sm:$0xff] %v16472_v20  ;;  %v4581_v48 = vmul.f32 %v4504_v21, %v4504_v21  ;;  %v4505_v1 = vmul.f32 %v16420_v18, %v16466_v3 }
 0x338   : > { %v4537_v40 = vadd.f32 %v4536_v54, %v4502_v17  ;;  %v4579_v56 = vmul.f32 %v4502_v17, %v4502_v17  ;;  %v4613_v57 = vadd.f32 %v4612_v58, %v4578_v33  ;;  %v4503_v62 = vmul.f32 %v16398_v39, %v16461_v10 }
 0x33a   : > { %v4614_v43 = vadd.f32 %v4613_v57, %v4579_v56  ;;  %v4538_v41 = vadd.f32 %v4537_v40, %v4503_v62  ;;  %v4580_v59 = vmul.f32 %v4503_v62, %v4503_v62  ;;  %v13187_v53 = vpop.f32.mrb[16].mxu0 }
 0x33b   : > { %v13997_v55 = vadd.f32 %v13187_v53, %v16221_v8  ;;  %v4152_v45 = vpop.f32.mrb[17].mxu0  ;;  %v16486_v53 = vpop.permute.xlu0 %4422 }
 0x33c   : > { %v4539_v17 = vadd.f32 %v4538_v41, %v4504_v21  ;;  %v4615_v33 = vadd.f32 %v4614_v43, %v4580_v59  ;;  %v13998_v58 = vadd.f32 %v4152_v45, %v16223_v2  ;;  %v13188_v54 = vpop.f32.mrb[18].mxu0  ;;  %19035 = vst [vmem:[#allocation31_spill] sm:$0xff] %v16486_v53  ;;  %v4582_v21 = vmul.f32 %v4505_v1, %v4505_v1 }
 0x33d   : > { %v16479_v39 = vadd.f32 %v13997_v55, %v16370_v9  ;;  %v13999_v62 = vadd.f32 %v13188_v54, %v16225_v13  ;;  %v4155_v40 = vpop.f32.mrb[19].mxu0  ;;  %v16496_v13 = vpop.permute.xlu1 %4427 }
 0x33e   : > { %v4616_v56 = vadd.f32 %v4615_v33, %v4581_v48  ;;  %v16483_v57 = vadd.f32 %v13998_v58, %v16370_v9  ;;  %v14000_v8 = vadd.f32 %v4155_v40, %v16227_v61  ;;  %v4540_v55 = vadd.f32 %v4539_v17, %v4505_v1  ;;  %19036 = vst [vmem:[#allocation32_spill] sm:$0xff] %v16496_v13 }
 0x33f   : > { %v16489_v41 = vadd.f32 %v13999_v62, %v16370_v9  ;;  %v4508_v48 = vmul.f32 %v16448_v37, %v16479_v39  ;;  %v16506_v37 = vpop.permute.xlu0 %4432 }
 0x340   : > { %v4506_v2 = vmul.f32 %v16430_v14, %v16483_v57  ;;  %v16494_v45 = vadd.f32 %v14000_v8, %v16370_v9  ;;  %v4617_v59 = vadd.f32 %v4616_v56, %v4582_v21  ;;  %19037 = vst [vmem:[#allocation33_spill] sm:$0xff] %v16506_v37 }
 0x341   : > { %v4509_v54 = vmul.f32 %v16456_v28, %v16489_v41 }
 0x342   : > { %v4541_v43 = vadd.f32 %v4540_v55, %v4506_v2  ;;  %v4583_v61 = vmul.f32 %v4506_v2, %v4506_v2  ;;  %v4507_v33 = vmul.f32 %v16440_v52, %v16494_v45  ;;  %v13191_v58 = vpop.f32.mrb[20].mxu0  ;;  %v4585_v2 = vmul.f32 %v4508_v48, %v4508_v48 }
 0x343   : > { %v14001_v1 = vadd.f32 %v13191_v58, %v16229_v4  ;;  %v4168_v17 = vpop.f32.mrb[21].mxu0 }
 0x344   : > { %v4618_v62 = vadd.f32 %v4617_v59, %v4583_v61  ;;  %v4542_v40 = vadd.f32 %v4541_v43, %v4507_v33  ;;  %v4584_v8 = vmul.f32 %v4507_v33, %v4507_v33  ;;  %v14002_v14 = vadd.f32 %v4168_v17, %v16231_v5  ;;  %v13192_v18 = vpop.f32.mrb[22].mxu0  ;;  %v16516_v61 = vpop.permute.xlu1 %4437 }
 0x345   : > { %v16509_v56 = vadd.f32 %v14001_v1, %v16370_v9  ;;  %v14003_v21 = vadd.f32 %v13192_v18, %v16233_v63  ;;  %v4171_v55 = vpop.f32.mrb[23].mxu0  ;;  %19038 = vst [vmem:[#allocation34_spill] sm:$0xff] %v16516_v61  ;;  %v4586_v5 = vmul.f32 %v4509_v54, %v4509_v54 }
 0x346   : > { %v4543_v52 = vadd.f32 %v4542_v40, %v4508_v48  ;;  %v4619_v28 = vadd.f32 %v4618_v62, %v4584_v8  ;;  %v16513_v4 = vadd.f32 %v14002_v14, %v16370_v9  ;;  %v14004_v43 = vadd.f32 %v4171_v55, %v16235_v25  ;;  %v16530_v40 = vpop.permute.xlu0 %4442 }
 0x347   : > { %v16519_v59 = vadd.f32 %v14003_v21, %v16370_v9  ;;  %v4512_v14 = vmul.f32 %v16486_v53, %v16509_v56  ;;  %19039 = vst [vmem:[#allocation35_spill] sm:$0xff] %v16530_v40 }
 0x348   : > { %v4620_v33 = vadd.f32 %v4619_v28, %v4585_v2  ;;  %v4510_v58 = vmul.f32 %v16470_v36, %v16513_v4  ;;  %v4544_v1 = vadd.f32 %v4543_v52, %v4509_v54  ;;  %v16524_v63 = vadd.f32 %v14004_v43, %v16370_v9 }
 0x349   : > { %v4513_v28 = vmul.f32 %v16496_v13, %v16519_v59 }
 0x34a   : > { %v4545_v18 = vadd.f32 %v4544_v1, %v4510_v58  ;;  %v4587_v48 = vmul.f32 %v4510_v58, %v4510_v58  ;;  %v4621_v25 = vadd.f32 %v4620_v33, %v4586_v5  ;;  %v4511_v17 = vmul.f32 %v16472_v20, %v16524_v63  ;;  %v13195_v62 = vpop.f32.mrb[24].mxu0  ;;  %v16536_v58 = vpop.permute.xlu1 %4447 }
 0x34b   : > { %v14005_v52 = vadd.f32 %v13195_v62, %v16237_v27  ;;  %v4184_v54 = vpop.f32.mrb[25].mxu0  ;;  %19040 = vst [vmem:[#allocation36_spill] sm:$0xff] %v16536_v58  ;;  %v4589_v5 = vmul.f32 %v4512_v14, %v4512_v14 }
 0x34c   : > { %v4622_v8 = vadd.f32 %v4621_v25, %v4587_v48  ;;  %v4546_v2 = vadd.f32 %v4545_v18, %v4511_v17  ;;  %v4588_v21 = vmul.f32 %v4511_v17, %v4511_v17  ;;  %v14006_v55 = vadd.f32 %v4184_v54, %v16239_v15  ;;  %v13196_v43 = vpop.f32.mrb[26].mxu0 }
 0x34d   : > { %v16539_v33 = vadd.f32 %v14005_v52, %v16370_v9  ;;  %v14007_v1 = vadd.f32 %v13196_v43, %v16241_v19  ;;  %v4187_v53 = vpop.f32.mrb[27].mxu0  ;;  %v4590_v48 = vmul.f32 %v4513_v28, %v4513_v28  ;;  %v16551_v52 = vpop.permute.xlu0 %4452 }
 0x34e   : > { %v4547_v20 = vadd.f32 %v4546_v2, %v4512_v14  ;;  %v4623_v13 = vadd.f32 %v4622_v8, %v4588_v21  ;;  %v16543_v27 = vadd.f32 %v14006_v55, %v16370_v9  ;;  %v14008_v18 = vadd.f32 %v4187_v53, %v16243_v22  ;;  %19041 = vst [vmem:[#allocation37_spill] sm:$0xff] %v16551_v52  ;;  %v16560_v2 = vpop.permute.xlu1 %4457 }
 0x34f   : > { %v4516_v19 = vmul.f32 %v16530_v40, %v16539_v33  ;;  %v16556_v14 = vadd.f32 %v14007_v1, %v16370_v9  ;;  %19042 = vst [vmem:[#allocation38_spill] sm:$0xff] %v16560_v2 }
 0x350   : > { %v4624_v25 = vadd.f32 %v4623_v13, %v4589_v5  ;;  %v4514_v15 = vmul.f32 %v16506_v37, %v16543_v27  ;;  %v4548_v17 = vadd.f32 %v4547_v20, %v4513_v28  ;;  %v16549_v62 = vadd.f32 %v14008_v18, %v16370_v9 }
 0x351   : > { %v4593_v1 = vmul.f32 %v4516_v19, %v4516_v19 }
 0x352   : > { %v4549_v54 = vadd.f32 %v4548_v17, %v4514_v15  ;;  %v4591_v8 = vmul.f32 %v4514_v15, %v4514_v15  ;;  %v4625_v22 = vadd.f32 %v4624_v25, %v4590_v48  ;;  %v4515_v53 = vmul.f32 %v16516_v61, %v16549_v62  ;;  %v13199_v13 = vpop.f32.mrb[28].mxu0 }
 0x353   : > { %v14009_v20 = vadd.f32 %v13199_v13, %v16245_v30  ;;  %v4200_v28 = vpop.f32.mrb[29].mxu0  ;;  %v4517_v15 = vmul.f32 %v16536_v58, %v16556_v14 }
 0x354   : > { %v4626_v21 = vadd.f32 %v4625_v22, %v4591_v8  ;;  %v4550_v55 = vadd.f32 %v4549_v54, %v4515_v53  ;;  %v4592_v43 = vmul.f32 %v4515_v53, %v4515_v53  ;;  %v14010_v5 = vadd.f32 %v4200_v28, %v16247_v24  ;;  %v13200_v18 = vpop.f32.mrb[30].mxu0  ;;  %v16571_v8 = vpop.permute.xlu0 %4462 }
 0x355   : > { %v14011_v48 = vadd.f32 %v13200_v18, %v16249_v26  ;;  %v4203_v25 = vpop.f32.mrb[31].mxu0  ;;  %19043 = vst [vmem:[#allocation39_spill] sm:$0xff] %v16571_v8  ;;  %v16574_v54 = vadd.f32 %v14009_v20, %v16370_v9  ;;  %v4594_v13 = vmul.f32 %v4517_v15, %v4517_v15 }
 0x356   : > { %v4551_v17 = vadd.f32 %v4550_v55, %v4516_v19  ;;  %v4627_v40 = vadd.f32 %v4626_v21, %v4592_v43  ;;  %v16568_v61 = vadd.f32 %v14010_v5, %v16370_v9  ;;  %v14012_v30 = vadd.f32 %v4203_v25, %v16251_v7  ;;  %v16581_v19 = vpop.permute.xlu1 %4467 }
 0x357   : > { %19044 = vst [vmem:[#allocation40_spill] sm:$0xff] %v16581_v19  ;;  %v16584_v21 = vadd.f32 %v14011_v48, %v16370_v9  ;;  %v4520_v18 = vmul.f32 %v16571_v8, %v16574_v54 }
 0x358   : > { %v4628_v24 = vadd.f32 %v4627_v40, %v4593_v1  ;;  %v4518_v22 = vmul.f32 %v16551_v52, %v16568_v61  ;;  %v4552_v53 = vadd.f32 %v4551_v17, %v4517_v15  ;;  %v16579_v26 = vadd.f32 %v14012_v30, %v16370_v9  ;;  %v16592_v17 = vpop.permute.xlu0 %4472 }
 0x359   : > { %19045 = vst [vmem:[#allocation41_spill] sm:$0xff] %v16592_v17 }
 0x35a   : > { %v4553_v28 = vadd.f32 %v4552_v53, %v4518_v22  ;;  %v4519_v7 = vmul.f32 %v16560_v2, %v16579_v26  ;;  %v13203_v20 = vpop.f32.mrb[32].mxu0  ;;  %v4595_v55 = vmul.f32 %v4518_v22, %v4518_v22  ;;  %v4629_v40 = vadd.f32 %v4628_v24, %v4594_v13  ;;  %v16601_v13 = vpop.permute.xlu1 %4477 }
 0x35b   : > { %v14013_v43 = vadd.f32 %v13203_v20, %v16271_v47  ;;  %v4216_v5 = vpop.f32.mrb[33].mxu0  ;;  %v4521_v53 = vmul.f32 %v16581_v19, %v16584_v21  ;;  %19046 = vst [vmem:[#allocation42_spill] sm:$0xff] %v16601_v13 }
 0x35c   : > { %v4554_v1 = vadd.f32 %v4553_v28, %v4519_v7  ;;  %v14014_v25 = vadd.f32 %v4216_v5, %v16275_v60  ;;  %v13204_v15 = vpop.f32.mrb[34].mxu0  ;;  %v4630_v28 = vadd.f32 %v4629_v40, %v4595_v55  ;;  %v4596_v20 = vmul.f32 %v4519_v7, %v4519_v7 }
 0x35d   : > { %v14015_v48 = vadd.f32 %v13204_v15, %v16277_v31  ;;  %v4219_v30 = vpop.f32.mrb[35].mxu0  ;;  %v16604_v60 = vadd.f32 %v14013_v43, %v16370_v9 }
 0x35e   : > { %v4555_v22 = vadd.f32 %v4554_v1, %v4520_v18  ;;  %v16598_v24 = vadd.f32 %v14014_v25, %v16370_v9  ;;  %v14016_v47 = vadd.f32 %v4219_v30, %v16280_v34  ;;  %v16616_v30 = vpop.permute.xlu0 %4482  ;;  %v4631_v7 = vadd.f32 %v4630_v28, %v4596_v20  ;;  %v16620_v43 = vpop.permute.xlu1 %4487 }
 0x35f   : > { %v16612_v25 = vadd.f32 %v14015_v48, %v16370_v9  ;;  %19047 = vst [vmem:[#allocation43_spill] sm:$0xff] %v16616_v30  ;;  %v4524_v55 = vmul.f32 %v16616_v30, %v16604_v60  ;;  %19048 = vst [vmem:[#allocation44_spill] sm:$0xff] %v16620_v43  ;;  %v4598_v48 = vmul.f32 %v4521_v53, %v4521_v53 }
 0x360   : > { %v4522_v31 = vmul.f32 %v16592_v17, %v16598_v24  ;;  %v4556_v5 = vadd.f32 %v4555_v22, %v4521_v53  ;;  %v16609_v15 = vadd.f32 %v14016_v47, %v16370_v9  ;;  %v4597_v22 = vmul.f32 %v4520_v18, %v4520_v18 }
 0x361   : > { %v4525_v47 = vmul.f32 %v16620_v43, %v16612_v25  ;;  %v4601_v36 = vmul.f32 %v4524_v55, %v4524_v55  ;;  %v19049_v18 = vmov 0.0   ;;  %v19050_v53 = vmov 0.0|0.0  }
 0x362   : > { %v4557_v1 = vadd.f32 %v4556_v5, %v4522_v31  ;;  %v4523_v34 = vmul.f32 %v16601_v13, %v16609_v15  ;;  %v4632_v17 = vadd.f32 %v4631_v7, %v4597_v22  ;;  %v4599_v8 = vmul.f32 %v4522_v31, %v4522_v31 }
 0x363   : > { %v4602_v31 = vmul.f32 %v4525_v47, %v4525_v47  ;;  %v4967_v22 = vlaneseq }
 0x364   : > { %v4558_v40 = vadd.f32 %v4557_v1, %v4523_v34  ;;  %v4633_v13 = vadd.f32 %v4632_v17, %v4598_v48  ;;  %v4600_v20 = vmul.f32 %v4523_v34, %v4523_v34 }
 0x366   : > { %v4559_v5 = vadd.f32 %v4558_v40, %v4524_v55  ;;  %v4634_v28 = vadd.f32 %v4633_v13, %v4599_v8 }
 0x368   : > { %v4560_v9 = vadd.f32 %v4559_v5, %v4525_v47  ;;  %v4635_v1 = vadd.f32 %v4634_v28, %v4600_v20  ;;  %v4956_v47 = vld [vmem:[%s541_s29] sm:$0x1]  ;;  %v4968_v5 = vshrl.u32 %v4967_v22, 7 }
 0x369   : > { %v4957_v48 = vadd.f32 1.0, %v4956_v47 }
 0x36a   : > { %v4561_v19 = vrot.slane %v4560_v9, 4  ;;  %v4636_v7 = vadd.f32 %v4635_v1, %v4601_v36  ;;  %v16659_v1 = vsub.s32 0, %v4968_v5 }
 0x36c   : > { %v4562_v2 = vadd.f32 %v4561_v19, %v4560_v9  ;;  %v4637_v19 = vadd.f32 %v4636_v7, %v4602_v31  ;;  %v4958_v9 = vld [vmem:[%s18882_s4] sm:$0x1]  ;;  %19051 = vst [vmem:[#allocation45_spill] sm:$0xff] %v16659_v1 }
 0x36d   : > { %v4961_v31 = vld [vmem:[%s18883_s5] sm:$0x1] }
 0x36e   : > { %v4563_v52 = vrot.slane %v4562_v2, 2 }
 0x370   : > { %v4564_v58 = vadd.f32 %v4563_v52, %v4562_v2 }
 0x372   : > { %v4565_v30 = vrot.slane %v4564_v58, 1 }
 0x374   : > { %v4566_v37 = vadd.f32 %v4565_v30, %v4564_v58  ;;  %v4638_v58 = vrot.slane %v4637_v19, 4 }
 0x376   : > { %13238 = vmatmul.mubr.f32.vlgmr.msra.gmra.mrb[20].mxu1 %v4566_v37 }
 0x377   : > { %13911 = vmatpush3.bf16.msra.mxu1 %v16259_v6  ;;  %13272 = vmatprep.mubr.msk.f32.mxu1 %vm15216_vm6, %v19049_v18  ;;  %v4639_v6 = vadd.f32 %v4638_v58, %v4637_v19 }
 0x378   : > { %13912 = vmatprep.subr.bf16.mxu1 %v19050_v53 }
 0x379   : > { %v4640_v37 = vrot.slane %v4639_v6, 2 }
 0x37b   : > { %13914 = vmatpush3.bf16.msra.mxu1 %v16273_v29  ;;  %v4641_v29 = vadd.f32 %v4640_v37, %v4639_v6 }
 0x37c   : > { %13915 = vmatprep.subr.bf16.mxu1 %v19050_v53 }
 0x37f   : > { %13917 = vmatpush3.bf16.msra.mxu1 %v16289_v35  ;;  %v4642_v35 = vrot.slane %v4641_v29, 1 }
 0x380   : > { %13918 = vmatprep.subr.bf16.mxu1 %v19050_v53 }
 0x383   : > { %13920 = vmatpush3.bf16.msra.mxu1 %v16299_v0  ;;  %v4643_v0 = vadd.f32 %v4642_v35, %v4641_v29  ;;  %v4965_v29 = vld [vmem:[%s544_s24] sm:$0x1]  ;;  %s14574_s24 = smul.u32 144, %s19309_s22 }
 0x384   : > { %13921 = vmatprep.subr.bf16.mxu1 %v19050_v53 }
 0x385   : > { %s18745_s26 = scalar_lea.vmem %s18894_s16, %s14574_s24 }
 0x387   : > { %13923 = vmatpush3.bf16.msra.mxu1 %v16309_v42  ;;  %v4808_v42 = vld [vmem:[%s18888_s10] sm:$0xff] }
 0x388   : > { %13924 = vmatprep.subr.bf16.mxu1 %v19050_v53 }
 0x38b   : > { %13926 = vmatpush3.bf16.msra.mxu1 %v16319_v46 }
 0x38c   : > { %13927 = vmatprep.subr.bf16.mxu1 %v19050_v53 }
 0x38f   : > { %13929 = vmatpush3.bf16.msra.mxu1 %v16329_v49 }
 0x390   : > { %13930 = vmatprep.subr.bf16.mxu1 %v19050_v53 }
 0x393   : > { %13932 = vmatpush3.bf16.msra.mxu1 %v16339_v51 }
 0x394   : > { %13275 = vmatprep.subr.mxu1 %v19049_v18 }
 0x396   : > { %13273 = vmatmul.mubr.f32.vlgmr.msra.gmra.mrb[22].mxu1 %v4643_v0 }
 0x397   : > { %13277 = vmatprep.mubr.msk.f32.mxu1 %vm15216_vm6, %v19049_v18  ;;  %13276 = vmatpush3.msra.mxu1 %v4808_v42 }
 0x398   : > { %13280 = vmatprep.subr.mxu1 %v19049_v18 }
 0x449   : > { %v4726_v46 = vpop.f32.mrb[20].mxu1 }
 0x44a   : > { %v4801_v49 = vmul.f32 0.00390625, %v4726_v46  ;;  %v13239_v36 = vpop.f32.mrb[21].mxu1 }
 0x44c   : > { %13278 = vmatmul.mubr.msk.f32.vlgmr.msra.gmra.mrb[24].mxu1 %vm4809_vm7, %v4801_v49  ;;  %v4803_v52 = vmul.f32 %v4801_v49, %v4801_v49 }
 0x44d   : > { %13281 = vmatpush3.msra.mxu1 %v4808_v42  ;;  %13282 = vmatprep.mubr.msk.f32.mxu1 %vm15216_vm6, %v19049_v18 }
 0x469   : > { %v4796_v51 = vpop.f32.mrb[22].mxu1 }
 0x46a   : > { %v4802_v2 = vmul.f32 0.00390625, %v4796_v51  ;;  %v13274_v8 = vpop.f32.mrb[23].mxu1 }
 0x46c   : > { %v4804_v17 = vsub.f32 %v4802_v2, %v4803_v52  ;;  %v19052_v52 = vld [vmem:[#allocation17_spill] sm:$0xff] }
 0x46e   : > { %v4805_v13 = vmax.f32 %v4804_v17, 0.0  ;;  %v19053_v17 = vld [vmem:[#allocation18_spill] sm:$0xff] }
 0x470   : > { %v4806_v34 = vadd.f32 1e-05, %v4805_v13 }
 0x472   : > { %14884 = vrsqrt.f32 %v4806_v34  ;;  %v19054_v34 = vld [vmem:[#allocation21_spill] sm:$0xff] }
 0x47c   : > { %v14885_v30 = vpop.eup %14884 }
 0x47d   : > { %13283 = vmatmul.mubr.msk.f32.vlgmr.msra.gmra.mrb[26].mxu1 %vm4809_vm7, %v14885_v30 }
 0x51f   : > { %v4879_v55 = vpop.f32.mrb[24].mxu1 }
 0x520   : > { %v13279_v40 = vpop.f32.mrb[25].mxu1 }
 0x550   : > { %v4952_v28 = vpop.f32.mrb[26].mxu1 }
 0x551   : > { %v4959_v20 = vmul.f32 %v4958_v9, %v4952_v28  ;;  %v13284_v7 = vpop.f32.mrb[27].mxu1 }
 0x553   : > { %v4960_v19 = vmul.f32 %v4959_v20, %v4957_v48  ;;  %v4962_v58 = vmul.f32 %v4959_v20, %v4879_v55 }
 0x555   : > { %v4963_v6 = vsub.f32 %v4961_v31, %v4962_v58  ;;  %v4970_v37 = vrot.slane %v4960_v19, %v16659_v1 }
 0x557   : > { %v4964_v35 = vmul.f32 %v4963_v6, %v4957_v48  ;;  %v4971_v0 = vmul.f32 %v4970_v37, %v16378_v12  ;;  %v4972_v42 = vmul.f32 %v4970_v37, %v16388_v11  ;;  %v4973_v46 = vmul.f32 %v4970_v37, %v16375_v50  ;;  %v19055_v11 = vld [vmem:[#allocation23_spill] sm:$0xff] }
 0x558   : > { %v4974_v49 = vmul.f32 %v4970_v37, %v16383_v38  ;;  %v4975_v36 = vmul.f32 %v4970_v37, %v16404_v32  ;;  %v4976_v51 = vmul.f32 %v4970_v37, %v16412_v44  ;;  %v4977_v2 = vmul.f32 %v4970_v37, %v19052_v52  ;;  %v19056_v50 = vld [vmem:[#allocation27_spill] sm:$0xff]  ;;  %v19057_v44 = vld [vmem:[#allocation26_spill] sm:$0xff] }
 0x559   : > { %v4966_v8 = vadd.f32 %v4965_v29, %v4964_v35  ;;  %v4978_v13 = vmul.f32 %v4970_v37, %v19053_v17  ;;  %v4979_v30 = vmul.f32 %v4970_v37, %v19054_v34  ;;  %v4980_v55 = vmul.f32 %v4970_v37, %v16438_v23 }
 0x55a   : > { %v4981_v12 = vmul.f32 %v4970_v37, %v16425_v16  ;;  %v4982_v40 = vmul.f32 %v4970_v37, %v19055_v11  ;;  %v4983_v22 = vmul.f32 %v4970_v37, %v19056_v50  ;;  %v4984_v38 = vmul.f32 %v4970_v37, %v16461_v10 }
 0x55b   : > { %v5011_v32 = vrot.slane %v4966_v8, %v16659_v1  ;;  %v4985_v47 = vmul.f32 %v4970_v37, %v19057_v44  ;;  %v4986_v5 = vmul.f32 %v4970_v37, %v16466_v3  ;;  %v4987_v9 = vmul.f32 %v4970_v37, %v16483_v57 }
 0x55c   : > { %v4988_v48 = vmul.f32 %v4970_v37, %v16494_v45  ;;  %v4989_v23 = vmul.f32 %v4970_v37, %v16479_v39  ;;  %v4990_v16 = vmul.f32 %v4970_v37, %v16489_v41  ;;  %v4991_v28 = vmul.f32 %v4970_v37, %v16513_v4 }
 0x55d   : > { %v4992_v20 = vmul.f32 %v4970_v37, %v16524_v63  ;;  %v4993_v10 = vmul.f32 %v4970_v37, %v16509_v56  ;;  %v4994_v7 = vmul.f32 %v4970_v37, %v16519_v59  ;;  %v4995_v31 = vmul.f32 %v4970_v37, %v16543_v27 }
 0x55e   : > { %v4996_v3 = vmul.f32 %v4970_v37, %v16549_v62  ;;  %v4997_v57 = vmul.f32 %v4970_v37, %v16539_v33  ;;  %v4998_v45 = vmul.f32 %v4970_v37, %v16556_v14  ;;  %v4999_v39 = vmul.f32 %v4970_v37, %v16568_v61 }
 0x55f   : > { %v5000_v41 = vmul.f32 %v4970_v37, %v16579_v26  ;;  %v5001_v4 = vmul.f32 %v4970_v37, %v16574_v54  ;;  %v5002_v63 = vmul.f32 %v4970_v37, %v16584_v21  ;;  %v5003_v56 = vmul.f32 %v4970_v37, %v16598_v24 }
 0x560   : > { %v5004_v59 = vmul.f32 %v4970_v37, %v16609_v15  ;;  %v5005_v27 = vmul.f32 %v4970_v37, %v16604_v60  ;;  %v5006_v62 = vmul.f32 %v4970_v37, %v16612_v25  ;;  %v16706_v19 = vadd.f32 %v5011_v32, %v4971_v0 }
 0x561   : > { %v16708_v33 = vadd.f32 %v5011_v32, %v4972_v42  ;;  %v16710_v14 = vadd.f32 %v5011_v32, %v4973_v46  ;;  %v16712_v61 = vadd.f32 %v5011_v32, %v4974_v49  ;;  %v16714_v26 = vadd.f32 %v5011_v32, %v4975_v36 }
 0x562   : > { %v16716_v54 = vadd.f32 %v5011_v32, %v4976_v51  ;;  %v16718_v21 = vadd.f32 %v5011_v32, %v4977_v2  ;;  %v16720_v24 = vadd.f32 %v5011_v32, %v4978_v13  ;;  %v16722_v15 = vadd.f32 %v5011_v32, %v4979_v30 }
 0x563   : > { %v16724_v60 = vadd.f32 %v5011_v32, %v4980_v55  ;;  %v16726_v25 = vadd.f32 %v5011_v32, %v4981_v12  ;;  %v16728_v58 = vadd.f32 %v5011_v32, %v4982_v40  ;;  %v16730_v6 = vadd.f32 %v5011_v32, %v4983_v22 }
 0x564   : > { %v16732_v37 = vadd.f32 %v5011_v32, %v4984_v38  ;;  %v16734_v29 = vadd.f32 %v5011_v32, %v4985_v47  ;;  %v16736_v35 = vadd.f32 %v5011_v32, %v4986_v5  ;;  %v16738_v0 = vadd.f32 %v5011_v32, %v4987_v9 }
 0x565   : > { %v16740_v42 = vadd.f32 %v5011_v32, %v4988_v48  ;;  %v16742_v46 = vadd.f32 %v5011_v32, %v4989_v23  ;;  %v16744_v49 = vadd.f32 %v5011_v32, %v4990_v16  ;;  %v16746_v36 = vadd.f32 %v5011_v32, %v4991_v28 }
 0x566   : > { %v16748_v51 = vadd.f32 %v5011_v32, %v4992_v20  ;;  %v16750_v52 = vadd.f32 %v5011_v32, %v4993_v10  ;;  %v16752_v2 = vadd.f32 %v5011_v32, %v4994_v7  ;;  %v16754_v8 = vadd.f32 %v5011_v32, %v4995_v31 }
 0x567   : > { %v16756_v17 = vadd.f32 %v5011_v32, %v4996_v3  ;;  %v16758_v13 = vadd.f32 %v5011_v32, %v4997_v57  ;;  %v16760_v34 = vadd.f32 %v5011_v32, %v4998_v45  ;;  %v16762_v30 = vadd.f32 %v5011_v32, %v4999_v39  ;;  %v14723_v39 = vld [vmem:[%s18880_s2 + $0x40] sm:$0xff]  }
 0x568   : > { %19058 = vst [vmem:[#allocation17_spill] sm:$0xff] %v16754_v8  ;;  %v16764_v55 = vadd.f32 %v5011_v32, %v5000_v41  ;;  %v16766_v12 = vadd.f32 %v5011_v32, %v5001_v4  ;;  %v16768_v11 = vadd.f32 %v5011_v32, %v5002_v63  ;;  %v16770_v40 = vadd.f32 %v5011_v32, %v5003_v56 }
 0x569   : > { %19059 = vst [vmem:[#allocation18_spill] sm:$0xff] %v16756_v17  ;;  %19060 = vst [vmem:[#allocation21_spill] sm:$0xff] %v16758_v13  ;;  %v16772_v50 = vadd.f32 %v5011_v32, %v5004_v59  ;;  %v16774_v22 = vadd.f32 %v5011_v32, %v5005_v27  ;;  %v16776_v38 = vadd.f32 %v5011_v32, %v5006_v62  ;;  %v11549_v44 = vmul.f32 -1.442695, %v16706_v19 }
 0x56a   : > { %19061 = vst [vmem:[#allocation23_spill] sm:$0xff] %v16760_v34  ;;  %19062 = vst [vmem:[#allocation27_spill] sm:$0xff] %v16762_v30  ;;  %v11550_v47 = vmul.f32 -1.442695, %v16708_v33  ;;  %v11551_v5 = vmul.f32 -1.442695, %v16710_v14  ;;  %13285 = vmatprep.subr.bf16.mxu1 %v14723_v39 }
 0x56b   : > { %19063 = vst [vmem:[#allocation26_spill] sm:$0xff] %v16764_v55  ;;  %19064 = vst [vmem:[#allocation46_spill] sm:$0xff] %v16766_v12  ;;  %v11552_v9 = vmul.f32 -1.442695, %v16712_v61  ;;  %14886 = vpow2.f32 %v11549_v44  ;;  %v11553_v48 = vmul.f32 -1.442695, %v16714_v26  ;;  %13286 = vmatpush3.bf16.msra.mxu1 %v14723_v39 }
 0x56c   : > { %19065 = vst [vmem:[#allocation47_spill] sm:$0xff] %v16768_v11  ;;  %19066 = vst [vmem:[#allocation48_spill] sm:$0xff] %v16770_v40  ;;  %14888 = vpow2.f32 %v11550_v47  ;;  %v11554_v23 = vmul.f32 -1.442695, %v16716_v54  ;;  %v11555_v16 = vmul.f32 -1.442695, %v16718_v21 }
 0x56d   : > { %19067 = vst [vmem:[#allocation49_spill] sm:$0xff] %v16772_v50  ;;  %19068 = vst [vmem:[#allocation50_spill] sm:$0xff] %v16774_v22  ;;  %14890 = vpow2.f32 %v11551_v5  ;;  %v11556_v32 = vmul.f32 -1.442695, %v16720_v24  ;;  %v11557_v28 = vmul.f32 -1.442695, %v16722_v15 }
 0x56e   : > { %19069 = vst [vmem:[#allocation51_spill] sm:$0xff] %v16776_v38  ;;  %14892 = vpow2.f32 %v11552_v9  ;;  %v11558_v20 = vmul.f32 -1.442695, %v16724_v60  ;;  %v11559_v10 = vmul.f32 -1.442695, %v16726_v25  ;;  %v14724_v47 = vld [vmem:[%s18880_s2 + $0x48] sm:$0xff]  }
 0x56f   : > { %14894 = vpow2.f32 %v11553_v48  ;;  %v11560_v7 = vmul.f32 -1.442695, %v16728_v58  ;;  %v11561_v31 = vmul.f32 -1.442695, %v16730_v6  ;;  %v11562_v3 = vmul.f32 -1.442695, %v16732_v37  ;;  %13287 = vmatprep.subr.bf16.mxu1 %v14724_v47 }
 0x570   : > { %14896 = vpow2.f32 %v11554_v23  ;;  %v11563_v45 = vmul.f32 -1.442695, %v16734_v29  ;;  %v11564_v4 = vmul.f32 -1.442695, %v16736_v35  ;;  %v11565_v56 = vmul.f32 -1.442695, %v16738_v0  ;;  %13288 = vmatpush3.bf16.msra.mxu1 %v14724_v47 }
 0x571   : > { %14898 = vpow2.f32 %v11555_v16  ;;  %v11566_v27 = vmul.f32 -1.442695, %v16740_v42  ;;  %v11567_v44 = vmul.f32 -1.442695, %v16742_v46  ;;  %v11568_v9 = vmul.f32 -1.442695, %v16744_v49 }
 0x572   : > { %14900 = vpow2.f32 %v11556_v32  ;;  %v11569_v23 = vmul.f32 -1.442695, %v16746_v36  ;;  %v11570_v32 = vmul.f32 -1.442695, %v16748_v51  ;;  %v11579_v18 = vmul.f32 -1.442695, %v16766_v12 }
 0x573   : > { %14902 = vpow2.f32 %v11557_v28 }
 0x574   : > { %14904 = vpow2.f32 %v11558_v20  ;;  %v11571_v20 = vmul.f32 -1.442695, %v16750_v52 }
 0x575   : > { %v16792_v57 = vpop.eup %14886  ;;  %14906 = vpow2.f32 %v11559_v10  ;;  %v14725_v10 = vld [vmem:[%s18880_s2 + $0x50] sm:$0xff]  }
 0x576   : > { %v16798_v41 = vpop.eup %14888  ;;  %14908 = vpow2.f32 %v11560_v7  ;;  %13289 = vmatprep.subr.bf16.mxu1 %v14725_v10 }
 0x577   : > { %v16801_v63 = vpop.eup %14890  ;;  %14910 = vpow2.f32 %v11561_v31  ;;  %v11572_v31 = vmul.f32 -1.442695, %v16752_v2  ;;  %13290 = vmatpush3.bf16.msra.mxu1 %v14725_v10 }
 0x578   : > { %v16804_v59 = vpop.eup %14892  ;;  %14912 = vpow2.f32 %v11562_v3 }
 0x579   : > { %v16807_v62 = vpop.eup %14894  ;;  %14914 = vpow2.f32 %v11563_v45  ;;  %v11573_v45 = vmul.f32 -1.442695, %v16754_v8 }
 0x57a   : > { %v16813_v5 = vpop.eup %14896  ;;  %14916 = vpow2.f32 %v11564_v4  ;;  %v11574_v4 = vmul.f32 -1.442695, %v16756_v17 }
 0x57b   : > { %v16816_v48 = vpop.eup %14898  ;;  %14918 = vpow2.f32 %v11565_v56 }
 0x57c   : > { %v16819_v16 = vpop.eup %14900  ;;  %14920 = vpow2.f32 %v11566_v27  ;;  %v11575_v27 = vmul.f32 -1.442695, %v16758_v13 }
 0x57d   : > { %v16822_v28 = vpop.eup %14902  ;;  %14922 = vpow2.f32 %v11567_v44  ;;  %v14726_v44 = vld [vmem:[%s18880_s2 + $0x58] sm:$0xff]   ;;  %v5164_v13 = vadd.f32 1.0, %v16819_v16 }
 0x57e   : > { %v16828_v7 = vpop.eup %14904  ;;  %14924 = vpow2.f32 %v11568_v9  ;;  %v11576_v9 = vmul.f32 -1.442695, %v16760_v34  ;;  %13291 = vmatprep.subr.bf16.mxu1 %v14726_v44  ;;  %v5161_v34 = vadd.f32 1.0, %v16807_v62 }
 0x57f   : > { %v16831_v3 = vpop.eup %14906  ;;  %14926 = vpow2.f32 %v11569_v23  ;;  %13292 = vmatpush3.bf16.msra.mxu1 %v14726_v44  ;;  %v5166_v62 = vadd.f32 1.0, %v16828_v7 }
 0x580   : > { %v16834_v39 = vpop.eup %14908  ;;  %14928 = vpow2.f32 %v11570_v32  ;;  %v11577_v32 = vmul.f32 -1.442695, %v16762_v30  ;;  %v5159_v30 = vadd.f32 1.0, %v16801_v63  ;;  %v5163_v63 = vadd.f32 1.0, %v16816_v48 }
 0x581   : > { %v16837_v56 = vpop.eup %14910  ;;  %14930 = vpow2.f32 %v11571_v20  ;;  %v11578_v20 = vmul.f32 -1.442695, %v16764_v55  ;;  %v11583_v55 = vmul.f32 -1.442695, %v16774_v22  ;;  %v5158_v22 = vadd.f32 1.0, %v16798_v41 }
 0x582   : > { %v16843_v47 = vpop.eup %14912  ;;  %14932 = vpow2.f32 %v11572_v31  ;;  %v14727_v31 = vld [vmem:[%s18880_s2 + $0x60] sm:$0xff]   ;;  %v5162_v41 = vadd.f32 1.0, %v16813_v5  ;;  %v5168_v5 = vadd.f32 1.0, %v16834_v39  ;;  %v5169_v48 = vadd.f32 1.0, %v16837_v56 }
 0x583   : > { %v16846_v23 = vpop.eup %14914  ;;  %14934 = vpow2.f32 %v11573_v45  ;;  %v11580_v45 = vmul.f32 -1.442695, %v16768_v11  ;;  %13293 = vmatprep.subr.bf16.mxu1 %v14727_v31  ;;  %v5170_v16 = vadd.f32 1.0, %v16843_v47 }
 0x584   : > { %v16849_v10 = vpop.eup %14916  ;;  %14936 = vpow2.f32 %v11574_v4  ;;  %v11581_v4 = vmul.f32 -1.442695, %v16770_v40  ;;  %13294 = vmatpush3.bf16.msra.mxu1 %v14727_v31  ;;  %v11584_v40 = vmul.f32 -1.442695, %v16776_v38  ;;  %v5157_v31 = vadd.f32 1.0, %v16792_v57 }
 0x585   : > { %v16852_v1 = vpop.eup %14918  ;;  %14938 = vpow2.f32 %v11575_v27  ;;  %v11582_v27 = vmul.f32 -1.442695, %v16772_v50  ;;  %v5172_v7 = vadd.f32 1.0, %v16849_v10 }
 0x586   : > { %v16858_v53 = vpop.eup %14920  ;;  %14940 = vpow2.f32 %v11576_v9  ;;  %v14728_v9 = vld [vmem:[%s18880_s2 + $0x68] sm:$0xff]  }
 0x587   : > { %v16861_v43 = vpop.eup %14922  ;;  %14942 = vpow2.f32 %v11577_v32  ;;  %v14729_v32 = vld [vmem:[%s18880_s2 + $0x70] sm:$0xff]   ;;  %13295 = vmatprep.subr.bf16.mxu1 %v14728_v9 }
 0x588   : > { %v14925_v44 = vpop.eup %14924  ;;  %14944 = vpow2.f32 %v11578_v20  ;;  %13296 = vmatpush3.bf16.msra.mxu1 %v14728_v9 }
 0x589   : > { %v14927_v12 = vpop.eup %14926  ;;  %14946 = vpow2.f32 %v11579_v18  ;;  %13297 = vmatprep.subr.bf16.mxu1 %v14729_v32  ;;  %v5176_v17 = vadd.f32 1.0, %v14925_v44 }
 0x58a   : > { %v14929_v11 = vpop.eup %14928  ;;  %14948 = vpow2.f32 %v11580_v45  ;;  %v14730_v45 = vld [vmem:[%s18880_s2 + $0x78] sm:$0xff]   ;;  %v5177_v56 = vadd.f32 1.0, %v14927_v12 }
 0x58b   : > { %v14931_v20 = vpop.eup %14930  ;;  %14950 = vpow2.f32 %v11581_v4  ;;  %v5160_v4 = vadd.f32 1.0, %v16804_v59  ;;  %v16898_v8 = vadd.f32 1.0, %v14929_v11 }
 0x58c   : > { %v14933_v18 = vpop.eup %14932  ;;  %14952 = vpow2.f32 %v11582_v27  ;;  %13298 = vmatpush3.bf16.msra.mxu1 %v14729_v32 }
 0x58d   : > { %v14935_v50 = vpop.eup %14934  ;;  %14954 = vpow2.f32 %v11583_v55  ;;  %13299 = vmatprep.subr.bf16.mxu1 %v14730_v45 }
 0x58e   : > { %v14937_v38 = vpop.eup %14936  ;;  %14956 = vpow2.f32 %v11584_v40  ;;  %v5165_v40 = vadd.f32 1.0, %v16822_v28  ;;  %v5171_v28 = vadd.f32 1.0, %v16846_v23  ;;  %v16900_v23 = vadd.f32 1.0, %v14931_v20 }
 0x58f   : > { %v14939_v57 = vpop.eup %14938  ;;  %14958 = vrcp.f32 %v5157_v31  ;;  %v5167_v31 = vadd.f32 1.0, %v16831_v3  ;;  %v5173_v3 = vadd.f32 1.0, %v16852_v1  ;;  %v16904_v1 = vadd.f32 1.0, %v14935_v50 }
 0x590   : > { %v14941_v27 = vpop.eup %14940  ;;  %14960 = vrcp.f32 %v5158_v22  ;;  %v14734_v22 = vld [vmem:[%s18880_s2] sm:$0xff]   ;;  %13300 = vmatpush3.bf16.msra.mxu1 %v14730_v45  ;;  %v16902_v45 = vadd.f32 1.0, %v14933_v18 }
 0x591   : > { %v14943_v55 = vpop.eup %14942  ;;  %14962 = vrcp.f32 %v5159_v30  ;;  %13337 = vmatprep.subr.bf16.mxu1 %v14734_v22  ;;  %v16910_v44 = vadd.f32 1.0, %v14941_v27  ;;  %v19071_v22 = vld [vmem:[#allocation5_spill] sm:$0xff] }
 0x592   : > { %v14945_v9 = vpop.eup %14944  ;;  %14964 = vrcp.f32 %v5160_v4  ;;  %v5175_v4 = vadd.f32 1.0, %v16861_v43 }
 0x593   : > { %v14947_v59 = vpop.eup %14946  ;;  %14966 = vrcp.f32 %v5161_v34  ;;  %v5174_v34 = vadd.f32 1.0, %v16858_v53  ;;  %v16906_v53 = vadd.f32 1.0, %v14937_v38  ;;  %v16914_v12 = vadd.f32 1.0, %v14945_v9 }
 0x594   : > { %v14949_v30 = vpop.eup %14948  ;;  %14968 = vrcp.f32 %v5162_v41  ;;  %v16908_v41 = vadd.f32 1.0, %v14939_v57  ;;  %v16916_v20 = vadd.f32 1.0, %v14947_v59  ;;  %v19070_v59 = vld [vmem:[#allocation3_spill] sm:$0xff] }
 0x595   : > { %v14951_v32 = vpop.eup %14950  ;;  %14970 = vrcp.f32 %v5163_v63  ;;  %v16918_v18 = vadd.f32 1.0, %v14949_v30 }
 0x596   : > { %v14953_v39 = vpop.eup %14952  ;;  %14972 = vrcp.f32 %v5164_v13  ;;  %v16912_v13 = vadd.f32 1.0, %v14943_v55  ;;  %v16921_v57 = vadd.f32 1.0, %v14951_v32 }
 0x597   : > { %v14955_v47 = vpop.eup %14954  ;;  %14974 = vrcp.f32 %v5165_v40  ;;  %v16923_v63 = vadd.f32 1.0, %v14953_v39 }
 0x598   : > { %v14957_v10 = vpop.eup %14956  ;;  %14976 = vrcp.f32 %v5166_v62  ;;  %v16926_v9 = vadd.f32 1.0, %v14955_v47 }
 0x599   : > { %v14959_v43 = vpop.eup %14958  ;;  %14978 = vrcp.f32 %v5167_v31 }
 0x59a   : > { %v14961_v11 = vpop.eup %14960  ;;  %14980 = vrcp.f32 %v5168_v5  ;;  %v5265_v50 = vmul.f32 %v14959_v43, %v16706_v19  ;;  %v16930_v5 = vadd.f32 1.0, %v14957_v10  ;;  %v19073_v43 = vld [vmem:[#allocation6_spill] sm:$0xff] }
 0x59b   : > { %v14963_v38 = vpop.eup %14962  ;;  %14982 = vrcp.f32 %v5169_v48  ;;  %v5266_v27 = vmul.f32 %v14961_v11, %v16708_v33  ;;  %v19072_v48 = vld [vmem:[#allocation4_spill] sm:$0xff] }
 0x59c   : > { %v14965_v55 = vpop.eup %14964  ;;  %14984 = vrcp.f32 %v5170_v16  ;;  %v5267_v40 = vmul.f32 %v14963_v38, %v16710_v14  ;;  %v5301_v62 = vmul.f32 %v5265_v50, %v19070_v59  ;;  %v19074_v50 = vld [vmem:[#allocation7_spill] sm:$0xff] }
 0x59d   : > { %v14967_v31 = vpop.eup %14966  ;;  %14986 = vrcp.f32 %v5171_v28  ;;  %v5268_v19 = vmul.f32 %v14965_v55, %v16712_v61  ;;  %v5302_v30 = vmul.f32 %v5266_v27, %v19071_v22  ;;  %v19075_v55 = vld [vmem:[#allocation8_spill] sm:$0xff] }
 0x59e   : > { %v14969_v32 = vpop.eup %14968  ;;  %14988 = vrcp.f32 %v5172_v7  ;;  %v5269_v33 = vmul.f32 %v14967_v31, %v16714_v26  ;;  %v5303_v39 = vmul.f32 %v5267_v40, %v19072_v48  ;;  %v16936_v47 = vpack.c.bf16 %v5301_v62, %v5301_v62  ;;  %v19076_v31 = vld [vmem:[#allocation9_spill] sm:$0xff] }
 0x59f   : > { %v14971_v16 = vpop.eup %14970  ;;  %14990 = vrcp.f32 %v5173_v3  ;;  %v5270_v14 = vmul.f32 %v14969_v32, %v16716_v54  ;;  %v5304_v10 = vmul.f32 %v5268_v19, %v19073_v43  ;;  %v16940_v11 = vpack.c.bf16 %v5302_v30, %v5302_v30  ;;  %v19077_v32 = vld [vmem:[#allocation10_spill] sm:$0xff] }
 0x5a0   : > { %v14973_v28 = vpop.eup %14972  ;;  %14992 = vrcp.f32 %v5174_v34  ;;  %v5271_v61 = vmul.f32 %v14971_v16, %v16718_v21  ;;  %v5305_v7 = vmul.f32 %v5269_v33, %v19074_v50  ;;  %v16944_v38 = vpack.c.bf16 %v5303_v39, %v5303_v39 }
 0x5a1   : > { %v14975_v26 = vpop.eup %14974  ;;  %14994 = vrcp.f32 %v5175_v4  ;;  %v5272_v27 = vmul.f32 %v14973_v28, %v16720_v24  ;;  %v5306_v3 = vmul.f32 %v5270_v14, %v19075_v55  ;;  %v16948_v40 = vpack.c.bf16 %v5304_v10, %v5304_v10  ;;  %v19079_v10 = vld [vmem:[#allocation12_spill] sm:$0xff] }
 0x5a2   : > { %v14977_v54 = vpop.eup %14976  ;;  %14996 = vrcp.f32 %v5176_v17  ;;  %v5273_v62 = vmul.f32 %v14975_v26, %v16722_v15  ;;  %v5307_v34 = vmul.f32 %v5271_v61, %v19076_v31  ;;  %v16952_v19 = vpack.c.bf16 %v5305_v7, %v5305_v7  ;;  %v19078_v17 = vld [vmem:[#allocation11_spill] sm:$0xff]  ;;  %v19080_v7 = vld [vmem:[#allocation13_spill] sm:$0xff] }
 0x5a3   : > { %v14979_v21 = vpop.eup %14978  ;;  %14998 = vrcp.f32 %v5177_v56  ;;  %v5274_v30 = vmul.f32 %v14977_v54, %v16724_v60  ;;  %v5308_v4 = vmul.f32 %v5272_v27, %v19077_v32  ;;  %v16956_v33 = vpack.c.bf16 %v5306_v3, %v5306_v3  ;;  %v19081_v3 = vld [vmem:[#allocation14_spill] sm:$0xff] }
 0x5a4   : > { %v14981_v24 = vpop.eup %14980  ;;  %15000 = vrcp.f32 %v16898_v8  ;;  %v5275_v39 = vmul.f32 %v14979_v21, %v16726_v25  ;;  %v5309_v16 = vmul.f32 %v5273_v62, %v19078_v17  ;;  %v16961_v15 = vpack.c.bf16 %v5307_v34, %v5307_v34  ;;  %v19082_v34 = vld [vmem:[#allocation15_spill] sm:$0xff] }
 0x5a5   : > { %v14983_v14 = vpop.eup %14982  ;;  %15002 = vrcp.f32 %v16900_v23  ;;  %v5276_v56 = vmul.f32 %v14981_v24, %v16728_v58  ;;  %v5310_v60 = vmul.f32 %v5274_v30, %v19079_v10  ;;  %v16966_v28 = vpack.c.bf16 %v5308_v4, %v5308_v4  ;;  %v19083_v4 = vld [vmem:[#allocation16_spill] sm:$0xff] }
 0x5a6   : > { %v14985_v61 = vpop.eup %14984  ;;  %15004 = vrcp.f32 %v16902_v45  ;;  %v5277_v8 = vmul.f32 %v14983_v14, %v16730_v6  ;;  %v5311_v25 = vmul.f32 %v5275_v39, %v19080_v7  ;;  %v16971_v26 = vpack.c.bf16 %v5309_v16, %v5309_v16  ;;  %v19084_v16 = vld [vmem:[#allocation19_spill] sm:$0xff] }
 0x5a7   : > { %v14987_v27 = vpop.eup %14986  ;;  %15006 = vrcp.f32 %v16904_v1  ;;  %v5278_v23 = vmul.f32 %v14985_v61, %v16732_v37  ;;  %v5312_v58 = vmul.f32 %v5276_v56, %v19081_v3  ;;  %v16976_v54 = vpack.c.bf16 %v5310_v60, %v5310_v60  ;;  %v19085_v60 = vld [vmem:[#allocation20_spill] sm:$0xff]  ;;  %v19115_v3 = vld [vmem:[#allocation42_spill] sm:$0xff] }
 0x5a8   : > { %v14989_v62 = vpop.eup %14988  ;;  %15008 = vrcp.f32 %v16906_v53  ;;  %v5279_v45 = vmul.f32 %v14987_v27, %v16734_v29  ;;  %v5313_v6 = vmul.f32 %v5277_v8, %v19082_v34  ;;  %v16981_v21 = vpack.c.bf16 %v5311_v25, %v5311_v25  ;;  %v19086_v25 = vld [vmem:[#allocation22_spill] sm:$0xff] }
 0x5a9   : > { %v14991_v30 = vpop.eup %14990  ;;  %15010 = vrcp.f32 %v16908_v41  ;;  %v5280_v1 = vmul.f32 %v14989_v62, %v16736_v35  ;;  %v5314_v37 = vmul.f32 %v5278_v23, %v19083_v4  ;;  %v16986_v24 = vpack.c.bf16 %v5312_v58, %v5312_v58  ;;  %v19087_v58 = vld [vmem:[#allocation24_spill] sm:$0xff] }
 0x5aa   : > { %v14993_v39 = vpop.eup %14992  ;;  %15012 = vrcp.f32 %v16910_v44  ;;  %v5281_v53 = vmul.f32 %v14991_v30, %v16738_v0  ;;  %v5315_v29 = vmul.f32 %v5279_v45, %v19084_v16  ;;  %v16991_v14 = vpack.c.bf16 %v5313_v6, %v5313_v6  ;;  %v19088_v6 = vld [vmem:[#allocation25_spill] sm:$0xff]  ;;  %v19109_v16 = vld [vmem:[#allocation39_spill] sm:$0xff] }
 0x5ab   : > { %v14995_v56 = vpop.eup %14994  ;;  %15014 = vrcp.f32 %v16912_v13  ;;  %v5282_v41 = vmul.f32 %v14993_v39, %v16740_v42  ;;  %v5316_v35 = vmul.f32 %v5280_v1, %v19085_v60  ;;  %v16996_v61 = vpack.c.bf16 %v5314_v37, %v5314_v37  ;;  %v19089_v37 = vld [vmem:[#allocation28_spill] sm:$0xff] }
 0x5ac   : > { %v14997_v8 = vpop.eup %14996  ;;  %15016 = vrcp.f32 %v16914_v12  ;;  %v5283_v44 = vmul.f32 %v14995_v56, %v16742_v46  ;;  %v5317_v0 = vmul.f32 %v5281_v53, %v19086_v25  ;;  %v17001_v27 = vpack.c.bf16 %v5315_v29, %v5315_v29  ;;  %v19090_v29 = vld [vmem:[#allocation29_spill] sm:$0xff] }
 0x5ad   : > { %v14999_v23 = vpop.eup %14998  ;;  %15018 = vrcp.f32 %v16916_v20  ;;  %v5284_v13 = vmul.f32 %v14997_v8, %v16744_v49  ;;  %v5318_v42 = vmul.f32 %v5282_v41, %v19087_v58  ;;  %v17006_v62 = vpack.c.bf16 %v5316_v35, %v5316_v35  ;;  %v19091_v35 = vld [vmem:[#allocation30_spill] sm:$0xff]  ;;  %v19101_v58 = vld [vmem:[#allocation35_spill] sm:$0xff] }
 0x5ae   : > { %v15001_v45 = vpop.eup %15000  ;;  %15020 = vrcp.f32 %v16918_v18  ;;  %v5285_v12 = vmul.f32 %v14999_v23, %v16746_v36  ;;  %v5319_v46 = vmul.f32 %v5283_v44, %v19088_v6  ;;  %v17011_v30 = vpack.c.bf16 %v5317_v0, %v5317_v0  ;;  %v19092_v0 = vld [vmem:[#allocation17_spill] sm:$0xff]  ;;  %v19093_v23 = vld [vmem:[#allocation31_spill] sm:$0xff] }
 0x5af   : > { %v15003_v1 = vpop.eup %15002  ;;  %15022 = vrcp.f32 %v16921_v57  ;;  %v5286_v20 = vmul.f32 %v15001_v45, %v16748_v51  ;;  %v5320_v49 = vmul.f32 %v5284_v13, %v19089_v37  ;;  %v17016_v39 = vpack.c.bf16 %v5318_v42, %v5318_v42  ;;  %v19094_v45 = vld [vmem:[#allocation18_spill] sm:$0xff] }
 0x5b0   : > { %v15005_v53 = vpop.eup %15004  ;;  %15024 = vrcp.f32 %v16923_v63  ;;  %v5287_v18 = vmul.f32 %v15003_v1, %v16750_v52  ;;  %v5321_v36 = vmul.f32 %v5285_v12, %v19090_v29  ;;  %v17021_v56 = vpack.c.bf16 %v5319_v46, %v5319_v46  ;;  %v19095_v12 = vld [vmem:[#allocation32_spill] sm:$0xff]  ;;  %v19099_v29 = vld [vmem:[#allocation34_spill] sm:$0xff] }
 0x5b1   : > { %v15007_v41 = vpop.eup %15006  ;;  %15026 = vrcp.f32 %v16926_v9  ;;  %v5288_v57 = vmul.f32 %v15005_v53, %v16752_v2  ;;  %v5322_v51 = vmul.f32 %v5286_v20, %v19091_v35  ;;  %v17026_v8 = vpack.c.bf16 %v5320_v49, %v5320_v49  ;;  %v19096_v49 = vld [vmem:[#allocation21_spill] sm:$0xff]  ;;  %v19098_v35 = vld [vmem:[#allocation23_spill] sm:$0xff] }
 0x5b2   : > { %v15009_v44 = vpop.eup %15008  ;;  %15028 = vrcp.f32 %v16930_v5  ;;  %v5289_v63 = vmul.f32 %v15007_v41, %v19092_v0  ;;  %v5323_v52 = vmul.f32 %v5287_v18, %v19093_v23  ;;  %v17031_v13 = vpack.c.bf16 %v5321_v36, %v5321_v36  ;;  %v19097_v53 = vld [vmem:[#allocation33_spill] sm:$0xff] }
 0x5b3   : > { %v15011_v42 = vpop.eup %15010  ;;  %v5290_v9 = vmul.f32 %v15009_v44, %v19094_v45  ;;  %v5324_v2 = vmul.f32 %v5288_v57, %v19095_v12  ;;  %v17035_v46 = vpack.c.bf16 %v5322_v51, %v5322_v51  ;;  %v5449_v1 = vshrl.u32 %v16936_v47, 16  ;;  %v19100_v12 = vld [vmem:[#allocation27_spill] sm:$0xff] }
 0x5b4   : > { %v15013_v20 = vpop.eup %15012  ;;  %v5291_v5 = vmul.f32 %v15011_v42, %v19096_v49  ;;  %v5325_v41 = vmul.f32 %v5289_v63, %v19097_v53  ;;  %v17040_v0 = vpack.c.bf16 %v5323_v52, %v5323_v52  ;;  %v5452_v18 = vshll.u32 %v16936_v47, 16  ;;  %v19102_v49 = vld [vmem:[#allocation26_spill] sm:$0xff]  ;;  %v19103_v47 = vld [vmem:[#allocation36_spill] sm:$0xff] }
 0x5b5   : > { %v15015_v36 = vpop.eup %15014  ;;  %v5292_v23 = vmul.f32 %v15013_v20, %v19098_v35  ;;  %v5326_v44 = vmul.f32 %v5290_v9, %v19099_v29  ;;  %v17045_v45 = vpack.c.bf16 %v5324_v2, %v5324_v2  ;;  %v5451_v57 = vrot.slane %v5449_v1, 6  ;;  %v19104_v2 = vld [vmem:[#allocation46_spill] sm:$0xff]  ;;  %v19105_v20 = vld [vmem:[#allocation37_spill] sm:$0xff] }
 0x5b6   : > { %v15017_v51 = vpop.eup %15016  ;;  %v5293_v37 = vmul.f32 %v15015_v36, %v19100_v12  ;;  %v5327_v6 = vmul.f32 %v5291_v5, %v19101_v58  ;;  %v17049_v42 = vpack.c.bf16 %v5325_v41, %v5325_v41  ;;  %v5454_v63 = vrot.slane %v5452_v18, 7  ;;  %v19106_v18 = vld [vmem:[#allocation47_spill] sm:$0xff]  ;;  %v19107_v58 = vld [vmem:[#allocation38_spill] sm:$0xff] }
 0x5b7   : > { %v15019_v52 = vpop.eup %15018  ;;  %v5294_v53 = vmul.f32 %v15017_v51, %v19102_v49  ;;  %v5328_v25 = vmul.f32 %v5292_v23, %v19103_v47  ;;  %v17053_v60 = vpack.c.bf16 %v5326_v44, %v5326_v44  ;;  %v5458_v35 = vshrl.u32 %v16940_v11, 16  ;;  %v19108_v47 = vld [vmem:[#allocation48_spill] sm:$0xff] }
 0x5b8   : > { %v15021_v9 = vpop.eup %15020  ;;  %v5295_v1 = vmul.f32 %v15019_v52, %v19104_v2  ;;  %v5329_v29 = vmul.f32 %v5293_v37, %v19105_v20  ;;  %v17058_v12 = vpack.c.bf16 %v5327_v6, %v5327_v6  ;;  %v17060_v5 = vor.u32 %v5454_v63, %v5451_v57  ;;  %v19110_v57 = vld [vmem:[#allocation49_spill] sm:$0xff]  ;;  %v19111_v2 = vld [vmem:[#allocation40_spill] sm:$0xff] }
 0x5b9   : > { %v15023_v41 = vpop.eup %15022  ;;  %v5296_v36 = vmul.f32 %v15021_v9, %v19106_v18  ;;  %v5330_v51 = vmul.f32 %v5294_v53, %v19107_v58  ;;  %v17064_v49 = vpack.c.bf16 %v5328_v25, %v5328_v25  ;;  %v5460_v23 = vrot.slane %v5458_v35, 6  ;;  %v19112_v35 = vld [vmem:[#allocation50_spill] sm:$0xff]  ;;  %v19113_v58 = vld [vmem:[#allocation41_spill] sm:$0xff] }
 0x5ba   : > { %v15025_v44 = vpop.eup %15024  ;;  %v5297_v4 = vmul.f32 %v15023_v41, %v19108_v47  ;;  %v5331_v34 = vmul.f32 %v5295_v1, %v19109_v16  ;;  %v17068_v52 = vpack.c.bf16 %v5329_v29, %v5329_v29  ;;  %v5456_v6 = vrot.slane %v17060_v5, 4  ;;  %v19114_v1 = vld [vmem:[#allocation51_spill] sm:$0xff] }
 0x5bb   : > { %v15027_v37 = vpop.eup %15026  ;;  %v5298_v63 = vmul.f32 %v15025_v44, %v19110_v57  ;;  %v5332_v20 = vmul.f32 %v5296_v36, %v19111_v2  ;;  %v17073_v9 = vpack.c.bf16 %v5330_v51, %v5330_v51  ;;  %v5461_v25 = vshll.u32 %v16940_v11, 16  ;;  %v19118_v51 = vld [vmem:[#allocation43_spill] sm:$0xff] }
 0x5bc   : > { %v15029_v53 = vpop.eup %15028  ;;  %v5299_v18 = vmul.f32 %v15027_v37, %v19112_v35  ;;  %v5333_v47 = vmul.f32 %v5297_v4, %v19113_v58  ;;  %v17078_v41 = vpack.c.bf16 %v5331_v34, %v5331_v34  ;;  %v5468_v29 = vshrl.u32 %v16944_v38, 16  ;;  %v19119_v35 = vld [vmem:[#allocation44_spill] sm:$0xff] }
 0x5bd   : > { %v5300_v16 = vmul.f32 %v15029_v53, %v19114_v1  ;;  %v5334_v10 = vmul.f32 %v5298_v63, %v19115_v3  ;;  %v17083_v44 = vpack.c.bf16 %v5332_v20, %v5332_v20  ;;  %v5463_v36 = vrot.slane %v5461_v25, 7 }
 0x5be   : > { %v5335_v37 = vmul.f32 %v5299_v18, %v19118_v51  ;;  %v17092_v4 = vpack.c.bf16 %v5333_v47, %v5333_v47  ;;  %v5470_v34 = vrot.slane %v5468_v29, 6  ;;  %v5471_v57 = vshll.u32 %v16944_v38, 16 }
 0x5bf   : > { %v5336_v53 = vmul.f32 %v5300_v16, %v19119_v35  ;;  %v17096_v1 = vpack.c.bf16 %v5334_v10, %v5334_v10  ;;  %v5464_v20 = vor.u32 %v5463_v36, %v5460_v23  ;;  %v5478_v63 = vshrl.u32 %v16948_v40, 16 }
 0x5c0   : > { %v17099_v25 = vpack.c.bf16 %v5335_v37, %v5335_v37  ;;  %v5473_v3 = vrot.slane %v5471_v57, 7  ;;  %v5481_v58 = vshll.u32 %v16948_v40, 16  ;;  %v5488_v2 = vshrl.u32 %v16952_v19, 16 }
 0x5c1   : > { %v17103_v18 = vpack.c.bf16 %v5336_v53, %v5336_v53  ;;  %v5465_v47 = vsel %vm17087_vm10, %v5456_v6, %v5464_v20  ;;  %v5466_v38 = vrot.slane %v5464_v20, 4  ;;  %v5480_v29 = vrot.slane %v5478_v63, 6 }
 0x5c2   : > { %v5474_v16 = vor.u32 %v5473_v3, %v5470_v34  ;;  %v5483_v10 = vrot.slane %v5481_v58, 7  ;;  %v5490_v35 = vrot.slane %v5488_v2, 6  ;;  %v5491_v23 = vshll.u32 %v16952_v19, 16  ;;  %5850 = vst [vmem:[#allocation2 + $0xc] sm:$0xf] %v5465_v47 }
 0x5c3   : > { %v5498_v36 = vshrl.u32 %v16956_v33, 16  ;;  %v5501_v37 = vshll.u32 %v16956_v33, 16  ;;  %v5508_v40 = vshrl.u32 %v16961_v15, 16  ;;  %v5511_v57 = vshll.u32 %v16961_v15, 16 }
 0x5c4   : > { %v5475_v53 = vsel %vm17087_vm10, %v5466_v38, %v5474_v16  ;;  %v5476_v6 = vrot.slane %v5474_v16, 4  ;;  %v5484_v20 = vor.u32 %v5483_v10, %v5480_v29  ;;  %v5493_v63 = vrot.slane %v5491_v23, 7 }
 0x5c5   : > { %v5500_v3 = vrot.slane %v5498_v36, 6  ;;  %v5503_v58 = vrot.slane %v5501_v37, 7  ;;  %v5510_v2 = vrot.slane %v5508_v40, 6  ;;  %v5513_v34 = vrot.slane %v5511_v57, 7  ;;  %5851 = vst [vmem:[#allocation2 + $0x10] sm:$0xf] %v5475_v53 }
 0x5c6   : > { %v5485_v19 = vsel %vm17087_vm10, %v5476_v6, %v5484_v20  ;;  %v5486_v47 = vrot.slane %v5484_v20, 4  ;;  %v5494_v33 = vor.u32 %v5493_v63, %v5490_v35  ;;  %v5518_v51 = vshrl.u32 %v16966_v28, 16 }
 0x5c7   : > { %v5504_v7 = vor.u32 %v5503_v58, %v5500_v3  ;;  %v5514_v15 = vor.u32 %v5513_v34, %v5510_v2  ;;  %v5521_v17 = vshll.u32 %v16966_v28, 16  ;;  %v5528_v38 = vshrl.u32 %v16971_v26, 16  ;;  %5852 = vst [vmem:[#allocation2 + $0x14] sm:$0xf] %v5485_v19 }
 0x5c8   : > { %v5495_v29 = vsel %vm17087_vm10, %v5486_v47, %v5494_v33  ;;  %v5496_v16 = vrot.slane %v5494_v33, 4  ;;  %v5520_v10 = vrot.slane %v5518_v51, 6  ;;  %v5531_v23 = vshll.u32 %v16971_v26, 16 }
 0x5c9   : > { %v5506_v36 = vrot.slane %v5504_v7, 4  ;;  %v5516_v37 = vrot.slane %v5514_v15, 4  ;;  %v5523_v40 = vrot.slane %v5521_v17, 7  ;;  %v5530_v35 = vrot.slane %v5528_v38, 6  ;;  %5853 = vst [vmem:[#allocation2 + $0x18] sm:$0xf] %v5495_v29 }
 0x5ca   : > { %v5505_v57 = vsel %vm17087_vm10, %v5496_v16, %v5504_v7  ;;  %v5533_v53 = vrot.slane %v5531_v23, 7  ;;  %v5538_v28 = vshrl.u32 %v16976_v54, 16  ;;  %v5541_v6 = vshll.u32 %v16976_v54, 16 }
 0x5cb   : > { %v5515_v20 = vsel %vm17087_vm10, %v5506_v36, %v5514_v15  ;;  %v5524_v63 = vor.u32 %v5523_v40, %v5520_v10  ;;  %v5548_v51 = vshrl.u32 %v16981_v21, 16  ;;  %v5551_v26 = vshll.u32 %v16981_v21, 16  ;;  %5854 = vst [vmem:[#allocation2 + $0x1c] sm:$0xf] %v5505_v57 }
 0x5cc   : > { %v5534_v17 = vor.u32 %v5533_v53, %v5530_v35  ;;  %v5540_v3 = vrot.slane %v5538_v28, 6  ;;  %v5543_v58 = vrot.slane %v5541_v6, 7  ;;  %v5558_v2 = vshrl.u32 %v16986_v24, 16  ;;  %5855 = vst [vmem:[#allocation2 + $0x20] sm:$0xf] %v5515_v20 }
 0x5cd   : > { %v5525_v7 = vsel %vm17087_vm10, %v5516_v37, %v5524_v63  ;;  %v5526_v34 = vrot.slane %v5524_v63, 4  ;;  %v5550_v54 = vrot.slane %v5548_v51, 6  ;;  %v5553_v19 = vrot.slane %v5551_v26, 7 }
 0x5ce   : > { %v5536_v47 = vrot.slane %v5534_v17, 4  ;;  %v5544_v33 = vor.u32 %v5543_v58, %v5540_v3  ;;  %v5560_v15 = vrot.slane %v5558_v2, 6  ;;  %v5561_v38 = vshll.u32 %v16986_v24, 16  ;;  %5856 = vst [vmem:[#allocation2 + $0x24] sm:$0xf] %v5525_v7 }
 0x5cf   : > { %v5535_v21 = vsel %vm17087_vm10, %v5526_v34, %v5534_v17  ;;  %v5554_v29 = vor.u32 %v5553_v19, %v5550_v54  ;;  %v5568_v16 = vshrl.u32 %v16991_v14, 16  ;;  %v5571_v10 = vshll.u32 %v16991_v14, 16 }
 0x5d0   : > { %v5545_v23 = vsel %vm17087_vm10, %v5536_v47, %v5544_v33  ;;  %v5546_v36 = vrot.slane %v5544_v33, 4  ;;  %v5563_v37 = vrot.slane %v5561_v38, 7  ;;  %v5578_v40 = vshrl.u32 %v16996_v61, 16  ;;  %5857 = vst [vmem:[#allocation2 + $0x28] sm:$0xf] %v5535_v21 }
 0x5d1   : > { %v5556_v35 = vrot.slane %v5554_v29, 4  ;;  %v5570_v57 = vrot.slane %v5568_v16, 6  ;;  %v5573_v24 = vrot.slane %v5571_v10, 7  ;;  %v5581_v53 = vshll.u32 %v16996_v61, 16  ;;  %5858 = vst [vmem:[#allocation2 + $0x2c] sm:$0xf] %v5545_v23 }
 0x5d2   : > { %v5555_v28 = vsel %vm17087_vm10, %v5546_v36, %v5554_v29  ;;  %v5564_v6 = vor.u32 %v5563_v37, %v5560_v15  ;;  %v5580_v20 = vrot.slane %v5578_v40, 6  ;;  %v5588_v14 = vshrl.u32 %v17001_v27, 16 }
 0x5d3   : > { %v5574_v63 = vor.u32 %v5573_v24, %v5570_v57  ;;  %v5583_v51 = vrot.slane %v5581_v53, 7  ;;  %v5591_v26 = vshll.u32 %v17001_v27, 16  ;;  %v5598_v17 = vshrl.u32 %v17006_v62, 16  ;;  %5859 = vst [vmem:[#allocation2 + $0x30] sm:$0xf] %v5555_v28 }
 0x5d4   : > { %v5565_v3 = vsel %vm17087_vm10, %v5556_v35, %v5564_v6  ;;  %v5566_v58 = vrot.slane %v5564_v6, 4  ;;  %v5590_v61 = vrot.slane %v5588_v14, 6  ;;  %v5601_v2 = vshll.u32 %v17006_v62, 16 }
 0x5d5   : > { %v5576_v7 = vrot.slane %v5574_v63, 4  ;;  %v5584_v34 = vor.u32 %v5583_v51, %v5580_v20  ;;  %v5593_v54 = vrot.slane %v5591_v26, 7  ;;  %v5600_v19 = vrot.slane %v5598_v17, 6  ;;  %5860 = vst [vmem:[#allocation2 + $0x34] sm:$0xf] %v5565_v3 }
 0x5d6   : > { %v5575_v47 = vsel %vm17087_vm10, %v5566_v58, %v5574_v63  ;;  %v5603_v33 = vrot.slane %v5601_v2, 7  ;;  %v5608_v27 = vshrl.u32 %v17011_v30, 16  ;;  %v5611_v15 = vshll.u32 %v17011_v30, 16 }
 0x5d7   : > { %v5585_v38 = vsel %vm17087_vm10, %v5576_v7, %v5584_v34  ;;  %v5586_v21 = vrot.slane %v5584_v34, 4  ;;  %v5594_v29 = vor.u32 %v5593_v54, %v5590_v61  ;;  %v5618_v62 = vshrl.u32 %v17016_v39, 16  ;;  %5861 = vst [vmem:[#allocation2 + $0x38] sm:$0xf] %v5575_v47 }
 0x5d8   : > { %v5604_v16 = vor.u32 %v5603_v33, %v5600_v19  ;;  %v5610_v10 = vrot.slane %v5608_v27, 6  ;;  %v5613_v23 = vrot.slane %v5611_v15, 7  ;;  %v5621_v36 = vshll.u32 %v17016_v39, 16  ;;  %5862 = vst [vmem:[#allocation2 + $0x3c] sm:$0xf] %v5585_v38 }
 0x5d9   : > { %v5595_v37 = vsel %vm17087_vm10, %v5586_v21, %v5594_v29  ;;  %v5596_v40 = vrot.slane %v5594_v29, 4  ;;  %v5620_v35 = vrot.slane %v5618_v62, 6  ;;  %v5628_v30 = vshrl.u32 %v17021_v56, 16 }
 0x5da   : > { %v5606_v57 = vrot.slane %v5604_v16, 4  ;;  %v5614_v24 = vor.u32 %v5613_v23, %v5610_v10  ;;  %v5623_v53 = vrot.slane %v5621_v36, 7  ;;  %v5631_v28 = vshll.u32 %v17021_v56, 16  ;;  %5863 = vst [vmem:[#allocation2 + $0x40] sm:$0xf] %v5595_v37 }
 0x5db   : > { %v5605_v6 = vsel %vm17087_vm10, %v5596_v40, %v5604_v16  ;;  %v5630_v20 = vrot.slane %v5628_v30, 6  ;;  %v5638_v39 = vshrl.u32 %v17026_v8, 16  ;;  %v5641_v14 = vshll.u32 %v17026_v8, 16 }
 0x5dc   : > { %v5615_v63 = vsel %vm17087_vm10, %v5606_v57, %v5614_v24  ;;  %v5616_v51 = vrot.slane %v5614_v24, 4  ;;  %v5624_v26 = vor.u32 %v5623_v53, %v5620_v35  ;;  %v5633_v17 = vrot.slane %v5631_v28, 7  ;;  %5864 = vst [vmem:[#allocation2 + $0x44] sm:$0xf] %v5605_v6 }
 0x5dd   : > { %v5640_v3 = vrot.slane %v5638_v39, 6  ;;  %v5643_v58 = vrot.slane %v5641_v14, 7  ;;  %v5648_v56 = vshrl.u32 %v17031_v13, 16  ;;  %v5651_v61 = vshll.u32 %v17031_v13, 16  ;;  %5865 = vst [vmem:[#allocation2 + $0x48] sm:$0xf] %v5615_v63 }
 0x5de   : > { %v5625_v2 = vsel %vm17087_vm10, %v5616_v51, %v5624_v26  ;;  %v5626_v7 = vrot.slane %v5624_v26, 4  ;;  %v5634_v34 = vor.u32 %v5633_v17, %v5630_v20  ;;  %v5658_v8 = vshrl.u32 %v17035_v46, 16 }
 0x5df   : > { %v5644_v54 = vor.u32 %v5643_v58, %v5640_v3  ;;  %v5650_v19 = vrot.slane %v5648_v56, 6  ;;  %v5653_v47 = vrot.slane %v5651_v61, 7  ;;  %v5661_v33 = vshll.u32 %v17035_v46, 16  ;;  %5866 = vst [vmem:[#allocation2 + $0x4c] sm:$0xf] %v5625_v2 }
 0x5e0   : > { %v5635_v27 = vsel %vm17087_vm10, %v5626_v7, %v5634_v34  ;;  %v5636_v15 = vrot.slane %v5634_v34, 4  ;;  %v5660_v38 = vrot.slane %v5658_v8, 6  ;;  %v5668_v13 = vshrl.u32 %v17040_v0, 16 }
 0x5e1   : > { %v5646_v21 = vrot.slane %v5644_v54, 4  ;;  %v5654_v29 = vor.u32 %v5653_v47, %v5650_v19  ;;  %v5663_v62 = vrot.slane %v5661_v33, 7  ;;  %v5671_v16 = vshll.u32 %v17040_v0, 16  ;;  %5867 = vst [vmem:[#allocation2 + $0x50] sm:$0xf] %v5635_v27 }
 0x5e2   : > { %v5645_v10 = vsel %vm17087_vm10, %v5636_v15, %v5644_v54  ;;  %v5670_v23 = vrot.slane %v5668_v13, 6  ;;  %v5678_v46 = vshrl.u32 %v17045_v45, 16  ;;  %v5681_v36 = vshll.u32 %v17045_v45, 16 }
 0x5e3   : > { %v5655_v37 = vsel %vm17087_vm10, %v5646_v21, %v5654_v29  ;;  %v5656_v40 = vrot.slane %v5654_v29, 4  ;;  %v5664_v35 = vor.u32 %v5663_v62, %v5660_v38  ;;  %v5673_v30 = vrot.slane %v5671_v16, 7  ;;  %5868 = vst [vmem:[#allocation2 + $0x54] sm:$0xf] %v5645_v10 }
 0x5e4   : > { %v5680_v57 = vrot.slane %v5678_v46, 6  ;;  %v5683_v24 = vrot.slane %v5681_v36, 7  ;;  %v5688_v0 = vshrl.u32 %v17049_v42, 16  ;;  %v5691_v53 = vshll.u32 %v17049_v42, 16  ;;  %5869 = vst [vmem:[#allocation2 + $0x58] sm:$0xf] %v5655_v37 }
 0x5e5   : > { %v5665_v28 = vsel %vm17087_vm10, %v5656_v40, %v5664_v35  ;;  %v5666_v6 = vrot.slane %v5664_v35, 4  ;;  %v5674_v20 = vor.u32 %v5673_v30, %v5670_v23  ;;  %v5698_v45 = vshrl.u32 %v17053_v60, 16 }
 0x5e6   : > { %v5684_v39 = vor.u32 %v5683_v24, %v5680_v57  ;;  %v5690_v14 = vrot.slane %v5688_v0, 6  ;;  %v5693_v63 = vrot.slane %v5691_v53, 7  ;;  %v5701_v51 = vshll.u32 %v17053_v60, 16  ;;  %5870 = vst [vmem:[#allocation2 + $0x5c] sm:$0xf] %v5665_v28 }
 0x5e7   : > { %v5675_v26 = vsel %vm17087_vm10, %v5666_v6, %v5674_v20  ;;  %v5676_v17 = vrot.slane %v5674_v20, 4  ;;  %v5700_v3 = vrot.slane %v5698_v45, 6  ;;  %v5708_v42 = vshrl.u32 %v17058_v12, 16 }
 0x5e8   : > { %v5686_v58 = vrot.slane %v5684_v39, 4  ;;  %v5694_v56 = vor.u32 %v5693_v63, %v5690_v14  ;;  %v5703_v61 = vrot.slane %v5701_v51, 7  ;;  %v5711_v2 = vshll.u32 %v17058_v12, 16  ;;  %5871 = vst [vmem:[#allocation2 + $0x60] sm:$0xf] %v5675_v26 }
 0x5e9   : > { %v5685_v7 = vsel %vm17087_vm10, %v5676_v17, %v5684_v39  ;;  %v5710_v34 = vrot.slane %v5708_v42, 6  ;;  %v5718_v60 = vshrl.u32 %v17064_v49, 16  ;;  %v5721_v8 = vshll.u32 %v17064_v49, 16 }
 0x5ea   : > { %v5695_v54 = vsel %vm17087_vm10, %v5686_v58, %v5694_v56  ;;  %v5696_v19 = vrot.slane %v5694_v56, 4  ;;  %v5704_v47 = vor.u32 %v5703_v61, %v5700_v3  ;;  %v5713_v33 = vrot.slane %v5711_v2, 7  ;;  %5872 = vst [vmem:[#allocation2 + $0x64] sm:$0xf] %v5685_v7  ;;  %v5847_v3 = vld [vmem:[#allocation2 + $0x8] sm:$0xe] }
 0x5eb   : > { %v5720_v27 = vrot.slane %v5718_v60, 6  ;;  %v5723_v12 = vrot.slane %v5721_v8, 7  ;;  %v5728_v15 = vshrl.u32 %v17068_v52, 16  ;;  %v5731_v38 = vshll.u32 %v17068_v52, 16  ;;  %5873 = vst [vmem:[#allocation2 + $0x68] sm:$0xf] %v5695_v54 }
 0x5ec   : > { %v5705_v13 = vsel %vm17087_vm10, %v5696_v19, %v5704_v47  ;;  %v5706_v49 = vrot.slane %v5704_v47, 4  ;;  %v5714_v21 = vor.u32 %v5713_v33, %v5710_v34  ;;  %v5738_v29 = vshrl.u32 %v17073_v9, 16 }
 0x5ed   : > { %v5724_v62 = vor.u32 %v5723_v12, %v5720_v27  ;;  %v5730_v16 = vrot.slane %v5728_v15, 6  ;;  %v5733_v10 = vrot.slane %v5731_v38, 7  ;;  %v5741_v23 = vshll.u32 %v17073_v9, 16  ;;  %5874 = vst [vmem:[#allocation2 + $0x6c] sm:$0xf] %v5705_v13 }
 0x5ee   : > { %v5715_v46 = vsel %vm17087_vm10, %v5706_v49, %v5714_v21  ;;  %v5716_v36 = vrot.slane %v5714_v21, 4  ;;  %v5740_v37 = vrot.slane %v5738_v29, 6  ;;  %v5748_v52 = vshrl.u32 %v17078_v41, 16 }
 0x5ef   : > { %v5726_v40 = vrot.slane %v5724_v62, 4  ;;  %v5734_v35 = vor.u32 %v5733_v10, %v5730_v16  ;;  %v5743_v30 = vrot.slane %v5741_v23, 7  ;;  %v5751_v57 = vshll.u32 %v17078_v41, 16  ;;  %5875 = vst [vmem:[#allocation2 + $0x70] sm:$0xf] %v5715_v46 }
 0x5f0   : > { %v5725_v24 = vsel %vm17087_vm10, %v5716_v36, %v5724_v62  ;;  %v5750_v0 = vrot.slane %v5748_v52, 6  ;;  %v5758_v9 = vshrl.u32 %v17083_v44, 16  ;;  %v5761_v53 = vshll.u32 %v17083_v44, 16  ;;  %v5887_v10 = vld [vmem:[#allocation2 + $0x98] sm:$0x3] }
 0x5f1   : > { %v5735_v28 = vsel %vm17087_vm10, %v5726_v40, %v5734_v35  ;;  %v5736_v6 = vrot.slane %v5734_v35, 4  ;;  %v5744_v20 = vor.u32 %v5743_v30, %v5740_v37  ;;  %v5753_v45 = vrot.slane %v5751_v57, 7  ;;  %5876 = vst [vmem:[#allocation2 + $0x74] sm:$0xf] %v5725_v24  ;;  %v5902_v37 = vld [vmem:[#allocation2] sm:$0xf] }
 0x5f2   : > { %v5760_v39 = vrot.slane %v5758_v9, 6  ;;  %v5763_v14 = vrot.slane %v5761_v53, 7  ;;  %v5768_v41 = vshrl.u32 %v17092_v4, 16  ;;  %v5771_v63 = vshll.u32 %v17092_v4, 16  ;;  %5877 = vst [vmem:[#allocation2 + $0x78] sm:$0xf] %v5735_v28 }
 0x5f3   : > { %v5745_v51 = vsel %vm17087_vm10, %v5736_v6, %v5744_v20  ;;  %v5746_v26 = vrot.slane %v5744_v20, 4  ;;  %v5754_v17 = vor.u32 %v5753_v45, %v5750_v0  ;;  %v5778_v44 = vshrl.u32 %v17096_v1, 16  ;;  %v17250_v0 = vld [vmem:[#allocation2 + $0x10] sm:$0xff]   ;;  %v17257_v45 = vld [vmem:[#allocation2 + $0x18] sm:$0xff]  }
 0x5f4   : > { %v5764_v42 = vor.u32 %v5763_v14, %v5760_v39  ;;  %v5770_v58 = vrot.slane %v5768_v41, 6  ;;  %v5773_v56 = vrot.slane %v5771_v63, 7  ;;  %v5781_v61 = vshll.u32 %v17096_v1, 16  ;;  %5878 = vst [vmem:[#allocation2 + $0x7c] sm:$0xf] %v5745_v51  ;;  %v17261_v41 = vld [vmem:[#allocation2 + $0x20] sm:$0xff]  }
 0x5f5   : > { %v5755_v2 = vsel %vm17087_vm10, %v5746_v26, %v5754_v17  ;;  %v5756_v7 = vrot.slane %v5754_v17, 4  ;;  %v5780_v4 = vrot.slane %v5778_v44, 6  ;;  %v5788_v34 = vshrl.u32 %v17099_v25, 16  ;;  %v17264_v26 = vld [vmem:[#allocation2 + $0x28] sm:$0xff]   ;;  %v17266_v17 = vld [vmem:[#allocation2 + $0x30] sm:$0xff]  }
 0x5f6   : > { %v5766_v8 = vrot.slane %v5764_v42, 4  ;;  %v5774_v54 = vor.u32 %v5773_v56, %v5770_v58  ;;  %v5783_v19 = vrot.slane %v5781_v61, 7  ;;  %v5791_v47 = vshll.u32 %v17099_v25, 16  ;;  %5879 = vst [vmem:[#allocation2 + $0x80] sm:$0xf] %v5755_v2  ;;  %v14738_v2 = vld [vmem:[%s18880_s2 + $0x8] sm:$0xff]  }
 0x5f7   : > { %v5765_v1 = vsel %vm17087_vm10, %v5756_v7, %v5764_v42  ;;  %v5790_v33 = vrot.slane %v5788_v34, 6  ;;  %v5798_v27 = vshrl.u32 %v17103_v18, 16  ;;  %v5801_v12 = vshll.u32 %v17103_v18, 16  ;;  %v17275_v7 = vld [vmem:[#allocation2 + $0x38] sm:$0xff]  }
 0x5f8   : > { %v5775_v15 = vsel %vm17087_vm10, %v5766_v8, %v5774_v54  ;;  %v5776_v38 = vrot.slane %v5774_v54, 4  ;;  %v5784_v13 = vor.u32 %v5783_v19, %v5780_v4  ;;  %v5793_v49 = vrot.slane %v5791_v47, 7  ;;  %5880 = vst [vmem:[#allocation2 + $0x84] sm:$0xf] %v5765_v1  ;;  %v17277_v4 = vld [vmem:[#allocation2 + $0x40] sm:$0xff]   ;;  %v14743_v47 = vld [vmem:[#allocation2 + $0x48] sm:$0xff]  }
 0x5f9   : > { %v5800_v21 = vrot.slane %v5798_v27, 6  ;;  %v5803_v29 = vrot.slane %v5801_v12, 7  ;;  %v5848_v25 = vsel %vm17227_vm13, %v17060_v5, %v5847_v3  ;;  %5881 = vst [vmem:[#allocation2 + $0x88] sm:$0xf] %v5775_v15  ;;  %v5903_v5 = vld [vmem:[#allocation2 + $0x4] sm:$0xf] }
 0x5fa   : > { %v5785_v62 = vsel %vm17087_vm10, %v5776_v38, %v5784_v13  ;;  %v5786_v16 = vrot.slane %v5784_v13, 4  ;;  %v5794_v18 = vor.u32 %v5793_v49, %v5790_v33  ;;  %5849 = vst [vmem:[#allocation2 + $0x8] sm:$0xe] %v5848_v25  ;;  %v17248_v30 = vcombine.low %v5902_v37, %v5903_v5  ;;  %v14745_v1 = vld [vmem:[#allocation2 + $0x50] sm:$0xff]   ;;  %v14746_v33 = vld [vmem:[#allocation2 + $0x58] sm:$0xff]   ;;  %v14748_v15 = vld [vmem:[#allocation2 + $0x60] sm:$0xff]  }
 0x5fb   : > { %v5804_v23 = vor.u32 %v5803_v29, %v5800_v21  ;;  %5882 = vst [vmem:[#allocation2 + $0x8c] sm:$0xf] %v5785_v62  ;;  %v6081_v28 = vshll.u32 %v17250_v0, 16  ;;  %v6085_v44 = vshrl.u32 %v17250_v0, 16  ;;  %v6089_v3 = vshll.u32 %v17257_v45, 16  ;;  %v14741_v21 = vld [vmem:[%s18880_s2 + $0x10] sm:$0xff]  }
 0x5fc   : > { %v5795_v46 = vsel %vm17087_vm10, %v5786_v16, %v5794_v18  ;;  %v5796_v36 = vrot.slane %v5794_v18, 4  ;;  %v6068_v9 = vshll.u32 %v17248_v30, 16  ;;  %v6066_v11 = vshrl.u32 %v17248_v30, 16  ;;  %v15187_v29 = vld [vmem:[%s18880_s2] sm:$0xff]   ;;  %v17297_v5 = vld [vmem:[#allocation2 + $0x70] sm:$0xff]  }
 0x5fd   : > { %v5806_v52 = vrot.slane %v5804_v23, 4  ;;  %5883 = vst [vmem:[#allocation2 + $0x90] sm:$0xf] %v5795_v46  ;;  %v6083_v14 = vrot.slane %v6081_v28, 1  ;;  %v6097_v61 = vshll.u32 %v17261_v41, 16  ;;  %v6105_v8 = vshll.u32 %v17264_v26, 16 }
 0x5fe   : > { %v5805_v40 = vsel %vm17087_vm10, %v5796_v36, %v5804_v23  ;;  %v6070_v20 = vrot.slane %v6068_v9, 1  ;;  %v6113_v54 = vshll.u32 %v17266_v17, 16  ;;  %v6091_v19 = vrot.slane %v6089_v3, 1  ;;  %v17295_v46 = vld [vmem:[#allocation2 + $0x68] sm:$0xff]   ;;  %v14747_v3 = vld [vmem:[%s18880_s2 + $0x20] sm:$0xff]  }
 0x5ff   : > { %5884 = vst [vmem:[#allocation2 + $0x94] sm:$0xf] %v5805_v40  ;;  %v5888_v35 = vsel %vm5886_vm15, %v5806_v52, %v5887_v10  ;;  %v6087_v56 = vor.u32 %v6085_v44, %v6083_v14  ;;  %v6093_v12 = vshrl.u32 %v17257_v45, 16  ;;  %v6099_v13 = vrot.slane %v6097_v61, 1  ;;  %v17443_v22 = vld [vmem:[#allocation2 + $0x80] sm:$0xff]  }
 0x600   : > { %5889 = vst [vmem:[#allocation2 + $0x98] sm:$0x3] %v5888_v35  ;;  %v6071_v63 = vor.u32 %v6070_v20, %v6066_v11  ;;  %v6101_v49 = vshrl.u32 %v17261_v41, 16  ;;  %v6107_v25 = vrot.slane %v6105_v8, 1  ;;  %v6109_v62 = vshrl.u32 %v17264_v26, 16 }
 0x601   : > { %v5892_v57 = vld [vmem:[#allocation2 + $0x8] sm:$0x3]  ;;  %v6092_v38 = vsel %vm750_vm0, %v6087_v56, %v6091_v19  ;;  %v6115_v16 = vrot.slane %v6113_v54, 1  ;;  %v6121_v18 = vshll.u32 %v17275_v7, 16  ;;  %v6129_v10 = vshll.u32 %v17277_v4, 16 }
 0x602   : > { %v5893_v24 = vsel %vm5886_vm15, 0, %v5892_v57  ;;  %v6137_v23 = vshll.u32 %v14743_v47, 16  ;;  %v6095_v36 = vor.u32 %v6093_v12, %v6091_v19  ;;  %v6145_v37 = vshll.u32 %v14745_v1, 16  ;;  %v14744_v57 = vld [vmem:[%s18880_s2 + $0x18] sm:$0xff]  }
 0x603   : > { %5894 = vst [vmem:[#allocation2 + $0x8] sm:$0x3] %v5893_v24  ;;  %v6153_v52 = vshll.u32 %v14746_v33, 16  ;;  %v6103_v40 = vor.u32 %v6101_v49, %v6099_v13  ;;  %v6117_v35 = vshrl.u32 %v17266_v17, 16  ;;  %v6161_v24 = vshll.u32 %v14748_v15, 16 }
 0x604   : > { %v6123_v9 = vrot.slane %v6121_v18, 1  ;;  %v6131_v28 = vrot.slane %v6129_v10, 1  ;;  %v6100_v11 = vsel %vm750_vm0, %v6095_v36, %v6099_v13  ;;  %v6147_v20 = vrot.slane %v6145_v37, 1  ;;  %v17314_v49 = vld [vmem:[#allocation2 + $0xc] sm:$0xf]  ;;  %v17331_v37 = vld [vmem:[#allocation2 + $0x80] sm:$0xff]  }
 0x605   : > { %v6111_v44 = vor.u32 %v6109_v62, %v6107_v25  ;;  %v6133_v56 = vshrl.u32 %v17277_v4, 16  ;;  %v6141_v61 = vshrl.u32 %v14743_v47, 16  ;;  %v6157_v54 = vshrl.u32 %v14746_v33, 16  ;;  %v14750_v47 = vld [vmem:[%s18880_s2 + $0x28] sm:$0xff]  }
 0x606   : > { %v6165_v19 = vshrl.u32 %v14748_v15, 16  ;;  %v17325_v15 = vld [vmem:[#allocation2 + $0x10] sm:$0xff]   ;;  %v6173_v36 = vshrl.u32 %v17295_v46, 16 }
 0x607   : > { %v5895_v53 = vld [vmem:[#allocation2 + $0x98] sm:$0xe]  ;;  %v6135_v12 = vor.u32 %v6133_v56, %v6131_v28  ;;  %v6116_v18 = vsel %vm750_vm0, %v6111_v44, %v6115_v16  ;;  %v17367_v56 = vld [vmem:[#allocation2 + $0x30] sm:$0xff]  }
 0x608   : > { %v5896_v6 = vsel %vm17227_vm13, 0, %v5895_v53  ;;  %v6125_v53 = vshrl.u32 %v17275_v7, 16 }
 0x609   : > { %5897 = vst [vmem:[#allocation2 + $0x98] sm:$0xe] %v5896_v6  ;;  %v6139_v6 = vrot.slane %v6137_v23, 1 }
 0x60a   : > { %v17259_v39 = vld [vmem:[#allocation2 + $0x8] sm:$0xff]   ;;  %v6127_v8 = vor.u32 %v6125_v53, %v6123_v9 }
 0x60b   : > { %v6073_v51 = vshll.u32 %v17259_v39, 16  ;;  %v6077_v58 = vshrl.u32 %v17259_v39, 16 }
 0x60c   : > { %v6132_v23 = vsel %vm750_vm0, %v6127_v8, %v6131_v28 }
 0x60d   : > { %v6075_v42 = vrot.slane %v6073_v51, 1  ;;  %v6108_v51 = vsel %vm750_vm0, %v6103_v40, %v6107_v25  ;;  %v6140_v40 = vsel %vm750_vm0, %v6135_v12, %v6139_v6 }
 0x60f   : > { %v6076_v34 = vsel %vm750_vm0, %v6071_v63, %v6075_v42  ;;  %v6079_v60 = vor.u32 %v6077_v58, %v6075_v42  ;;  %v17305_v63 = vld [vmem:[#allocation2 + $0x78] sm:$0xff]   ;;  %v6163_v42 = vrot.slane %v6161_v24, 1  ;;  %v6169_v58 = vshll.u32 %v17295_v46, 16 }
 0x610   : > { %13301 = vmatprep.mubr.bf16.mxu1 %v6076_v34  ;;  %v6177_v34 = vshll.u32 %v17297_v5, 16  ;;  %v6185_v62 = vshll.u32 %v17305_v63, 16 }
 0x611   : > { %v6084_v27 = vsel %vm750_vm0, %v6079_v60, %v6083_v14  ;;  %v6155_v14 = vrot.slane %v6153_v52, 1  ;;  %v6119_v60 = vor.u32 %v6117_v35, %v6115_v16  ;;  %v6167_v25 = vor.u32 %v6165_v19, %v6163_v42  ;;  %v17333_v52 = vld [vmem:[#allocation2 + $0x18] sm:$0xff]  }
 0x612   : > { %13302 = vmatmul.mubr.bf16.vlgmr.msra.gmra.mrb[28].mxu1 %v6084_v27  ;;  %v7036_v27 = vld [vmem:[#allocation2 + $0x8] sm:$0xe]  ;;  %v6181_v16 = vshrl.u32 %v17297_v5, 16  ;;  %v17374_v19 = vld [vmem:[#allocation2 + $0x38] sm:$0xff]  }
 0x613   : > { %13305 = vmatprep.mubr.bf16.mxu1 %v6092_v38  ;;  %13338 = vmatpush3.bf16.msra.mxu1 %v15187_v29  ;;  %v6143_v38 = vor.u32 %v6141_v61, %v6139_v6  ;;  %v6159_v29 = vor.u32 %v6157_v54, %v6155_v14  ;;  %v17323_v33 = vcombine.low %v7036_v27, %v17314_v49  ;;  %v17352_v6 = vld [vmem:[#allocation2 + $0x20] sm:$0xff]   ;;  %v7532_v61 = vshll.u32 %v17325_v15, 16 }
 0x614   : > { %13339 = vmatprep.subr.bf16.mxu1 %v14738_v2  ;;  %v6124_v10 = vsel %vm750_vm0, %v6119_v60, %v6123_v9  ;;  %v7541_v54 = vshll.u32 %v17333_v52, 16 }
 0x615   : > { %v17337_v35 = vsel %vm750_vm0, %v6143_v38, %v6147_v20  ;;  %v17344_v24 = vsel %vm750_vm0, %v6159_v29, %v6163_v42  ;;  %v7524_v44 = vshll.u32 %v17323_v33, 16  ;;  %v14753_v42 = vld [vmem:[%s18880_s2 + $0x30] sm:$0xff]   ;;  %v7534_v12 = vrot.slane %v7532_v61, 2 }
 0x617   : > { %13340 = vmatpush3.bf16.msra.mxu1 %v14738_v2  ;;  %v6149_v2 = vshrl.u32 %v14745_v1, 16  ;;  %v17319_v1 = vrot.slane %v6177_v34, 1  ;;  %v7526_v8 = vrot.slane %v7524_v44, 2  ;;  %v7565_v44 = vshrl.u32 %v17367_v56, 16 }
 0x618   : > { %13341 = vmatprep.subr.bf16.mxu1 %v14741_v21 }
 0x619   : > { %v6151_v13 = vor.u32 %v6149_v2, %v6147_v20  ;;  %v17357_v20 = vrot.slane %v6185_v62, 1  ;;  %v7538_v2 = vshrl.u32 %v17333_v52, 16  ;;  %v7567_v34 = vrot.slane %v7565_v44, 1 }
 0x61a   : > { %13306 = vmatmul.mubr.bf16.gmra.mrb[32].mxu1 %v6100_v11  ;;  %v17355_v11 = vor.u32 %v6181_v16, %v17319_v1 }
 0x61b   : > { %13309 = vmatprep.mubr.bf16.mxu1 %v6108_v51  ;;  %13342 = vmatpush3.bf16.msra.mxu1 %v14741_v21  ;;  %v6171_v21 = vrot.slane %v6169_v58, 1  ;;  %v7521_v51 = vshrl.u32 %v17323_v33, 16  ;;  %v7540_v38 = vrot.slane %v7538_v2, 1 }
 0x61c   : > { %13343 = vmatprep.subr.bf16.mxu1 %v14744_v57 }
 0x61d   : > { %v17347_v9 = vsel %vm750_vm0, %v6167_v25, %v6171_v21  ;;  %v17349_v53 = vor.u32 %v6173_v36, %v6171_v21  ;;  %v7523_v60 = vrot.slane %v7521_v51, 1  ;;  %v7543_v25 = vrot.slane %v7541_v54, 2 }
 0x61e   : > { %v7550_v21 = vshll.u32 %v17352_v6, 16 }
 0x61f   : > { %13344 = vmatpush3.bf16.msra.mxu1 %v14744_v57  ;;  %v17340_v57 = vsel %vm750_vm0, %v6151_v13, %v6155_v14  ;;  %v17359_v14 = vld [vmem:[#allocation2 + $0x28] sm:$0xff]   ;;  %v7547_v13 = vshrl.u32 %v17352_v6, 16  ;;  %v7527_v29 = vor.u32 %v7526_v8, %v7523_v60  ;;  %v7568_v60 = vshll.u32 %v17367_v56, 16 }
 0x620   : > { %13345 = vmatprep.subr.bf16.mxu1 %v14747_v3  ;;  %v7556_v62 = vshrl.u32 %v17359_v14, 16  ;;  %v7559_v51 = vshll.u32 %v17359_v14, 16  ;;  %v7552_v61 = vrot.slane %v7550_v21, 2  ;;  %v7577_v21 = vshll.u32 %v17374_v19, 16 }
 0x621   : > { %v7549_v16 = vrot.slane %v7547_v13, 1 }
 0x622   : > { %13310 = vmatmul.mubr.bf16.gmra.mrb[36].mxu1 %v6116_v18  ;;  %v14756_v18 = vld [vmem:[%s18880_s2 + $0x38] sm:$0xff]   ;;  %v7558_v2 = vrot.slane %v7556_v62, 1  ;;  %v7561_v54 = vrot.slane %v7559_v51, 2 }
 0x623   : > { %13313 = vmatprep.mubr.bf16.mxu1 %v6124_v10  ;;  %13346 = vmatpush3.bf16.msra.mxu1 %v14747_v3  ;;  %v7529_v3 = vshrl.u32 %v17325_v15, 16  ;;  %v17382_v10 = vld [vmem:[#allocation2 + $0x40] sm:$0xff]  }
 0x624   : > { %13347 = vmatprep.subr.bf16.mxu1 %v14750_v47  ;;  %v7562_v62 = vor.u32 %v7561_v54, %v7558_v2  ;;  %v7586_v51 = vshll.u32 %v17382_v10, 16  ;;  %v17418_v54 = vld [vmem:[#allocation2 + $0x68] sm:$0xff]  }
 0x625   : > { %v7531_v27 = vrot.slane %v7529_v3, 1  ;;  %v7544_v3 = vor.u32 %v7543_v25, %v7540_v38  ;;  %v7553_v38 = vor.u32 %v7552_v61, %v7549_v16  ;;  %v7570_v25 = vrot.slane %v7568_v60, 2 }
 0x626   : > { %v7579_v61 = vrot.slane %v7577_v21, 2  ;;  %v7588_v32 = vrot.slane %v7586_v51, 2  ;;  %v7628_v43 = vshrl.u32 %v17418_v54, 16 }
 0x627   : > { %13348 = vmatpush3.bf16.msra.mxu1 %v14750_v47  ;;  %v7535_v36 = vor.u32 %v7534_v12, %v7531_v27  ;;  %v17386_v47 = vld [vmem:[#allocation2 + $0x48] sm:$0xff]   ;;  %v7574_v27 = vshrl.u32 %v17374_v19, 16  ;;  %v17393_v12 = vld [vmem:[#allocation2 + $0x50] sm:$0xff]   ;;  %v17411_v16 = vsel %vm2207_vm2, %v7544_v3, %v7553_v38  ;;  %v7571_v44 = vor.u32 %v7570_v25, %v7567_v34 }
 0x628   : > { %13349 = vmatprep.subr.bf16.mxu1 %v14753_v42  ;;  %19124 = vst [vmem:[#allocation21_spill] sm:$0xff] %v17411_v16  ;;  %v7592_v60 = vshrl.u32 %v17386_v47, 16  ;;  %v17415_v28 = vsel %vm2207_vm2, %v7553_v38, %v7562_v62  ;;  %v7595_v2 = vshll.u32 %v17386_v47, 16  ;;  %v7601_v34 = vshrl.u32 %v17393_v12, 16  ;;  %v17425_v25 = vld [vmem:[#allocation2 + $0x70] sm:$0xff]  }
 0x629   : > { %v17390_v8 = vsel %vm2207_vm2, %v7527_v29, %v7535_v36  ;;  %v17396_v13 = vsel %vm2207_vm2, %v7535_v36, %v7544_v3  ;;  %v17404_v29 = vld [vmem:[#allocation2 + $0x58] sm:$0xff]   ;;  %v17408_v36 = vld [vmem:[#allocation2 + $0x60] sm:$0xff]   ;;  %19125 = vst [vmem:[#allocation23_spill] sm:$0xff] %v17415_v28 }
 0x62a   : > { %13314 = vmatmul.mubr.bf16.gmra.mrb[40].mxu1 %v6132_v23  ;;  %19122 = vst [vmem:[#allocation17_spill] sm:$0xff] %v17390_v8  ;;  %19123 = vst [vmem:[#allocation18_spill] sm:$0xff] %v17396_v13  ;;  %v17402_v23 = vld [vmem:[%s18880_s2 + $0x80] sm:$0xff]   ;;  %v7594_v3 = vrot.slane %v7592_v60, 1  ;;  %v7597_v21 = vrot.slane %v7595_v2, 2  ;;  %v7610_v51 = vshrl.u32 %v17404_v29, 16 }
 0x62b   : > { %13317 = vmatprep.mubr.bf16.mxu1 %v6140_v40  ;;  %13350 = vmatpush3.bf16.msra.mxu1 %v14753_v42  ;;  %v7576_v40 = vrot.slane %v7574_v27, 1  ;;  %v7583_v42 = vshrl.u32 %v17382_v10, 16  ;;  %v17421_v27 = vsel %vm2207_vm2, %v7562_v62, %v7571_v44  ;;  %v7603_v31 = vrot.slane %v7601_v34, 1 }
 0x62c   : > { %13351 = vmatprep.subr.bf16.mxu1 %v14756_v18  ;;  %19126 = vst [vmem:[#allocation27_spill] sm:$0xff] %v17421_v27  ;;  %v7613_v62 = vshll.u32 %v17404_v29, 16  ;;  %v7612_v2 = vrot.slane %v7610_v51, 1  ;;  %v7622_v34 = vshll.u32 %v17408_v36, 16  ;;  %v7630_v51 = vrot.slane %v7628_v43, 1 }
 0x62d   : > { %v7585_v58 = vrot.slane %v7583_v42, 1  ;;  %v7580_v55 = vor.u32 %v7579_v61, %v7576_v40  ;;  %v7604_v42 = vshll.u32 %v17393_v12, 16  ;;  %v7619_v40 = vshrl.u32 %v17408_v36, 16  ;;  %v17435_v61 = vld [vmem:[#allocation2 + $0x78] sm:$0xff]  }
 0x62e   : > { %v7615_v50 = vrot.slane %v7613_v62, 2  ;;  %v7640_v62 = vshll.u32 %v17425_v25, 16 }
 0x62f   : > { %13352 = vmatpush3.bf16.msra.mxu1 %v14756_v18  ;;  %v7589_v38 = vor.u32 %v7588_v32, %v7585_v58  ;;  %v17430_v18 = vsel %vm2207_vm2, %v7571_v44, %v7580_v55  ;;  %v7598_v32 = vor.u32 %v7597_v21, %v7594_v3  ;;  %v7606_v58 = vrot.slane %v7604_v42, 2  ;;  %v17450_v21 = vld [vmem:[#allocation2 + $0x88] sm:$0xff]  }
 0x630   : > { %13389 = vmatprep.subr.bf16.mxu1 %v17402_v23  ;;  %19127 = vst [vmem:[#allocation26_spill] sm:$0xff] %v17430_v18  ;;  %v7621_v44 = vrot.slane %v7619_v40, 1  ;;  %v7637_v3 = vshrl.u32 %v17425_v25, 16  ;;  %v7616_v42 = vor.u32 %v7615_v50, %v7612_v2  ;;  %v7642_v18 = vrot.slane %v7640_v62, 2 }
 0x631   : > { %v17438_v60 = vsel %vm2207_vm2, %v7580_v55, %v7589_v38  ;;  %v7607_v48 = vor.u32 %v7606_v58, %v7603_v31  ;;  %v7631_v55 = vshll.u32 %v17418_v54, 16  ;;  %v7649_v50 = vshll.u32 %v17435_v61, 16 }
 0x632   : > { %13318 = vmatmul.mubr.bf16.gmra.mrb[44].mxu1 %v17337_v35  ;;  %19128 = vst [vmem:[#allocation46_spill] sm:$0xff] %v17438_v60  ;;  %v17446_v35 = vsel %vm2207_vm2, %v7589_v38, %v7598_v32  ;;  %v7639_v60 = vrot.slane %v7637_v3, 1  ;;  %v7646_v38 = vshrl.u32 %v17435_v61, 16 }
 0x633   : > { %13321 = vmatprep.mubr.bf16.mxu1 %v17340_v57  ;;  %19129 = vst [vmem:[#allocation47_spill] sm:$0xff] %v17446_v35  ;;  %v7624_v57 = vrot.slane %v7622_v34, 2  ;;  %v17454_v40 = vsel %vm2207_vm2, %v7598_v32, %v7607_v48  ;;  %v7633_v59 = vrot.slane %v7631_v55, 2  ;;  %v17457_v35 = vld [vmem:[#allocation2 + $0x90] sm:$0xff]   ;;  %v17460_v31 = vsel %vm2207_vm2, %v7607_v48, %v7616_v42 }
 0x634   : > { %19130 = vst [vmem:[#allocation48_spill] sm:$0xff] %v17454_v40  ;;  %19131 = vst [vmem:[#allocation49_spill] sm:$0xff] %v17457_v35  ;;  %v7648_v43 = vrot.slane %v7646_v38, 1  ;;  %v7655_v34 = vshrl.u32 %v17443_v22, 16  ;;  %v7658_v32 = vshll.u32 %v17443_v22, 16  ;;  %v17465_v40 = vld [vmem:[#allocation2 + $0x88] sm:$0xff]   ;;  %v7643_v3 = vor.u32 %v7642_v18, %v7639_v60 }
 0x635   : > { %19132 = vst [vmem:[#allocation50_spill] sm:$0xff] %v17460_v31  ;;  %v7625_v58 = vor.u32 %v7624_v57, %v7621_v44  ;;  %v7634_v2 = vor.u32 %v7633_v59, %v7630_v51  ;;  %v7651_v27 = vrot.slane %v7649_v50, 2  ;;  %v7664_v48 = vshrl.u32 %v17450_v21, 16 }
 0x636   : > { %v7657_v59 = vrot.slane %v7655_v34, 1  ;;  %v7660_v57 = vrot.slane %v7658_v32, 2  ;;  %v7667_v51 = vshll.u32 %v17450_v21, 16  ;;  %v7673_v18 = vshrl.u32 %v17457_v35, 16  ;;  %v7969_v34 = vld [vmem:[#allocation2 + $0x8] sm:$0xc] }
 0x637   : > { %v17468_v55 = vsel %vm2207_vm2, %v7616_v42, %v7625_v58  ;;  %v17473_v44 = vsel %vm2207_vm2, %v7625_v58, %v7634_v2  ;;  %v17478_v62 = vsel %vm2207_vm2, %v7634_v2, %v7643_v3  ;;  %v7652_v42 = vor.u32 %v7651_v27, %v7648_v43 }
 0x638   : > { %19133 = vst [vmem:[#allocation51_spill] sm:$0xff] %v17468_v55  ;;  %19134 = vst [vmem:[#allocation52_spill] sm:$0xff] %v17473_v44  ;;  %v7666_v38 = vrot.slane %v7664_v48, 1  ;;  %v7661_v60 = vor.u32 %v7660_v57, %v7657_v59  ;;  %v7669_v58 = vrot.slane %v7667_v51, 2  ;;  %v7676_v50 = vshll.u32 %v17457_v35, 16 }
 0x639   : > { %19135 = vst [vmem:[#allocation53_spill] sm:$0xff] %v17478_v62  ;;  %v6201_v32 = vshll.u32 %v17465_v40, 16  ;;  %v7675_v2 = vrot.slane %v7673_v18, 1  ;;  %v11781_v27 = vcombine.low %v7969_v34, %v17314_v49  ;;  %v6188_v43 = vsel %vm750_vm0, %v17355_v11, %v17357_v20 }
 0x63a   : > { %13322 = vmatmul.mubr.bf16.gmra.mrb[48].mxu1 %v17344_v24  ;;  %v6180_v24 = vsel %vm750_vm0, %v17349_v53, %v17319_v1  ;;  %v17494_v48 = vsel %vm2207_vm2, %v7652_v42, %v7661_v60  ;;  %v7670_v1 = vor.u32 %v7669_v58, %v7666_v38  ;;  %v7678_v53 = vrot.slane %v7676_v50, 2 }
 0x63b   : > { %13325 = vmatprep.mubr.bf16.mxu1 %v17347_v9  ;;  %v17487_v9 = vsel %vm2207_vm2, %v7643_v3, %v7652_v42  ;;  %19137 = vst [vmem:[#allocation55_spill] sm:$0xff] %v17494_v48  ;;  %v19138_v59 = vshll.u32 %v17331_v37, 16  ;;  %v7990_v51 = vrot.slane %v11781_v27, 2  ;;  %v7991_v62 = vrot.slane %v17325_v15, 2 }
 0x63c   : > { %19136 = vst [vmem:[#allocation54_spill] sm:$0xff] %v17487_v9  ;;  %v7993_v3 = vrot.slane %v17333_v52, 2  ;;  %v17501_v18 = vsel %vm2207_vm2, %v7661_v60, %v7670_v1  ;;  %v17503_v49 = vor.u32 %v7678_v53, %v7675_v2  ;;  %v7995_v11 = vrot.slane %v17352_v6, 2 }
 0x63d   : > { %v6195_v57 = vrot.slane %v19138_v59, 1  ;;  %19139 = vst [vmem:[#allocation56_spill] sm:$0xff] %v17501_v18  ;;  %v7997_v42 = vrot.slane %v17359_v14, 2  ;;  %v19141_v38 = vshrl.u32 %v17305_v63, 16  ;;  %v17511_v50 = vsel %vm2678_vm3, %v7990_v51, %v7991_v62  ;;  %v17620_v18 = vld [vmem:[#allocation2 + $0x48] sm:$0xff]  }
 0x63e   : > { %19140 = vst [vmem:[#allocation57_spill] sm:$0xff] %v17503_v49  ;;  %19142 = vst [vmem:[#allocation58_spill] sm:$0xff] %v17511_v50  ;;  %v17514_v15 = vsel %vm2678_vm3, %v7991_v62, %v7993_v3  ;;  %v7999_v52 = vrot.slane %v17367_v56, 2  ;;  %v17519_v60 = vsel %vm2207_vm2, %v7670_v1, %v17503_v49  ;;  %v17522_v34 = vsel %vm2678_vm3, %v7993_v3, %v7995_v11  ;;  %v17535_v59 = vld [vmem:[#allocation2 + $0x98] ss:$0 sps:$4 sm:$0x33]  }
 0x63f   : > { %v6191_v58 = vor.u32 %v19141_v38, %v17357_v20  ;;  %19143 = vst [vmem:[#allocation59_spill] sm:$0xff] %v17514_v15  ;;  %19144 = vst [vmem:[#allocation60_spill] sm:$0xff] %v17519_v60  ;;  %v17525_v2 = vsel %vm2678_vm3, %v7995_v11, %v7997_v42  ;;  %v8001_v20 = vrot.slane %v17374_v19, 2  ;;  %v19147_v27 = vshrl.u32 %v17331_v37, 16 }
 0x640   : > { %19145 = vst [vmem:[#allocation61_spill] sm:$0xff] %v17522_v34  ;;  %19146 = vst [vmem:[#allocation62_spill] sm:$0xff] %v17525_v2  ;;  %v17531_v53 = vsel %vm2678_vm3, %v7997_v42, %v7999_v52  ;;  %v8005_v1 = vrot.slane %v17386_v47, 2  ;;  %v8007_v3 = vrot.slane %v17393_v12, 2  ;;  %v8009_v11 = vrot.slane %v17404_v29, 2 }
 0x641   : > { %v6199_v62 = vor.u32 %v19147_v27, %v6195_v57  ;;  %19148 = vst [vmem:[#allocation63_spill] sm:$0xff] %v17531_v53  ;;  %19149 = vst [vmem:[#allocation64_spill] sm:$0xff] %v17535_v59  ;;  %v17538_v51 = vsel %vm2678_vm3, %v7999_v52, %v8001_v20  ;;  %v8013_v27 = vrot.slane %v17418_v54, 2  ;;  %v8015_v53 = vrot.slane %v17425_v25, 2 }
 0x642   : > { %13326 = vmatmul.mubr.bf16.gmra.mrb[52].mxu1 %v6180_v24  ;;  %v8003_v24 = vrot.slane %v17382_v10, 2  ;;  %19150 = vst [vmem:[#allocation65_spill] sm:$0xff] %v17538_v51  ;;  %v17552_v2 = vsel %vm2678_vm3, %v8005_v1, %v8007_v3  ;;  %v17555_v52 = vsel %vm2678_vm3, %v8007_v3, %v8009_v11  ;;  %v8017_v34 = vrot.slane %v17435_v61, 2 }
 0x643   : > { %13329 = vmatprep.mubr.bf16.mxu1 %v6188_v43  ;;  %v8011_v43 = vrot.slane %v17408_v36, 2  ;;  %19153 = vst [vmem:[#allocation68_spill] sm:$0xff] %v17552_v2  ;;  %19154 = vst [vmem:[#allocation69_spill] sm:$0xff] %v17555_v52  ;;  %v6203_v2 = vrot.slane %v6201_v32, 1  ;;  %v6196_v52 = vsel %vm750_vm0, %v6191_v58, %v6195_v57  ;;  %v8306_v58 = vld [vmem:[#allocation2 + $0x10] sm:$0xc] }
 0x644   : > { %v17544_v38 = vsel %vm2678_vm3, %v8001_v20, %v8003_v24  ;;  %v17547_v42 = vsel %vm2678_vm3, %v8003_v24, %v8005_v1  ;;  %v17561_v20 = vld [vmem:[#allocation2 + $0x90] ss:$0 sps:$4 sm:$0x11]   ;;  %v8021_v1 = vrot.slane %v17450_v21, 2  ;;  %v17572_v3 = vsel %vm2678_vm3, %v8015_v53, %v8017_v34 }
 0x645   : > { %19151 = vst [vmem:[#allocation66_spill] sm:$0xff] %v17544_v38  ;;  %19152 = vst [vmem:[#allocation67_spill] sm:$0xff] %v17547_v42  ;;  %v17558_v51 = vsel %vm2678_vm3, %v8009_v11, %v8011_v43  ;;  %v17564_v24 = vsel %vm2678_vm3, %v8011_v43, %v8013_v27  ;;  %v17567_v42 = vsel %vm2678_vm3, %v8013_v27, %v8015_v53  ;;  %v8019_v38 = vrot.slane %v17443_v22, 2 }
 0x646   : > { %19155 = vst [vmem:[#allocation70_spill] sm:$0xff] %v17558_v51  ;;  %19156 = vst [vmem:[#allocation71_spill] sm:$0xff] %v17564_v24  ;;  %v8023_v11 = vrot.slane %v17457_v35, 2  ;;  %v8025_v51 = vrot.slane %v17535_v59, 2  ;;  %v6209_v57 = vshll.u32 %v17561_v20, 16 }
 0x647   : > { %19157 = vst [vmem:[#allocation72_spill] sm:$0xff] %v17567_v42  ;;  %19158 = vst [vmem:[#allocation73_spill] sm:$0xff] %v17572_v3  ;;  %v17578_v43 = vsel %vm2678_vm3, %v8017_v34, %v8019_v38  ;;  %v17581_v27 = vsel %vm2678_vm3, %v8019_v38, %v8021_v1  ;;  %v6204_v42 = vsel %vm750_vm0, %v6199_v62, %v6203_v2  ;;  %v6205_v3 = vshrl.u32 %v17465_v40, 16  ;;  %v17592_v34 = vld [vmem:[#allocation2 + $0x14] sm:$0xf]  ;;  %v17597_v62 = vld [vmem:[#allocation2 + $0x18] sm:$0xff]  }
 0x648   : > { %19159 = vst [vmem:[#allocation74_spill] sm:$0xff] %v17578_v43  ;;  %19160 = vst [vmem:[#allocation75_spill] sm:$0xff] %v17581_v27  ;;  %v17585_v32 = vsel %vm2678_vm3, %v8021_v1, %v8023_v11  ;;  %v17588_v53 = vsel %vm2678_vm3, %v8023_v11, %v8025_v51  ;;  %v17595_v38 = vcombine.low %v8306_v58, %v17592_v34  ;;  %v17599_v1 = vld [vmem:[#allocation2 + $0x20] sm:$0xff]   ;;  %v17602_v11 = vld [vmem:[#allocation2 + $0x28] sm:$0xff]  }
 0x649   : > { %19161 = vst [vmem:[#allocation76_spill] sm:$0xff] %v17585_v32  ;;  %19162 = vst [vmem:[#allocation77_spill] sm:$0xff] %v17588_v53  ;;  %v6207_v43 = vor.u32 %v6205_v3, %v6203_v2  ;;  %v8799_v3 = vshrl.u32 %v17597_v62, 16  ;;  %v17611_v58 = vld [vmem:[#allocation2 + $0x38] sm:$0xff]   ;;  %v8820_v49 = vshll.u32 %v17602_v11, 16 }
 0x64a   : > { %13330 = vmatmul.mubr.bf16.gmra.mrb[56].mxu1 %v6196_v52  ;;  %19163 = vst [vmem:[#allocation78_spill] sm:$0xff] %v17595_v38  ;;  %v6211_v52 = vrot.slane %v6209_v57, 1  ;;  %v8791_v53 = vshrl.u32 %v17595_v38, 16  ;;  %v8794_v2 = vshll.u32 %v17595_v38, 16  ;;  %v8802_v57 = vshll.u32 %v17597_v62, 16 }
 0x64b   : > { %13333 = vmatprep.mubr.bf16.mxu1 %v6204_v42  ;;  %v17604_v42 = vld [vmem:[#allocation2 + $0x30] sm:$0xff]   ;;  %v8801_v24 = vrot.slane %v8799_v3, 2  ;;  %v8835_v44 = vshrl.u32 %v17611_v58, 16 }
 0x64c   : > { %v6212_v51 = vsel %vm750_vm0, %v6207_v43, %v6211_v52  ;;  %v8793_v32 = vrot.slane %v8791_v53, 2  ;;  %v8808_v43 = vshrl.u32 %v17599_v1, 16  ;;  %v8811_v52 = vshll.u32 %v17599_v1, 16  ;;  %v17626_v3 = vld [vmem:[#allocation2 + $0x50] sm:$0xff]  }
 0x64d   : > { %v8796_v27 = vrot.slane %v8794_v2, 3  ;;  %v8804_v15 = vrot.slane %v8802_v57, 3  ;;  %v8826_v60 = vshrl.u32 %v17604_v42, 16  ;;  %v8829_v9 = vshll.u32 %v17604_v42, 16  ;;  %v14759_v2 = vld [vmem:[%s18880_s2 + $0x88] sm:$0xff]  }
 0x64e   : > { %v8810_v50 = vrot.slane %v8808_v43, 2  ;;  %v8813_v38 = vrot.slane %v8811_v52, 3  ;;  %v8822_v43 = vrot.slane %v8820_v49, 3  ;;  %v8837_v49 = vrot.slane %v8835_v44, 2 }
 0x64f   : > { %v8797_v53 = vor.u32 %v8796_v27, %v8793_v32  ;;  %v8805_v59 = vor.u32 %v8804_v15, %v8801_v24  ;;  %v8828_v52 = vrot.slane %v8826_v60, 2  ;;  %v8831_v31 = vrot.slane %v8829_v9, 3  ;;  %v17635_v27 = vld [vmem:[#allocation2 + $0x58] sm:$0xff]   ;;  %v17643_v9 = vld [vmem:[#allocation2 + $0x60] sm:$0xff]  }
 0x650   : > { %v8814_v57 = vor.u32 %v8813_v38, %v8810_v50  ;;  %v8838_v15 = vshll.u32 %v17611_v58, 16  ;;  %v8874_v13 = vshll.u32 %v17635_v27, 16 }
 0x651   : > { %v17630_v55 = vsel %vm3479_vm4, %v8797_v53, %v8805_v59  ;;  %v8832_v38 = vor.u32 %v8831_v31, %v8828_v52 }
 0x652   : > { %13334 = vmatmul.mubr.bf16.gmra.mrb[60].mxu1 %v6212_v51  ;;  %v17615_v51 = vld [vmem:[#allocation2 + $0x40] sm:$0xff]   ;;  %19164 = vst [vmem:[#allocation79_spill] sm:$0xff] %v17630_v55  ;;  %v17638_v32 = vsel %vm3479_vm4, %v8805_v59, %v8814_v57  ;;  %v14760_v59 = vld [vmem:[%s18880_s2 + $0x90] sm:$0xff]  }
 0x653   : > { %13353 = vmatprep.mubr.bf16.mxu1 %v17248_v30  ;;  %v8817_v30 = vshrl.u32 %v17602_v11, 16  ;;  %v8844_v24 = vshrl.u32 %v17615_v51, 16  ;;  %19165 = vst [vmem:[#allocation80_spill] sm:$0xff] %v17638_v32  ;;  %v8847_v60 = vshll.u32 %v17615_v51, 16  ;;  %v17660_v32 = vld [vmem:[#allocation2 + $0x70] sm:$0xff]  }
 0x655   : > { %v8819_v48 = vrot.slane %v8817_v30, 2  ;;  %v8840_v30 = vrot.slane %v8838_v15, 3  ;;  %v8846_v53 = vrot.slane %v8844_v24, 2  ;;  %v8865_v24 = vshll.u32 %v17626_v3, 16 }
 0x657   : > { %v8823_v50 = vor.u32 %v8822_v43, %v8819_v48  ;;  %v8849_v48 = vrot.slane %v8847_v60, 3  ;;  %v17654_v43 = vld [vmem:[#allocation2 + $0x68] sm:$0xff]   ;;  %v8841_v52 = vor.u32 %v8840_v30, %v8837_v49  ;;  %v8871_v60 = vshrl.u32 %v17635_v27, 16  ;;  %v14761_v49 = vld [vmem:[%s18880_s2 + $0x98] sm:$0xff]  }
 0x658   : > { %v8867_v16 = vrot.slane %v8865_v24, 3  ;;  %v17671_v30 = vld [vmem:[#allocation2 + $0x78] sm:$0xff]  }
 0x659   : > { %v17650_v44 = vsel %vm3479_vm4, %v8814_v57, %v8823_v50  ;;  %v17657_v31 = vsel %vm3479_vm4, %v8823_v50, %v8832_v38  ;;  %v8850_v55 = vor.u32 %v8849_v48, %v8846_v53  ;;  %v8880_v50 = vshrl.u32 %v17643_v9, 16  ;;  %v17677_v48 = vld [vmem:[#allocation2 + $0x80] sm:$0xff]  }
 0x65a   : > { %13354 = vmatmul.mubr.bf16.vlgmr.msra.gmra.mrb[28].mxu1 %v17259_v39  ;;  %v8853_v39 = vshrl.u32 %v17620_v18, 16  ;;  %19166 = vst [vmem:[#allocation81_spill] sm:$0xff] %v17650_v44  ;;  %19167 = vst [vmem:[#allocation82_spill] sm:$0xff] %v17657_v31  ;;  %v17664_v44 = vsel %vm3479_vm4, %v8832_v38, %v8841_v52  ;;  %v8883_v38 = vshll.u32 %v17643_v9, 16 }
 0x65b   : > { %13357 = vmatprep.mubr.bf16.mxu1 %v17250_v0  ;;  %13390 = vmatpush3.bf16.msra.mxu1 %v17402_v23  ;;  %v8856_v0 = vshll.u32 %v17620_v18, 16  ;;  %v8862_v23 = vshrl.u32 %v17626_v3, 16  ;;  %19168 = vst [vmem:[#allocation83_spill] sm:$0xff] %v17664_v44  ;;  %v17674_v53 = vsel %vm3479_vm4, %v8841_v52, %v8850_v55  ;;  %v8882_v24 = vrot.slane %v8880_v50, 2 }
 0x65c   : > { %13391 = vmatprep.subr.bf16.mxu1 %v14759_v2  ;;  %v8855_v15 = vrot.slane %v8853_v39, 2  ;;  %19169 = vst [vmem:[#allocation84_spill] sm:$0xff] %v17674_v53  ;;  %v8889_v44 = vshrl.u32 %v17654_v43, 16  ;;  %v8885_v8 = vrot.slane %v8883_v38, 3  ;;  %v8892_v52 = vshll.u32 %v17654_v43, 16 }
 0x65d   : > { %v8858_v28 = vrot.slane %v8856_v0, 3  ;;  %v8864_v57 = vrot.slane %v8862_v23, 2  ;;  %v8876_v23 = vrot.slane %v8874_v13, 3 }
 0x65e   : > { %v8886_v50 = vor.u32 %v8885_v8, %v8882_v24  ;;  %v8894_v38 = vrot.slane %v8892_v52, 3  ;;  %v8919_v8 = vshll.u32 %v17677_v48, 16 }
 0x65f   : > { %13392 = vmatpush3.bf16.msra.mxu1 %v14759_v2  ;;  %v8859_v39 = vor.u32 %v8858_v28, %v8855_v15  ;;  %v8873_v2 = vrot.slane %v8871_v60, 2  ;;  %v8868_v0 = vor.u32 %v8867_v16, %v8864_v57  ;;  %v8898_v28 = vshrl.u32 %v17660_v32, 16  ;;  %v17687_v15 = vld [vmem:[#allocation2 + $0x88] sm:$0xff]   ;;  %v17696_v60 = vld [vmem:[#allocation2 + $0x90] sm:$0xff]  }
 0x660   : > { %13393 = vmatprep.subr.bf16.mxu1 %v14760_v59  ;;  %v8891_v57 = vrot.slane %v8889_v44, 2  ;;  %v8910_v44 = vshll.u32 %v17671_v30, 16 }
 0x661   : > { %v17682_v31 = vsel %vm3479_vm4, %v8850_v55, %v8859_v39  ;;  %v17690_v13 = vsel %vm3479_vm4, %v8859_v39, %v8868_v0  ;;  %v8877_v16 = vor.u32 %v8876_v23, %v8873_v2  ;;  %v14762_v55 = vld [vmem:[%s18880_s2 + $0xa0] sm:$0xff]   ;;  %v8916_v2 = vshrl.u32 %v17677_v48, 16  ;;  %v17704_v23 = vld [vmem:[#allocation2 + $0x98] sm:$0xff]  }
 0x662   : > { %13358 = vmatmul.mubr.bf16.gmra.mrb[32].mxu1 %v17257_v45  ;;  %19170 = vst [vmem:[#allocation85_spill] sm:$0xff] %v17682_v31  ;;  %19171 = vst [vmem:[#allocation86_spill] sm:$0xff] %v17690_v13  ;;  %v8901_v45 = vshll.u32 %v17660_v32, 16  ;;  %v8895_v53 = vor.u32 %v8894_v38, %v8891_v57  ;;  %v8912_v52 = vrot.slane %v8910_v44, 3  ;;  %v8928_v57 = vshll.u32 %v17687_v15, 16 }
 0x663   : > { %13361 = vmatprep.mubr.bf16.mxu1 %v17261_v41  ;;  %13394 = vmatpush3.bf16.msra.mxu1 %v14760_v59  ;;  %v8900_v41 = vrot.slane %v8898_v28, 2  ;;  %v8907_v59 = vshrl.u32 %v17671_v30, 16  ;;  %v17700_v31 = vsel %vm3479_vm4, %v8868_v0, %v8877_v16  ;;  %v17707_v13 = vsel %vm3479_vm4, %v8877_v16, %v8886_v50 }
 0x664   : > { %13395 = vmatprep.subr.bf16.mxu1 %v14761_v49  ;;  %19172 = vst [vmem:[#allocation87_spill] sm:$0xff] %v17700_v31  ;;  %v8903_v39 = vrot.slane %v8901_v45, 3  ;;  %19173 = vst [vmem:[#allocation88_spill] sm:$0xff] %v17707_v13  ;;  %v8918_v28 = vrot.slane %v8916_v2, 2  ;;  %v8925_v0 = vshrl.u32 %v17687_v15, 16  ;;  %v14763_v45 = vld [vmem:[%s18880_s2 + $0xa8] sm:$0xff]   ;;  %v17715_v31 = vsel %vm3479_vm4, %v8886_v50, %v8895_v53 }
 0x665   : > { %v8909_v35 = vrot.slane %v8907_v59, 2  ;;  %19174 = vst [vmem:[#allocation89_spill] sm:$0xff] %v17715_v31  ;;  %v8921_v16 = vrot.slane %v8919_v8, 3  ;;  %v8934_v38 = vshrl.u32 %v17696_v60, 16  ;;  %v8930_v2 = vrot.slane %v8928_v57, 3 }
 0x666   : > { %v8904_v24 = vor.u32 %v8903_v39, %v8900_v41  ;;  %v8927_v59 = vrot.slane %v8925_v0, 2  ;;  %v8937_v39 = vshll.u32 %v17696_v60, 16  ;;  %v8943_v50 = vshrl.u32 %v17704_v23, 16  ;;  %v9239_v31 = vld [vmem:[#allocation2 + $0x10] sm:$0x8] }
 0x667   : > { %13396 = vmatpush3.bf16.msra.mxu1 %v14761_v49  ;;  %v8913_v41 = vor.u32 %v8912_v52, %v8909_v35  ;;  %v8922_v44 = vor.u32 %v8921_v16, %v8918_v28  ;;  %v8936_v13 = vrot.slane %v8934_v38, 2  ;;  %v8946_v35 = vshll.u32 %v17704_v23, 16 }
 0x668   : > { %13397 = vmatprep.subr.bf16.mxu1 %v14762_v55  ;;  %v17720_v49 = vsel %vm3479_vm4, %v8895_v53, %v8904_v24  ;;  %v8939_v53 = vrot.slane %v8937_v39, 3  ;;  %v8931_v28 = vor.u32 %v8930_v2, %v8927_v59  ;;  %v8945_v0 = vrot.slane %v8943_v50, 2 }
 0x669   : > { %v17727_v8 = vsel %vm3479_vm4, %v8904_v24, %v8913_v41  ;;  %v17734_v52 = vsel %vm3479_vm4, %v8913_v41, %v8922_v44  ;;  %v8948_v57 = vrot.slane %v8946_v35, 3  ;;  %v9261_v24 = vrot.slane %v17597_v62, 3 }
 0x66a   : > { %13362 = vmatmul.mubr.bf16.gmra.mrb[36].mxu1 %v17264_v26  ;;  %19175 = vst [vmem:[#allocation90_spill] sm:$0xff] %v17727_v8  ;;  %v14764_v26 = vld [vmem:[%s18880_s2 + $0xb0] sm:$0xff]   ;;  %v8940_v16 = vor.u32 %v8939_v53, %v8936_v13  ;;  %v9263_v38 = vrot.slane %v17599_v1, 3  ;;  %v9265_v59 = vrot.slane %v17602_v11, 3  ;;  %v9267_v13 = vrot.slane %v17604_v42, 3 }
 0x66b   : > { %13365 = vmatprep.mubr.bf16.mxu1 %v17266_v17  ;;  %13398 = vmatpush3.bf16.msra.mxu1 %v14762_v55  ;;  %v11874_v17 = vcombine.low %v9239_v31, %v17592_v34  ;;  %v17738_v55 = vsel %vm3479_vm4, %v8922_v44, %v8931_v28  ;;  %v17745_v8 = vor.u32 %v8948_v57, %v8945_v0  ;;  %v14765_v34 = vld [vmem:[%s18880_s2 + $0xb8] sm:$0xff]   ;;  %v9271_v53 = vrot.slane %v17615_v51, 3 }
 0x66c   : > { %13399 = vmatprep.subr.bf16.mxu1 %v14763_v45  ;;  %v17743_v39 = vsel %vm3479_vm4, %v8931_v28, %v8940_v16  ;;  %v17752_v31 = vsel %vm3950_vm5, %v9261_v24, %v9263_v38  ;;  %v17764_v50 = vsel %vm3950_vm5, %v9263_v38, %v9265_v59  ;;  %v17769_v35 = vsel %vm3950_vm5, %v9265_v59, %v9267_v13  ;;  %v14767_v38 = vld [vmem:[%s18880_s2 + $0xc0] sm:$0xff]  }
 0x66d   : > { %v9260_v41 = vrot.slane %v11874_v17, 3  ;;  %v17758_v44 = vsel %vm3479_vm4, %v8940_v16, %v17745_v8  ;;  %19176 = vst [vmem:[#allocation91_spill] sm:$0xff] %v17769_v35  ;;  %v9273_v0 = vrot.slane %v17620_v18, 3  ;;  %v17776_v16 = vld [vmem:[#allocation2 + $0xa0] ss:$0 sps:$4 sm:$0x77]  }
 0x66e   : > { %v9275_v17 = vrot.slane %v17626_v3, 3  ;;  %v9285_v59 = vrot.slane %v17671_v30, 3 }
 0x66f   : > { %13400 = vmatpush3.bf16.msra.mxu1 %v14763_v45  ;;  %v9269_v45 = vrot.slane %v17611_v58, 3  ;;  %v17761_v2 = vsel %vm3950_vm5, %v9260_v41, %v9261_v24  ;;  %v9279_v24 = vrot.slane %v17643_v9, 3  ;;  %v17788_v41 = vsel %vm3950_vm5, %v9271_v53, %v9273_v0 }
 0x670   : > { %13401 = vmatprep.subr.bf16.mxu1 %v14764_v26  ;;  %19179 = vst [vmem:[#allocation94_spill] sm:$0xff] %v17788_v41 }
 0x671   : > { %v17772_v28 = vsel %vm3950_vm5, %v9267_v13, %v9269_v45  ;;  %v17779_v57 = vsel %vm3950_vm5, %v9269_v45, %v9271_v53  ;;  %v17794_v13 = vsel %vm3950_vm5, %v9273_v0, %v9275_v17  ;;  %v9289_v0 = vrot.slane %v17687_v15, 3 }
 0x672   : > { %13366 = vmatmul.mubr.bf16.gmra.mrb[40].mxu1 %v17275_v7  ;;  %19177 = vst [vmem:[#allocation92_spill] sm:$0xff] %v17772_v28  ;;  %19178 = vst [vmem:[#allocation93_spill] sm:$0xff] %v17779_v57  ;;  %v9277_v7 = vrot.slane %v17635_v27, 3  ;;  %v9287_v28 = vrot.slane %v17677_v48, 3 }
 0x673   : > { %13369 = vmatprep.mubr.bf16.mxu1 %v17277_v4  ;;  %13402 = vmatpush3.bf16.msra.mxu1 %v14764_v26  ;;  %v9281_v4 = vrot.slane %v17654_v43, 3  ;;  %v9283_v26 = vrot.slane %v17660_v32, 3 }
 0x674   : > { %13403 = vmatprep.subr.bf16.mxu1 %v14765_v34  ;;  %v17797_v45 = vsel %vm3950_vm5, %v9275_v17, %v9277_v7  ;;  %v17800_v57 = vsel %vm3950_vm5, %v9277_v7, %v9279_v24  ;;  %v17814_v17 = vsel %vm3950_vm5, %v9285_v59, %v9287_v28  ;;  %v9291_v7 = vrot.slane %v17696_v60, 3 }
 0x675   : > { %19180 = vst [vmem:[#allocation95_spill] sm:$0xff] %v17797_v45  ;;  %19181 = vst [vmem:[#allocation96_spill] sm:$0xff] %v17800_v57  ;;  %v17804_v53 = vsel %vm3950_vm5, %v9279_v24, %v9281_v4  ;;  %v17807_v41 = vsel %vm3950_vm5, %v9281_v4, %v9283_v26  ;;  %v17810_v35 = vsel %vm3950_vm5, %v9283_v26, %v9285_v59  ;;  %v9293_v57 = vrot.slane %v17704_v23, 3  ;;  %v17831_v59 = vld [vmem:[#allocation2 + $0x48] sm:$0xff]  }
 0x676   : > { %19182 = vst [vmem:[#allocation97_spill] sm:$0xff] %v17804_v53  ;;  %19183 = vst [vmem:[#allocation98_spill] sm:$0xff] %v17807_v41  ;;  %v9295_v45 = vrot.slane %v17776_v16, 3  ;;  %v17820_v24 = vsel %vm3950_vm5, %v9287_v28, %v9289_v0  ;;  %v17823_v4 = vsel %vm3950_vm5, %v9289_v0, %v9291_v7  ;;  %v17840_v28 = vld [vmem:[#allocation2 + $0x60] sm:$0xff]  }
 0x677   : > { %19184 = vst [vmem:[#allocation99_spill] sm:$0xff] %v17810_v35  ;;  %13404 = vmatpush3.bf16.msra.mxu1 %v14765_v34  ;;  %19185 = vst [vmem:[#allocation100_spill] sm:$0xff] %v17814_v17  ;;  %v17826_v26 = vsel %vm3950_vm5, %v9291_v7, %v9293_v57  ;;  %v17834_v17 = vld [vmem:[#allocation2 + $0x50] sm:$0xff]   ;;  %v17837_v35 = vld [vmem:[#allocation2 + $0x58] sm:$0xff]  }
 0x678   : > { %13441 = vmatprep.subr.bf16.mxu1 %v14767_v38  ;;  %19186 = vst [vmem:[#allocation101_spill] sm:$0xff] %v17820_v24  ;;  %19187 = vst [vmem:[#allocation102_spill] sm:$0xff] %v17823_v4  ;;  %v17829_v34 = vsel %vm3950_vm5, %v9293_v57, %v9295_v45  ;;  %v6699_v57 = vld [vmem:[#allocation2] sm:$0xe]  ;;  %v15192_v45 = vld [vmem:[#allocation2 + $0x4] sm:$0xf] }
 0x679   : > { %19188 = vst [vmem:[#allocation103_spill] sm:$0xff] %v17826_v26  ;;  %19189 = vst [vmem:[#allocation104_spill] sm:$0xff] %v17829_v34  ;;  %v11688_v0 = vcombine.low %v6699_v57, %v15192_v45  ;;  %v15193_v34 = vld [vmem:[#allocation2 + $0x8] sm:$0xff]   ;;  %v15194_v24 = vld [vmem:[#allocation2 + $0x10] sm:$0xff]  }
 0x67a   : > { %13370 = vmatmul.mubr.bf16.gmra.mrb[44].mxu1 %v17831_v59  ;;  %v6721_v26 = vrot.slane %v15193_v34, 1  ;;  %v6723_v41 = vrot.slane %v15194_v24, 1  ;;  %v15196_v34 = vld [vmem:[#allocation2 + $0x20] sm:$0xff]   ;;  %v15197_v45 = vld [vmem:[#allocation2 + $0x28] sm:$0xff]  }
 0x67b   : > { %13373 = vmatprep.mubr.bf16.mxu1 %v17834_v17  ;;  %v6720_v7 = vrot.slane %v11688_v0, 1  ;;  %v6727_v24 = vrot.slane %v15196_v34, 1  ;;  %v6729_v0 = vrot.slane %v15197_v45, 1  ;;  %v15200_v45 = vld [vmem:[#allocation2 + $0x40] sm:$0xff]  }
 0x67d   : > { %v6722_v4 = vsel %vm1406_vm1, %v6720_v7, %v6721_v26 }
 0x682   : > { %13374 = vmatmul.mubr.bf16.gmra.mrb[48].mxu1 %v17837_v35 }
 0x683   : > { %13377 = vmatprep.mubr.bf16.mxu1 %v17840_v28 }
 0x68a   : > { %13378 = vmatmul.mubr.bf16.gmra.mrb[52].mxu1 %v17295_v46  ;;  %v15195_v46 = vld [vmem:[#allocation2 + $0x18] sm:$0xff]  }
 0x68b   : > { %13381 = vmatprep.mubr.bf16.mxu1 %v17297_v5  ;;  %v6725_v53 = vrot.slane %v15195_v46, 1  ;;  %v14768_v5 = vld [vmem:[%s18880_s2 + $0xc8] sm:$0xff]   ;;  %v15198_v46 = vld [vmem:[#allocation2 + $0x30] sm:$0xff]  }
 0x68d   : > { %v6726_v57 = vsel %vm1406_vm1, %v6723_v41, %v6725_v53  ;;  %v6728_v7 = vsel %vm1406_vm1, %v6725_v53, %v6727_v24  ;;  %v14772_v53 = vld [vmem:[%s18880_s2 + $0xe8] sm:$0xff]  }
 0x692   : > { %13382 = vmatmul.mubr.bf16.gmra.mrb[56].mxu1 %v17305_v63  ;;  %v6724_v63 = vsel %vm1406_vm1, %v6721_v26, %v6723_v41  ;;  %v14770_v26 = vld [vmem:[%s18880_s2 + $0xd8] sm:$0xff]   ;;  %v14771_v41 = vld [vmem:[%s18880_s2 + $0xe0] sm:$0xff]  }
 0x693   : > { %13385 = vmatprep.mubr.bf16.mxu1 %v17331_v37 }
 0x69a   : > { %13386 = vmatmul.mubr.bf16.gmra.mrb[60].mxu1 %v17465_v40 }
 0x69b   : > { %13405 = vmatprep.mubr.bf16.mxu1 %v6722_v4  ;;  %v14769_v4 = vld [vmem:[%s18880_s2 + $0xd0] sm:$0xff]  }
 0x6a2   : > { %13406 = vmatmul.mubr.bf16.vlgmr.msra.gmra.mrb[28].mxu1 %v6724_v63  ;;  %v6731_v63 = vrot.slane %v15198_v46, 1  ;;  %v14778_v46 = vld [vmem:[%s18880_s2 + $0x100] sm:$0xff]  }
 0x6a3   : > { %13409 = vmatprep.mubr.bf16.mxu1 %v6726_v57  ;;  %13442 = vmatpush3.bf16.msra.mxu1 %v14767_v38  ;;  %v6730_v38 = vsel %vm1406_vm1, %v6727_v24, %v6729_v0  ;;  %v14773_v24 = vld [vmem:[%s18880_s2 + $0xf0] sm:$0xff]  }
 0x6a4   : > { %13443 = vmatprep.subr.bf16.mxu1 %v14768_v5  ;;  %v6732_v34 = vsel %vm1406_vm1, %v6729_v0, %v6731_v63  ;;  %v14774_v0 = vld [vmem:[%s18880_s2 + $0xf8] sm:$0xff]  }
 0x6a7   : > { %13444 = vmatpush3.bf16.msra.mxu1 %v14768_v5  ;;  %v15199_v5 = vld [vmem:[#allocation2 + $0x38] sm:$0xff]  }
 0x6a8   : > { %13445 = vmatprep.subr.bf16.mxu1 %v14769_v4  ;;  %v6733_v57 = vrot.slane %v15199_v5, 1 }
 0x6aa   : > { %13410 = vmatmul.mubr.bf16.gmra.mrb[32].mxu1 %v6728_v7  ;;  %v6735_v7 = vrot.slane %v15200_v45, 1 }
 0x6ab   : > { %13413 = vmatprep.mubr.bf16.mxu1 %v6730_v38  ;;  %13446 = vmatpush3.bf16.msra.mxu1 %v14769_v4  ;;  %v6734_v4 = vsel %vm1406_vm1, %v6731_v63, %v6733_v57  ;;  %v6741_v63 = vrot.slane %v17837_v35, 1 }
 0x6ac   : > { %13447 = vmatprep.subr.bf16.mxu1 %v14770_v26  ;;  %v6736_v38 = vsel %vm1406_vm1, %v6733_v57, %v6735_v7 }
 0x6af   : > { %13448 = vmatpush3.bf16.msra.mxu1 %v14770_v26  ;;  %v6737_v26 = vrot.slane %v17831_v59, 1  ;;  %v6739_v59 = vrot.slane %v17834_v17, 1  ;;  %v15202_v17 = vld [vmem:[#allocation2 + $0x70] sm:$0xff]  }
 0x6b0   : > { %13449 = vmatprep.subr.bf16.mxu1 %v14771_v41  ;;  %v6747_v35 = vrot.slane %v15202_v17, 1  ;;  %v14782_v17 = vld [vmem:[%s18880_s2 + $0x108] sm:$0xff]  }
 0x6b1   : > { %v6740_v5 = vsel %vm1406_vm1, %v6737_v26, %v6739_v59  ;;  %v6742_v57 = vsel %vm1406_vm1, %v6739_v59, %v6741_v63 }
 0x6b2   : > { %13414 = vmatmul.mubr.bf16.gmra.mrb[36].mxu1 %v6732_v34  ;;  %v15201_v34 = vld [vmem:[#allocation2 + $0x68] sm:$0xff]  }
 0x6b3   : > { %13417 = vmatprep.mubr.bf16.mxu1 %v6734_v4  ;;  %13450 = vmatpush3.bf16.msra.mxu1 %v14771_v41  ;;  %v6738_v41 = vsel %vm1406_vm1, %v6735_v7, %v6737_v26  ;;  %v6745_v4 = vrot.slane %v15201_v34, 1  ;;  %v15203_v7 = vld [vmem:[#allocation2 + $0x78] sm:$0xff]  }
 0x6b4   : > { %13451 = vmatprep.subr.bf16.mxu1 %v14772_v53 }
 0x6b5   : > { %v6748_v26 = vsel %vm1406_vm1, %v6745_v4, %v6747_v35 }
 0x6b7   : > { %13452 = vmatpush3.bf16.msra.mxu1 %v14772_v53  ;;  %v6743_v53 = vrot.slane %v17840_v28, 1  ;;  %v6751_v28 = vrot.slane %v17331_v37, 1  ;;  %v15205_v37 = vld [vmem:[#allocation2 + $0x18] sm:$0xff]  }
 0x6b8   : > { %13453 = vmatprep.subr.bf16.mxu1 %v14773_v24 }
 0x6b9   : > { %v6746_v45 = vsel %vm1406_vm1, %v6743_v53, %v6745_v4 }
 0x6ba   : > { %13418 = vmatmul.mubr.bf16.gmra.mrb[40].mxu1 %v6736_v38 }
 0x6bb   : > { %13421 = vmatprep.mubr.bf16.mxu1 %v6738_v41  ;;  %13454 = vmatpush3.bf16.msra.mxu1 %v14773_v24  ;;  %v6744_v24 = vsel %vm1406_vm1, %v6741_v63, %v6743_v53  ;;  %v6753_v41 = vrot.slane %v17465_v40, 1  ;;  %v15204_v53 = vld [vmem:[#allocation2 + $0x10] sm:$0xff]   ;;  %v7186_v40 = vrot.slane %v15205_v37, 1  ;;  %v7206_v37 = vrot.slane %v17418_v54, 1 }
 0x6bc   : > { %13455 = vmatprep.subr.bf16.mxu1 %v14774_v0  ;;  %v7184_v34 = vrot.slane %v15204_v53, 1  ;;  %v7214_v54 = vrot.slane %v17450_v21, 1  ;;  %v19192_v21 = vld [vmem:[#allocation18_spill] sm:$0xff] }
 0x6bd   : > { %v6754_v63 = vsel %vm1406_vm1, %v6751_v28, %v6753_v41 }
 0x6bf   : > { %13456 = vmatpush3.bf16.msra.mxu1 %v14774_v0  ;;  %v6749_v0 = vrot.slane %v15203_v7, 1  ;;  %v7190_v7 = vrot.slane %v17359_v14, 1  ;;  %v14791_v14 = vld [vmem:[%s18880_s2 + $0x120] sm:$0xff]  }
 0x6c0   : > { %13493 = vmatprep.subr.bf16.mxu1 %v14778_v46 }
 0x6c1   : > { %v6750_v38 = vsel %vm1406_vm1, %v6747_v35, %v6749_v0  ;;  %v6752_v59 = vsel %vm1406_vm1, %v6749_v0, %v6751_v28  ;;  %v14785_v35 = vld [vmem:[%s18880_s2 + $0x110] sm:$0xff]   ;;  %v14788_v0 = vld [vmem:[%s18880_s2 + $0x118] sm:$0xff]   ;;  %v14794_v28 = vld [vmem:[%s18880_s2 + $0x128] sm:$0xff]  }
 0x6c2   : > { %13422 = vmatmul.mubr.bf16.gmra.mrb[44].mxu1 %v6740_v5  ;;  %v6755_v5 = vrot.slane %v17561_v20, 1  ;;  %v7187_v20 = vsel %vm1406_vm1, %v7184_v34, %v7186_v40 }
 0x6c3   : > { %13425 = vmatprep.mubr.bf16.mxu1 %v6742_v57  ;;  %v7183_v57 = vrot.slane %v17323_v33, 1 }
 0x6c4   : > { %v6756_v4 = vsel %vm1406_vm1, %v6753_v41, %v6755_v5  ;;  %v14800_v5 = vld [vmem:[%s18880_s2 + $0x138] sm:$0xff]  }
 0x6ca   : > { %13426 = vmatmul.mubr.bf16.gmra.mrb[48].mxu1 %v6744_v24  ;;  %v7185_v24 = vsel %vm1406_vm1, %v7183_v57, %v7184_v34  ;;  %v7204_v34 = vrot.slane %v17408_v36, 1  ;;  %v7212_v36 = vrot.slane %v17443_v22, 1 }
 0x6cb   : > { %13429 = vmatprep.mubr.bf16.mxu1 %v6746_v45  ;;  %v7188_v45 = vrot.slane %v17352_v6, 1  ;;  %v7192_v6 = vrot.slane %v17367_v56, 1  ;;  %v7194_v56 = vrot.slane %v17374_v19, 1  ;;  %v14797_v19 = vld [vmem:[%s18880_s2 + $0x130] sm:$0xff]  }
 0x6cd   : > { %v7189_v33 = vsel %vm1406_vm1, %v7186_v40, %v7188_v45  ;;  %v7195_v41 = vsel %vm1406_vm1, %v7192_v6, %v7194_v56  ;;  %v7208_v40 = vrot.slane %v17425_v25, 1 }
 0x6d2   : > { %13430 = vmatmul.mubr.bf16.gmra.mrb[52].mxu1 %v6748_v26  ;;  %v7191_v26 = vsel %vm1406_vm1, %v7188_v45, %v7190_v7  ;;  %v7207_v45 = vsel %vm1406_vm1, %v7204_v34, %v7206_v37 }
 0x6d3   : > { %13433 = vmatprep.mubr.bf16.mxu1 %v6750_v38  ;;  %v7196_v38 = vrot.slane %v17382_v10, 1  ;;  %v7198_v10 = vrot.slane %v17386_v47, 1  ;;  %v14802_v47 = vld [vmem:[%s18880_s2 + $0x140] sm:$0xff]  }
 0x6d5   : > { %v7199_v57 = vsel %vm1406_vm1, %v7196_v38, %v7198_v10 }
 0x6da   : > { %13434 = vmatmul.mubr.bf16.gmra.mrb[56].mxu1 %v6752_v59  ;;  %v7197_v59 = vsel %vm1406_vm1, %v7194_v56, %v7196_v38  ;;  %v14804_v56 = vld [vmem:[%s18880_s2 + $0x150] sm:$0xff]   ;;  %v14805_v38 = vld [vmem:[%s18880_s2 + $0x158] sm:$0xff]  }
 0x6db   : > { %13437 = vmatprep.mubr.bf16.mxu1 %v6754_v63  ;;  %v7200_v63 = vrot.slane %v17393_v12, 1  ;;  %v7202_v12 = vrot.slane %v17404_v29, 1  ;;  %v7210_v29 = vrot.slane %v17435_v61, 1 }
 0x6dd   : > { %v7201_v53 = vsel %vm1406_vm1, %v7198_v10, %v7200_v63  ;;  %v19196_v10 = vld [vmem:[#allocation26_spill] sm:$0xff] }
 0x6e2   : > { %13438 = vmatmul.mubr.bf16.gmra.mrb[60].mxu1 %v6756_v4  ;;  %v7203_v4 = vsel %vm1406_vm1, %v7200_v63, %v7202_v12  ;;  %v19197_v63 = vld [vmem:[#allocation46_spill] sm:$0xff] }
 0x6e3   : > { %13457 = vmatprep.mubr.bf16.mxu1 %v7185_v24  ;;  %v7205_v24 = vsel %vm1406_vm1, %v7202_v12, %v7204_v34  ;;  %v14812_v12 = vld [vmem:[%s18880_s2 + $0x180] sm:$0xff]  }
 0x6e4   : > { %v19200_v34 = vld [vmem:[#allocation50_spill] sm:$0xff] }
 0x6ea   : > { %13458 = vmatmul.mubr.bf16.vlgmr.msra.gmra.mrb[28].mxu1 %v7187_v20  ;;  %v7211_v20 = vsel %vm1406_vm1, %v7208_v40, %v7210_v29 }
 0x6eb   : > { %13461 = vmatprep.mubr.bf16.mxu1 %v7189_v33  ;;  %13494 = vmatpush3.bf16.msra.mxu1 %v14778_v46  ;;  %v7193_v46 = vsel %vm1406_vm1, %v7190_v7, %v7192_v6  ;;  %v7213_v33 = vsel %vm1406_vm1, %v7210_v29, %v7212_v36  ;;  %v7215_v7 = vsel %vm1406_vm1, %v7212_v36, %v7214_v54  ;;  %v14801_v6 = vld [vmem:[#allocation2 + $0x98] ss:$0 sps:$4 sm:$0x11]  }
 0x6ec   : > { %13495 = vmatprep.subr.bf16.mxu1 %v14782_v17  ;;  %v7218_v61 = vrot.slane %v14801_v6, 1 }
 0x6ef   : > { %13496 = vmatpush3.bf16.msra.mxu1 %v14782_v17  ;;  %v7209_v17 = vsel %vm1406_vm1, %v7206_v37, %v7208_v40  ;;  %v19203_v37 = vld [vmem:[#allocation53_spill] sm:$0xff]  ;;  %v19204_v40 = vld [vmem:[#allocation54_spill] sm:$0xff] }
 0x6f0   : > { %13497 = vmatprep.subr.bf16.mxu1 %v14785_v35 }
 0x6f2   : > { %13462 = vmatmul.mubr.bf16.gmra.mrb[32].mxu1 %v7191_v26  ;;  %v19191_v26 = vld [vmem:[#allocation17_spill] sm:$0xff] }
 0x6f3   : > { %13465 = vmatprep.mubr.bf16.mxu1 %v7193_v46  ;;  %13498 = vmatpush3.bf16.msra.mxu1 %v14785_v35  ;;  %v19190_v35 = vld [vmem:[#allocation49_spill] sm:$0xff]  ;;  %v14803_v46 = vld [vmem:[%s18880_s2 + $0x148] sm:$0xff]  }
 0x6f4   : > { %13499 = vmatprep.subr.bf16.mxu1 %v14788_v0  ;;  %v7216_v25 = vrot.slane %v19190_v35, 1  ;;  %v19208_v35 = vld [vmem:[#allocation60_spill] sm:$0xff] }
 0x6f6   : > { %v7219_v22 = vsel %vm1406_vm1, %v7216_v25, %v7218_v61  ;;  %v14813_v61 = vld [vmem:[%s18880_s2 + $0x188] sm:$0xff]  }
 0x6f7   : > { %13500 = vmatpush3.bf16.msra.mxu1 %v14788_v0  ;;  %v7217_v0 = vsel %vm1406_vm1, %v7214_v54, %v7216_v25  ;;  %v19207_v54 = vld [vmem:[#allocation56_spill] sm:$0xff] }
 0x6f8   : > { %13501 = vmatprep.subr.bf16.mxu1 %v14791_v14 }
 0x6fa   : > { %13466 = vmatmul.mubr.bf16.gmra.mrb[36].mxu1 %v7195_v41  ;;  %v19195_v41 = vld [vmem:[#allocation27_spill] sm:$0xff] }
 0x6fb   : > { %13469 = vmatprep.mubr.bf16.mxu1 %v7197_v59  ;;  %13502 = vmatpush3.bf16.msra.mxu1 %v14791_v14  ;;  %v19193_v14 = vld [vmem:[#allocation21_spill] sm:$0xff] }
 0x6fc   : > { %13503 = vmatprep.subr.bf16.mxu1 %v14794_v28  ;;  %v14806_v59 = vld [vmem:[%s18880_s2 + $0x160] sm:$0xff]  }
 0x6ff   : > { %13504 = vmatpush3.bf16.msra.mxu1 %v14794_v28  ;;  %v19194_v28 = vld [vmem:[#allocation23_spill] sm:$0xff] }
 0x700   : > { %13505 = vmatprep.subr.bf16.mxu1 %v14797_v19 }
 0x702   : > { %13470 = vmatmul.mubr.bf16.gmra.mrb[40].mxu1 %v7199_v57  ;;  %v14809_v57 = vld [vmem:[%s18880_s2 + $0x178] sm:$0xff]  }
 0x703   : > { %13473 = vmatprep.mubr.bf16.mxu1 %v7201_v53  ;;  %13506 = vmatpush3.bf16.msra.mxu1 %v14797_v19  ;;  %v14807_v19 = vld [vmem:[%s18880_s2 + $0x168] sm:$0xff]  }
 0x704   : > { %13507 = vmatprep.subr.bf16.mxu1 %v14800_v5  ;;  %v19198_v53 = vld [vmem:[#allocation47_spill] sm:$0xff] }
 0x707   : > { %13508 = vmatpush3.bf16.msra.mxu1 %v14800_v5  ;;  %v14808_v5 = vld [vmem:[%s18880_s2 + $0x170] sm:$0xff]  }
 0x708   : > { %13545 = vmatprep.subr.bf16.mxu1 %v14802_v47 }
 0x70a   : > { %13474 = vmatmul.mubr.bf16.gmra.mrb[44].mxu1 %v7203_v4  ;;  %v19201_v4 = vld [vmem:[#allocation51_spill] sm:$0xff] }
 0x70b   : > { %13477 = vmatprep.mubr.bf16.mxu1 %v7205_v24  ;;  %v19202_v24 = vld [vmem:[#allocation52_spill] sm:$0xff] }
 0x712   : > { %13478 = vmatmul.mubr.bf16.gmra.mrb[48].mxu1 %v7207_v45  ;;  %v19205_v45 = vld [vmem:[#allocation55_spill] sm:$0xff] }
 0x713   : > { %13481 = vmatprep.mubr.bf16.mxu1 %v7209_v17  ;;  %v19206_v17 = vld [vmem:[#allocation64_spill] sm:$0xff] }
 0x714   : > { %v7682_v29 = vshrl.u32 %v19206_v17, 16  ;;  %v7685_v36 = vshll.u32 %v19206_v17, 16 }
 0x71a   : > { %13482 = vmatmul.mubr.bf16.gmra.mrb[52].mxu1 %v7211_v20  ;;  %v7684_v20 = vrot.slane %v7682_v29, 1  ;;  %v8454_v29 = vrot.slane %v17597_v62, 2  ;;  %v14830_v62 = vld [vmem:[%s18880_s2 + $0x1d0] sm:$0xff]  }
 0x71b   : > { %13485 = vmatprep.mubr.bf16.mxu1 %v7213_v33  ;;  %v7687_v33 = vrot.slane %v7685_v36, 2  ;;  %v19228_v36 = vld [vmem:[#allocation77_spill] sm:$0xff] }
 0x71d   : > { %v7688_v25 = vor.u32 %v7687_v33, %v7684_v20  ;;  %v8456_v33 = vrot.slane %v17599_v1, 2  ;;  %v8460_v1 = vrot.slane %v17604_v42, 2  ;;  %v14836_v42 = vld [vmem:[%s18880_s2 + $0x1e0] sm:$0xff]  }
 0x722   : > { %13486 = vmatmul.mubr.bf16.gmra.mrb[56].mxu1 %v7215_v7  ;;  %v19209_v7 = vld [vmem:[#allocation57_spill] sm:$0xff] }
 0x723   : > { %13489 = vmatprep.mubr.bf16.mxu1 %v7217_v0  ;;  %v7689_v6 = vsel %vm2207_vm2, %v19209_v7, %v7688_v25  ;;  %v19210_v0 = vld [vmem:[#allocation58_spill] sm:$0xff]  ;;  %v8457_v25 = vsel %vm2678_vm3, %v8454_v29, %v8456_v33 }
 0x72a   : > { %13490 = vmatmul.mubr.bf16.gmra.mrb[60].mxu1 %v7219_v22  ;;  %v19211_v22 = vld [vmem:[#allocation59_spill] sm:$0xff] }
 0x72b   : > { %13509 = vmatprep.mubr.bf16.mxu1 %v19191_v26  ;;  %v19212_v26 = vld [vmem:[#allocation61_spill] sm:$0xff] }
 0x732   : > { %13510 = vmatmul.mubr.bf16.vlgmr.msra.gmra.mrb[28].mxu1 %v19192_v21  ;;  %v14815_v21 = vld [vmem:[%s18880_s2 + $0x198] sm:$0xff]  }
 0x733   : > { %13513 = vmatprep.mubr.bf16.mxu1 %v19193_v14  ;;  %13546 = vmatpush3.bf16.msra.mxu1 %v14802_v47  ;;  %v19199_v47 = vld [vmem:[#allocation48_spill] sm:$0xff]  ;;  %v19213_v14 = vld [vmem:[#allocation62_spill] sm:$0xff] }
 0x734   : > { %13547 = vmatprep.subr.bf16.mxu1 %v14803_v46 }
 0x737   : > { %13548 = vmatpush3.bf16.msra.mxu1 %v14803_v46  ;;  %v14814_v46 = vld [vmem:[%s18880_s2 + $0x190] sm:$0xff]  }
 0x738   : > { %13549 = vmatprep.subr.bf16.mxu1 %v14804_v56 }
 0x73a   : > { %13514 = vmatmul.mubr.bf16.gmra.mrb[32].mxu1 %v19194_v28  ;;  %v14817_v28 = vld [vmem:[%s18880_s2 + $0x1a8] sm:$0xff]  }
 0x73b   : > { %13517 = vmatprep.mubr.bf16.mxu1 %v19195_v41  ;;  %13550 = vmatpush3.bf16.msra.mxu1 %v14804_v56  ;;  %v19214_v56 = vld [vmem:[#allocation63_spill] sm:$0xff]  ;;  %v19215_v41 = vld [vmem:[#allocation65_spill] sm:$0xff] }
 0x73c   : > { %13551 = vmatprep.subr.bf16.mxu1 %v14805_v38 }
 0x73f   : > { %13552 = vmatpush3.bf16.msra.mxu1 %v14805_v38  ;;  %v14816_v38 = vld [vmem:[%s18880_s2 + $0x1a0] sm:$0xff]  }
 0x740   : > { %13553 = vmatprep.subr.bf16.mxu1 %v14806_v59 }
 0x742   : > { %13518 = vmatmul.mubr.bf16.gmra.mrb[36].mxu1 %v19196_v10  ;;  %v14819_v10 = vld [vmem:[%s18880_s2 + $0x1b8] sm:$0xff]  }
 0x743   : > { %13521 = vmatprep.mubr.bf16.mxu1 %v19197_v63  ;;  %13554 = vmatpush3.bf16.msra.mxu1 %v14806_v59  ;;  %v19216_v59 = vld [vmem:[#allocation66_spill] sm:$0xff]  ;;  %v19217_v63 = vld [vmem:[#allocation67_spill] sm:$0xff] }
 0x744   : > { %13555 = vmatprep.subr.bf16.mxu1 %v14807_v19 }
 0x747   : > { %13556 = vmatpush3.bf16.msra.mxu1 %v14807_v19  ;;  %v14818_v19 = vld [vmem:[%s18880_s2 + $0x1b0] sm:$0xff]  }
 0x748   : > { %13557 = vmatprep.subr.bf16.mxu1 %v14808_v5 }
 0x74a   : > { %13522 = vmatmul.mubr.bf16.gmra.mrb[40].mxu1 %v19198_v53  ;;  %v19219_v53 = vld [vmem:[#allocation69_spill] sm:$0xff] }
 0x74b   : > { %13525 = vmatprep.mubr.bf16.mxu1 %v19199_v47  ;;  %13558 = vmatpush3.bf16.msra.mxu1 %v14808_v5  ;;  %v19218_v5 = vld [vmem:[#allocation68_spill] sm:$0xff]  ;;  %v19220_v47 = vld [vmem:[#allocation70_spill] sm:$0xff] }
 0x74c   : > { %13559 = vmatprep.subr.bf16.mxu1 %v14809_v57 }
 0x74f   : > { %13560 = vmatpush3.bf16.msra.mxu1 %v14809_v57  ;;  %v14823_v57 = vld [vmem:[%s18880_s2 + $0x1c0] sm:$0xff]  }
 0x750   : > { %13597 = vmatprep.subr.bf16.mxu1 %v14812_v12 }
 0x752   : > { %13526 = vmatmul.mubr.bf16.gmra.mrb[44].mxu1 %v19200_v34  ;;  %v19222_v34 = vld [vmem:[#allocation72_spill] sm:$0xff] }
 0x753   : > { %13529 = vmatprep.mubr.bf16.mxu1 %v19201_v4  ;;  %v19223_v4 = vld [vmem:[#allocation73_spill] sm:$0xff] }
 0x75a   : > { %13530 = vmatmul.mubr.bf16.gmra.mrb[48].mxu1 %v19202_v24  ;;  %v19224_v24 = vld [vmem:[#allocation74_spill] sm:$0xff] }
 0x75b   : > { %13533 = vmatprep.mubr.bf16.mxu1 %v19203_v37  ;;  %v19225_v37 = vld [vmem:[#allocation75_spill] sm:$0xff] }
 0x762   : > { %13534 = vmatmul.mubr.bf16.gmra.mrb[52].mxu1 %v19204_v40  ;;  %v19226_v40 = vld [vmem:[#allocation76_spill] sm:$0xff] }
 0x763   : > { %13537 = vmatprep.mubr.bf16.mxu1 %v19205_v45  ;;  %v19227_v45 = vld [vmem:[#allocation78_spill] sm:$0xff] }
 0x764   : > { %v8453_v17 = vrot.slane %v19227_v45, 2  ;;  %v14850_v45 = vld [vmem:[%s18880_s2 + $0x218] sm:$0xff]  }
 0x766   : > { %v8455_v20 = vsel %vm2678_vm3, %v8453_v17, %v8454_v29  ;;  %v19232_v17 = vld [vmem:[#allocation82_spill] sm:$0xff]  ;;  %v19233_v29 = vld [vmem:[#allocation83_spill] sm:$0xff] }
 0x76a   : > { %13538 = vmatmul.mubr.bf16.gmra.mrb[56].mxu1 %v19207_v54  ;;  %v8458_v54 = vrot.slane %v17602_v11, 2  ;;  %v8462_v11 = vrot.slane %v17611_v58, 2  ;;  %v8464_v58 = vrot.slane %v17615_v51, 2  ;;  %v14842_v51 = vld [vmem:[%s18880_s2 + $0x1f0] sm:$0xff]  }
 0x76b   : > { %13541 = vmatprep.mubr.bf16.mxu1 %v19208_v35  ;;  %v14827_v35 = vld [vmem:[%s18880_s2 + $0x1c8] sm:$0xff]  }
 0x76c   : > { %v8459_v7 = vsel %vm2678_vm3, %v8456_v33, %v8458_v54  ;;  %v19234_v33 = vld [vmem:[#allocation84_spill] sm:$0xff] }
 0x772   : > { %13542 = vmatmul.mubr.bf16.gmra.mrb[60].mxu1 %v7689_v6  ;;  %v14833_v6 = vld [vmem:[%s18880_s2 + $0x1d8] sm:$0xff]  }
 0x773   : > { %13561 = vmatprep.mubr.bf16.mxu1 %v19210_v0  ;;  %v8461_v0 = vsel %vm2678_vm3, %v8458_v54, %v8460_v1  ;;  %v19235_v54 = vld [vmem:[#allocation85_spill] sm:$0xff] }
 0x77a   : > { %13562 = vmatmul.mubr.bf16.vlgmr.msra.gmra.mrb[28].mxu1 %v19211_v22  ;;  %v8466_v22 = vrot.slane %v17620_v18, 2  ;;  %v8468_v18 = vrot.slane %v17626_v3, 2  ;;  %v14847_v3 = vld [vmem:[%s18880_s2 + $0x200] sm:$0xff]  }
 0x77b   : > { %13565 = vmatprep.mubr.bf16.mxu1 %v19212_v26  ;;  %13598 = vmatpush3.bf16.msra.mxu1 %v14812_v12  ;;  %v19221_v12 = vld [vmem:[#allocation71_spill] sm:$0xff] }
 0x77c   : > { %13599 = vmatprep.subr.bf16.mxu1 %v14813_v61  ;;  %v14839_v26 = vld [vmem:[%s18880_s2 + $0x1e8] sm:$0xff]  }
 0x77f   : > { %13600 = vmatpush3.bf16.msra.mxu1 %v14813_v61  ;;  %v8463_v61 = vsel %vm2678_vm3, %v8460_v1, %v8462_v11  ;;  %v19238_v1 = vld [vmem:[#allocation88_spill] sm:$0xff] }
 0x780   : > { %13601 = vmatprep.subr.bf16.mxu1 %v14814_v46 }
 0x782   : > { %13566 = vmatmul.mubr.bf16.gmra.mrb[32].mxu1 %v19213_v14  ;;  %v8470_v14 = vrot.slane %v17635_v27, 2  ;;  %v8472_v27 = vrot.slane %v17643_v9, 2  ;;  %v8480_v9 = vrot.slane %v17677_v48, 2 }
 0x783   : > { %13569 = vmatprep.mubr.bf16.mxu1 %v19214_v56  ;;  %13602 = vmatpush3.bf16.msra.mxu1 %v14814_v46  ;;  %v8465_v46 = vsel %vm2678_vm3, %v8462_v11, %v8464_v58  ;;  %v14845_v56 = vld [vmem:[%s18880_s2 + $0x1f8] sm:$0xff]  }
 0x784   : > { %13603 = vmatprep.subr.bf16.mxu1 %v14815_v21  ;;  %v19239_v11 = vld [vmem:[#allocation89_spill] sm:$0xff] }
 0x787   : > { %13604 = vmatpush3.bf16.msra.mxu1 %v14815_v21  ;;  %v8467_v21 = vsel %vm2678_vm3, %v8464_v58, %v8466_v22 }
 0x788   : > { %13605 = vmatprep.subr.bf16.mxu1 %v14816_v38 }
 0x78a   : > { %13570 = vmatmul.mubr.bf16.gmra.mrb[36].mxu1 %v19215_v41  ;;  %v8474_v41 = vrot.slane %v17654_v43, 2  ;;  %v8482_v43 = vrot.slane %v17687_v15, 2 }
 0x78b   : > { %13573 = vmatprep.mubr.bf16.mxu1 %v19216_v59  ;;  %13606 = vmatpush3.bf16.msra.mxu1 %v14816_v38  ;;  %v8469_v38 = vsel %vm2678_vm3, %v8466_v22, %v8468_v18  ;;  %v8473_v59 = vsel %vm2678_vm3, %v8470_v14, %v8472_v27 }
 0x78c   : > { %13607 = vmatprep.subr.bf16.mxu1 %v14817_v28 }
 0x78f   : > { %13608 = vmatpush3.bf16.msra.mxu1 %v14817_v28  ;;  %v8471_v28 = vsel %vm2678_vm3, %v8468_v18, %v8470_v14  ;;  %v19254_v18 = vld [vmem:[#allocation104_spill] sm:$0xff]  ;;  %v9774_v14 = vld [vmem:[%s18887_s9 + $0x8] sm:$0xff] }
 0x790   : > { %13609 = vmatprep.subr.bf16.mxu1 %v14818_v19 }
 0x792   : > { %13574 = vmatmul.mubr.bf16.gmra.mrb[40].mxu1 %v19217_v63  ;;  %v8478_v63 = vrot.slane %v17671_v30, 2  ;;  %v8486_v30 = vrot.slane %v17704_v23, 2  ;;  %v19231_v23 = vld [vmem:[#allocation81_spill] sm:$0xff] }
 0x793   : > { %13577 = vmatprep.mubr.bf16.mxu1 %v19218_v5  ;;  %13610 = vmatpush3.bf16.msra.mxu1 %v14818_v19  ;;  %v8475_v19 = vsel %vm2678_vm3, %v8472_v27, %v8474_v41 }
 0x794   : > { %13611 = vmatprep.subr.bf16.mxu1 %v14819_v10 }
 0x797   : > { %13612 = vmatpush3.bf16.msra.mxu1 %v14819_v10  ;;  %v8476_v10 = vrot.slane %v17660_v32, 2  ;;  %v8484_v32 = vrot.slane %v17696_v60, 2  ;;  %v19230_v60 = vld [vmem:[#allocation80_spill] sm:$0xff] }
 0x798   : > { %13649 = vmatprep.subr.bf16.mxu1 %v14823_v57 }
 0x799   : > { %v8477_v5 = vsel %vm2678_vm3, %v8474_v41, %v8476_v10  ;;  %v9777_v41 = vld [vmem:[%s18887_s9 + $0x20] sm:$0xff] }
 0x79a   : > { %13578 = vmatmul.mubr.bf16.gmra.mrb[44].mxu1 %v19219_v53  ;;  %v8481_v53 = vsel %vm2678_vm3, %v8478_v63, %v8480_v9 }
 0x79b   : > { %13581 = vmatprep.mubr.bf16.mxu1 %v19220_v47  ;;  %v8483_v47 = vsel %vm2678_vm3, %v8480_v9, %v8482_v43  ;;  %v9782_v9 = vld [vmem:[%s18887_s9 + $0x48] sm:$0xff] }
 0x7a2   : > { %13582 = vmatmul.mubr.bf16.gmra.mrb[48].mxu1 %v19221_v12  ;;  %v8485_v12 = vsel %vm2678_vm3, %v8482_v43, %v8484_v32 }
 0x7a3   : > { %13585 = vmatprep.mubr.bf16.mxu1 %v19222_v34  ;;  %v14846_v34 = vld [vmem:[#allocation2 + $0xa0] ss:$0 sps:$4 sm:$0x33]  }
 0x7a4   : > { %v8488_v48 = vrot.slane %v14846_v34, 2  ;;  %v9787_v34 = vld [vmem:[%s18887_s9 + $0x70] sm:$0xff] }
 0x7a6   : > { %v8489_v15 = vsel %vm2678_vm3, %v8486_v30, %v8488_v48  ;;  %v9788_v48 = vld [vmem:[%s18887_s9 + $0x78] sm:$0xff] }
 0x7aa   : > { %13586 = vmatmul.mubr.bf16.gmra.mrb[52].mxu1 %v19223_v4  ;;  %v8487_v4 = vsel %vm2678_vm3, %v8484_v32, %v8486_v30  ;;  %v9785_v30 = vld [vmem:[%s18887_s9 + $0x60] sm:$0xff] }
 0x7ab   : > { %13589 = vmatprep.mubr.bf16.mxu1 %v19224_v24  ;;  %v19229_v24 = vld [vmem:[#allocation79_spill] sm:$0xff] }
 0x7b2   : > { %13590 = vmatmul.mubr.bf16.gmra.mrb[56].mxu1 %v19225_v37  ;;  %v14848_v37 = vld [vmem:[%s18880_s2 + $0x208] sm:$0xff]  }
 0x7b3   : > { %13593 = vmatprep.mubr.bf16.mxu1 %v19226_v40  ;;  %v14849_v40 = vld [vmem:[%s18880_s2 + $0x210] sm:$0xff]  }
 0x7ba   : > { %13594 = vmatmul.mubr.bf16.gmra.mrb[60].mxu1 %v19228_v36  ;;  %v14851_v36 = vld [vmem:[%s18880_s2 + $0x220] sm:$0xff]  }
 0x7bb   : > { %13613 = vmatprep.mubr.bf16.mxu1 %v8455_v20  ;;  %v14852_v20 = vld [vmem:[%s18880_s2 + $0x228] sm:$0xff]  }
 0x7c2   : > { %13614 = vmatmul.mubr.bf16.vlgmr.msra.gmra.mrb[28].mxu1 %v8457_v25  ;;  %v14854_v25 = vld [vmem:[%s18880_s2 + $0x238] sm:$0xff]  }
 0x7c3   : > { %13617 = vmatprep.mubr.bf16.mxu1 %v8459_v7  ;;  %13650 = vmatpush3.bf16.msra.mxu1 %v14823_v57  ;;  %v8479_v57 = vsel %vm2678_vm3, %v8476_v10, %v8478_v63  ;;  %v19236_v7 = vld [vmem:[#allocation86_spill] sm:$0xff]  ;;  %v9779_v10 = vld [vmem:[%s18887_s9 + $0x30] sm:$0xff]  ;;  %v9780_v63 = vld [vmem:[%s18887_s9 + $0x38] sm:$0xff] }
 0x7c4   : > { %13651 = vmatprep.subr.bf16.mxu1 %v14827_v35 }
 0x7c7   : > { %13652 = vmatpush3.bf16.msra.mxu1 %v14827_v35  ;;  %v14853_v35 = vld [vmem:[%s18880_s2 + $0x230] sm:$0xff]  }
 0x7c8   : > { %13653 = vmatprep.subr.bf16.mxu1 %v14830_v62 }
 0x7ca   : > { %13618 = vmatmul.mubr.bf16.gmra.mrb[32].mxu1 %v8461_v0  ;;  %v8952_v0 = vshrl.u32 %v17776_v16, 16 }
 0x7cb   : > { %13621 = vmatprep.mubr.bf16.mxu1 %v8463_v61  ;;  %13654 = vmatpush3.bf16.msra.mxu1 %v14830_v62  ;;  %v19237_v62 = vld [vmem:[#allocation87_spill] sm:$0xff]  ;;  %v8955_v61 = vshll.u32 %v17776_v16, 16  ;;  %v19243_v16 = vld [vmem:[#allocation93_spill] sm:$0xff] }
 0x7cc   : > { %13655 = vmatprep.subr.bf16.mxu1 %v14833_v6 }
 0x7cd   : > { %v8957_v58 = vrot.slane %v8955_v61, 3 }
 0x7cf   : > { %13656 = vmatpush3.bf16.msra.mxu1 %v14833_v6  ;;  %v19240_v6 = vld [vmem:[#allocation90_spill] sm:$0xff] }
 0x7d0   : > { %13657 = vmatprep.subr.bf16.mxu1 %v14836_v42 }
 0x7d2   : > { %13622 = vmatmul.mubr.bf16.gmra.mrb[36].mxu1 %v8465_v46  ;;  %v19251_v46 = vld [vmem:[#allocation101_spill] sm:$0xff] }
 0x7d3   : > { %13625 = vmatprep.mubr.bf16.mxu1 %v8467_v21  ;;  %13658 = vmatpush3.bf16.msra.mxu1 %v14836_v42  ;;  %v8954_v42 = vrot.slane %v8952_v0, 2  ;;  %v19252_v21 = vld [vmem:[#allocation102_spill] sm:$0xff] }
 0x7d4   : > { %13659 = vmatprep.subr.bf16.mxu1 %v14839_v26 }
 0x7d5   : > { %v8958_v22 = vor.u32 %v8957_v58, %v8954_v42 }
 0x7d7   : > { %13660 = vmatpush3.bf16.msra.mxu1 %v14839_v26  ;;  %v19247_v26 = vld [vmem:[#allocation97_spill] sm:$0xff] }
 0x7d8   : > { %13661 = vmatprep.subr.bf16.mxu1 %v14842_v51 }
 0x7da   : > { %13626 = vmatmul.mubr.bf16.gmra.mrb[40].mxu1 %v8469_v38  ;;  %v19255_v38 = vmov 0.0|0.0  }
 0x7db   : > { %13629 = vmatprep.mubr.bf16.mxu1 %v8471_v28  ;;  %13662 = vmatpush3.bf16.msra.mxu1 %v14842_v51  ;;  %v19253_v51 = vld [vmem:[#allocation103_spill] sm:$0xff] }
 0x7dc   : > { %13663 = vmatprep.subr.bf16.mxu1 %v14845_v56  ;;  %v9775_v28 = vld [vmem:[%s18887_s9 + $0x10] sm:$0xff] }
 0x7df   : > { %13664 = vmatpush3.bf16.msra.mxu1 %v14845_v56 }
 0x7e0   : > { %13701 = vmatprep.subr.bf16.mxu1 %v14847_v3 }
 0x7e2   : > { %13630 = vmatmul.mubr.bf16.gmra.mrb[44].mxu1 %v8473_v59  ;;  %v9778_v59 = vld [vmem:[%s18887_s9 + $0x28] sm:$0xff] }
 0x7e3   : > { %13633 = vmatprep.mubr.bf16.mxu1 %v8475_v19  ;;  %v18188_v19 = vpack.c.bf16 %v9778_v59, %v9777_v41  ;;  %v19263_v41 = vld [vmem:[#allocation10_spill] sm:$0xff] }
 0x7ea   : > { %13634 = vmatmul.mubr.bf16.gmra.mrb[48].mxu1 %v8477_v5  ;;  %v18198_v5 = vpack.c.bf16 %v9780_v63, %v9779_v10 }
 0x7eb   : > { %13637 = vmatprep.mubr.bf16.mxu1 %v8479_v57  ;;  %v9781_v57 = vld [vmem:[%s18887_s9 + $0x40] sm:$0xff] }
 0x7ec   : > { %v18208_v43 = vpack.c.bf16 %v9782_v9, %v9781_v57 }
 0x7f2   : > { %13638 = vmatmul.mubr.bf16.gmra.mrb[52].mxu1 %v8481_v53  ;;  %v9783_v53 = vld [vmem:[%s18887_s9 + $0x50] sm:$0xff] }
 0x7f3   : > { %13641 = vmatprep.mubr.bf16.mxu1 %v8483_v47  ;;  %v9784_v47 = vld [vmem:[%s18887_s9 + $0x58] sm:$0xff] }
 0x7f4   : > { %v18218_v32 = vpack.c.bf16 %v9784_v47, %v9783_v53 }
 0x7fa   : > { %13642 = vmatmul.mubr.bf16.gmra.mrb[56].mxu1 %v8485_v12  ;;  %v9786_v12 = vld [vmem:[%s18887_s9 + $0x68] sm:$0xff] }
 0x7fb   : > { %13645 = vmatprep.mubr.bf16.mxu1 %v8487_v4  ;;  %v18231_v4 = vpack.c.bf16 %v9786_v12, %v9785_v30 }
 0x802   : > { %13646 = vmatmul.mubr.bf16.gmra.mrb[60].mxu1 %v8489_v15  ;;  %v18237_v15 = vpack.c.bf16 %v9788_v48, %v9787_v34 }
 0x803   : > { %13665 = vmatprep.mubr.bf16.mxu1 %v19229_v24  ;;  %v18245_v24 = vld [vmem:[%s18884_s6] ss:$0 sm:$0xff] }
 0x80a   : > { %13666 = vmatmul.mubr.bf16.vlgmr.msra.gmra.mrb[28].mxu1 %v19230_v60 }
 0x80b   : > { %13669 = vmatprep.mubr.bf16.mxu1 %v19231_v23  ;;  %13702 = vmatpush3.bf16.msra.mxu1 %v14847_v3  ;;  %v9776_v3 = vld [vmem:[%s18887_s9 + $0x18] sm:$0xff] }
 0x80c   : > { %13703 = vmatprep.subr.bf16.mxu1 %v14848_v37  ;;  %v18178_v27 = vpack.c.bf16 %v9776_v3, %v9775_v28  ;;  %v19262_v28 = vld [vmem:[#allocation8_spill] sm:$0xff] }
 0x80f   : > { %13704 = vmatpush3.bf16.msra.mxu1 %v14848_v37 }
 0x810   : > { %13705 = vmatprep.subr.bf16.mxu1 %v14849_v40 }
 0x812   : > { %13670 = vmatmul.mubr.bf16.gmra.mrb[32].mxu1 %v19232_v17 }
 0x813   : > { %13673 = vmatprep.mubr.bf16.mxu1 %v19233_v29  ;;  %13706 = vmatpush3.bf16.msra.mxu1 %v14849_v40 }
 0x814   : > { %13707 = vmatprep.subr.bf16.mxu1 %v14850_v45 }
 0x817   : > { %13708 = vmatpush3.bf16.msra.mxu1 %v14850_v45 }
 0x818   : > { %13709 = vmatprep.subr.bf16.mxu1 %v14851_v36 }
 0x81a   : > { %13674 = vmatmul.mubr.bf16.gmra.mrb[36].mxu1 %v19234_v33 }
 0x81b   : > { %13677 = vmatprep.mubr.bf16.mxu1 %v19235_v54  ;;  %13710 = vmatpush3.bf16.msra.mxu1 %v14851_v36  ;;  %v19256_v36 = vld [vmem:[#allocation3_spill] sm:$0xff]  ;;  %v19257_v54 = vld [vmem:[#allocation4_spill] sm:$0xff] }
 0x81c   : > { %13711 = vmatprep.subr.bf16.mxu1 %v14852_v20 }
 0x81f   : > { %13712 = vmatpush3.bf16.msra.mxu1 %v14852_v20 }
 0x820   : > { %13713 = vmatprep.subr.bf16.mxu1 %v14853_v35 }
 0x822   : > { %13678 = vmatmul.mubr.bf16.gmra.mrb[40].mxu1 %v19236_v7 }
 0x823   : > { %13681 = vmatprep.mubr.bf16.mxu1 %v19237_v62  ;;  %13714 = vmatpush3.bf16.msra.mxu1 %v14853_v35  ;;  %v19259_v62 = vld [vmem:[#allocation6_spill] sm:$0xff] }
 0x824   : > { %13715 = vmatprep.subr.bf16.mxu1 %v14854_v25 }
 0x827   : > { %13716 = vmatpush3.bf16.msra.mxu1 %v14854_v25  ;;  %v19258_v25 = vld [vmem:[#allocation5_spill] sm:$0xff] }
 0x82a   : > { %13682 = vmatmul.mubr.bf16.gmra.mrb[44].mxu1 %v19238_v1 }
 0x82b   : > { %13685 = vmatprep.mubr.bf16.mxu1 %v19239_v11 }
 0x832   : > { %13686 = vmatmul.mubr.bf16.gmra.mrb[48].mxu1 %v17720_v49  ;;  %v8959_v49 = vsel %vm3479_vm4, %v17745_v8, %v8958_v22  ;;  %v19246_v8 = vld [vmem:[#allocation96_spill] sm:$0xff] }
 0x833   : > { %13689 = vmatprep.mubr.bf16.mxu1 %v19240_v6 }
 0x83a   : > { %13690 = vmatmul.mubr.bf16.gmra.mrb[52].mxu1 %v17734_v52  ;;  %v19241_v52 = vld [vmem:[#allocation91_spill] sm:$0xff] }
 0x83b   : > { %13693 = vmatprep.mubr.bf16.mxu1 %v17738_v55  ;;  %v19242_v55 = vld [vmem:[#allocation92_spill] sm:$0xff] }
 0x842   : > { %13694 = vmatmul.mubr.bf16.gmra.mrb[56].mxu1 %v17743_v39  ;;  %v19244_v39 = vld [vmem:[#allocation94_spill] sm:$0xff] }
 0x843   : > { %13697 = vmatprep.mubr.bf16.mxu1 %v17758_v44  ;;  %v19245_v44 = vld [vmem:[#allocation95_spill] sm:$0xff] }
 0x84a   : > { %13698 = vmatmul.mubr.bf16.gmra.mrb[60].mxu1 %v8959_v49 }
 0x84b   : > { %13717 = vmatprep.mubr.bf16.mxu1 %v17761_v2  ;;  %v19248_v2 = vld [vmem:[#allocation98_spill] sm:$0xff] }
 0x852   : > { %13718 = vmatmul.mubr.bf16.vlgmr.msra.gmra.mrb[28].mxu1 %v17752_v31  ;;  %v19249_v31 = vld [vmem:[#allocation99_spill] sm:$0xff] }
 0x853   : > { %13721 = vmatprep.mubr.bf16.mxu1 %v17764_v50  ;;  %v19250_v50 = vld [vmem:[#allocation100_spill] sm:$0xff] }
 0x85a   : > { %13722 = vmatmul.mubr.bf16.gmra.mrb[32].mxu1 %v19241_v52 }
 0x85b   : > { %13725 = vmatprep.mubr.bf16.mxu1 %v19242_v55 }
 0x862   : > { %13726 = vmatmul.mubr.bf16.gmra.mrb[36].mxu1 %v19243_v16 }
 0x863   : > { %13729 = vmatprep.mubr.bf16.mxu1 %v19244_v39 }
 0x86a   : > { %13730 = vmatmul.mubr.bf16.gmra.mrb[40].mxu1 %v17794_v13  ;;  %v9773_v13 = vld [vmem:[%s18887_s9] sm:$0xff] }
 0x86b   : > { %13733 = vmatprep.mubr.bf16.mxu1 %v19245_v44  ;;  %v18168_v56 = vpack.c.bf16 %v9774_v14, %v9773_v13 }
 0x86d   : > { %13935 = vmatpush3.bf16.msra.mxu0 %v18168_v56 }
 0x86e   : > { %13936 = vmatprep.subr.bf16.mxu0 %v19255_v38 }
 0x871   : > { %13938 = vmatpush3.bf16.msra.mxu0 %v18178_v27 }
 0x872   : > { %13734 = vmatmul.mubr.bf16.gmra.mrb[44].mxu1 %v19246_v8  ;;  %13939 = vmatprep.subr.bf16.mxu0 %v19255_v38 }
 0x873   : > { %13737 = vmatprep.mubr.bf16.mxu1 %v19247_v26 }
 0x875   : > { %13941 = vmatpush3.bf16.msra.mxu0 %v18188_v19 }
 0x876   : > { %13942 = vmatprep.subr.bf16.mxu0 %v19255_v38 }
 0x879   : > { %13944 = vmatpush3.bf16.msra.mxu0 %v18198_v5 }
 0x87a   : > { %13738 = vmatmul.mubr.bf16.gmra.mrb[48].mxu1 %v19248_v2  ;;  %13945 = vmatprep.subr.bf16.mxu0 %v19255_v38  ;;  %v19260_v2 = vld [vmem:[#allocation7_spill] sm:$0xff] }
 0x87b   : > { %13741 = vmatprep.mubr.bf16.mxu1 %v19249_v31 }
 0x87d   : > { %13947 = vmatpush3.bf16.msra.mxu0 %v18208_v43 }
 0x87e   : > { %13948 = vmatprep.subr.bf16.mxu0 %v19255_v38 }
 0x881   : > { %13950 = vmatpush3.bf16.msra.mxu0 %v18218_v32 }
 0x882   : > { %13742 = vmatmul.mubr.bf16.gmra.mrb[52].mxu1 %v19250_v50  ;;  %13951 = vmatprep.subr.bf16.mxu0 %v19255_v38 }
 0x883   : > { %13745 = vmatprep.mubr.bf16.mxu1 %v19251_v46 }
 0x885   : > { %13953 = vmatpush3.bf16.msra.mxu0 %v18231_v4 }
 0x886   : > { %13954 = vmatprep.subr.bf16.mxu0 %v19255_v38 }
 0x889   : > { %13956 = vmatpush3.bf16.msra.mxu0 %v18237_v15 }
 0x88a   : > { %13746 = vmatmul.mubr.bf16.gmra.mrb[56].mxu1 %v19252_v21  ;;  %13957 = vmatprep.subr.bf16.mxu0 %v19255_v38  ;;  %v19261_v21 = vld [vmem:[#allocation9_spill] sm:$0xff] }
 0x88b   : > { %13749 = vmatprep.mubr.bf16.mxu1 %v19253_v51 }
 0x892   : > { %13750 = vmatmul.mubr.bf16.gmra.mrb[60].mxu1 %v19254_v18 }
 0x925   : > { %v13719_v37 = vpop.f32.mrb[28].mxu1 }
 0x926   : > { %v9397_v60 = vpop.f32.mrb[29].mxu1  ;;  %v18248_v23 = vadd.f32 %v13719_v37, %v18245_v24 }
 0x927   : > { %v18251_v40 = vadd.f32 %v18245_v24, %v9397_v60  ;;  %v13720_v45 = vpop.f32.mrb[30].mxu1 }
 0x928   : > { %v18254_v17 = vadd.f32 %v13720_v45, %v18245_v24  ;;  %v9400_v29 = vpop.f32.mrb[31].mxu1  ;;  %v9621_v35 = vmul.f32 %v18248_v23, %v19257_v54 }
 0x929   : > { %v9619_v20 = vmul.f32 %v18251_v40, %v19256_v36  ;;  %v18259_v33 = vadd.f32 %v18245_v24, %v9400_v29 }
 0x92a   : > { %v9622_v1 = vmul.f32 %v18254_v17, %v19259_v62  ;;  %v9698_v22 = vmul.f32 %v9621_v35, %v9621_v35 }
 0x92b   : > { %v9620_v7 = vmul.f32 %v18259_v33, %v19258_v25  ;;  %v9696_v11 = vmul.f32 %v9619_v20, %v9619_v20 }
 0x92c   : > { %v9699_v39 = vmul.f32 %v9622_v1, %v9622_v1 }
 0x92d   : > { %v9655_v6 = vadd.f32 %v9620_v7, %v9619_v20  ;;  %v9697_v0 = vmul.f32 %v9620_v7, %v9620_v7  ;;  %v13723_v61 = vpop.f32.mrb[32].mxu1  ;;  %v19264_v20 = vld [vmem:[#allocation11_spill] sm:$0xff]  ;;  %v19265_v7 = vld [vmem:[#allocation13_spill] sm:$0xff] }
 0x92e   : > { %v18268_v42 = vadd.f32 %v13723_v61, %v18245_v24  ;;  %v9413_v58 = vpop.f32.mrb[33].mxu1 }
 0x92f   : > { %v9656_v49 = vadd.f32 %v9655_v6, %v9621_v35  ;;  %v9732_v52 = vadd.f32 %v9697_v0, %v9696_v11  ;;  %v18271_v55 = vadd.f32 %v18245_v24, %v9413_v58  ;;  %v13724_v16 = vpop.f32.mrb[34].mxu1  ;;  %v19266_v0 = vld [vmem:[#allocation12_spill] sm:$0xff]  ;;  %v19267_v58 = vld [vmem:[#allocation14_spill] sm:$0xff] }
 0x930   : > { %v18274_v44 = vadd.f32 %v13724_v16, %v18245_v24  ;;  %v9416_v8 = vpop.f32.mrb[35].mxu1  ;;  %v9625_v51 = vmul.f32 %v18268_v42, %v19261_v21 }
 0x931   : > { %v9733_v26 = vadd.f32 %v9732_v52, %v9698_v22  ;;  %v9623_v31 = vmul.f32 %v18271_v55, %v19260_v2  ;;  %v9657_v50 = vadd.f32 %v9656_v49, %v9622_v1  ;;  %v18279_v46 = vadd.f32 %v18245_v24, %v9416_v8 }
 0x932   : > { %v9626_v59 = vmul.f32 %v18274_v44, %v19263_v41  ;;  %v9702_v30 = vmul.f32 %v9625_v51, %v9625_v51 }
 0x933   : > { %v9658_v18 = vadd.f32 %v9657_v50, %v9623_v31  ;;  %v9700_v13 = vmul.f32 %v9623_v31, %v9623_v31  ;;  %v9734_v14 = vadd.f32 %v9733_v26, %v9699_v39  ;;  %v9624_v3 = vmul.f32 %v18279_v46, %v19262_v28 }
 0x934   : > { %v9703_v60 = vmul.f32 %v9626_v59, %v9626_v59 }
 0x935   : > { %v9735_v10 = vadd.f32 %v9734_v14, %v9700_v13  ;;  %v9659_v63 = vadd.f32 %v9658_v18, %v9624_v3  ;;  %v9701_v57 = vmul.f32 %v9624_v3, %v9624_v3  ;;  %v13727_v9 = vpop.f32.mrb[36].mxu1  ;;  %v19268_v3 = vld [vmem:[#allocation15_spill] sm:$0xff] }
 0x936   : > { %v18288_v53 = vadd.f32 %v13727_v9, %v18245_v24  ;;  %v9429_v47 = vpop.f32.mrb[37].mxu1 }
 0x937   : > { %v9660_v12 = vadd.f32 %v9659_v63, %v9625_v51  ;;  %v9736_v34 = vadd.f32 %v9735_v10, %v9701_v57  ;;  %v18291_v48 = vadd.f32 %v18245_v24, %v9429_v47  ;;  %v13728_v37 = vpop.f32.mrb[38].mxu1  ;;  %v19269_v63 = vld [vmem:[#allocation19_spill] sm:$0xff] }
 0x938   : > { %v18294_v45 = vadd.f32 %v13728_v37, %v18245_v24  ;;  %v9432_v29 = vpop.f32.mrb[39].mxu1  ;;  %v9629_v62 = vmul.f32 %v18288_v53, %v19265_v7  ;;  %v19271_v37 = vld [vmem:[#allocation20_spill] sm:$0xff] }
 0x939   : > { %v9737_v36 = vadd.f32 %v9736_v34, %v9702_v30  ;;  %v9627_v54 = vmul.f32 %v18291_v48, %v19264_v20  ;;  %v9661_v35 = vadd.f32 %v9660_v12, %v9626_v59  ;;  %v18299_v25 = vadd.f32 %v18245_v24, %v9432_v29  ;;  %v19270_v12 = vld [vmem:[#allocation16_spill] sm:$0xff] }
 0x93a   : > { %v9630_v22 = vmul.f32 %v18294_v45, %v19267_v58  ;;  %v9706_v2 = vmul.f32 %v9629_v62, %v9629_v62 }
 0x93b   : > { %v9662_v1 = vadd.f32 %v9661_v35, %v9627_v54  ;;  %v9704_v11 = vmul.f32 %v9627_v54, %v9627_v54  ;;  %v9738_v6 = vadd.f32 %v9737_v36, %v9703_v60  ;;  %v9628_v61 = vmul.f32 %v18299_v25, %v19266_v0 }
 0x93c   : > { %v9707_v18 = vmul.f32 %v9630_v22, %v9630_v22 }
 0x93d   : > { %v9739_v49 = vadd.f32 %v9738_v6, %v9704_v11  ;;  %v9663_v52 = vadd.f32 %v9662_v1, %v9628_v61  ;;  %v9705_v16 = vmul.f32 %v9628_v61, %v9628_v61  ;;  %v13731_v39 = vpop.f32.mrb[40].mxu1 }
 0x93e   : > { %v18308_v8 = vadd.f32 %v13731_v39, %v18245_v24  ;;  %v9445_v26 = vpop.f32.mrb[41].mxu1 }
 0x93f   : > { %v9664_v31 = vadd.f32 %v9663_v52, %v9629_v62  ;;  %v9740_v50 = vadd.f32 %v9739_v49, %v9705_v16  ;;  %v18311_v21 = vadd.f32 %v18245_v24, %v9445_v26  ;;  %v13732_v51 = vpop.f32.mrb[42].mxu1  ;;  %v19272_v52 = vld [vmem:[#allocation22_spill] sm:$0xff] }
 0x940   : > { %v18314_v13 = vadd.f32 %v13732_v51, %v18245_v24  ;;  %v9448_v14 = vpop.f32.mrb[43].mxu1  ;;  %v9633_v57 = vmul.f32 %v18308_v8, %v19269_v63 }
 0x941   : > { %v9741_v28 = vadd.f32 %v9740_v50, %v9706_v2  ;;  %v9631_v41 = vmul.f32 %v18311_v21, %v19268_v3  ;;  %v9665_v59 = vadd.f32 %v9664_v31, %v9630_v22  ;;  %v18319_v10 = vadd.f32 %v18245_v24, %v9448_v14  ;;  %v19273_v2 = vld [vmem:[#allocation25_spill] sm:$0xff]  ;;  %v19274_v14 = vld [vmem:[#allocation24_spill] sm:$0xff] }
 0x942   : > { %v9634_v60 = vmul.f32 %v18314_v13, %v19271_v37  ;;  %v9710_v62 = vmul.f32 %v9633_v57, %v9633_v57  ;;  %v19275_v3 = vld [vmem:[#allocation28_spill] sm:$0xff] }
 0x943   : > { %v9666_v9 = vadd.f32 %v9665_v59, %v9631_v41  ;;  %v9708_v47 = vmul.f32 %v9631_v41, %v9631_v41  ;;  %v9742_v30 = vadd.f32 %v9741_v28, %v9707_v18  ;;  %v9632_v34 = vmul.f32 %v18319_v10, %v19270_v12 }
 0x944   : > { %v9711_v61 = vmul.f32 %v9634_v60, %v9634_v60 }
 0x945   : > { %v9743_v29 = vadd.f32 %v9742_v30, %v9708_v47  ;;  %v9667_v36 = vadd.f32 %v9666_v9, %v9632_v34  ;;  %v9709_v20 = vmul.f32 %v9632_v34, %v9632_v34  ;;  %v13735_v54 = vpop.f32.mrb[44].mxu1 }
 0x946   : > { %v18328_v35 = vadd.f32 %v13735_v54, %v18245_v24  ;;  %v9461_v7 = vpop.f32.mrb[45].mxu1 }
 0x947   : > { %v9668_v1 = vadd.f32 %v9667_v36, %v9633_v57  ;;  %v9744_v11 = vadd.f32 %v9743_v29, %v9709_v20  ;;  %v18331_v6 = vadd.f32 %v18245_v24, %v9461_v7  ;;  %v13736_v0 = vpop.f32.mrb[46].mxu1 }
 0x948   : > { %v18334_v58 = vadd.f32 %v13736_v0, %v18245_v24  ;;  %v9464_v22 = vpop.f32.mrb[47].mxu1  ;;  %v9637_v31 = vmul.f32 %v18328_v35, %v19273_v2 }
 0x949   : > { %v9745_v49 = vadd.f32 %v9744_v11, %v9710_v62  ;;  %v9635_v16 = vmul.f32 %v18331_v6, %v19272_v52  ;;  %v9669_v39 = vadd.f32 %v9668_v1, %v9634_v60  ;;  %v18339_v26 = vadd.f32 %v18245_v24, %v9464_v22  ;;  %v19276_v62 = vld [vmem:[#allocation29_spill] sm:$0xff] }
 0x94a   : > { %v9638_v41 = vmul.f32 %v18334_v58, %v19275_v3  ;;  %v9714_v12 = vmul.f32 %v9637_v31, %v9637_v31 }
 0x94b   : > { %v9670_v50 = vadd.f32 %v9669_v39, %v9635_v16  ;;  %v9712_v51 = vmul.f32 %v9635_v16, %v9635_v16  ;;  %v9746_v18 = vadd.f32 %v9745_v49, %v9711_v61  ;;  %v9636_v28 = vmul.f32 %v18339_v26, %v19274_v14  ;;  %v19277_v61 = vld [vmem:[#allocation31_spill] sm:$0xff]  ;;  %v19278_v39 = vld [vmem:[#allocation30_spill] sm:$0xff] }
 0x94c   : > { %v9715_v36 = vmul.f32 %v9638_v41, %v9638_v41 }
 0x94d   : > { %v9747_v59 = vadd.f32 %v9746_v18, %v9712_v51  ;;  %v9671_v63 = vadd.f32 %v9670_v50, %v9636_v28  ;;  %v9713_v57 = vmul.f32 %v9636_v28, %v9636_v28  ;;  %v13739_v9 = vpop.f32.mrb[48].mxu1 }
 0x94e   : > { %v18348_v47 = vadd.f32 %v13739_v9, %v18245_v24  ;;  %v9477_v30 = vpop.f32.mrb[49].mxu1 }
 0x94f   : > { %v9672_v34 = vadd.f32 %v9671_v63, %v9637_v31  ;;  %v9748_v37 = vadd.f32 %v9747_v59, %v9713_v57  ;;  %v18351_v60 = vadd.f32 %v18245_v24, %v9477_v30  ;;  %v13740_v29 = vpop.f32.mrb[50].mxu1  ;;  %v19279_v31 = vld [vmem:[#allocation32_spill] sm:$0xff] }
 0x950   : > { %v18354_v20 = vadd.f32 %v13740_v29, %v18245_v24  ;;  %v9480_v54 = vpop.f32.mrb[51].mxu1  ;;  %v9641_v22 = vmul.f32 %v18348_v47, %v19277_v61  ;;  %v19280_v29 = vld [vmem:[#allocation33_spill] sm:$0xff] }
 0x951   : > { %v9749_v7 = vadd.f32 %v9748_v37, %v9714_v12  ;;  %v9639_v1 = vmul.f32 %v18351_v60, %v19276_v62  ;;  %v9673_v11 = vadd.f32 %v9672_v34, %v9638_v41  ;;  %v18359_v0 = vadd.f32 %v18245_v24, %v9480_v54  ;;  %v19282_v62 = vld [vmem:[#allocation35_spill] sm:$0xff] }
 0x952   : > { %v9642_v50 = vmul.f32 %v18354_v20, %v19279_v31  ;;  %v9718_v59 = vmul.f32 %v9641_v22, %v9641_v22 }
 0x953   : > { %v9674_v49 = vadd.f32 %v9673_v11, %v9639_v1  ;;  %v9716_v52 = vmul.f32 %v9639_v1, %v9639_v1  ;;  %v9750_v16 = vadd.f32 %v9749_v7, %v9715_v36  ;;  %v9640_v2 = vmul.f32 %v18359_v0, %v19278_v39 }
 0x954   : > { %v9719_v12 = vmul.f32 %v9642_v50, %v9642_v50 }
 0x955   : > { %v9751_v51 = vadd.f32 %v9750_v16, %v9716_v52  ;;  %v9675_v18 = vadd.f32 %v9674_v49, %v9640_v2  ;;  %v9717_v14 = vmul.f32 %v9640_v2, %v9640_v2  ;;  %v13743_v28 = vpop.f32.mrb[52].mxu1  ;;  %v19283_v52 = vld [vmem:[#allocation34_spill] sm:$0xff] }
 0x956   : > { %v18368_v3 = vadd.f32 %v13743_v28, %v18245_v24  ;;  %v9493_v41 = vpop.f32.mrb[53].mxu1 }
 0x957   : > { %v9676_v63 = vadd.f32 %v9675_v18, %v9641_v22  ;;  %v9752_v57 = vadd.f32 %v9751_v51, %v9717_v14  ;;  %v18371_v9 = vadd.f32 %v18245_v24, %v9493_v41  ;;  %v13744_v30 = vpop.f32.mrb[54].mxu1 }
 0x958   : > { %v9496_v34 = vpop.f32.mrb[55].mxu1  ;;  %v9645_v1 = vmul.f32 %v18368_v3, %v19282_v62  ;;  %v18381_v11 = vadd.f32 %v13744_v30, %v18245_v24 }
 0x959   : > { %v9753_v37 = vadd.f32 %v9752_v57, %v9718_v59  ;;  %v9643_v36 = vmul.f32 %v18371_v9, %v19280_v29  ;;  %v9677_v54 = vadd.f32 %v9676_v63, %v9642_v50  ;;  %v18376_v7 = vadd.f32 %v18245_v24, %v9496_v34  ;;  %v19284_v50 = vld [vmem:[#allocation36_spill] sm:$0xff] }
 0x95a   : > { %v9646_v18 = vmul.f32 %v18381_v11, %v19284_v50  ;;  %v9722_v28 = vmul.f32 %v9645_v1, %v9645_v1 }
 0x95b   : > { %19281 = vst [vmem:[#allocation49_spill] sm:$0xff] %v18376_v7  ;;  %v9678_v61 = vadd.f32 %v9677_v54, %v9643_v36  ;;  %v9720_v22 = vmul.f32 %v9643_v36, %v9643_v36  ;;  %v9754_v49 = vadd.f32 %v9753_v37, %v9719_v12  ;;  %v9644_v16 = vmul.f32 %v18376_v7, %v19283_v52  ;;  %v19287_v37 = vld [vmem:[#allocation37_spill] sm:$0xff] }
 0x95c   : > { %v9723_v62 = vmul.f32 %v9646_v18, %v9646_v18 }
 0x95d   : > { %v9755_v39 = vadd.f32 %v9754_v49, %v9720_v22  ;;  %v9679_v2 = vadd.f32 %v9678_v61, %v9644_v16  ;;  %v9721_v31 = vmul.f32 %v9644_v16, %v9644_v16  ;;  %v13747_v51 = vpop.f32.mrb[56].mxu1  ;;  %v19290_v22 = vld [vmem:[#allocation38_spill] sm:$0xff] }
 0x95e   : > { %v9509_v14 = vpop.f32.mrb[57].mxu1  ;;  %v18391_v30 = vadd.f32 %v13747_v51, %v18245_v24 }
 0x95f   : > { %v9680_v41 = vadd.f32 %v9679_v2, %v9645_v1  ;;  %v9756_v59 = vadd.f32 %v9755_v39, %v9721_v31  ;;  %v18388_v63 = vadd.f32 %v18245_v24, %v9509_v14  ;;  %v13748_v57 = vpop.f32.mrb[58].mxu1  ;;  %v19291_v39 = vld [vmem:[#allocation39_spill] sm:$0xff]  ;;  %v19292_v14 = vld [vmem:[#allocation40_spill] sm:$0xff] }
 0x960   : > { %19286 = vst [vmem:[#allocation18_spill] sm:$0xff] %v18391_v30  ;;  %v9512_v12 = vpop.f32.mrb[59].mxu1  ;;  %v18399_v1 = vadd.f32 %v13748_v57, %v18245_v24  ;;  %v9649_v2 = vmul.f32 %v18391_v30, %v19291_v39 }
 0x961   : > { %19285 = vst [vmem:[#allocation17_spill] sm:$0xff] %v18388_v63  ;;  %v9757_v34 = vadd.f32 %v9756_v59, %v9722_v28  ;;  %v9647_v29 = vmul.f32 %v18388_v63, %v19287_v37  ;;  %v9681_v36 = vadd.f32 %v9680_v41, %v9646_v18  ;;  %v18396_v54 = vadd.f32 %v18245_v24, %v9512_v12 }
 0x962   : > { %19289 = vst [vmem:[#allocation23_spill] sm:$0xff] %v18399_v1  ;;  %v9650_v28 = vmul.f32 %v18399_v1, %v19292_v14  ;;  %v9726_v14 = vmul.f32 %v9649_v2, %v9649_v2 }
 0x963   : > { %19288 = vst [vmem:[#allocation21_spill] sm:$0xff] %v18396_v54  ;;  %v9682_v61 = vadd.f32 %v9681_v36, %v9647_v29  ;;  %v9648_v49 = vmul.f32 %v18396_v54, %v19290_v22  ;;  %v9724_v52 = vmul.f32 %v9647_v29, %v9647_v29  ;;  %v9758_v16 = vadd.f32 %v9757_v34, %v9723_v62  ;;  %v19294_v34 = vld [vmem:[#allocation41_spill] sm:$0xff]  ;;  %v19298_v54 = vld [vmem:[#allocation44_spill] sm:$0xff] }
 0x964   : > { %v9727_v1 = vmul.f32 %v9650_v28, %v9650_v28 }
 0x965   : > { %v9683_v31 = vadd.f32 %v9682_v61, %v9648_v49  ;;  %v13751_v51 = vpop.f32.mrb[60].mxu1  ;;  %v9759_v57 = vadd.f32 %v9758_v16, %v9724_v52  ;;  %v9725_v12 = vmul.f32 %v9648_v49, %v9648_v49  ;;  %v19297_v49 = vld [vmem:[#allocation43_spill] sm:$0xff] }
 0x966   : > { %v9525_v50 = vpop.f32.mrb[61].mxu1  ;;  %v18411_v29 = vadd.f32 %v13751_v51, %v18245_v24 }
 0x967   : > { %v9684_v41 = vadd.f32 %v9683_v31, %v9649_v2  ;;  %v18408_v18 = vadd.f32 %v18245_v24, %v9525_v50  ;;  %v13752_v59 = vpop.f32.mrb[62].mxu1  ;;  %v19296_v31 = vld [vmem:[#allocation42_spill] sm:$0xff]  ;;  %v9760_v52 = vadd.f32 %v9759_v57, %v9725_v12 }
 0x968   : > { %v9528_v37 = vpop.f32.mrb[63].mxu1  ;;  %v18419_v39 = vadd.f32 %v13752_v59, %v18245_v24  ;;  %v9653_v16 = vmul.f32 %v18411_v29, %v19297_v49 }
 0x969   : > { %19293 = vst [vmem:[#allocation27_spill] sm:$0xff] %v18408_v18  ;;  %v9651_v36 = vmul.f32 %v18408_v18, %v19294_v34  ;;  %v9685_v62 = vadd.f32 %v9684_v41, %v9650_v28  ;;  %v18416_v61 = vadd.f32 %v18245_v24, %v9528_v37  ;;  %v9761_v18 = vadd.f32 %v9760_v52, %v9726_v14  ;;  %v14866_v52 = vld [vmem:[%s15326_s18 + $0x10] sm:$0xff]  }
 0x96a   : > { %v9654_v34 = vmul.f32 %v18419_v39, %v19298_v54  ;;  %v19299_v54 = vmov 0.0  }
 0x96b   : > { %19295 = vst [vmem:[#allocation26_spill] sm:$0xff] %v18416_v61  ;;  %v9686_v22 = vadd.f32 %v9685_v62, %v9651_v36  ;;  %v9652_v50 = vmul.f32 %v18416_v61, %v19296_v31  ;;  %v9728_v63 = vmul.f32 %v9651_v36, %v9651_v36  ;;  %v9762_v24 = vadd.f32 %v9761_v18, %v9727_v1 }
 0x96c   : > { %v9731_v28 = vmul.f32 %v9654_v34, %v9654_v34 }
 0x96d   : > { %v9687_v51 = vadd.f32 %v9686_v22, %v9652_v50  ;;  %v9763_v7 = vadd.f32 %v9762_v24, %v9728_v63  ;;  %v9729_v57 = vmul.f32 %v9652_v50, %v9652_v50  ;;  %v9730_v22 = vmul.f32 %v9653_v16, %v9653_v16  ;;  %v14865_v50 = vld [vmem:[%s15326_s18 + $0x8] sm:$0xfe]  }
 0x96e   : > { %v10576_v14 = vshrl.u32 %v14865_v50, 16 }
 0x96f   : > { %v9688_v41 = vadd.f32 %v9687_v51, %v9653_v16  ;;  %v9764_v61 = vadd.f32 %v9763_v7, %v9729_v57 }
 0x970   : > { %v10578_v24 = vrot.slane %v10576_v14, 1 }
 0x971   : > { %v9689_v37 = vadd.f32 %v9688_v41, %v9654_v34  ;;  %v9765_v2 = vadd.f32 %v9764_v61, %v9730_v22  ;;  %v10579_v34 = vshll.u32 %v14865_v50, 16  ;;  %v10584_v41 = vshrl.u32 %v14866_v52, 16  ;;  %v14858_v22 = vld [vmem:[%s18892_s14 + $0x8] sm:$0xff]   ;;  %v14870_v50 = vld [vmem:[%s15326_s18 + $0x30] sm:$0xff]  }
 0x973   : > { %v9690_v62 = vrot.slane %v9689_v37, 4  ;;  %v9766_v1 = vadd.f32 %v9765_v2, %v9731_v28  ;;  %v14859_v28 = vld [vmem:[%s18892_s14 + $0x10] sm:$0xff]  }
 0x975   : > { %v9691_v59 = vadd.f32 %v9690_v62, %v9689_v37  ;;  %v9767_v7 = vrot.slane %v9766_v1, 4  ;;  %v10587_v37 = vshll.u32 %v14866_v52, 16 }
 0x977   : > { %v9692_v30 = vrot.slane %v9691_v59, 2  ;;  %v10589_v57 = vrot.slane %v10587_v37, 2 }
 0x979   : > { %v9693_v31 = vadd.f32 %v9692_v30, %v9691_v59  ;;  %v10581_v59 = vrot.slane %v10579_v34, 2  ;;  %v10620_v34 = vshrl.u32 %v14870_v50, 16 }
 0x97b   : > { %v9694_v12 = vrot.slane %v9693_v31, 1 }
 0x97d   : > { %v9695_v49 = vadd.f32 %v9694_v12, %v9693_v31  ;;  %v10586_v31 = vrot.slane %v10584_v41, 1  ;;  %v10582_v12 = vor.u32 %v10581_v59, %v10578_v24  ;;  %v10623_v41 = vshll.u32 %v14870_v50, 16  ;;  %v14871_v59 = vld [vmem:[%s15326_s18 + $0x38] sm:$0xff]  }
 0x97f   : > { %13786 = vmatmul.mubr.f32.vlgmr.msra.gmra.mrb[36].mxu0 %v9695_v49  ;;  %v10590_v49 = vor.u32 %v10589_v57, %v10586_v31  ;;  %v10622_v57 = vrot.slane %v10620_v34, 1 }
 0x980   : > { %13959 = vmatpush3.bf16.msra.mxu0 %v18168_v56  ;;  %13820 = vmatprep.mubr.msk.f32.mxu0 %vm15216_vm6, %v19299_v54  ;;  %v9768_v56 = vadd.f32 %v9767_v7, %v9766_v1  ;;  %v14860_v1 = vld [vmem:[%s18892_s14 + $0x18] sm:$0xff]   ;;  %v14861_v7 = vld [vmem:[%s18892_s14 + $0x20] sm:$0xff]  }
 0x981   : > { %13960 = vmatprep.subr.bf16.mxu0 %v19255_v38 }
 0x982   : > { %v9769_v63 = vrot.slane %v9768_v56, 2 }
 0x984   : > { %13962 = vmatpush3.bf16.msra.mxu0 %v18178_v27  ;;  %v9770_v27 = vadd.f32 %v9769_v63, %v9768_v56  ;;  %v14867_v56 = vld [vmem:[%s15326_s18 + $0x18] sm:$0xff]   ;;  %v14862_v63 = vld [vmem:[%s18892_s14 + $0x28] sm:$0xff]  }
 0x985   : > { %13963 = vmatprep.subr.bf16.mxu0 %v19255_v38 }
 0x988   : > { %13965 = vmatpush3.bf16.msra.mxu0 %v18188_v19  ;;  %v9771_v19 = vrot.slane %v9770_v27, 1 }
 0x989   : > { %13966 = vmatprep.subr.bf16.mxu0 %v19255_v38 }
 0x98c   : > { %13968 = vmatpush3.bf16.msra.mxu0 %v18198_v5  ;;  %v9772_v5 = vadd.f32 %v9771_v19, %v9770_v27  ;;  %v14868_v27 = vld [vmem:[%s15326_s18 + $0x20] sm:$0xff]   ;;  %v10593_v19 = vshrl.u32 %v14867_v56, 16 }
 0x98d   : > { %13969 = vmatprep.subr.bf16.mxu0 %v19255_v38 }
 0x990   : > { %13971 = vmatpush3.bf16.msra.mxu0 %v18208_v43  ;;  %v9936_v43 = vld [vmem:[%s18888_s10] sm:$0xff] }
 0x991   : > { %13972 = vmatprep.subr.bf16.mxu0 %v19255_v38 }
 0x994   : > { %13974 = vmatpush3.bf16.msra.mxu0 %v18218_v32 }
 0x995   : > { %13975 = vmatprep.subr.bf16.mxu0 %v19255_v38 }
 0x998   : > { %13977 = vmatpush3.bf16.msra.mxu0 %v18231_v4 }
 0x999   : > { %13978 = vmatprep.subr.bf16.mxu0 %v19255_v38 }
 0x99c   : > { %13980 = vmatpush3.bf16.msra.mxu0 %v18237_v15  ;;  %v14857_v15 = vld [vmem:[%s18892_s14] sm:$0xff]  }
 0x99d   : > { %13823 = vmatprep.subr.mxu0 %v19299_v54 }
 0x99f   : > { %13821 = vmatmul.mubr.f32.vlgmr.msra.gmra.mrb[38].mxu0 %v9772_v5  ;;  %v10596_v5 = vshll.u32 %v14867_v56, 16 }
 0x9a0   : > { %13825 = vmatprep.mubr.msk.f32.mxu0 %vm15216_vm6, %v19299_v54  ;;  %13824 = vmatpush3.msra.mxu0 %v9936_v43 }
 0x9a1   : > { %13828 = vmatprep.subr.mxu0 %v19299_v54 }
 0xa52   : > { %v9855_v38 = vpop.f32.mrb[36].mxu0 }
 0xa53   : > { %v9929_v32 = vmul.f32 0.00390625, %v9855_v38  ;;  %v13787_v4 = vpop.f32.mrb[37].mxu0  ;;  %v10602_v38 = vshrl.u32 %v14868_v27, 16 }
 0xa54   : > { %v10595_v4 = vrot.slane %v10593_v19, 1  ;;  %v14873_v19 = vld [vmem:[%s15326_s18 + $0x48] sm:$0xff]  }
 0xa55   : > { %13826 = vmatmul.mubr.msk.f32.vlgmr.msra.gmra.mrb[40].mxu0 %vm4809_vm7, %v9929_v32  ;;  %v9931_v18 = vmul.f32 %v9929_v32, %v9929_v32  ;;  %v10605_v32 = vshll.u32 %v14868_v27, 16 }
 0xa56   : > { %13829 = vmatpush3.msra.mxu0 %v9936_v43  ;;  %13830 = vmatprep.mubr.msk.f32.mxu0 %vm15216_vm6, %v19299_v54  ;;  %v10591_v54 = vsel %vm2207_vm2, %v10582_v12, %v10590_v49  ;;  %v14863_v43 = vld [vmem:[%s18892_s14 + $0x30] sm:$0xff]   ;;  %v10625_v12 = vrot.slane %v10623_v41, 2 }
 0xa57   : > { %13833 = vmatprep.subr.bf16.mxu0 %v14857_v15 }
 0xa72   : > { %v9925_v30 = vpop.f32.mrb[38].mxu0 }
 0xa73   : > { %v9930_v36 = vmul.f32 0.00390625, %v9925_v30  ;;  %v13822_v61 = vpop.f32.mrb[39].mxu0  ;;  %v14869_v30 = vld [vmem:[%s15326_s18 + $0x28] sm:$0xff]  }
 0xa74   : > { %v10607_v61 = vrot.slane %v10605_v32, 2  ;;  %v14874_v32 = vld [vmem:[%s15326_s18 + $0x50] sm:$0xff]  }
 0xa75   : > { %v9932_v16 = vsub.f32 %v9930_v36, %v9931_v18  ;;  %v14864_v18 = vld [vmem:[%s18892_s14 + $0x38] sm:$0xff]   ;;  %v10604_v36 = vrot.slane %v10602_v38, 1 }
 0xa77   : > { %v9933_v51 = vmax.f32 %v9932_v16, 0.0  ;;  %v10611_v16 = vshrl.u32 %v14869_v30, 16  ;;  %v10608_v14 = vor.u32 %v10607_v61, %v10604_v36  ;;  %v10656_v36 = vshrl.u32 %v14874_v32, 16 }
 0xa78   : > { %v10659_v61 = vshll.u32 %v14874_v32, 16 }
 0xa79   : > { %v9934_v62 = vadd.f32 1e-05, %v9933_v51  ;;  %v10614_v51 = vshll.u32 %v14869_v30, 16  ;;  %v10650_v30 = vshll.u32 %v14873_v19, 16  ;;  %v10658_v34 = vrot.slane %v10656_v36, 1 }
 0xa7a   : > { %v10661_v41 = vrot.slane %v10659_v61, 2 }
 0xa7b   : > { %15030 = vrsqrt.f32 %v9934_v62  ;;  %v10613_v62 = vrot.slane %v10611_v16, 1  ;;  %v10616_v24 = vrot.slane %v10614_v51, 2  ;;  %v10652_v16 = vrot.slane %v10650_v30, 2  ;;  %v14875_v51 = vld [vmem:[%s15326_s18 + $0x58] sm:$0xff]  }
 0xa7c   : > { %v14879_v30 = vld [vmem:[%s15326_s18 + $0x78] sm:$0xff]  }
 0xa85   : > { %v15031_v2 = vpop.eup %15030 }
 0xa86   : > { %13831 = vmatmul.mubr.msk.f32.vlgmr.msra.gmra.mrb[42].mxu0 %vm4809_vm7, %v15031_v2  ;;  %v10629_v2 = vshrl.u32 %v14871_v59, 16 }
 0xa87   : > { %13834 = vmatpush3.bf16.msra.mxu0 %v14857_v15  ;;  %13849 = vmatprep.mubr.bf16.mxu0 %v10591_v54  ;;  %v10598_v15 = vrot.slane %v10596_v5, 2  ;;  %v10617_v54 = vor.u32 %v10616_v24, %v10613_v62  ;;  %v10665_v24 = vshrl.u32 %v14875_v51, 16 }
 0xa88   : > { %13835 = vmatprep.subr.bf16.mxu0 %v14858_v22 }
 0xa89   : > { %v10599_v52 = vor.u32 %v10598_v15, %v10595_v4  ;;  %v10647_v15 = vshrl.u32 %v14873_v19, 16 }
 0xa8b   : > { %13836 = vmatpush3.bf16.msra.mxu0 %v14858_v22  ;;  %v10600_v37 = vsel %vm2207_vm2, %v10590_v49, %v10599_v52  ;;  %v10609_v31 = vsel %vm2207_vm2, %v10599_v52, %v10608_v14  ;;  %v14872_v22 = vld [vmem:[%s15326_s18 + $0x40] sm:$0xff]   ;;  %v10618_v49 = vsel %vm2207_vm2, %v10608_v14, %v10617_v54  ;;  %v10649_v52 = vrot.slane %v10647_v15, 1 }
 0xa8c   : > { %13837 = vmatprep.subr.bf16.mxu0 %v14859_v28  ;;  %v10641_v56 = vshll.u32 %v14872_v22, 16 }
 0xa8d   : > { %v10653_v62 = vor.u32 %v10652_v16, %v10649_v52  ;;  %v10701_v16 = vshrl.u32 %v14879_v30, 16 }
 0xa8e   : > { %v10643_v38 = vrot.slane %v10641_v56, 2 }
 0xa8f   : > { %13838 = vmatpush3.bf16.msra.mxu0 %v14859_v28  ;;  %v10632_v28 = vshll.u32 %v14871_v59, 16  ;;  %v10668_v59 = vshll.u32 %v14875_v51, 16  ;;  %v10704_v51 = vshll.u32 %v14879_v30, 16 }
 0xa90   : > { %13839 = vmatprep.subr.bf16.mxu0 %v14860_v1 }
 0xa91   : > { %v10634_v27 = vrot.slane %v10632_v28, 2  ;;  %v14877_v28 = vld [vmem:[%s15326_s18 + $0x68] sm:$0xff]  }
 0xa92   : > { %v10686_v19 = vshll.u32 %v14877_v28, 16 }
 0xa93   : > { %13840 = vmatpush3.bf16.msra.mxu0 %v14860_v1  ;;  %v10626_v1 = vor.u32 %v10625_v12, %v10622_v57 }
 0xa94   : > { %13841 = vmatprep.subr.bf16.mxu0 %v14861_v7  ;;  %v10688_v15 = vrot.slane %v10686_v19, 2  ;;  %v14883_v19 = vld [vmem:[%s15326_s18 + $0x98] ss:$0 sps:$4 sm:$0x33]  }
 0xa95   : > { %v10627_v5 = vsel %vm2207_vm2, %v10617_v54, %v10626_v1  ;;  %v10667_v54 = vrot.slane %v10665_v24, 1  ;;  %v10706_v24 = vrot.slane %v10704_v51, 2 }
 0xa97   : > { %13842 = vmatpush3.bf16.msra.mxu0 %v14861_v7  ;;  %v10638_v7 = vshrl.u32 %v14872_v22, 16 }
 0xa98   : > { %13843 = vmatprep.subr.bf16.mxu0 %v14862_v63 }
 0xa9b   : > { %13844 = vmatpush3.bf16.msra.mxu0 %v14862_v63  ;;  %v10631_v63 = vrot.slane %v10629_v2, 1  ;;  %v10670_v2 = vrot.slane %v10668_v59, 2  ;;  %v14881_v59 = vld [vmem:[%s15326_s18 + $0x88] sm:$0xff]  }
 0xa9c   : > { %13845 = vmatprep.subr.bf16.mxu0 %v14863_v43 }
 0xa9d   : > { %v10635_v4 = vor.u32 %v10634_v27, %v10631_v63  ;;  %v10671_v63 = vor.u32 %v10670_v2, %v10667_v54  ;;  %v10683_v27 = vshrl.u32 %v14877_v28, 16  ;;  %v10719_v2 = vshrl.u32 %v14881_v59, 16 }
 0xa9e   : > { %v10722_v28 = vshll.u32 %v14881_v59, 16 }
 0xa9f   : > { %13846 = vmatpush3.bf16.msra.mxu0 %v14863_v43  ;;  %v10640_v43 = vrot.slane %v10638_v7, 1  ;;  %v10636_v50 = vsel %vm2207_vm2, %v10626_v1, %v10635_v4 }
 0xaa0   : > { %13847 = vmatprep.subr.bf16.mxu0 %v14864_v18 }
 0xaa3   : > { %13848 = vmatpush3.bf16.msra.mxu0 %v14864_v18  ;;  %v10644_v18 = vor.u32 %v10643_v38, %v10640_v43 }
 0xaa5   : > { %v10645_v14 = vsel %vm2207_vm2, %v10635_v4, %v10644_v18  ;;  %v10654_v22 = vsel %vm2207_vm2, %v10644_v18, %v10653_v62  ;;  %v10685_v4 = vrot.slane %v10683_v27, 1  ;;  %v10724_v27 = vrot.slane %v10722_v28, 2 }
 0xaa6   : > { %13850 = vmatmul.mubr.bf16.vlgmr.msra.gmra.mrb[44].mxu0 %v10600_v37  ;;  %v14876_v37 = vld [vmem:[%s15326_s18 + $0x60] sm:$0xff]  }
 0xaa7   : > { %13853 = vmatprep.mubr.bf16.mxu0 %v10609_v31  ;;  %v10662_v31 = vor.u32 %v10661_v41, %v10658_v34  ;;  %v10674_v57 = vshrl.u32 %v14876_v37, 16  ;;  %v10677_v12 = vshll.u32 %v14876_v37, 16  ;;  %v10689_v52 = vor.u32 %v10688_v15, %v10685_v4 }
 0xaa8   : > { %v10737_v4 = vshrl.u32 %v14883_v19, 16  ;;  %v10740_v15 = vshll.u32 %v14883_v19, 16 }
 0xaa9   : > { %v10663_v1 = vsel %vm2207_vm2, %v10653_v62, %v10662_v31  ;;  %v10676_v7 = vrot.slane %v10674_v57, 1  ;;  %v10679_v56 = vrot.slane %v10677_v12, 2  ;;  %v10672_v32 = vsel %vm2207_vm2, %v10662_v31, %v10671_v63 }
 0xaaa   : > { %v10703_v62 = vrot.slane %v10701_v16, 1 }
 0xaac   : > { %v10707_v54 = vor.u32 %v10706_v24, %v10703_v62  ;;  %v10085_v24 = vld [vmem:[%s18886_s8] sm:$0x1] }
 0xaae   : > { %13854 = vmatmul.mubr.bf16.gmra.mrb[48].mxu0 %v10618_v49  ;;  %v14878_v49 = vld [vmem:[%s15326_s18 + $0x70] sm:$0xff]  }
 0xaaf   : > { %13857 = vmatprep.mubr.bf16.mxu0 %v10627_v5  ;;  %v10680_v5 = vor.u32 %v10679_v56, %v10676_v7  ;;  %v10692_v43 = vshrl.u32 %v14878_v49, 16  ;;  %v10695_v38 = vshll.u32 %v14878_v49, 16 }
 0xab1   : > { %v10681_v18 = vsel %vm2207_vm2, %v10671_v63, %v10680_v5  ;;  %v10694_v36 = vrot.slane %v10692_v43, 1  ;;  %v10697_v61 = vrot.slane %v10695_v38, 2  ;;  %v10690_v37 = vsel %vm2207_vm2, %v10680_v5, %v10689_v52 }
 0xab2   : > { %v10721_v63 = vrot.slane %v10719_v2, 1 }
 0xab6   : > { %13858 = vmatmul.mubr.bf16.gmra.mrb[52].mxu0 %v10636_v50  ;;  %v14880_v50 = vld [vmem:[%s15326_s18 + $0x80] sm:$0xff]  }
 0xab7   : > { %13861 = vmatprep.mubr.bf16.mxu0 %v10645_v14  ;;  %v10698_v14 = vor.u32 %v10697_v61, %v10694_v36  ;;  %v10710_v34 = vshrl.u32 %v14880_v50, 16  ;;  %v10713_v41 = vshll.u32 %v14880_v50, 16  ;;  %v10739_v36 = vrot.slane %v10737_v4, 1 }
 0xab8   : > { %v10742_v61 = vrot.slane %v10740_v15, 2 }
 0xab9   : > { %v10699_v31 = vsel %vm2207_vm2, %v10689_v52, %v10698_v14  ;;  %v10712_v57 = vrot.slane %v10710_v34, 1  ;;  %v10715_v12 = vrot.slane %v10713_v41, 2  ;;  %v10708_v49 = vsel %vm2207_vm2, %v10698_v14, %v10707_v54  ;;  %v10083_v34 = vld [vmem:[%s18885_s7] sm:$0x1] }
 0xaba   : > { %v10743_v52 = vor.u32 %v10742_v61, %v10739_v36 }
 0xabe   : > { %13862 = vmatmul.mubr.bf16.gmra.mrb[56].mxu0 %v10654_v22  ;;  %v14882_v22 = vld [vmem:[%s15326_s18 + $0x90] sm:$0xff]  }
 0xabf   : > { %13865 = vmatprep.mubr.bf16.mxu0 %v10663_v1  ;;  %v10716_v1 = vor.u32 %v10715_v12, %v10712_v57  ;;  %v10728_v7 = vshrl.u32 %v14882_v22, 16  ;;  %v10731_v56 = vshll.u32 %v14882_v22, 16 }
 0xac1   : > { %v10717_v5 = vsel %vm2207_vm2, %v10707_v54, %v10716_v1  ;;  %v10730_v43 = vrot.slane %v10728_v7, 1  ;;  %v10733_v38 = vrot.slane %v10731_v56, 2 }
 0xac3   : > { %v10734_v30 = vor.u32 %v10733_v38, %v10730_v43 }
 0xac5   : > { %v10744_v16 = vsel %vm2207_vm2, %v10734_v30, %v10743_v52 }
 0xac6   : > { %13866 = vmatmul.mubr.bf16.gmra.mrb[60].mxu0 %v10672_v32  ;;  %v10725_v32 = vor.u32 %v10724_v27, %v10721_v63 }
 0xac7   : > { %13869 = vmatprep.mubr.bf16.mxu0 %v10681_v18 }
 0xac8   : > { %v10726_v18 = vsel %vm2207_vm2, %v10716_v1, %v10725_v32  ;;  %v10735_v50 = vsel %vm2207_vm2, %v10725_v32, %v10734_v30 }
 0xace   : > { %13870 = vmatmul.mubr.bf16.gmra.mrb[64].mxu0 %v10690_v37 }
 0xacf   : > { %13873 = vmatprep.mubr.bf16.mxu0 %v10699_v31  ;;  %v19300_v31 = vld [vmem:[#allocation45_spill] sm:$0xff] }
 0xad6   : > { %13874 = vmatmul.mubr.bf16.gmra.mrb[68].mxu0 %v10708_v49 }
 0xad7   : > { %13877 = vmatprep.mubr.bf16.mxu0 %v10717_v5 }
 0xade   : > { %13878 = vmatmul.mubr.bf16.gmra.mrb[72].mxu0 %v10726_v18 }
 0xadf   : > { %13881 = vmatprep.mubr.bf16.mxu0 %v10735_v50 }
 0xae6   : > { %13882 = vmatmul.mubr.bf16.gmra.mrb[76].mxu0 %v10744_v16 }
 0xb28   : > { %v10006_v51 = vpop.f32.mrb[40].mxu0 }
 0xb29   : > { %v13827_v14 = vpop.f32.mrb[41].mxu0 }
 0xb59   : > { %v10079_v41 = vpop.f32.mrb[42].mxu0 }
 0xb5a   : > { %v10084_v37 = vmul.f32 %v10083_v34, %v10079_v41  ;;  %v13832_v62 = vpop.f32.mrb[43].mxu0 }
 0xb5c   : > { %v10086_v59 = vmul.f32 %v10084_v37, %v10006_v51  ;;  %v18523_v57 = vrot.slane %v10084_v37, %v19300_v31 }
 0xb5e   : > { %v10087_v12 = vsub.f32 %v10085_v24, %v10086_v59  ;;  %v10094_v22 = vmul.f32 %v18523_v57, %v18248_v23  ;;  %v10092_v54 = vmul.f32 %v18523_v57, %v18251_v40  ;;  %v10095_v2 = vmul.f32 %v18523_v57, %v18254_v17 }
 0xb5f   : > { %v10093_v28 = vmul.f32 %v18523_v57, %v18259_v33  ;;  %v10098_v7 = vmul.f32 %v18523_v57, %v18268_v42  ;;  %v10096_v56 = vmul.f32 %v18523_v57, %v18271_v55  ;;  %v10099_v23 = vmul.f32 %v18523_v57, %v18274_v44 }
 0xb60   : > { %v18534_v1 = vrot.slane %v10087_v12, %v19300_v31  ;;  %v10097_v40 = vmul.f32 %v18523_v57, %v18279_v46  ;;  %v10102_v17 = vmul.f32 %v18523_v57, %v18288_v53  ;;  %v10100_v33 = vmul.f32 %v18523_v57, %v18291_v48 }
 0xb61   : > { %v10103_v49 = vmul.f32 %v18523_v57, %v18294_v45  ;;  %v10101_v4 = vmul.f32 %v18523_v57, %v18299_v25  ;;  %v10106_v15 = vmul.f32 %v18523_v57, %v18308_v8  ;;  %v10104_v36 = vmul.f32 %v18523_v57, %v18311_v21 }
 0xb62   : > { %v18551_v42 = vadd.f32 %v18534_v1, %v10094_v22  ;;  %v18554_v55 = vadd.f32 %v18534_v1, %v10092_v54  ;;  %v18557_v44 = vadd.f32 %v18534_v1, %v10095_v2  ;;  %v18560_v46 = vadd.f32 %v18534_v1, %v10093_v28 }
 0xb63   : > { %v18563_v53 = vadd.f32 %v18534_v1, %v10098_v7  ;;  %v18566_v48 = vadd.f32 %v18534_v1, %v10096_v56  ;;  %v18569_v45 = vadd.f32 %v18534_v1, %v10099_v23  ;;  %v18572_v63 = vadd.f32 %v18534_v1, %v10097_v40 }
 0xb64   : > { %v11888_v27 = vmul.f32 -1.442695, %v18551_v42  ;;  %v11886_v19 = vmul.f32 -1.442695, %v18554_v55  ;;  %v11889_v5 = vmul.f32 -1.442695, %v18557_v44  ;;  %v18578_v43 = vadd.f32 %v18534_v1, %v10102_v17 }
 0xb65   : > { %v11887_v38 = vmul.f32 -1.442695, %v18560_v46  ;;  %v18582_v32 = vadd.f32 %v18534_v1, %v10100_v33  ;;  %v11892_v30 = vmul.f32 -1.442695, %v18563_v53  ;;  %v11890_v18 = vmul.f32 -1.442695, %v18566_v48 }
 0xb66   : > { %15032 = vpow2.f32 %v11888_v27  ;;  %v11893_v61 = vmul.f32 -1.442695, %v18569_v45  ;;  %v18594_v50 = vadd.f32 %v18534_v1, %v10103_v49  ;;  %v18597_v52 = vadd.f32 %v18534_v1, %v10101_v4 }
 0xb67   : > { %15034 = vpow2.f32 %v11886_v19  ;;  %v18600_v25 = vadd.f32 %v18534_v1, %v10106_v15  ;;  %v18603_v8 = vadd.f32 %v18534_v1, %v10104_v36  ;;  %v10107_v16 = vmul.f32 %v18523_v57, %v18314_v13 }
 0xb68   : > { %15036 = vpow2.f32 %v11889_v5  ;;  %v11891_v21 = vmul.f32 -1.442695, %v18572_v63  ;;  %v11896_v51 = vmul.f32 -1.442695, %v18578_v43  ;;  %v10105_v14 = vmul.f32 %v18523_v57, %v18319_v10 }
 0xb69   : > { %15038 = vpow2.f32 %v11887_v38  ;;  %v11894_v34 = vmul.f32 -1.442695, %v18582_v32  ;;  %v11897_v41 = vmul.f32 -1.442695, %v18594_v50  ;;  %v18614_v37 = vadd.f32 %v18534_v1, %v10107_v16 }
 0xb6a   : > { %15040 = vpow2.f32 %v11892_v30  ;;  %v18617_v62 = vadd.f32 %v18534_v1, %v10105_v14  ;;  %v10110_v13 = vmul.f32 %v18523_v57, %v18328_v35  ;;  %v10108_v24 = vmul.f32 %v18523_v57, %v18331_v6 }
 0xb6b   : > { %15042 = vpow2.f32 %v11890_v18  ;;  %v11895_v10 = vmul.f32 -1.442695, %v18597_v52  ;;  %v10111_v59 = vmul.f32 %v18523_v57, %v18334_v58  ;;  %v10109_v31 = vmul.f32 %v18523_v57, %v18339_v26 }
 0xb6c   : > { %15044 = vpow2.f32 %v11893_v61  ;;  %v11900_v12 = vmul.f32 -1.442695, %v18600_v25  ;;  %v18630_v22 = vadd.f32 %v18534_v1, %v10110_v13  ;;  %v18633_v35 = vadd.f32 %v18534_v1, %v10108_v24 }
 0xb6d   : > { %15046 = vpow2.f32 %v11891_v21  ;;  %v18636_v6 = vadd.f32 %v18534_v1, %v10111_v59  ;;  %v18639_v54 = vadd.f32 %v18534_v1, %v10109_v31  ;;  %v10114_v58 = vmul.f32 %v18523_v57, %v18348_v47 }
 0xb6e   : > { %15048 = vpow2.f32 %v11896_v51  ;;  %v10112_v26 = vmul.f32 %v18523_v57, %v18351_v60  ;;  %v10115_v40 = vmul.f32 %v18523_v57, %v18354_v20  ;;  %v18654_v33 = vmul.f32 -1.442695, %v18603_v8 }
 0xb6f   : > { %15050 = vpow2.f32 %v11894_v34  ;;  %v18646_v28 = vadd.f32 %v18534_v1, %v10114_v58  ;;  %v10113_v60 = vmul.f32 %v18523_v57, %v18359_v0  ;;  %v18659_v19 = vmul.f32 -1.442695, %v18614_v37  ;;  %v18693_v58 = vld [vmem:[%s18893_s15] ss:$0 sm:$0xff] }
 0xb70   : > { %v15033_v2 = vpop.eup %15032  ;;  %15052 = vpow2.f32 %v11897_v41  ;;  %v18649_v23 = vadd.f32 %v18534_v1, %v10112_v26  ;;  %v18662_v5 = vadd.f32 %v18534_v1, %v10115_v40  ;;  %v10118_v15 = vmul.f32 %v18523_v57, %v18368_v3 }
 0xb71   : > { %v15035_v7 = vpop.eup %15034  ;;  %v10280_v56 = vadd.f32 1.0, %v15033_v2  ;;  %15054 = vpow2.f32 %v11895_v10  ;;  %v18665_v4 = vadd.f32 %v18534_v1, %v10113_v60  ;;  %v18670_v18 = vmul.f32 -1.442695, %v18617_v62  ;;  %v19301_v10 = vld [vmem:[#allocation49_spill] sm:$0xff] }
 0xb72   : > { %v15037_v17 = vpop.eup %15036  ;;  %v10278_v47 = vadd.f32 1.0, %v15035_v7  ;;  %15056 = vpow2.f32 %v11900_v12  ;;  %v10116_v36 = vmul.f32 %v18523_v57, %v18371_v9  ;;  %v18675_v21 = vmul.f32 -1.442695, %v18630_v22 }
 0xb73   : > { %v15039_v49 = vpop.eup %15038  ;;  %15058 = vrcp.f32 %v10280_v56  ;;  %v10281_v27 = vadd.f32 1.0, %v15037_v17  ;;  %v18678_v51 = vadd.f32 %v18534_v1, %v10118_v15  ;;  %v10119_v41 = vmul.f32 %v18523_v57, %v18381_v11 }
 0xb74   : > { %v15041_v38 = vpop.eup %15040  ;;  %15060 = vrcp.f32 %v10278_v47  ;;  %v10279_v20 = vadd.f32 1.0, %v15039_v49  ;;  %v18681_v34 = vadd.f32 %v18534_v1, %v10116_v36  ;;  %v18686_v24 = vmul.f32 -1.442695, %v18633_v35 }
 0xb75   : > { %v15043_v30 = vpop.eup %15042  ;;  %15062 = vrcp.f32 %v10281_v27  ;;  %v10284_v0 = vadd.f32 1.0, %v15041_v38  ;;  %v10117_v59 = vmul.f32 %v18523_v57, %v19301_v10  ;;  %v18696_v11 = vmul.f32 -1.442695, %v18636_v6 }
 0xb76   : > { %v15045_v61 = vpop.eup %15044  ;;  %15064 = vrcp.f32 %v10279_v20  ;;  %v10282_v16 = vadd.f32 1.0, %v15043_v30  ;;  %v18699_v2 = vadd.f32 %v18534_v1, %v10119_v41  ;;  %v18702_v17 = vmul.f32 -1.442695, %v18639_v54  ;;  %v19302_v41 = vld [vmem:[#allocation18_spill] sm:$0xff] }
 0xb77   : > { %v15047_v14 = vpop.eup %15046  ;;  %15066 = vrcp.f32 %v10284_v0  ;;  %v10285_v3 = vadd.f32 1.0, %v15045_v61  ;;  %v18705_v47 = vadd.f32 %v18534_v1, %v10117_v59  ;;  %v18708_v38 = vmul.f32 -1.442695, %v18646_v28 }
 0xb78   : > { %v15049_v13 = vpop.eup %15048  ;;  %15068 = vrcp.f32 %v10282_v16  ;;  %v10283_v9 = vadd.f32 1.0, %v15047_v14  ;;  %v18711_v20 = vmul.f32 -1.442695, %v18649_v23  ;;  %v18715_v61 = vmul.f32 -1.442695, %v18662_v5 }
 0xb79   : > { %v15051_v31 = vpop.eup %15050  ;;  %v13851_v12 = vpop.f32.mrb[44].mxu0  ;;  %15070 = vrcp.f32 %v10285_v3  ;;  %v10288_v26 = vadd.f32 1.0, %v15049_v13  ;;  %v10122_v13 = vmul.f32 %v18523_v57, %v19302_v41 }
 0xb7a   : > { %v15053_v7 = vpop.eup %15052  ;;  %v10845_v56 = vpop.f32.mrb[45].mxu0  ;;  %15072 = vrcp.f32 %v10283_v9  ;;  %v10286_v40 = vadd.f32 1.0, %v15051_v31  ;;  %v10854_v30 = vadd.f32 %v13851_v12, %v18693_v58  ;;  %v19303_v31 = vld [vmem:[#allocation17_spill] sm:$0xff] }
 0xb7b   : > { %v15055_v60 = vpop.eup %15054  ;;  %v13852_v49 = vpop.f32.mrb[46].mxu0  ;;  %15074 = vrcp.f32 %v10288_v26  ;;  %v10289_v27 = vadd.f32 1.0, %v15053_v7  ;;  %v10846_v14 = vadd.f32 %v18693_v58, %v10845_v56  ;;  %v10120_v12 = vmul.f32 %v18523_v57, %v19303_v31 }
 0xb7c   : > { %v15057_v15 = vpop.eup %15056  ;;  %v10848_v0 = vpop.f32.mrb[47].mxu0  ;;  %15076 = vrcp.f32 %v10286_v40  ;;  %v10287_v36 = vadd.f32 1.0, %v15055_v60  ;;  %v10857_v59 = vadd.f32 %v13852_v49, %v18693_v58  ;;  %v18728_v40 = vadd.f32 %v18534_v1, %v10122_v13 }
 0xb7d   : > { %v15059_v16 = vpop.eup %15058  ;;  %15078 = vrcp.f32 %v10289_v27  ;;  %v10292_v3 = vadd.f32 1.0, %v15057_v15  ;;  %v10849_v56 = vadd.f32 %v18693_v58, %v10848_v0  ;;  %v18733_v49 = vadd.f32 %v18534_v1, %v10120_v12  ;;  %v19304_v0 = vld [vmem:[#allocation23_spill] sm:$0xff] }
 0xb7e   : > { %v15061_v9 = vpop.eup %15060  ;;  %v10388_v10 = vmul.f32 %v15059_v16, %v18551_v42  ;;  %15080 = vrcp.f32 %v10287_v36 }
 0xb7f   : > { %v15063_v26 = vpop.eup %15062  ;;  %v10386_v7 = vmul.f32 %v15061_v9, %v18554_v55  ;;  %15082 = vrcp.f32 %v10292_v3  ;;  %v10123_v3 = vmul.f32 %v18523_v57, %v19304_v0 }
 0xb80   : > { %v15065_v60 = vpop.eup %15064  ;;  %v10990_v27 = vadd.f32 %v10854_v30, %v10388_v10  ;;  %v10389_v42 = vmul.f32 %v15063_v26, %v18557_v44  ;;  %15084 = vpow2.f32 %v18654_v33 }
 0xb81   : > { %v15067_v15 = vpop.eup %15066  ;;  %v10988_v36 = vadd.f32 %v10846_v14, %v10386_v7  ;;  %v10387_v55 = vmul.f32 %v15065_v60, %v18560_v46  ;;  %v13855_v16 = vpop.f32.mrb[48].mxu0  ;;  %15086 = vpow2.f32 %v18659_v19 }
 0xb82   : > { %v15069_v41 = vpop.eup %15068  ;;  %v10991_v13 = vadd.f32 %v10857_v59, %v10389_v42  ;;  %v10392_v30 = vmul.f32 %v15067_v15, %v18563_v53  ;;  %v10870_v44 = vadd.f32 %v13855_v16, %v18693_v58  ;;  %v10861_v33 = vpop.f32.mrb[49].mxu0  ;;  %15088 = vpow2.f32 %v18670_v18 }
 0xb83   : > { %v15071_v9 = vpop.eup %15070  ;;  %v10989_v46 = vadd.f32 %v10849_v56, %v10387_v55  ;;  %v10390_v19 = vmul.f32 %v15069_v41, %v18566_v48  ;;  %v10862_v14 = vadd.f32 %v18693_v58, %v10861_v33  ;;  %v13856_v10 = vpop.f32.mrb[50].mxu0  ;;  %15090 = vpow2.f32 %v18675_v21 }
 0xb84   : > { %v15073_v53 = vpop.eup %15072  ;;  %v12068_v59 = vpack.c.bf16 %v10991_v13, %v10990_v27  ;;  %v10994_v31 = vadd.f32 %v10870_v44, %v10392_v30  ;;  %v10393_v18 = vmul.f32 %v15071_v9, %v18569_v45  ;;  %v10873_v12 = vadd.f32 %v13856_v10, %v18693_v58  ;;  %v10864_v26 = vpop.f32.mrb[51].mxu0  ;;  %v19305_v27 = vld [vmem:[#allocation21_spill] sm:$0xff] }
 0xb85   : > { %v15075_v7 = vpop.eup %15074  ;;  %v12063_v60 = vpack.c.bf16 %v10989_v46, %v10988_v36  ;;  %v10992_v56 = vadd.f32 %v10862_v14, %v10390_v19  ;;  %v10391_v48 = vmul.f32 %v15073_v53, %v18572_v63  ;;  %v10865_v42 = vadd.f32 %v18693_v58, %v10864_v26 }
 0xb86   : > { %v15077_v15 = vpop.eup %15076  ;;  %12150 = vst [vmem:[%s18745_s26 + $0x8] sm:$0xff] %v12068_v59   ;;  %v10995_v55 = vadd.f32 %v10873_v12, %v10393_v18  ;;  %15092 = vpow2.f32 %v18686_v24  ;;  %v11907_v21 = vmul.f32 -1.442695, %v18665_v4  ;;  %v10121_v45 = vmul.f32 %v18523_v57, %v19305_v27 }
 0xb87   : > { %v15079_v16 = vpop.eup %15078  ;;  %12064 = vst [vmem:[%s18745_s26] sm:$0xff] %v12063_v60   ;;  %v10993_v0 = vadd.f32 %v10865_v42, %v10391_v48  ;;  %15094 = vpow2.f32 %v18696_v11  ;;  %v11912_v63 = vmul.f32 -1.442695, %v18678_v51  ;;  %v18763_v36 = vadd.f32 %v18534_v1, %v10123_v3  ;;  %v19306_v42 = vld [vmem:[#allocation27_spill] sm:$0xff] }
 0xb88   : > { %v15081_v41 = vpop.eup %15080  ;;  %v12078_v13 = vpack.c.bf16 %v10995_v55, %v10994_v31  ;;  %15096 = vpow2.f32 %v18702_v17  ;;  %v11910_v24 = vmul.f32 -1.442695, %v18681_v34  ;;  %v18768_v30 = vadd.f32 %v18534_v1, %v10121_v45 }
 0xb89   : > { %v15083_v44 = vpop.eup %15082  ;;  %v12073_v33 = vpack.c.bf16 %v10993_v0, %v10992_v56  ;;  %v10396_v9 = vmul.f32 %v15075_v7, %v18578_v43  ;;  %v13859_v11 = vpop.f32.mrb[52].mxu0  ;;  %v10394_v46 = vmul.f32 %v15077_v15, %v18582_v32  ;;  %15098 = vpow2.f32 %v18708_v38 }
 0xb8a   : > { %v15085_v3 = vpop.eup %15084  ;;  %12152 = vst [vmem:[%s18745_s26 + $0x18] sm:$0xff] %v12078_v13   ;;  %v10886_v19 = vadd.f32 %v13859_v11, %v18693_v58  ;;  %v10877_v17 = vpop.f32.mrb[53].mxu0  ;;  %v10397_v14 = vmul.f32 %v15079_v16, %v18594_v50  ;;  %v10395_v10 = vmul.f32 %v15081_v41, %v18597_v52  ;;  %15100 = vpow2.f32 %v18711_v20 }
 0xb8b   : > { %v15087_v53 = vpop.eup %15086  ;;  %12151 = vst [vmem:[%s18745_s26 + $0x10] sm:$0xff] %v12073_v33   ;;  %v10878_v43 = vadd.f32 %v18693_v58, %v10877_v17  ;;  %v13860_v59 = vpop.f32.mrb[54].mxu0  ;;  %v10290_v31 = vadd.f32 1.0, %v15085_v3  ;;  %15102 = vpow2.f32 %v18715_v61  ;;  %v10126_v32 = vmul.f32 %v18523_v57, %v18411_v29 }
 0xb8c   : > { %v15089_v38 = vpop.eup %15088  ;;  %v10998_v18 = vadd.f32 %v10886_v19, %v10396_v9  ;;  %v10889_v12 = vadd.f32 %v13860_v59, %v18693_v58  ;;  %v10880_v50 = vpop.f32.mrb[55].mxu0  ;;  %v10293_v26 = vadd.f32 1.0, %v15087_v53  ;;  %15104 = vpow2.f32 %v11907_v21  ;;  %v19307_v53 = vld [vmem:[#allocation26_spill] sm:$0xff] }
 0xb8d   : > { %v15091_v52 = vpop.eup %15090  ;;  %v10996_v20 = vadd.f32 %v10878_v43, %v10394_v46  ;;  %v10881_v7 = vadd.f32 %v18693_v58, %v10880_v50  ;;  %15106 = vrcp.f32 %v10290_v31  ;;  %v10291_v60 = vadd.f32 1.0, %v15089_v38 }
 0xb8e   : > { %v10999_v56 = vadd.f32 %v10889_v12, %v10397_v14  ;;  %15108 = vrcp.f32 %v10293_v26  ;;  %v10296_v48 = vadd.f32 1.0, %v15091_v52  ;;  %v18786_v61 = vadd.f32 %v18534_v1, %v10126_v32 }
 0xb8f   : > { %v10997_v29 = vadd.f32 %v10881_v7, %v10395_v10  ;;  %15110 = vrcp.f32 %v10291_v60  ;;  %v10124_v15 = vmul.f32 %v18523_v57, %v19306_v42  ;;  %v10400_v27 = vmul.f32 %v15083_v44, %v18600_v25 }
 0xb90   : > { %v15093_v55 = vpop.eup %15092  ;;  %v12088_v21 = vpack.c.bf16 %v10999_v56, %v10998_v18  ;;  %15112 = vrcp.f32 %v10296_v48  ;;  %v10127_v45 = vmul.f32 %v18523_v57, %v18419_v39  ;;  %v10125_v43 = vmul.f32 %v18523_v57, %v19307_v53 }
 0xb91   : > { %v15095_v16 = vpop.eup %15094  ;;  %v12083_v0 = vpack.c.bf16 %v10997_v29, %v10996_v20  ;;  %v13863_v41 = vpop.f32.mrb[56].mxu0  ;;  %v10294_v13 = vadd.f32 1.0, %v15093_v55  ;;  %15114 = vpow2.f32 %v11912_v63  ;;  %v18794_v33 = vadd.f32 %v18534_v1, %v10124_v15 }
 0xb92   : > { %v15097_v9 = vpop.eup %15096  ;;  %12154 = vst [vmem:[%s18745_s26 + $0x28] sm:$0xff] %v12088_v21   ;;  %v10902_v11 = vadd.f32 %v13863_v41, %v18693_v58  ;;  %v10893_v46 = vpop.f32.mrb[57].mxu0  ;;  %v10297_v3 = vadd.f32 1.0, %v15095_v16  ;;  %15116 = vpow2.f32 %v11910_v24  ;;  %v18799_v25 = vadd.f32 %v18534_v1, %v10127_v45 }
 0xb93   : > { %v15099_v44 = vpop.eup %15098  ;;  %12153 = vst [vmem:[%s18745_s26 + $0x20] sm:$0xff] %v12083_v0   ;;  %v13864_v39 = vpop.f32.mrb[58].mxu0  ;;  %15118 = vrcp.f32 %v10294_v13  ;;  %v10295_v19 = vadd.f32 1.0, %v15097_v9  ;;  %v11913_v24 = vmul.f32 -1.442695, %v18699_v2  ;;  %v10894_v38 = vadd.f32 %v18693_v58, %v10893_v46 }
 0xb94   : > { %v15101_v17 = vpop.eup %15100  ;;  %v11002_v63 = vadd.f32 %v10902_v11, %v10400_v27  ;;  %v10896_v14 = vpop.f32.mrb[59].mxu0  ;;  %15120 = vrcp.f32 %v10297_v3  ;;  %v10300_v10 = vadd.f32 1.0, %v15099_v44  ;;  %v18807_v12 = vadd.f32 %v18534_v1, %v10125_v43 }
 0xb95   : > { %v15103_v59 = vpop.eup %15102  ;;  %15122 = vrcp.f32 %v10295_v19  ;;  %v10298_v31 = vadd.f32 1.0, %v15101_v17  ;;  %v10905_v26 = vadd.f32 %v13864_v39, %v18693_v58  ;;  %v11911_v57 = vmul.f32 -1.442695, %v18705_v47 }
 0xb96   : > { %v15105_v32 = vpop.eup %15104  ;;  %15124 = vrcp.f32 %v10300_v10  ;;  %v10301_v18 = vadd.f32 1.0, %v15103_v59  ;;  %v10897_v60 = vadd.f32 %v18693_v58, %v10896_v14  ;;  %v11916_v56 = vmul.f32 -1.442695, %v18728_v40 }
 0xb97   : > { %v15107_v50 = vpop.eup %15106  ;;  %15126 = vrcp.f32 %v10298_v31  ;;  %v10299_v52 = vadd.f32 1.0, %v15105_v32  ;;  %v11914_v42 = vmul.f32 -1.442695, %v18733_v49  ;;  %v11917_v15 = vmul.f32 -1.442695, %v18763_v36 }
 0xb98   : > { %v15109_v20 = vpop.eup %15108  ;;  %v10398_v7 = vmul.f32 %v15107_v50, %v18603_v8  ;;  %15128 = vrcp.f32 %v10301_v18  ;;  %v11918_v18 = vmul.f32 -1.442695, %v18794_v33 }
 0xb99   : > { %v15111_v48 = vpop.eup %15110  ;;  %v10401_v29 = vmul.f32 %v15109_v20, %v18614_v37  ;;  %v13867_v1 = vpop.f32.mrb[60].mxu0  ;;  %15130 = vrcp.f32 %v10299_v52  ;;  %v11915_v37 = vmul.f32 -1.442695, %v18768_v30 }
 0xb9a   : > { %v15113_v55 = vpop.eup %15112  ;;  %v11000_v21 = vadd.f32 %v10894_v38, %v10398_v7  ;;  %v10399_v27 = vmul.f32 %v15111_v48, %v18617_v62  ;;  %v10918_v8 = vadd.f32 %v13867_v1, %v18693_v58  ;;  %v10909_v45 = vpop.f32.mrb[61].mxu0  ;;  %15132 = vpow2.f32 %v11913_v24 }
 0xb9b   : > { %v15115_v16 = vpop.eup %15114  ;;  %v11003_v0 = vadd.f32 %v10905_v26, %v10401_v29  ;;  %v10404_v41 = vmul.f32 %v15113_v55, %v18630_v22  ;;  %v13868_v13 = vpop.f32.mrb[62].mxu0  ;;  %15134 = vpow2.f32 %v11911_v57  ;;  %v10910_v46 = vadd.f32 %v18693_v58, %v10909_v45 }
 0xb9c   : > { %v15117_v9 = vpop.eup %15116  ;;  %v11001_v11 = vadd.f32 %v10897_v60, %v10399_v27  ;;  %v10912_v3 = vpop.f32.mrb[63].mxu0  ;;  %v10304_v44 = vadd.f32 1.0, %v15115_v16  ;;  %15136 = vpow2.f32 %v11916_v56  ;;  %v10921_v17 = vadd.f32 %v13868_v13, %v18693_v58 }
 0xb9d   : > { %v15119_v62 = vpop.eup %15118  ;;  %v12098_v39 = vpack.c.bf16 %v11003_v0, %v11002_v63  ;;  %v11006_v19 = vadd.f32 %v10918_v8, %v10404_v41  ;;  %v10302_v14 = vadd.f32 1.0, %v15117_v9  ;;  %v10913_v43 = vadd.f32 %v18693_v58, %v10912_v3 }
 0xb9e   : > { %v15121_v22 = vpop.eup %15120  ;;  %v12093_v10 = vpack.c.bf16 %v11001_v11, %v11000_v21  ;;  %v10402_v53 = vmul.f32 %v15119_v62, %v18633_v35  ;;  %15138 = vrcp.f32 %v10304_v44  ;;  %v11920_v24 = vmul.f32 -1.442695, %v18786_v61 }
 0xb9f   : > { %v15123_v59 = vpop.eup %15122  ;;  %12156 = vst [vmem:[%s18745_s26 + $0x38] sm:$0xff] %v12098_v39   ;;  %v10405_v31 = vmul.f32 %v15121_v22, %v18636_v6  ;;  %15140 = vrcp.f32 %v10302_v14  ;;  %v11921_v57 = vmul.f32 -1.442695, %v18799_v25 }
 0xba0   : > { %v15125_v32 = vpop.eup %15124  ;;  %12155 = vst [vmem:[%s18745_s26 + $0x30] sm:$0xff] %v12093_v10   ;;  %v11004_v63 = vadd.f32 %v10910_v46, %v10402_v53  ;;  %v10403_v38 = vmul.f32 %v15123_v59, %v18639_v54  ;;  %15142 = vpow2.f32 %v11914_v42 }
 0xba1   : > { %v15127_v50 = vpop.eup %15126  ;;  %v11007_v35 = vadd.f32 %v10921_v17, %v10405_v31  ;;  %v10408_v26 = vmul.f32 %v15125_v32, %v18646_v28  ;;  %v13871_v52 = vpop.f32.mrb[64].mxu0  ;;  %15144 = vpow2.f32 %v11917_v15 }
 0xba2   : > { %v15129_v6 = vpop.eup %15128  ;;  %v11005_v20 = vadd.f32 %v10913_v43, %v10403_v38  ;;  %v10934_v7 = vadd.f32 %v13871_v52, %v18693_v58  ;;  %v10406_v60 = vmul.f32 %v15127_v50, %v18649_v23  ;;  %v10925_v56 = vpop.f32.mrb[65].mxu0  ;;  %15146 = vpow2.f32 %v11915_v37 }
 0xba3   : > { %v15131_v54 = vpop.eup %15130  ;;  %v12108_v48 = vpack.c.bf16 %v11007_v35, %v11006_v19  ;;  %v10926_v29 = vadd.f32 %v18693_v58, %v10925_v56  ;;  %v10409_v1 = vmul.f32 %v15129_v6, %v18662_v5  ;;  %v13872_v28 = vpop.f32.mrb[66].mxu0  ;;  %15148 = vpow2.f32 %v11920_v24 }
 0xba4   : > { %v15133_v42 = vpop.eup %15132  ;;  %v12103_v15 = vpack.c.bf16 %v11005_v20, %v11004_v63  ;;  %v11010_v55 = vadd.f32 %v10934_v7, %v10408_v26  ;;  %v10937_v21 = vadd.f32 %v13872_v28, %v18693_v58  ;;  %v10407_v27 = vmul.f32 %v15131_v54, %v18665_v4  ;;  %v10928_v23 = vpop.f32.mrb[67].mxu0 }
 0xba5   : > { %v15135_v8 = vpop.eup %15134  ;;  %12158 = vst [vmem:[%s18745_s26 + $0x48] sm:$0xff] %v12108_v48   ;;  %v11008_v45 = vadd.f32 %v10926_v29, %v10406_v60  ;;  %v10929_v16 = vadd.f32 %v18693_v58, %v10928_v23  ;;  %v10305_v0 = vadd.f32 1.0, %v15133_v42  ;;  %15150 = vpow2.f32 %v11918_v18 }
 0xba6   : > { %v15137_v41 = vpop.eup %15136  ;;  %12157 = vst [vmem:[%s18745_s26 + $0x40] sm:$0xff] %v12103_v15   ;;  %v11011_v5 = vadd.f32 %v10937_v21, %v10409_v1  ;;  %v10303_v13 = vadd.f32 1.0, %v15135_v8  ;;  %15152 = vpow2.f32 %v11921_v57  ;;  %v11919_v37 = vmul.f32 -1.442695, %v18807_v12 }
 0xba7   : > { %v11009_v9 = vadd.f32 %v10929_v16, %v10407_v27  ;;  %15154 = vrcp.f32 %v10305_v0  ;;  %v10308_v4 = vadd.f32 1.0, %v15137_v41 }
 0xba8   : > { %v15139_v11 = vpop.eup %15138  ;;  %v12118_v46 = vpack.c.bf16 %v11011_v5, %v11010_v55  ;;  %15156 = vrcp.f32 %v10303_v13 }
 0xba9   : > { %v15141_v3 = vpop.eup %15140  ;;  %v12113_v44 = vpack.c.bf16 %v11009_v9, %v11008_v45  ;;  %v13875_v62 = vpop.f32.mrb[68].mxu0  ;;  %15158 = vrcp.f32 %v10308_v4  ;;  %v10412_v19 = vmul.f32 %v15139_v11, %v18678_v51 }
 0xbaa   : > { %v15143_v39 = vpop.eup %15142  ;;  %12160 = vst [vmem:[%s18745_s26 + $0x58] sm:$0xff] %v12118_v46   ;;  %v10950_v17 = vadd.f32 %v13875_v62, %v18693_v58  ;;  %v10941_v14 = vpop.f32.mrb[69].mxu0  ;;  %15160 = vpow2.f32 %v11919_v37  ;;  %v10410_v10 = vmul.f32 %v15141_v3, %v18681_v34 }
 0xbab   : > { %v15145_v22 = vpop.eup %15144  ;;  %12159 = vst [vmem:[%s18745_s26 + $0x50] sm:$0xff] %v12113_v44   ;;  %v10942_v53 = vadd.f32 %v18693_v58, %v10941_v14  ;;  %v13876_v43 = vpop.f32.mrb[70].mxu0  ;;  %v10306_v59 = vadd.f32 1.0, %v15143_v39 }
 0xbac   : > { %v15147_v31 = vpop.eup %15146  ;;  %v11014_v24 = vadd.f32 %v10950_v17, %v10412_v19  ;;  %v10944_v32 = vpop.f32.mrb[71].mxu0  ;;  %v10309_v63 = vadd.f32 1.0, %v15145_v22  ;;  %v10953_v52 = vadd.f32 %v13876_v43, %v18693_v58 }
 0xbad   : > { %v15149_v38 = vpop.eup %15148  ;;  %v11012_v18 = vadd.f32 %v10942_v53, %v10410_v10  ;;  %15162 = vrcp.f32 %v10306_v59  ;;  %v10307_v51 = vadd.f32 1.0, %v15147_v31  ;;  %v10945_v6 = vadd.f32 %v18693_v58, %v10944_v32 }
 0xbae   : > { %15164 = vrcp.f32 %v10309_v63  ;;  %v10312_v50 = vadd.f32 1.0, %v15149_v38 }
 0xbaf   : > { %v15151_v35 = vpop.eup %15150  ;;  %15166 = vrcp.f32 %v10307_v51 }
 0xbb0   : > { %v15153_v26 = vpop.eup %15152  ;;  %15168 = vrcp.f32 %v10312_v50  ;;  %v10310_v34 = vadd.f32 1.0, %v15151_v35 }
 0xbb1   : > { %v15155_v57 = vpop.eup %15154  ;;  %v13879_v20 = vpop.f32.mrb[72].mxu0  ;;  %v10313_v7 = vadd.f32 1.0, %v15153_v26 }
 0xbb2   : > { %v15157_v60 = vpop.eup %15156  ;;  %v10413_v56 = vmul.f32 %v15155_v57, %v18699_v2  ;;  %v10966_v54 = vadd.f32 %v13879_v20, %v18693_v58  ;;  %v10957_v48 = vpop.f32.mrb[73].mxu0  ;;  %15170 = vrcp.f32 %v10310_v34 }
 0xbb3   : > { %v15159_v29 = vpop.eup %15158  ;;  %v10411_v1 = vmul.f32 %v15157_v60, %v18705_v47  ;;  %v13880_v28 = vpop.f32.mrb[74].mxu0  ;;  %15172 = vrcp.f32 %v10313_v7  ;;  %v10958_v45 = vadd.f32 %v18693_v58, %v10957_v48 }
 0xbb4   : > { %v15161_v42 = vpop.eup %15160  ;;  %v11015_v15 = vadd.f32 %v10953_v52, %v10413_v56  ;;  %v10416_v55 = vmul.f32 %v15159_v29, %v18728_v40  ;;  %v10960_v21 = vpop.f32.mrb[75].mxu0  ;;  %v10969_v41 = vadd.f32 %v13880_v28, %v18693_v58 }
 0xbb5   : > { %v11013_v27 = vadd.f32 %v10945_v6, %v10411_v1  ;;  %v10311_v23 = vadd.f32 1.0, %v15161_v42  ;;  %v10961_v13 = vadd.f32 %v18693_v58, %v10960_v21 }
 0xbb6   : > { %v12128_v8 = vpack.c.bf16 %v11015_v15, %v11014_v24  ;;  %v11018_v2 = vadd.f32 %v10966_v54, %v10416_v55 }
 0xbb7   : > { %v15163_v16 = vpop.eup %15162  ;;  %v12123_v0 = vpack.c.bf16 %v11013_v27, %v11012_v18  ;;  %15174 = vrcp.f32 %v10311_v23 }
 0xbb8   : > { %v15165_v47 = vpop.eup %15164  ;;  %12162 = vst [vmem:[%s18745_s26 + $0x68] sm:$0xff] %v12128_v8   ;;  %v10414_v5 = vmul.f32 %v15163_v16, %v18733_v49 }
 0xbb9   : > { %v15167_v40 = vpop.eup %15166  ;;  %12161 = vst [vmem:[%s18745_s26 + $0x60] sm:$0xff] %v12123_v0   ;;  %v10417_v37 = vmul.f32 %v15165_v47, %v18763_v36  ;;  %v13883_v9 = vpop.f32.mrb[76].mxu0 }
 0xbba   : > { %v15169_v4 = vpop.eup %15168  ;;  %v11016_v11 = vadd.f32 %v10958_v45, %v10414_v5  ;;  %v10415_v46 = vmul.f32 %v15167_v40, %v18768_v30  ;;  %v10982_v3 = vadd.f32 %v13883_v9, %v18693_v58  ;;  %v10973_v44 = vpop.f32.mrb[77].mxu0 }
 0xbbb   : > { %v11019_v62 = vadd.f32 %v10969_v41, %v10417_v37  ;;  %v10420_v39 = vmul.f32 %v15169_v4, %v18786_v61  ;;  %v10974_v49 = vadd.f32 %v18693_v58, %v10973_v44  ;;  %v13884_v19 = vpop.f32.mrb[78].mxu0 }
 0xbbc   : > { %v15171_v17 = vpop.eup %15170  ;;  %v11017_v14 = vadd.f32 %v10961_v13, %v10415_v46  ;;  %v10985_v36 = vadd.f32 %v13884_v19, %v18693_v58  ;;  %v10976_v22 = vpop.f32.mrb[79].mxu0 }
 0xbbd   : > { %v15173_v10 = vpop.eup %15172  ;;  %v12138_v53 = vpack.c.bf16 %v11019_v62, %v11018_v2  ;;  %v11022_v30 = vadd.f32 %v10982_v3, %v10420_v39  ;;  %v10418_v43 = vmul.f32 %v15171_v17, %v18794_v33  ;;  %v10977_v32 = vadd.f32 %v18693_v58, %v10976_v22 }
 0xbbe   : > { %v12133_v59 = vpack.c.bf16 %v11017_v14, %v11016_v11  ;;  %v10421_v31 = vmul.f32 %v15173_v10, %v18799_v25 }
 0xbbf   : > { %12164 = vst [vmem:[%s18745_s26 + $0x78] sm:$0xff] %v12138_v53   ;;  %v11020_v61 = vadd.f32 %v10974_v49, %v10418_v43 }
 0xbc0   : > { %12163 = vst [vmem:[%s18745_s26 + $0x70] sm:$0xff] %v12133_v59   ;;  %v11023_v24 = vadd.f32 %v10985_v36, %v10421_v31 }
 0xbc1   : > { %v15175_v63 = vpop.eup %15174 }
 0xbc2   : > { %v12148_v38 = vpack.c.bf16 %v11023_v24, %v11022_v30  ;;  %v10419_v18 = vmul.f32 %v15175_v63, %v18807_v12 }
 0xbc4   : > { %12166 = vst [vmem:[%s18745_s26 + $0x88] sm:$0xff] %v12148_v38   ;;  %v11021_v51 = vadd.f32 %v10977_v32, %v10419_v18 }
 0xbc6   : > { %v12143_v50 = vpack.c.bf16 %v11021_v51, %v11020_v61 }
 0xbc8   : > { %12165 = vst [vmem:[%s18745_s26 + $0x80] sm:$0xff] %v12143_v50  }
 0xbc9 PF: > { %s26_s21 = sadd.s32 1, %s15212_s21  }
 0xbca   : > { %p23_p4 = scmp.ge.s32.totalorder %s26_s21, 4  }
 0xbcc   :  { %25 = sbr.rel (!%p23_p4) target bundleno = 2 (0x2), region = 136 }

</bundles_post_ra>
